<compile_context>
chip_gen: v5e
topology: v5e:2x2
jax: 0.10.0
libtpu: 0.0.40
codegen_flags: <defaults>
</compile_context>

<pallas_src>
import functools

import jax
import jax.numpy as jnp
from jax import lax
from jax.experimental import pallas as pl
from jax.experimental.pallas import tpu as pltpu

_K = 11            # depthwise kernel: Conv2d(dim, dim, 11, padding=5, groups=dim)
_PAD = _K // 2
_EPS = 1e-6


def _gelu_exact(x):
    # torch.nn.GELU() default (approximate='none'): 0.5 * x * (1 + erf(x / sqrt(2))).
    # TODO(synk): lax.erf has no Pallas-TPU lowering; erf uses the Abramowitz&Stegun
    # 7.1.26 rational approximation (max abs err 1.5e-7).  The exp() already runs on
    # the EUP; the reciprocal is kept exact because GELU is only a few % of the VALU
    # work vs the 121-tap DW loop and the self-check tolerance is tight at dim=4.
    p = 0.3275911
    a1, a2, a3, a4, a5 = 0.254829592, -0.284496736, 1.421413741, -1.453152027, 1.061405429
    z = jnp.abs(x) * 0.7071067811865476
    t = 1.0 / (1.0 + p * z)
    poly = ((((a5 * t + a4) * t + a3) * t + a2) * t + a1) * t
    erf = 1.0 - poly * jnp.exp(-z * z)
    erf = jnp.where(x >= 0, erf, -erf)
    return 0.5 * x * (1.0 + erf)


@functools.partial(jax.jit, static_argnames=("tile_w", "matmul_dtype"))
def conv_mod_pallas(a, v, params, *, tile_w=64, matmul_dtype=jnp.float32):
    """a: (2*dim, H, W) f32, v: (dim, H, W) f32 -> (1, dim, H, W) f32 (like the module)."""
    f32 = jnp.float32
    mmdt = matmul_dtype
    C2, H, W = a.shape
    C = v.shape[0]
    assert C2 == 2 * C and v.shape[1:] == (H, W)

    # lane-dense (zero-padded) channel counts; padded channels provably contribute 0.
    Cp = -(-C // 128) * 128
    C2p = -(-C2 // 128) * 128

    # ---- column tiling: Wt output columns per grid step (multiple of 8); each step
    # consumes a Wslab = Wt + 2*PAD (sublane-rounded) halo window of `a`.
    Wt = max(8, (min(tile_w, W) // 8) * 8)
    if -(-W // Wt) < 2 and W >= 32:
        # force nt >= 2 so both v7x TensorCores get work; on 1-TC chips pass a large
        # tile_w explicitly to amortise the 10-column halo instead.
        Wt = max(8, ((-(-W // 2)) + 7) // 8 * 8)
    nt = -(-W // Wt)
    Wslab = -(-(Wt + 2 * _PAD) // 8) * 8
    Wa = (nt - 1) * Wt + Wslab                     # padded width of the HBM `a` array

    # matmul row-blocking (target M ~ 256 so the 256-wide v6e/v7x MXU stays fed).
    RB_A = max(1, min(H, 256 // Wslab))
    RB_V = max(1, min(H, 256 // Wt))

    # depthwise horizontal-offset group size, chosen so the tap accumulators fit vregs.
    slab_vregs = (Wslab // 8) * (Cp // 128)
    out_vregs = (Wt // 8) * (Cp // 128)
    OJG = 2 if (3 * slab_vregs + out_vregs + 6) <= 56 else 1

    def kernel(a_hbm, v_ref, gna_ref, bna_ref, gnv_ref, bnv_ref,
               w1t_ref, b1_ref, wdw_ref, bdw_ref, wvt_ref, bv_ref,
               wpt_ref, bp_ref, out_ref, aslab_ref, dw_ref, dma_sem):
        t = pl.program_id(0)

        # ---- 1. DMA this tile's halo window of `a` (HBM -> VMEM).  Overlapping
        # windows can't be expressed with a blocked index_map, so the slab is fetched
        # manually; offsets and sizes are multiples of (8, 128) so the copy is aligned.
        # TODO(synk): double-buffer this copy across grid steps to hide its latency.
        col0 = pl.multiple_of(t * Wt, 8)
        cp = pltpu.make_async_copy(a_hbm.at[:, pl.ds(col0, Wslab), :], aslab_ref, dma_sem)
        cp.start()
        cp.wait()

        # Mask of slab columns that lie inside the image: this is the depthwise conv's
        # zero padding in W (edge-tile halos / right-edge round-up columns -> 0).
        j = lax.broadcasted_iota(jnp.int32, (Wslab, Cp), 0)
        lo = _PAD - t * Wt
        colmask = ((j >= lo) & (j < lo + W)).astype(f32)

        # ---- 2. LayerNorm (channels_first LN on the 3-D CHW input => stats over H per
        # (channel, column); affine per channel).  One pass (sum / sum-sq) + rsqrt,
        # folded into a per-column scale/shift.  fori_loop keeps live ranges bounded.
        def ln_scale_shift(x_ref, width, nch, g_ref, b_ref):
            def body(h, c):
                s1, s2 = c
                row = x_ref[h, :, :]
                return s1 + row, s2 + row * row
            s1, s2 = lax.fori_loop(
                0, H, body,
                (jnp.zeros((width, nch), f32), jnp.zeros((width, nch), f32)))
            u = s1 * (1.0 / H)
            # clamp: guards the one-pass E[x^2]-E[x]^2 formula against tiny negatives.
            var = jnp.maximum(s2 * (1.0 / H) - u * u, 0.0)
            inv = lax.rsqrt(var + _EPS)
            scale = g_ref[...] * inv                     # (1,nch) * (width,nch)
            shift = b_ref[...] - u * scale
            return scale, shift

        scale_a, shift_a = ln_scale_shift(aslab_ref, Wslab, C2p, gna_ref, bna_ref)
        scale_v, shift_v = ln_scale_shift(v_ref, Wt, Cp, gnv_ref, bnv_ref)

        # helper: uniform row-block loop (fori_loop for the full blocks + static tail).
        def for_row_blocks(rb, fn):
            nfull = H // rb
            if nfull > 0:
                def body(i, c):
                    fn(i * rb, rb)
                    return c
                lax.fori_loop(0, nfull, body, 0)
            if H - nfull * rb > 0:
                fn(nfull * rb, H - nfull * rb)

        # ---- 3. a-branch: LN affine -> 1x1 conv (one MXU matmul per row block,
        # M = rb*Wslab) -> exact GELU -> image mask, written to the H-padded DW scratch.
        dw_ref[pl.ds(0, _PAD), :, :] = jnp.zeros((_PAD, Wslab, Cp), f32)
        dw_ref[pl.ds(H + _PAD, _PAD), :, :] = jnp.zeros((_PAD, Wslab, Cp), f32)
        w1t = w1t_ref[...]
        b1 = b1_ref[...]

        def a_block(hb, rb):
            x = aslab_ref[pl.ds(hb, rb), :, :]                        # (rb, Wslab, C2p)
            xn = (x * scale_a + shift_a).reshape(rb * Wslab, C2p)
            y = jnp.dot(xn.astype(mmdt), w1t, preferred_element_type=f32) + b1
            y = _gelu_exact(y).reshape(rb, Wslab, Cp) * colmask
            dw_ref[pl.ds(hb + _PAD, rb), :, :] = y

        for_row_blocks(RB_A, a_block)

        # ---- 4. depthwise 11x11 conv, one output row at a time so the accumulators
        # stay register resident.  For each group of horizontal offsets (oj) the 11
        # vertical taps are accumulated at full slab width from ALIGNED row loads only;
        # the horizontal shift is then a single in-register shifted window (static
        # value slice) per oj -- no sublane-unaligned VMEM slices, no relayout copies.
        bdw = bdw_ref[...]

        def dw_row(h, carry):
            out_acc = jnp.zeros((Wt, Cp), f32)
            for ojb in range(0, _K, OJG):
                noj = min(OJG, _K - ojb)
                vacc = [jnp.zeros((Wslab, Cp), f32) for _ in range(noj)]
                for oi in range(_K):
                    row = dw_ref[h + oi, :, :]                        # (Wslab, Cp) aligned
                    for q in range(noj):
                        vacc[q] = vacc[q] + wdw_ref[oi * _K + ojb + q, :, :] * row
                for q in range(noj):
                    oj = ojb + q
                    out_acc = out_acc + vacc[q][oj:oj + Wt, :]        # shifted window
            out_ref[h, :, :] = out_acc + bdw                          # a2 (pre-modulation)
            return carry

        lax.fori_loop(0, H, dw_row, 0)

        # ---- 5. v-branch + modulation + proj, fused per row block (M = rb*Wt):
        # v1 = LN(v)@wv.T + bv ; out = (a2 * v1)@wp.T + bp.  a2 is read back from the
        # output block written in stage 4 (no extra scratch / VMEM pass).
        wvt = wvt_ref[...]
        bv = bv_ref[...]
        wpt = wpt_ref[...]
        bp = bp_ref[...]

        def proj_block(hb, rb):
            vr = v_ref[pl.ds(hb, rb), :, :]                           # (rb, Wt, Cp)
            vn = (vr * scale_v + shift_v).reshape(rb * Wt, Cp)
            v1 = jnp.dot(vn.astype(mmdt), wvt, preferred_element_type=f32) + bv
            m = out_ref[pl.ds(hb, rb), :, :].reshape(rb * Wt, Cp) * v1
            y = jnp.dot(m.astype(mmdt), wpt, preferred_element_type=f32) + bp
            out_ref[pl.ds(hb, rb), :, :] = y.reshape(rb, Wt, Cp)

        for_row_blocks(RB_V, proj_block)

    # ------------------------------------------------------------------ wrapper glue
    # channels-last + zero-pad channels to lane multiples; pad W once for the halo (a)
    # / to a whole number of tiles (v).  No per-tile copies: the kernel DMAs each
    # overlapping `a` window itself and v / out are tiled directly by BlockSpec.
    a_hwc = jnp.transpose(a.astype(f32), (1, 2, 0))                   # (H, W, 2C)
    a_hwc = jnp.pad(a_hwc, ((0, 0), (_PAD, Wa - _PAD - W), (0, C2p - C2)))
    v_hwc = jnp.transpose(v.astype(f32), (1, 2, 0))                   # (H, W, C)
    v_hwc = jnp.pad(v_hwc, ((0, 0), (0, nt * Wt - W), (0, Cp - C)))

    def vec(x, n):                    # (k,) -> (1, n) zero-padded row
        x = x.astype(f32)[None, :]
        return jnp.pad(x, ((0, 0), (0, n - x.shape[1])))

    def mat_t(wm, rows, cols):        # (Cout, Cin) -> (rows, cols) padded transpose
        wt = wm.astype(f32).T
        return jnp.pad(wt, ((0, rows - wt.shape[0]), (0, cols - wt.shape[1])))

    w1t = mat_t(params["w1"], C2p, Cp).astype(mmdt)
    wvt = mat_t(params["wv"], Cp, Cp).astype(mmdt)
    wpt = mat_t(params["wp"], Cp, Cp).astype(mmdt)
    wdw = params["wdw"].astype(f32).reshape(C, _K * _K).T[:, None, :]  # (121, 1, C)
    wdw = jnp.pad(wdw, ((0, 0), (0, 0), (0, Cp - C)))

    args = (a_hwc, v_hwc,
            vec(params["gna"], C2p), vec(params["bna"], C2p),
            vec(params["gnv"], Cp), vec(params["bnv"], Cp),
            w1t, vec(params["b1"], Cp),
            wdw, vec(params["bdw"], Cp),
            wvt, vec(params["bv"], Cp),
            wpt, vec(params["bp"], Cp))

    def full(shape):                  # small parameter: whole array, same block each step
        return pl.BlockSpec(shape, lambda *_: (0,) * len(shape))
    # TODO(synk): these constant-index weight blocks are still double-buffered by the
    # pipeline; at Cp >= 256 switch them to pl.Buffered(1) / a one-shot DMA.

    in_specs = [
        pl.BlockSpec(memory_space=pl.ANY),                  # a: stays in HBM, manual DMA
        pl.BlockSpec((H, Wt, Cp), lambda t: (0, t, 0)),     # v tile
        full((1, C2p)), full((1, C2p)), full((1, Cp)), full((1, Cp)),
        full((C2p, Cp)), full((1, Cp)),
        full((_K * _K, 1, Cp)), full((1, Cp)),
        full((Cp, Cp)), full((1, Cp)),
        full((Cp, Cp)), full((1, Cp)),
    ]

    # VMEM budget derived from the actual working set (instead of a blanket 64 MiB).
    wbytes = jnp.dtype(mmdt).itemsize
    vmem_est = (4 * (H * Wslab * C2p                        # `a` halo slab scratch
                     + (H + 2 * _PAD) * Wslab * Cp          # H-padded DW scratch
                     + 4 * H * Wt * Cp                      # v + out tiles, double-buffered
                     + 2 * _K * _K * 8 * Cp)                # dw weights (sublane padded) x2
                + 2 * wbytes * (C2p * Cp + 2 * Cp * Cp))    # matmul weights x2
    vmem_limit = int(min(100 * 2 ** 20, max(32 * 2 ** 20, 1.5 * vmem_est + (8 << 20))))

    flops = 2 * H * W * C * (C2 + 2 * C + _K * _K) + 16 * H * W * (C2 + C)
    cost = pl.CostEstimate(flops=int(flops),
                           transcendentals=int(H * W * C),
                           bytes_accessed=int(4 * (a.size + v.size + H * W * C)))

    out = pl.pallas_call(
        kernel,
        out_shape=jax.ShapeDtypeStruct((H, nt * Wt, Cp), f32),
        grid=(nt,),
        in_specs=in_specs,
        out_specs=pl.BlockSpec((H, Wt, Cp), lambda t: (0, t, 0)),
        scratch_shapes=[pltpu.VMEM((H, Wslab, C2p), f32),             # `a` halo slab
                        pltpu.VMEM((H + 2 * _PAD, Wslab, Cp), f32),   # H-padded DW input
                        pltpu.SemaphoreType.DMA],
        compiler_params=pltpu.CompilerParams(
            dimension_semantics=("parallel",),   # column tiles are independent
            vmem_limit_bytes=vmem_limit),
        cost_estimate=cost,
    )(*args)

    out = out[:, :W, :C]
    return jnp.transpose(out, (2, 0, 1))[None]               # (1, dim, H, W)


def conv_mod_reference(a, v, P, matmul_dtype=jnp.float32):
    """Pure-JAX replica of the PyTorch forward, for numerical validation.

    matmul_dtype rounds the 1x1-conv operands the same way the kernel feeds the MXU
    (bf16 operands, f32 accumulate) so the bf16 fast path can be checked tightly."""
    hp = lax.Precision.HIGHEST
    f32 = jnp.float32
    C, H, W = v.shape

    def q(x):
        return x.astype(matmul_dtype).astype(f32)

    def ln(x, w, b):
        u = x.mean(axis=1, keepdims=True)
        s = ((x - u) ** 2).mean(axis=1, keepdims=True)
        return w[:, None, None] * ((x - u) / jnp.sqrt(s + _EPS)) + b[:, None, None]

    def conv1x1(w, x, b):
        return jnp.einsum("oc,chw->ohw", q(w), q(x), precision=hp) + b[:, None, None]

    an = ln(a, P["gna"], P["bna"])
    a1 = jax.nn.gelu(conv1x1(P["w1"], an, P["b1"]), approximate=False)
    pad = jnp.pad(a1, ((0, 0), (_PAD, _PAD), (_PAD, _PAD)))
    a2 = P["bdw"][:, None, None]
    for di in range(_K):
        for dj in range(_K):
            a2 = a2 + P["wdw"][:, di, dj][:, None, None] * pad[:, di:di + H, dj:dj + W]
    vn = ln(v, P["gnv"], P["bnv"])
    v1 = conv1x1(P["wv"], vn, P["bv"])
    att = conv1x1(P["wp"], a2 * v1, P["bp"])
    return att[None]


if __name__ == "__main__":
    dim = 4
    f32 = jnp.float32
    key = jax.random.PRNGKey(0)
    ks = jax.random.split(key, 16)

    def unif(k, shape, fan_in):
        bnd = fan_in ** -0.5
        return jax.random.uniform(k, shape, f32, -bnd, bnd)

    # Parameter shapes follow ConvMod.__init__ (1x1 conv kernels stored as (Cout, Cin),
    # depthwise kernel as (C, 11, 11)); deterministic synthetic init.
    params = {
        "gna": 1.0 + 0.1 * jax.random.normal(ks[0], (2 * dim,), f32),   # LayerNorm(dim*2).weight
        "bna": 0.1 * jax.random.normal(ks[1], (2 * dim,), f32),         # LayerNorm(dim*2).bias
        "gnv": 1.0 + 0.1 * jax.random.normal(ks[2], (dim,), f32),       # LayerNorm(dim).weight
        "bnv": 0.1 * jax.random.normal(ks[3], (dim,), f32),             # LayerNorm(dim).bias
        "w1":  unif(ks[4], (dim, 2 * dim), 2 * dim),                    # Conv2d(2*dim, dim, 1)
        "b1":  unif(ks[5], (dim,), 2 * dim),
        "wdw": unif(ks[6], (dim, _K, _K), _K * _K),                     # Conv2d(dim, dim, 11, groups=dim)
        "bdw": unif(ks[7], (dim,), _K * _K),
        "wv":  unif(ks[8], (dim, dim), dim),                            # Conv2d(dim, dim, 1)
        "bv":  unif(ks[9], (dim,), dim),
        "wp":  unif(ks[10], (dim, dim), dim),                           # Conv2d(dim, dim, 1)
        "bp":  unif(ks[11], (dim,), dim),
    }

    # --- case 1: 16x16 image, forced two-column-tile grid (nt=2, both halo edges,
    # megacore-shardable "parallel" grid axis).
    H1, W1 = 16, 16
    a1_in = jax.random.normal(ks[12], (2 * dim, H1, W1), f32)
    v1_in = jax.random.normal(ks[13], (dim, H1, W1), f32)
    out1 = jax.block_until_ready(conv_mod_pallas(a1_in, v1_in, params, tile_w=8))
    assert out1.shape == (1, dim, H1, W1), out1.shape
    ref1 = conv_mod_reference(a1_in, v1_in, params)
    err1 = float(jnp.max(jnp.abs(out1 - ref1)))
    assert err1 < 2e-3, f"case1 max abs err {err1}"

    # --- case 2: H smaller than the 11x11 kernel + ragged last column tile
    # (W=40, tile_w=16 -> nt=3).
    H2, W2 = 8, 40
    a2_in = jax.random.normal(ks[14], (2 * dim, H2, W2), f32)
    v2_in = jax.random.normal(ks[15], (dim, H2, W2), f32)
    out2 = jax.block_until_ready(conv_mod_pallas(a2_in, v2_in, params, tile_w=16))
    assert out2.shape == (1, dim, H2, W2), out2.shape
    ref2 = conv_mod_reference(a2_in, v2_in, params)
    err2 = float(jnp.max(jnp.abs(out2 - ref2)))
    assert err2 < 2e-3, f"case2 max abs err {err2}"

    # --- case 3: bf16 MXU operands for the three 1x1 convs (the v5e/v6e/v7x fast path),
    # validated against a reference that rounds the same operands through bf16.
    out3 = jax.block_until_ready(
        conv_mod_pallas(a1_in, v1_in, params, tile_w=8, matmul_dtype=jnp.bfloat16))
    ref3 = conv_mod_reference(a1_in, v1_in, params, matmul_dtype=jnp.bfloat16)
    err3 = float(jnp.max(jnp.abs(out3 - ref3)))
    assert err3 < 5e-3, f"case3 max abs err {err3}"

    print("KERNEL_OK")
</pallas_src>

<mosaic_0001>
module attributes {stable_mosaic.version = 11 : i64} {
  func.func @kernel(%arg0: i32, %arg1: memref<16x32x128xf32, #tpu.memory_space<any>>, %arg2: memref<16x8x128xf32, #tpu.memory_space<vmem>>, %arg3: memref<1x128xf32, #tpu.memory_space<vmem>>, %arg4: memref<1x128xf32, #tpu.memory_space<vmem>>, %arg5: memref<1x128xf32, #tpu.memory_space<vmem>>, %arg6: memref<1x128xf32, #tpu.memory_space<vmem>>, %arg7: memref<128x128xf32, #tpu.memory_space<vmem>>, %arg8: memref<1x128xf32, #tpu.memory_space<vmem>>, %arg9: memref<121x1x128xf32, #tpu.memory_space<vmem>>, %arg10: memref<1x128xf32, #tpu.memory_space<vmem>>, %arg11: memref<128x128xf32, #tpu.memory_space<vmem>>, %arg12: memref<1x128xf32, #tpu.memory_space<vmem>>, %arg13: memref<128x128xf32, #tpu.memory_space<vmem>>, %arg14: memref<1x128xf32, #tpu.memory_space<vmem>>, %arg15: memref<16x8x128xf32, #tpu.memory_space<vmem>>, %arg16: memref<16x24x128xf32, #tpu.memory_space<vmem>>, %arg17: memref<26x24x128xf32, #tpu.memory_space<vmem>>, %arg18: memref<!tpu.dma_semaphore, #tpu.memory_space<semaphore_mem>>) attributes {dimension_semantics = [#tpu.dimension_semantics<parallel>], iteration_bounds = array<i64: 2>, scalar_prefetch = 0 : i64, scratch_operands = 3 : i64, tpu.core_type = #tpu.core_type<tc>, window_params = [{}, {transform_indices = @transform_1, window_bounds = array<i64: 16, 8, 128>}, {pipeline_mode = #tpu.pipeline_mode<synchronous>, transform_indices = @transform_2, window_bounds = array<i64: 1, 128>}, {pipeline_mode = #tpu.pipeline_mode<synchronous>, transform_indices = @transform_3, window_bounds = array<i64: 1, 128>}, {pipeline_mode = #tpu.pipeline_mode<synchronous>, transform_indices = @transform_4, window_bounds = array<i64: 1, 128>}, {pipeline_mode = #tpu.pipeline_mode<synchronous>, transform_indices = @transform_5, window_bounds = array<i64: 1, 128>}, {pipeline_mode = #tpu.pipeline_mode<synchronous>, transform_indices = @transform_6, window_bounds = array<i64: 128, 128>}, {pipeline_mode = #tpu.pipeline_mode<synchronous>, transform_indices = @transform_7, window_bounds = array<i64: 1, 128>}, {pipeline_mode = #tpu.pipeline_mode<synchronous>, transform_indices = @transform_8, window_bounds = array<i64: 121, 1, 128>}, {pipeline_mode = #tpu.pipeline_mode<synchronous>, transform_indices = @transform_9, window_bounds = array<i64: 1, 128>}, {pipeline_mode = #tpu.pipeline_mode<synchronous>, transform_indices = @transform_10, window_bounds = array<i64: 128, 128>}, {pipeline_mode = #tpu.pipeline_mode<synchronous>, transform_indices = @transform_11, window_bounds = array<i64: 1, 128>}, {pipeline_mode = #tpu.pipeline_mode<synchronous>, transform_indices = @transform_12, window_bounds = array<i64: 128, 128>}, {pipeline_mode = #tpu.pipeline_mode<synchronous>, transform_indices = @transform_13, window_bounds = array<i64: 1, 128>}, {transform_indices = @transform_14, window_bounds = array<i64: 16, 8, 128>}]} {
    %c8_i32 = arith.constant 8 : i32
    %0 = arith.muli %arg0, %c8_i32 : i32
    %1 = tpu.assume_multiple %0, 8 : i32
    %c0_i32 = arith.constant 0 : i32
    %c0_i32_0 = arith.constant 0 : i32
    %2 = tpu.memref_slice %arg1[%c0_i32, %1, %c0_i32_0] : memref<16x32x128xf32, #tpu.memory_space<any>> -> memref<16x24x128xf32, #tpu.memory_space<any>>
    tpu.enqueue_dma source(%2 : memref<16x24x128xf32, #tpu.memory_space<any>>) target(%arg16 : memref<16x24x128xf32, #tpu.memory_space<vmem>>) target_semaphore(%arg18 : memref<!tpu.dma_semaphore, #tpu.memory_space<semaphore_mem>>)
    %c0_i32_1 = arith.constant 0 : i32
    %c0_i32_2 = arith.constant 0 : i32
    %3 = tpu.memref_slice %arg1[%c0_i32_1, %1, %c0_i32_2] : memref<16x32x128xf32, #tpu.memory_space<any>> -> memref<16x24x128xf32, #tpu.memory_space<any>>
    tpu.wait_dma2 semaphore(%arg18 : memref<!tpu.dma_semaphore, #tpu.memory_space<semaphore_mem>>) src(%3 : memref<16x24x128xf32, #tpu.memory_space<any>>) dst(%arg16 : memref<16x24x128xf32, #tpu.memory_space<vmem>>)
    %4 = tpu.iota {dimensions = array<i32: 0>} : vector<24x128xi32>
    %c8_i32_3 = arith.constant 8 : i32
    %5 = arith.muli %arg0, %c8_i32_3 : i32
    %c5_i32 = arith.constant 5 : i32
    %6 = arith.subi %c5_i32, %5 : i32
    %7 = vector.broadcast %6 : i32 to vector<24x128xi32>
    %8 = arith.cmpi sge, %4, %7 : vector<24x128xi32>
    %c16_i32 = arith.constant 16 : i32
    %9 = arith.addi %6, %c16_i32 : i32
    %10 = vector.broadcast %9 : i32 to vector<24x128xi32>
    %11 = arith.cmpi slt, %4, %10 : vector<24x128xi32>
    %12 = arith.andi %8, %11 : vector<24x128xi1>
    %13 = arith.extui %12 : vector<24x128xi1> to vector<24x128xi32>
    %14 = arith.sitofp %13 : vector<24x128xi32> to vector<24x128xf32>
    %cst = arith.constant 0.000000e+00 : f32
    %15 = vector.broadcast %cst : f32 to vector<24x128xf32>
    %cst_4 = arith.constant 0.000000e+00 : f32
    %16 = vector.broadcast %cst_4 : f32 to vector<24x128xf32>
    %c0_i32_5 = arith.constant 0 : i32
    %c16_i32_6 = arith.constant 16 : i32
    %17 = arith.addi %c0_i32_5, %c16_i32_6 : i32
    %c1_i32 = arith.constant 1 : i32
    %18:2 = scf.for %arg19 = %c0_i32_5 to %17 step %c1_i32 iter_args(%arg20 = %15, %arg21 = %16) -> (vector<24x128xf32>, vector<24x128xf32>)  : i32 {
      %210 = arith.index_cast %arg19 : i32 to index
      %c0_108 = arith.constant 0 : index
      %c0_109 = arith.constant 0 : index
      %211 = vector.load %arg16[%210, %c0_108, %c0_109] : memref<16x24x128xf32, #tpu.memory_space<vmem>>, vector<1x24x128xf32>
      %212 = vector.shape_cast %211 : vector<1x24x128xf32> to vector<24x128xf32>
      %213 = arith.addf %arg20, %212 : vector<24x128xf32>
      %214 = arith.mulf %212, %212 : vector<24x128xf32>
      %215 = arith.addf %arg21, %214 : vector<24x128xf32>
      scf.yield %213, %215 : vector<24x128xf32>, vector<24x128xf32>
    }
    %c16_i32_7 = arith.constant 16 : i32
    %cst_8 = arith.constant 6.250000e-02 : f32
    %19 = vector.broadcast %cst_8 : f32 to vector<24x128xf32>
    %20 = arith.mulf %18#0, %19 : vector<24x128xf32>
    %cst_9 = arith.constant 6.250000e-02 : f32
    %21 = vector.broadcast %cst_9 : f32 to vector<24x128xf32>
    %22 = arith.mulf %18#1, %21 : vector<24x128xf32>
    %23 = arith.mulf %20, %20 : vector<24x128xf32>
    %24 = arith.subf %22, %23 : vector<24x128xf32>
    %cst_10 = arith.constant 0.000000e+00 : f32
    %25 = vector.broadcast %cst_10 : f32 to vector<24x128xf32>
    %26 = arith.maximumf %24, %25 : vector<24x128xf32>
    %cst_11 = arith.constant 9.99999997E-7 : f32
    %27 = vector.broadcast %cst_11 : f32 to vector<24x128xf32>
    %28 = arith.addf %26, %27 : vector<24x128xf32>
    %29 = math.rsqrt %28 : vector<24x128xf32>
    %c0 = arith.constant 0 : index
    %c0_12 = arith.constant 0 : index
    %30 = vector.load %arg3[%c0, %c0_12] : memref<1x128xf32, #tpu.memory_space<vmem>>, vector<1x128xf32>
    %31 = vector.broadcast %30 : vector<1x128xf32> to vector<24x128xf32>
    %32 = arith.mulf %31, %29 : vector<24x128xf32>
    %c0_13 = arith.constant 0 : index
    %c0_14 = arith.constant 0 : index
    %33 = vector.load %arg4[%c0_13, %c0_14] : memref<1x128xf32, #tpu.memory_space<vmem>>, vector<1x128xf32>
    %34 = arith.mulf %20, %32 : vector<24x128xf32>
    %35 = vector.broadcast %33 : vector<1x128xf32> to vector<24x128xf32>
    %36 = arith.subf %35, %34 : vector<24x128xf32>
    %cst_15 = arith.constant 0.000000e+00 : f32
    %37 = vector.broadcast %cst_15 : f32 to vector<8x128xf32>
    %cst_16 = arith.constant 0.000000e+00 : f32
    %38 = vector.broadcast %cst_16 : f32 to vector<8x128xf32>
    %c0_i32_17 = arith.constant 0 : i32
    %c16_i32_18 = arith.constant 16 : i32
    %39 = arith.addi %c0_i32_17, %c16_i32_18 : i32
    %c1_i32_19 = arith.constant 1 : i32
    %40:2 = scf.for %arg19 = %c0_i32_17 to %39 step %c1_i32_19 iter_args(%arg20 = %37, %arg21 = %38) -> (vector<8x128xf32>, vector<8x128xf32>)  : i32 {
      %210 = arith.index_cast %arg19 : i32 to index
      %c0_108 = arith.constant 0 : index
      %c0_109 = arith.constant 0 : index
      %211 = vector.load %arg2[%210, %c0_108, %c0_109] : memref<16x8x128xf32, #tpu.memory_space<vmem>>, vector<1x8x128xf32>
      %212 = vector.shape_cast %211 : vector<1x8x128xf32> to vector<8x128xf32>
      %213 = arith.addf %arg20, %212 : vector<8x128xf32>
      %214 = arith.mulf %212, %212 : vector<8x128xf32>
      %215 = arith.addf %arg21, %214 : vector<8x128xf32>
      scf.yield %213, %215 : vector<8x128xf32>, vector<8x128xf32>
    }
    %c16_i32_20 = arith.constant 16 : i32
    %cst_21 = arith.constant 6.250000e-02 : f32
    %41 = vector.broadcast %cst_21 : f32 to vector<8x128xf32>
    %42 = arith.mulf %40#0, %41 : vector<8x128xf32>
    %cst_22 = arith.constant 6.250000e-02 : f32
    %43 = vector.broadcast %cst_22 : f32 to vector<8x128xf32>
    %44 = arith.mulf %40#1, %43 : vector<8x128xf32>
    %45 = arith.mulf %42, %42 : vector<8x128xf32>
    %46 = arith.subf %44, %45 : vector<8x128xf32>
    %cst_23 = arith.constant 0.000000e+00 : f32
    %47 = vector.broadcast %cst_23 : f32 to vector<8x128xf32>
    %48 = arith.maximumf %46, %47 : vector<8x128xf32>
    %cst_24 = arith.constant 9.99999997E-7 : f32
    %49 = vector.broadcast %cst_24 : f32 to vector<8x128xf32>
    %50 = arith.addf %48, %49 : vector<8x128xf32>
    %51 = math.rsqrt %50 : vector<8x128xf32>
    %c0_25 = arith.constant 0 : index
    %c0_26 = arith.constant 0 : index
    %52 = vector.load %arg5[%c0_25, %c0_26] : memref<1x128xf32, #tpu.memory_space<vmem>>, vector<1x128xf32>
    %53 = vector.broadcast %52 : vector<1x128xf32> to vector<8x128xf32>
    %54 = arith.mulf %53, %51 : vector<8x128xf32>
    %c0_27 = arith.constant 0 : index
    %c0_28 = arith.constant 0 : index
    %55 = vector.load %arg6[%c0_27, %c0_28] : memref<1x128xf32, #tpu.memory_space<vmem>>, vector<1x128xf32>
    %56 = arith.mulf %42, %54 : vector<8x128xf32>
    %57 = vector.broadcast %55 : vector<1x128xf32> to vector<8x128xf32>
    %58 = arith.subf %57, %56 : vector<8x128xf32>
    %cst_29 = arith.constant 0.000000e+00 : f32
    %59 = vector.broadcast %cst_29 : f32 to vector<5x24x128xf32>
    %c0_30 = arith.constant 0 : index
    %c0_31 = arith.constant 0 : index
    %c0_32 = arith.constant 0 : index
    %60 = vector.load %arg17[%c0_30, %c0_31, %c0_32] : memref<26x24x128xf32, #tpu.memory_space<vmem>>, vector<5x24x128xf32>
    tpu.vector_store %arg17[%c0_30, %c0_31, %c0_32], %59 {strides = array<i32>} : memref<26x24x128xf32, #tpu.memory_space<vmem>>, vector<5x24x128xf32>,
    %cst_33 = arith.constant 0.000000e+00 : f32
    %61 = vector.broadcast %cst_33 : f32 to vector<5x24x128xf32>
    %c21 = arith.constant 21 : index
    %c0_34 = arith.constant 0 : index
    %c0_35 = arith.constant 0 : index
    %62 = vector.load %arg17[%c21, %c0_34, %c0_35] : memref<26x24x128xf32, #tpu.memory_space<vmem>>, vector<5x24x128xf32>
    tpu.vector_store %arg17[%c21, %c0_34, %c0_35], %61 {strides = array<i32>} : memref<26x24x128xf32, #tpu.memory_space<vmem>>, vector<5x24x128xf32>,
    %c0_36 = arith.constant 0 : index
    %c0_37 = arith.constant 0 : index
    %63 = vector.load %arg7[%c0_36, %c0_37] : memref<128x128xf32, #tpu.memory_space<vmem>>, vector<128x128xf32>
    %c0_38 = arith.constant 0 : index
    %c0_39 = arith.constant 0 : index
    %64 = vector.load %arg8[%c0_38, %c0_39] : memref<1x128xf32, #tpu.memory_space<vmem>>, vector<1x128xf32>
    %c0_i32_40 = arith.constant 0 : i32
    %c10_i32 = arith.constant 10 : i32
    %65 = arith.muli %c0_i32_40, %c10_i32 : i32
    %66 = arith.index_cast %65 : i32 to index
    %c0_41 = arith.constant 0 : index
    %c0_42 = arith.constant 0 : index
    %67 = vector.load %arg16[%66, %c0_41, %c0_42] : memref<16x24x128xf32, #tpu.memory_space<vmem>>, vector<10x24x128xf32>
    %68 = vector.shape_cast %32 : vector<24x128xf32> to vector<1x24x128xf32>
    %69 = vector.broadcast %68 : vector<1x24x128xf32> to vector<10x24x128xf32>
    %70 = arith.mulf %67, %69 : vector<10x24x128xf32>
    %71 = vector.shape_cast %36 : vector<24x128xf32> to vector<1x24x128xf32>
    %72 = vector.broadcast %71 : vector<1x24x128xf32> to vector<10x24x128xf32>
    %73 = arith.addf %70, %72 : vector<10x24x128xf32>
    %74 = vector.shape_cast %73 : vector<10x24x128xf32> to vector<240x128xf32>
    %cst_43 = arith.constant dense<0.000000e+00> : vector<240x128xf32>
    %75 = tpu.matmul %74, %63, %cst_43 {dimension_numbers = #tpu.dot_dimension_numbers<[1], [0], [0], [1], [0, 0, 1, 1], [], []>} : vector<240x128xf32>, vector<128x128xf32>, vector<240x128xf32> -> vector<240x128xf32>
    %76 = vector.broadcast %64 : vector<1x128xf32> to vector<240x128xf32>
    %77 = arith.addf %75, %76 : vector<240x128xf32>
    %78 = math.absf %77 : vector<240x128xf32>
    %cst_44 = arith.constant 0.707106769 : f32
    %79 = vector.broadcast %cst_44 : f32 to vector<240x128xf32>
    %80 = arith.mulf %78, %79 : vector<240x128xf32>
    %cst_45 = arith.constant 0.327591091 : f32
    %81 = vector.broadcast %cst_45 : f32 to vector<240x128xf32>
    %82 = arith.mulf %81, %80 : vector<240x128xf32>
    %cst_46 = arith.constant 1.000000e+00 : f32
    %83 = vector.broadcast %cst_46 : f32 to vector<240x128xf32>
    %84 = arith.addf %83, %82 : vector<240x128xf32>
    %cst_47 = arith.constant 1.000000e+00 : f32
    %85 = vector.broadcast %cst_47 : f32 to vector<240x128xf32>
    %86 = arith.divf %85, %84 : vector<240x128xf32>
    %cst_48 = arith.constant 1.06140542 : f32
    %87 = vector.broadcast %cst_48 : f32 to vector<240x128xf32>
    %88 = arith.mulf %87, %86 : vector<240x128xf32>
    %cst_49 = arith.constant -1.45315206 : f32
    %89 = vector.broadcast %cst_49 : f32 to vector<240x128xf32>
    %90 = arith.addf %88, %89 : vector<240x128xf32>
    %91 = arith.mulf %90, %86 : vector<240x128xf32>
    %cst_50 = arith.constant 1.42141378 : f32
    %92 = vector.broadcast %cst_50 : f32 to vector<240x128xf32>
    %93 = arith.addf %91, %92 : vector<240x128xf32>
    %94 = arith.mulf %93, %86 : vector<240x128xf32>
    %cst_51 = arith.constant -0.284496725 : f32
    %95 = vector.broadcast %cst_51 : f32 to vector<240x128xf32>
    %96 = arith.addf %94, %95 : vector<240x128xf32>
    %97 = arith.mulf %96, %86 : vector<240x128xf32>
    %cst_52 = arith.constant 0.254829586 : f32
    %98 = vector.broadcast %cst_52 : f32 to vector<240x128xf32>
    %99 = arith.addf %97, %98 : vector<240x128xf32>
    %100 = arith.mulf %99, %86 : vector<240x128xf32>
    %cst_53 = arith.constant 0.000000e+00 : f32
    %101 = vector.broadcast %cst_53 : f32 to vector<240x128xf32>
    %102 = arith.subf %101, %80 : vector<240x128xf32>
    %103 = arith.mulf %102, %80 : vector<240x128xf32>
    %104 = math.exp %103 : vector<240x128xf32>
    %105 = arith.mulf %100, %104 : vector<240x128xf32>
    %cst_54 = arith.constant 1.000000e+00 : f32
    %106 = vector.broadcast %cst_54 : f32 to vector<240x128xf32>
    %107 = arith.subf %106, %105 : vector<240x128xf32>
    %cst_55 = arith.constant 0.000000e+00 : f32
    %108 = vector.broadcast %cst_55 : f32 to vector<240x128xf32>
    %109 = arith.cmpf oge, %77, %108 : vector<240x128xf32>
    %cst_56 = arith.constant 0.000000e+00 : f32
    %110 = vector.broadcast %cst_56 : f32 to vector<240x128xf32>
    %111 = arith.subf %110, %107 : vector<240x128xf32>
    %112 = arith.select %109, %107, %111 : vector<240x128xi1>, vector<240x128xf32>
    %cst_57 = arith.constant 5.000000e-01 : f32
    %113 = vector.broadcast %cst_57 : f32 to vector<240x128xf32>
    %114 = arith.mulf %113, %77 : vector<240x128xf32>
    %cst_58 = arith.constant 1.000000e+00 : f32
    %115 = vector.broadcast %cst_58 : f32 to vector<240x128xf32>
    %116 = arith.addf %115, %112 : vector<240x128xf32>
    %117 = arith.mulf %114, %116 : vector<240x128xf32>
    %118 = vector.shape_cast %117 : vector<240x128xf32> to vector<10x24x128xf32>
    %119 = vector.shape_cast %14 : vector<24x128xf32> to vector<1x24x128xf32>
    %120 = vector.broadcast %119 : vector<1x24x128xf32> to vector<10x24x128xf32>
    %121 = arith.mulf %118, %120 : vector<10x24x128xf32>
    %c5_i32_59 = arith.constant 5 : i32
    %122 = arith.addi %65, %c5_i32_59 : i32
    %123 = arith.index_cast %122 : i32 to index
    %c0_60 = arith.constant 0 : index
    %c0_61 = arith.constant 0 : index
    %124 = vector.load %arg17[%123, %c0_60, %c0_61] : memref<26x24x128xf32, #tpu.memory_space<vmem>>, vector<10x24x128xf32>
    tpu.vector_store %arg17[%123, %c0_60, %c0_61], %121 {strides = array<i32>} : memref<26x24x128xf32, #tpu.memory_space<vmem>>, vector<10x24x128xf32>,
    %c1_i32_62 = arith.constant 1 : i32
    %c10 = arith.constant 10 : index
    %c0_63 = arith.constant 0 : index
    %c0_64 = arith.constant 0 : index
    %125 = vector.load %arg16[%c10, %c0_63, %c0_64] : memref<16x24x128xf32, #tpu.memory_space<vmem>>, vector<6x24x128xf32>
    %126 = vector.shape_cast %32 : vector<24x128xf32> to vector<1x24x128xf32>
    %127 = vector.broadcast %126 : vector<1x24x128xf32> to vector<6x24x128xf32>
    %128 = arith.mulf %125, %127 : vector<6x24x128xf32>
    %129 = vector.shape_cast %36 : vector<24x128xf32> to vector<1x24x128xf32>
    %130 = vector.broadcast %129 : vector<1x24x128xf32> to vector<6x24x128xf32>
    %131 = arith.addf %128, %130 : vector<6x24x128xf32>
    %132 = vector.shape_cast %131 : vector<6x24x128xf32> to vector<144x128xf32>
    %cst_65 = arith.constant dense<0.000000e+00> : vector<144x128xf32>
    %133 = tpu.matmul %132, %63, %cst_65 {dimension_numbers = #tpu.dot_dimension_numbers<[1], [0], [0], [1], [0, 0, 1, 1], [], []>} : vector<144x128xf32>, vector<128x128xf32>, vector<144x128xf32> -> vector<144x128xf32>
    %134 = vector.broadcast %64 : vector<1x128xf32> to vector<144x128xf32>
    %135 = arith.addf %133, %134 : vector<144x128xf32>
    %136 = math.absf %135 : vector<144x128xf32>
    %cst_66 = arith.constant 0.707106769 : f32
    %137 = vector.broadcast %cst_66 : f32 to vector<144x128xf32>
    %138 = arith.mulf %136, %137 : vector<144x128xf32>
    %cst_67 = arith.constant 0.327591091 : f32
    %139 = vector.broadcast %cst_67 : f32 to vector<144x128xf32>
    %140 = arith.mulf %139, %138 : vector<144x128xf32>
    %cst_68 = arith.constant 1.000000e+00 : f32
    %141 = vector.broadcast %cst_68 : f32 to vector<144x128xf32>
    %142 = arith.addf %141, %140 : vector<144x128xf32>
    %cst_69 = arith.constant 1.000000e+00 : f32
    %143 = vector.broadcast %cst_69 : f32 to vector<144x128xf32>
    %144 = arith.divf %143, %142 : vector<144x128xf32>
    %cst_70 = arith.constant 1.06140542 : f32
    %145 = vector.broadcast %cst_70 : f32 to vector<144x128xf32>
    %146 = arith.mulf %145, %144 : vector<144x128xf32>
    %cst_71 = arith.constant -1.45315206 : f32
    %147 = vector.broadcast %cst_71 : f32 to vector<144x128xf32>
    %148 = arith.addf %146, %147 : vector<144x128xf32>
    %149 = arith.mulf %148, %144 : vector<144x128xf32>
    %cst_72 = arith.constant 1.42141378 : f32
    %150 = vector.broadcast %cst_72 : f32 to vector<144x128xf32>
    %151 = arith.addf %149, %150 : vector<144x128xf32>
    %152 = arith.mulf %151, %144 : vector<144x128xf32>
    %cst_73 = arith.constant -0.284496725 : f32
    %153 = vector.broadcast %cst_73 : f32 to vector<144x128xf32>
    %154 = arith.addf %152, %153 : vector<144x128xf32>
    %155 = arith.mulf %154, %144 : vector<144x128xf32>
    %cst_74 = arith.constant 0.254829586 : f32
    %156 = vector.broadcast %cst_74 : f32 to vector<144x128xf32>
    %157 = arith.addf %155, %156 : vector<144x128xf32>
    %158 = arith.mulf %157, %144 : vector<144x128xf32>
    %cst_75 = arith.constant 0.000000e+00 : f32
    %159 = vector.broadcast %cst_75 : f32 to vector<144x128xf32>
    %160 = arith.subf %159, %138 : vector<144x128xf32>
    %161 = arith.mulf %160, %138 : vector<144x128xf32>
    %162 = math.exp %161 : vector<144x128xf32>
    %163 = arith.mulf %158, %162 : vector<144x128xf32>
    %cst_76 = arith.constant 1.000000e+00 : f32
    %164 = vector.broadcast %cst_76 : f32 to vector<144x128xf32>
    %165 = arith.subf %164, %163 : vector<144x128xf32>
    %cst_77 = arith.constant 0.000000e+00 : f32
    %166 = vector.broadcast %cst_77 : f32 to vector<144x128xf32>
    %167 = arith.cmpf oge, %135, %166 : vector<144x128xf32>
    %cst_78 = arith.constant 0.000000e+00 : f32
    %168 = vector.broadcast %cst_78 : f32 to vector<144x128xf32>
    %169 = arith.subf %168, %165 : vector<144x128xf32>
    %170 = arith.select %167, %165, %169 : vector<144x128xi1>, vector<144x128xf32>
    %cst_79 = arith.constant 5.000000e-01 : f32
    %171 = vector.broadcast %cst_79 : f32 to vector<144x128xf32>
    %172 = arith.mulf %171, %135 : vector<144x128xf32>
    %cst_80 = arith.constant 1.000000e+00 : f32
    %173 = vector.broadcast %cst_80 : f32 to vector<144x128xf32>
    %174 = arith.addf %173, %170 : vector<144x128xf32>
    %175 = arith.mulf %172, %174 : vector<144x128xf32>
    %176 = vector.shape_cast %175 : vector<144x128xf32> to vector<6x24x128xf32>
    %177 = vector.shape_cast %14 : vector<24x128xf32> to vector<1x24x128xf32>
    %178 = vector.broadcast %177 : vector<1x24x128xf32> to vector<6x24x128xf32>
    %179 = arith.mulf %176, %178 : vector<6x24x128xf32>
    %c15 = arith.constant 15 : index
    %c0_81 = arith.constant 0 : index
    %c0_82 = arith.constant 0 : index
    %180 = vector.load %arg17[%c15, %c0_81, %c0_82] : memref<26x24x128xf32, #tpu.memory_space<vmem>>, vector<6x24x128xf32>
    tpu.vector_store %arg17[%c15, %c0_81, %c0_82], %179 {strides = array<i32>} : memref<26x24x128xf32, #tpu.memory_space<vmem>>, vector<6x24x128xf32>,
    %c0_83 = arith.constant 0 : index
    %c0_84 = arith.constant 0 : index
    %181 = vector.load %arg10[%c0_83, %c0_84] : memref<1x128xf32, #tpu.memory_space<vmem>>, vector<1x128xf32>
    %c0_i32_85 = arith.constant 0 : i32
    %c16_i32_86 = arith.constant 16 : i32
    %182 = arith.addi %c0_i32_85, %c16_i32_86 : i32
    %c1_i32_87 = arith.constant 1 : i32
    scf.for %arg19 = %c0_i32_85 to %182 step %c1_i32_87  : i32 {
      %cst_108 = arith.constant 0.000000e+00 : f32
      %210 = vector.broadcast %cst_108 : f32 to vector<8x128xf32>
      %cst_109 = arith.constant 0.000000e+00 : f32
      %211 = vector.broadcast %cst_109 : f32 to vector<24x128xf32>
      %cst_110 = arith.constant 0.000000e+00 : f32
      %212 = vector.broadcast %cst_110 : f32 to vector<24x128xf32>
      %c0_i32_111 = arith.constant 0 : i32
      %213 = arith.addi %arg19, %c0_i32_111 : i32
      %214 = arith.index_cast %213 : i32 to index
      %c0_112 = arith.constant 0 : index
      %c0_113 = arith.constant 0 : index
      %215 = vector.load %arg17[%214, %c0_112, %c0_113] : memref<26x24x128xf32, #tpu.memory_space<vmem>>, vector<1x24x128xf32>
      %216 = vector.shape_cast %215 : vector<1x24x128xf32> to vector<24x128xf32>
      %c0_114 = arith.constant 0 : index
      %c0_115 = arith.constant 0 : index
      %c0_116 = arith.constant 0 : index
      %217 = vector.load %arg9[%c0_114, %c0_115, %c0_116] : memref<121x1x128xf32, #tpu.memory_space<vmem>>, vector<1x1x128xf32>
      %218 = vector.shape_cast %217 : vector<1x1x128xf32> to vector<1x128xf32>
      %219 = vector.broadcast %218 : vector<1x128xf32> to vector<24x128xf32>
      %220 = arith.mulf %219, %216 : vector<24x128xf32>
      %221 = arith.addf %211, %220 : vector<24x128xf32>
      %c1 = arith.constant 1 : index
      %c0_117 = arith.constant 0 : index
      %c0_118 = arith.constant 0 : index
      %222 = vector.load %arg9[%c1, %c0_117, %c0_118] : memref<121x1x128xf32, #tpu.memory_space<vmem>>, vector<1x1x128xf32>
      %223 = vector.shape_cast %222 : vector<1x1x128xf32> to vector<1x128xf32>
      %224 = vector.broadcast %223 : vector<1x128xf32> to vector<24x128xf32>
      %225 = arith.mulf %224, %216 : vector<24x128xf32>
      %226 = arith.addf %212, %225 : vector<24x128xf32>
      %c1_i32_119 = arith.constant 1 : i32
      %227 = arith.addi %arg19, %c1_i32_119 : i32
      %228 = arith.index_cast %227 : i32 to index
      %c0_120 = arith.constant 0 : index
      %c0_121 = arith.constant 0 : index
      %229 = vector.load %arg17[%228, %c0_120, %c0_121] : memref<26x24x128xf32, #tpu.memory_space<vmem>>, vector<1x24x128xf32>
      %230 = vector.shape_cast %229 : vector<1x24x128xf32> to vector<24x128xf32>
      %c11 = arith.constant 11 : index
      %c0_122 = arith.constant 0 : index
      %c0_123 = arith.constant 0 : index
      %231 = vector.load %arg9[%c11, %c0_122, %c0_123] : memref<121x1x128xf32, #tpu.memory_space<vmem>>, vector<1x1x128xf32>
      %232 = vector.shape_cast %231 : vector<1x1x128xf32> to vector<1x128xf32>
      %233 = vector.broadcast %232 : vector<1x128xf32> to vector<24x128xf32>
      %234 = arith.mulf %233, %230 : vector<24x128xf32>
      %235 = arith.addf %221, %234 : vector<24x128xf32>
      %c12 = arith.constant 12 : index
      %c0_124 = arith.constant 0 : index
      %c0_125 = arith.constant 0 : index
      %236 = vector.load %arg9[%c12, %c0_124, %c0_125] : memref<121x1x128xf32, #tpu.memory_space<vmem>>, vector<1x1x128xf32>
      %237 = vector.shape_cast %236 : vector<1x1x128xf32> to vector<1x128xf32>
      %238 = vector.broadcast %237 : vector<1x128xf32> to vector<24x128xf32>
      %239 = arith.mulf %238, %230 : vector<24x128xf32>
      %240 = arith.addf %226, %239 : vector<24x128xf32>
      %c2_i32 = arith.constant 2 : i32
      %241 = arith.addi %arg19, %c2_i32 : i32
      %242 = arith.index_cast %241 : i32 to index
      %c0_126 = arith.constant 0 : index
      %c0_127 = arith.constant 0 : index
      %243 = vector.load %arg17[%242, %c0_126, %c0_127] : memref<26x24x128xf32, #tpu.memory_space<vmem>>, vector<1x24x128xf32>
      %244 = vector.shape_cast %243 : vector<1x24x128xf32> to vector<24x128xf32>
      %c22 = arith.constant 22 : index
      %c0_128 = arith.constant 0 : index
      %c0_129 = arith.constant 0 : index
      %245 = vector.load %arg9[%c22, %c0_128, %c0_129] : memref<121x1x128xf32, #tpu.memory_space<vmem>>, vector<1x1x128xf32>
      %246 = vector.shape_cast %245 : vector<1x1x128xf32> to vector<1x128xf32>
      %247 = vector.broadcast %246 : vector<1x128xf32> to vector<24x128xf32>
      %248 = arith.mulf %247, %244 : vector<24x128xf32>
      %249 = arith.addf %235, %248 : vector<24x128xf32>
      %c23 = arith.constant 23 : index
      %c0_130 = arith.constant 0 : index
      %c0_131 = arith.constant 0 : index
      %250 = vector.load %arg9[%c23, %c0_130, %c0_131] : memref<121x1x128xf32, #tpu.memory_space<vmem>>, vector<1x1x128xf32>
      %251 = vector.shape_cast %250 : vector<1x1x128xf32> to vector<1x128xf32>
      %252 = vector.broadcast %251 : vector<1x128xf32> to vector<24x128xf32>
      %253 = arith.mulf %252, %244 : vector<24x128xf32>
      %254 = arith.addf %240, %253 : vector<24x128xf32>
      %c3_i32 = arith.constant 3 : i32
      %255 = arith.addi %arg19, %c3_i32 : i32
      %256 = arith.index_cast %255 : i32 to index
      %c0_132 = arith.constant 0 : index
      %c0_133 = arith.constant 0 : index
      %257 = vector.load %arg17[%256, %c0_132, %c0_133] : memref<26x24x128xf32, #tpu.memory_space<vmem>>, vector<1x24x128xf32>
      %258 = vector.shape_cast %257 : vector<1x24x128xf32> to vector<24x128xf32>
      %c33 = arith.constant 33 : index
      %c0_134 = arith.constant 0 : index
      %c0_135 = arith.constant 0 : index
      %259 = vector.load %arg9[%c33, %c0_134, %c0_135] : memref<121x1x128xf32, #tpu.memory_space<vmem>>, vector<1x1x128xf32>
      %260 = vector.shape_cast %259 : vector<1x1x128xf32> to vector<1x128xf32>
      %261 = vector.broadcast %260 : vector<1x128xf32> to vector<24x128xf32>
      %262 = arith.mulf %261, %258 : vector<24x128xf32>
      %263 = arith.addf %249, %262 : vector<24x128xf32>
      %c34 = arith.constant 34 : index
      %c0_136 = arith.constant 0 : index
      %c0_137 = arith.constant 0 : index
      %264 = vector.load %arg9[%c34, %c0_136, %c0_137] : memref<121x1x128xf32, #tpu.memory_space<vmem>>, vector<1x1x128xf32>
      %265 = vector.shape_cast %264 : vector<1x1x128xf32> to vector<1x128xf32>
      %266 = vector.broadcast %265 : vector<1x128xf32> to vector<24x128xf32>
      %267 = arith.mulf %266, %258 : vector<24x128xf32>
      %268 = arith.addf %254, %267 : vector<24x128xf32>
      %c4_i32 = arith.constant 4 : i32
      %269 = arith.addi %arg19, %c4_i32 : i32
      %270 = arith.index_cast %269 : i32 to index
      %c0_138 = arith.constant 0 : index
      %c0_139 = arith.constant 0 : index
      %271 = vector.load %arg17[%270, %c0_138, %c0_139] : memref<26x24x128xf32, #tpu.memory_space<vmem>>, vector<1x24x128xf32>
      %272 = vector.shape_cast %271 : vector<1x24x128xf32> to vector<24x128xf32>
      %c44 = arith.constant 44 : index
      %c0_140 = arith.constant 0 : index
      %c0_141 = arith.constant 0 : index
      %273 = vector.load %arg9[%c44, %c0_140, %c0_141] : memref<121x1x128xf32, #tpu.memory_space<vmem>>, vector<1x1x128xf32>
      %274 = vector.shape_cast %273 : vector<1x1x128xf32> to vector<1x128xf32>
      %275 = vector.broadcast %274 : vector<1x128xf32> to vector<24x128xf32>
      %276 = arith.mulf %275, %272 : vector<24x128xf32>
      %277 = arith.addf %263, %276 : vector<24x128xf32>
      %c45 = arith.constant 45 : index
      %c0_142 = arith.constant 0 : index
      %c0_143 = arith.constant 0 : index
      %278 = vector.load %arg9[%c45, %c0_142, %c0_143] : memref<121x1x128xf32, #tpu.memory_space<vmem>>, vector<1x1x128xf32>
      %279 = vector.shape_cast %278 : vector<1x1x128xf32> to vector<1x128xf32>
      %280 = vector.broadcast %279 : vector<1x128xf32> to vector<24x128xf32>
      %281 = arith.mulf %280, %272 : vector<24x128xf32>
      %282 = arith.addf %268, %281 : vector<24x128xf32>
      %c5_i32_144 = arith.constant 5 : i32
      %283 = arith.addi %arg19, %c5_i32_144 : i32
      %284 = arith.index_cast %283 : i32 to index
      %c0_145 = arith.constant 0 : index
      %c0_146 = arith.constant 0 : index
      %285 = vector.load %arg17[%284, %c0_145, %c0_146] : memref<26x24x128xf32, #tpu.memory_space<vmem>>, vector<1x24x128xf32>
      %286 = vector.shape_cast %285 : vector<1x24x128xf32> to vector<24x128xf32>
      %c55 = arith.constant 55 : index
      %c0_147 = arith.constant 0 : index
      %c0_148 = arith.constant 0 : index
      %287 = vector.load %arg9[%c55, %c0_147, %c0_148] : memref<121x1x128xf32, #tpu.memory_space<vmem>>, vector<1x1x128xf32>
      %288 = vector.shape_cast %287 : vector<1x1x128xf32> to vector<1x128xf32>
      %289 = vector.broadcast %288 : vector<1x128xf32> to vector<24x128xf32>
      %290 = arith.mulf %289, %286 : vector<24x128xf32>
      %291 = arith.addf %277, %290 : vector<24x128xf32>
      %c56 = arith.constant 56 : index
      %c0_149 = arith.constant 0 : index
      %c0_150 = arith.constant 0 : index
      %292 = vector.load %arg9[%c56, %c0_149, %c0_150] : memref<121x1x128xf32, #tpu.memory_space<vmem>>, vector<1x1x128xf32>
      %293 = vector.shape_cast %292 : vector<1x1x128xf32> to vector<1x128xf32>
      %294 = vector.broadcast %293 : vector<1x128xf32> to vector<24x128xf32>
      %295 = arith.mulf %294, %286 : vector<24x128xf32>
      %296 = arith.addf %282, %295 : vector<24x128xf32>
      %c6_i32 = arith.constant 6 : i32
      %297 = arith.addi %arg19, %c6_i32 : i32
      %298 = arith.index_cast %297 : i32 to index
      %c0_151 = arith.constant 0 : index
      %c0_152 = arith.constant 0 : index
      %299 = vector.load %arg17[%298, %c0_151, %c0_152] : memref<26x24x128xf32, #tpu.memory_space<vmem>>, vector<1x24x128xf32>
      %300 = vector.shape_cast %299 : vector<1x24x128xf32> to vector<24x128xf32>
      %c66 = arith.constant 66 : index
      %c0_153 = arith.constant 0 : index
      %c0_154 = arith.constant 0 : index
      %301 = vector.load %arg9[%c66, %c0_153, %c0_154] : memref<121x1x128xf32, #tpu.memory_space<vmem>>, vector<1x1x128xf32>
      %302 = vector.shape_cast %301 : vector<1x1x128xf32> to vector<1x128xf32>
      %303 = vector.broadcast %302 : vector<1x128xf32> to vector<24x128xf32>
      %304 = arith.mulf %303, %300 : vector<24x128xf32>
      %305 = arith.addf %291, %304 : vector<24x128xf32>
      %c67 = arith.constant 67 : index
      %c0_155 = arith.constant 0 : index
      %c0_156 = arith.constant 0 : index
      %306 = vector.load %arg9[%c67, %c0_155, %c0_156] : memref<121x1x128xf32, #tpu.memory_space<vmem>>, vector<1x1x128xf32>
      %307 = vector.shape_cast %306 : vector<1x1x128xf32> to vector<1x128xf32>
      %308 = vector.broadcast %307 : vector<1x128xf32> to vector<24x128xf32>
      %309 = arith.mulf %308, %300 : vector<24x128xf32>
      %310 = arith.addf %296, %309 : vector<24x128xf32>
      %c7_i32 = arith.constant 7 : i32
      %311 = arith.addi %arg19, %c7_i32 : i32
      %312 = arith.index_cast %311 : i32 to index
      %c0_157 = arith.constant 0 : index
      %c0_158 = arith.constant 0 : index
      %313 = vector.load %arg17[%312, %c0_157, %c0_158] : memref<26x24x128xf32, #tpu.memory_space<vmem>>, vector<1x24x128xf32>
      %314 = vector.shape_cast %313 : vector<1x24x128xf32> to vector<24x128xf32>
      %c77 = arith.constant 77 : index
      %c0_159 = arith.constant 0 : index
      %c0_160 = arith.constant 0 : index
      %315 = vector.load %arg9[%c77, %c0_159, %c0_160] : memref<121x1x128xf32, #tpu.memory_space<vmem>>, vector<1x1x128xf32>
      %316 = vector.shape_cast %315 : vector<1x1x128xf32> to vector<1x128xf32>
      %317 = vector.broadcast %316 : vector<1x128xf32> to vector<24x128xf32>
      %318 = arith.mulf %317, %314 : vector<24x128xf32>
      %319 = arith.addf %305, %318 : vector<24x128xf32>
      %c78 = arith.constant 78 : index
      %c0_161 = arith.constant 0 : index
      %c0_162 = arith.constant 0 : index
      %320 = vector.load %arg9[%c78, %c0_161, %c0_162] : memref<121x1x128xf32, #tpu.memory_space<vmem>>, vector<1x1x128xf32>
      %321 = vector.shape_cast %320 : vector<1x1x128xf32> to vector<1x128xf32>
      %322 = vector.broadcast %321 : vector<1x128xf32> to vector<24x128xf32>
      %323 = arith.mulf %322, %314 : vector<24x128xf32>
      %324 = arith.addf %310, %323 : vector<24x128xf32>
      %c8_i32_163 = arith.constant 8 : i32
      %325 = arith.addi %arg19, %c8_i32_163 : i32
      %326 = arith.index_cast %325 : i32 to index
      %c0_164 = arith.constant 0 : index
      %c0_165 = arith.constant 0 : index
      %327 = vector.load %arg17[%326, %c0_164, %c0_165] : memref<26x24x128xf32, #tpu.memory_space<vmem>>, vector<1x24x128xf32>
      %328 = vector.shape_cast %327 : vector<1x24x128xf32> to vector<24x128xf32>
      %c88 = arith.constant 88 : index
      %c0_166 = arith.constant 0 : index
      %c0_167 = arith.constant 0 : index
      %329 = vector.load %arg9[%c88, %c0_166, %c0_167] : memref<121x1x128xf32, #tpu.memory_space<vmem>>, vector<1x1x128xf32>
      %330 = vector.shape_cast %329 : vector<1x1x128xf32> to vector<1x128xf32>
      %331 = vector.broadcast %330 : vector<1x128xf32> to vector<24x128xf32>
      %332 = arith.mulf %331, %328 : vector<24x128xf32>
      %333 = arith.addf %319, %332 : vector<24x128xf32>
      %c89 = arith.constant 89 : index
      %c0_168 = arith.constant 0 : index
      %c0_169 = arith.constant 0 : index
      %334 = vector.load %arg9[%c89, %c0_168, %c0_169] : memref<121x1x128xf32, #tpu.memory_space<vmem>>, vector<1x1x128xf32>
      %335 = vector.shape_cast %334 : vector<1x1x128xf32> to vector<1x128xf32>
      %336 = vector.broadcast %335 : vector<1x128xf32> to vector<24x128xf32>
      %337 = arith.mulf %336, %328 : vector<24x128xf32>
      %338 = arith.addf %324, %337 : vector<24x128xf32>
      %c9_i32 = arith.constant 9 : i32
      %339 = arith.addi %arg19, %c9_i32 : i32
      %340 = arith.index_cast %339 : i32 to index
      %c0_170 = arith.constant 0 : index
      %c0_171 = arith.constant 0 : index
      %341 = vector.load %arg17[%340, %c0_170, %c0_171] : memref<26x24x128xf32, #tpu.memory_space<vmem>>, vector<1x24x128xf32>
      %342 = vector.shape_cast %341 : vector<1x24x128xf32> to vector<24x128xf32>
      %c99 = arith.constant 99 : index
      %c0_172 = arith.constant 0 : index
      %c0_173 = arith.constant 0 : index
      %343 = vector.load %arg9[%c99, %c0_172, %c0_173] : memref<121x1x128xf32, #tpu.memory_space<vmem>>, vector<1x1x128xf32>
      %344 = vector.shape_cast %343 : vector<1x1x128xf32> to vector<1x128xf32>
      %345 = vector.broadcast %344 : vector<1x128xf32> to vector<24x128xf32>
      %346 = arith.mulf %345, %342 : vector<24x128xf32>
      %347 = arith.addf %333, %346 : vector<24x128xf32>
      %c100 = arith.constant 100 : index
      %c0_174 = arith.constant 0 : index
      %c0_175 = arith.constant 0 : index
      %348 = vector.load %arg9[%c100, %c0_174, %c0_175] : memref<121x1x128xf32, #tpu.memory_space<vmem>>, vector<1x1x128xf32>
      %349 = vector.shape_cast %348 : vector<1x1x128xf32> to vector<1x128xf32>
      %350 = vector.broadcast %349 : vector<1x128xf32> to vector<24x128xf32>
      %351 = arith.mulf %350, %342 : vector<24x128xf32>
      %352 = arith.addf %338, %351 : vector<24x128xf32>
      %c10_i32_176 = arith.constant 10 : i32
      %353 = arith.addi %arg19, %c10_i32_176 : i32
      %354 = arith.index_cast %353 : i32 to index
      %c0_177 = arith.constant 0 : index
      %c0_178 = arith.constant 0 : index
      %355 = vector.load %arg17[%354, %c0_177, %c0_178] : memref<26x24x128xf32, #tpu.memory_space<vmem>>, vector<1x24x128xf32>
      %356 = vector.shape_cast %355 : vector<1x24x128xf32> to vector<24x128xf32>
      %c110 = arith.constant 110 : index
      %c0_179 = arith.constant 0 : index
      %c0_180 = arith.constant 0 : index
      %357 = vector.load %arg9[%c110, %c0_179, %c0_180] : memref<121x1x128xf32, #tpu.memory_space<vmem>>, vector<1x1x128xf32>
      %358 = vector.shape_cast %357 : vector<1x1x128xf32> to vector<1x128xf32>
      %359 = vector.broadcast %358 : vector<1x128xf32> to vector<24x128xf32>
      %360 = arith.mulf %359, %356 : vector<24x128xf32>
      %361 = arith.addf %347, %360 : vector<24x128xf32>
      %c111 = arith.constant 111 : index
      %c0_181 = arith.constant 0 : index
      %c0_182 = arith.constant 0 : index
      %362 = vector.load %arg9[%c111, %c0_181, %c0_182] : memref<121x1x128xf32, #tpu.memory_space<vmem>>, vector<1x1x128xf32>
      %363 = vector.shape_cast %362 : vector<1x1x128xf32> to vector<1x128xf32>
      %364 = vector.broadcast %363 : vector<1x128xf32> to vector<24x128xf32>
      %365 = arith.mulf %364, %356 : vector<24x128xf32>
      %366 = arith.addf %352, %365 : vector<24x128xf32>
      %367 = vector.extract_strided_slice %361 {offsets = [0, 0], sizes = [8, 128], strides = [1, 1]} : vector<24x128xf32> to vector<8x128xf32>
      %368 = arith.addf %210, %367 : vector<8x128xf32>
      %369 = vector.extract_strided_slice %366 {offsets = [1, 0], sizes = [8, 128], strides = [1, 1]} : vector<24x128xf32> to vector<8x128xf32>
      %370 = arith.addf %368, %369 : vector<8x128xf32>
      %cst_183 = arith.constant 0.000000e+00 : f32
      %371 = vector.broadcast %cst_183 : f32 to vector<24x128xf32>
      %cst_184 = arith.constant 0.000000e+00 : f32
      %372 = vector.broadcast %cst_184 : f32 to vector<24x128xf32>
      %c0_i32_185 = arith.constant 0 : i32
      %373 = arith.addi %arg19, %c0_i32_185 : i32
      %374 = arith.index_cast %373 : i32 to index
      %c0_186 = arith.constant 0 : index
      %c0_187 = arith.constant 0 : index
      %375 = vector.load %arg17[%374, %c0_186, %c0_187] : memref<26x24x128xf32, #tpu.memory_space<vmem>>, vector<1x24x128xf32>
      %376 = vector.shape_cast %375 : vector<1x24x128xf32> to vector<24x128xf32>
      %c2 = arith.constant 2 : index
      %c0_188 = arith.constant 0 : index
      %c0_189 = arith.constant 0 : index
      %377 = vector.load %arg9[%c2, %c0_188, %c0_189] : memref<121x1x128xf32, #tpu.memory_space<vmem>>, vector<1x1x128xf32>
      %378 = vector.shape_cast %377 : vector<1x1x128xf32> to vector<1x128xf32>
      %379 = vector.broadcast %378 : vector<1x128xf32> to vector<24x128xf32>
      %380 = arith.mulf %379, %376 : vector<24x128xf32>
      %381 = arith.addf %371, %380 : vector<24x128xf32>
      %c3 = arith.constant 3 : index
      %c0_190 = arith.constant 0 : index
      %c0_191 = arith.constant 0 : index
      %382 = vector.load %arg9[%c3, %c0_190, %c0_191] : memref<121x1x128xf32, #tpu.memory_space<vmem>>, vector<1x1x128xf32>
      %383 = vector.shape_cast %382 : vector<1x1x128xf32> to vector<1x128xf32>
      %384 = vector.broadcast %383 : vector<1x128xf32> to vector<24x128xf32>
      %385 = arith.mulf %384, %376 : vector<24x128xf32>
      %386 = arith.addf %372, %385 : vector<24x128xf32>
      %c1_i32_192 = arith.constant 1 : i32
      %387 = arith.addi %arg19, %c1_i32_192 : i32
      %388 = arith.index_cast %387 : i32 to index
      %c0_193 = arith.constant 0 : index
      %c0_194 = arith.constant 0 : index
      %389 = vector.load %arg17[%388, %c0_193, %c0_194] : memref<26x24x128xf32, #tpu.memory_space<vmem>>, vector<1x24x128xf32>
      %390 = vector.shape_cast %389 : vector<1x24x128xf32> to vector<24x128xf32>
      %c13 = arith.constant 13 : index
      %c0_195 = arith.constant 0 : index
      %c0_196 = arith.constant 0 : index
      %391 = vector.load %arg9[%c13, %c0_195, %c0_196] : memref<121x1x128xf32, #tpu.memory_space<vmem>>, vector<1x1x128xf32>
      %392 = vector.shape_cast %391 : vector<1x1x128xf32> to vector<1x128xf32>
      %393 = vector.broadcast %392 : vector<1x128xf32> to vector<24x128xf32>
      %394 = arith.mulf %393, %390 : vector<24x128xf32>
      %395 = arith.addf %381, %394 : vector<24x128xf32>
      %c14 = arith.constant 14 : index
      %c0_197 = arith.constant 0 : index
      %c0_198 = arith.constant 0 : index
      %396 = vector.load %arg9[%c14, %c0_197, %c0_198] : memref<121x1x128xf32, #tpu.memory_space<vmem>>, vector<1x1x128xf32>
      %397 = vector.shape_cast %396 : vector<1x1x128xf32> to vector<1x128xf32>
      %398 = vector.broadcast %397 : vector<1x128xf32> to vector<24x128xf32>
      %399 = arith.mulf %398, %390 : vector<24x128xf32>
      %400 = arith.addf %386, %399 : vector<24x128xf32>
      %c2_i32_199 = arith.constant 2 : i32
      %401 = arith.addi %arg19, %c2_i32_199 : i32
      %402 = arith.index_cast %401 : i32 to index
      %c0_200 = arith.constant 0 : index
      %c0_201 = arith.constant 0 : index
      %403 = vector.load %arg17[%402, %c0_200, %c0_201] : memref<26x24x128xf32, #tpu.memory_space<vmem>>, vector<1x24x128xf32>
      %404 = vector.shape_cast %403 : vector<1x24x128xf32> to vector<24x128xf32>
      %c24 = arith.constant 24 : index
      %c0_202 = arith.constant 0 : index
      %c0_203 = arith.constant 0 : index
      %405 = vector.load %arg9[%c24, %c0_202, %c0_203] : memref<121x1x128xf32, #tpu.memory_space<vmem>>, vector<1x1x128xf32>
      %406 = vector.shape_cast %405 : vector<1x1x128xf32> to vector<1x128xf32>
      %407 = vector.broadcast %406 : vector<1x128xf32> to vector<24x128xf32>
      %408 = arith.mulf %407, %404 : vector<24x128xf32>
      %409 = arith.addf %395, %408 : vector<24x128xf32>
      %c25 = arith.constant 25 : index
      %c0_204 = arith.constant 0 : index
      %c0_205 = arith.constant 0 : index
      %410 = vector.load %arg9[%c25, %c0_204, %c0_205] : memref<121x1x128xf32, #tpu.memory_space<vmem>>, vector<1x1x128xf32>
      %411 = vector.shape_cast %410 : vector<1x1x128xf32> to vector<1x128xf32>
      %412 = vector.broadcast %411 : vector<1x128xf32> to vector<24x128xf32>
      %413 = arith.mulf %412, %404 : vector<24x128xf32>
      %414 = arith.addf %400, %413 : vector<24x128xf32>
      %c3_i32_206 = arith.constant 3 : i32
      %415 = arith.addi %arg19, %c3_i32_206 : i32
      %416 = arith.index_cast %415 : i32 to index
      %c0_207 = arith.constant 0 : index
      %c0_208 = arith.constant 0 : index
      %417 = vector.load %arg17[%416, %c0_207, %c0_208] : memref<26x24x128xf32, #tpu.memory_space<vmem>>, vector<1x24x128xf32>
      %418 = vector.shape_cast %417 : vector<1x24x128xf32> to vector<24x128xf32>
      %c35 = arith.constant 35 : index
      %c0_209 = arith.constant 0 : index
      %c0_210 = arith.constant 0 : index
      %419 = vector.load %arg9[%c35, %c0_209, %c0_210] : memref<121x1x128xf32, #tpu.memory_space<vmem>>, vector<1x1x128xf32>
      %420 = vector.shape_cast %419 : vector<1x1x128xf32> to vector<1x128xf32>
      %421 = vector.broadcast %420 : vector<1x128xf32> to vector<24x128xf32>
      %422 = arith.mulf %421, %418 : vector<24x128xf32>
      %423 = arith.addf %409, %422 : vector<24x128xf32>
      %c36 = arith.constant 36 : index
      %c0_211 = arith.constant 0 : index
      %c0_212 = arith.constant 0 : index
      %424 = vector.load %arg9[%c36, %c0_211, %c0_212] : memref<121x1x128xf32, #tpu.memory_space<vmem>>, vector<1x1x128xf32>
      %425 = vector.shape_cast %424 : vector<1x1x128xf32> to vector<1x128xf32>
      %426 = vector.broadcast %425 : vector<1x128xf32> to vector<24x128xf32>
      %427 = arith.mulf %426, %418 : vector<24x128xf32>
      %428 = arith.addf %414, %427 : vector<24x128xf32>
      %c4_i32_213 = arith.constant 4 : i32
      %429 = arith.addi %arg19, %c4_i32_213 : i32
      %430 = arith.index_cast %429 : i32 to index
      %c0_214 = arith.constant 0 : index
      %c0_215 = arith.constant 0 : index
      %431 = vector.load %arg17[%430, %c0_214, %c0_215] : memref<26x24x128xf32, #tpu.memory_space<vmem>>, vector<1x24x128xf32>
      %432 = vector.shape_cast %431 : vector<1x24x128xf32> to vector<24x128xf32>
      %c46 = arith.constant 46 : index
      %c0_216 = arith.constant 0 : index
      %c0_217 = arith.constant 0 : index
      %433 = vector.load %arg9[%c46, %c0_216, %c0_217] : memref<121x1x128xf32, #tpu.memory_space<vmem>>, vector<1x1x128xf32>
      %434 = vector.shape_cast %433 : vector<1x1x128xf32> to vector<1x128xf32>
      %435 = vector.broadcast %434 : vector<1x128xf32> to vector<24x128xf32>
      %436 = arith.mulf %435, %432 : vector<24x128xf32>
      %437 = arith.addf %423, %436 : vector<24x128xf32>
      %c47 = arith.constant 47 : index
      %c0_218 = arith.constant 0 : index
      %c0_219 = arith.constant 0 : index
      %438 = vector.load %arg9[%c47, %c0_218, %c0_219] : memref<121x1x128xf32, #tpu.memory_space<vmem>>, vector<1x1x128xf32>
      %439 = vector.shape_cast %438 : vector<1x1x128xf32> to vector<1x128xf32>
      %440 = vector.broadcast %439 : vector<1x128xf32> to vector<24x128xf32>
      %441 = arith.mulf %440, %432 : vector<24x128xf32>
      %442 = arith.addf %428, %441 : vector<24x128xf32>
      %c5_i32_220 = arith.constant 5 : i32
      %443 = arith.addi %arg19, %c5_i32_220 : i32
      %444 = arith.index_cast %443 : i32 to index
      %c0_221 = arith.constant 0 : index
      %c0_222 = arith.constant 0 : index
      %445 = vector.load %arg17[%444, %c0_221, %c0_222] : memref<26x24x128xf32, #tpu.memory_space<vmem>>, vector<1x24x128xf32>
      %446 = vector.shape_cast %445 : vector<1x24x128xf32> to vector<24x128xf32>
      %c57 = arith.constant 57 : index
      %c0_223 = arith.constant 0 : index
      %c0_224 = arith.constant 0 : index
      %447 = vector.load %arg9[%c57, %c0_223, %c0_224] : memref<121x1x128xf32, #tpu.memory_space<vmem>>, vector<1x1x128xf32>
      %448 = vector.shape_cast %447 : vector<1x1x128xf32> to vector<1x128xf32>
      %449 = vector.broadcast %448 : vector<1x128xf32> to vector<24x128xf32>
      %450 = arith.mulf %449, %446 : vector<24x128xf32>
      %451 = arith.addf %437, %450 : vector<24x128xf32>
      %c58 = arith.constant 58 : index
      %c0_225 = arith.constant 0 : index
      %c0_226 = arith.constant 0 : index
      %452 = vector.load %arg9[%c58, %c0_225, %c0_226] : memref<121x1x128xf32, #tpu.memory_space<vmem>>, vector<1x1x128xf32>
      %453 = vector.shape_cast %452 : vector<1x1x128xf32> to vector<1x128xf32>
      %454 = vector.broadcast %453 : vector<1x128xf32> to vector<24x128xf32>
      %455 = arith.mulf %454, %446 : vector<24x128xf32>
      %456 = arith.addf %442, %455 : vector<24x128xf32>
      %c6_i32_227 = arith.constant 6 : i32
      %457 = arith.addi %arg19, %c6_i32_227 : i32
      %458 = arith.index_cast %457 : i32 to index
      %c0_228 = arith.constant 0 : index
      %c0_229 = arith.constant 0 : index
      %459 = vector.load %arg17[%458, %c0_228, %c0_229] : memref<26x24x128xf32, #tpu.memory_space<vmem>>, vector<1x24x128xf32>
      %460 = vector.shape_cast %459 : vector<1x24x128xf32> to vector<24x128xf32>
      %c68 = arith.constant 68 : index
      %c0_230 = arith.constant 0 : index
      %c0_231 = arith.constant 0 : index
      %461 = vector.load %arg9[%c68, %c0_230, %c0_231] : memref<121x1x128xf32, #tpu.memory_space<vmem>>, vector<1x1x128xf32>
      %462 = vector.shape_cast %461 : vector<1x1x128xf32> to vector<1x128xf32>
      %463 = vector.broadcast %462 : vector<1x128xf32> to vector<24x128xf32>
      %464 = arith.mulf %463, %460 : vector<24x128xf32>
      %465 = arith.addf %451, %464 : vector<24x128xf32>
      %c69 = arith.constant 69 : index
      %c0_232 = arith.constant 0 : index
      %c0_233 = arith.constant 0 : index
      %466 = vector.load %arg9[%c69, %c0_232, %c0_233] : memref<121x1x128xf32, #tpu.memory_space<vmem>>, vector<1x1x128xf32>
      %467 = vector.shape_cast %466 : vector<1x1x128xf32> to vector<1x128xf32>
      %468 = vector.broadcast %467 : vector<1x128xf32> to vector<24x128xf32>
      %469 = arith.mulf %468, %460 : vector<24x128xf32>
      %470 = arith.addf %456, %469 : vector<24x128xf32>
      %c7_i32_234 = arith.constant 7 : i32
      %471 = arith.addi %arg19, %c7_i32_234 : i32
      %472 = arith.index_cast %471 : i32 to index
      %c0_235 = arith.constant 0 : index
      %c0_236 = arith.constant 0 : index
      %473 = vector.load %arg17[%472, %c0_235, %c0_236] : memref<26x24x128xf32, #tpu.memory_space<vmem>>, vector<1x24x128xf32>
      %474 = vector.shape_cast %473 : vector<1x24x128xf32> to vector<24x128xf32>
      %c79 = arith.constant 79 : index
      %c0_237 = arith.constant 0 : index
      %c0_238 = arith.constant 0 : index
      %475 = vector.load %arg9[%c79, %c0_237, %c0_238] : memref<121x1x128xf32, #tpu.memory_space<vmem>>, vector<1x1x128xf32>
      %476 = vector.shape_cast %475 : vector<1x1x128xf32> to vector<1x128xf32>
      %477 = vector.broadcast %476 : vector<1x128xf32> to vector<24x128xf32>
      %478 = arith.mulf %477, %474 : vector<24x128xf32>
      %479 = arith.addf %465, %478 : vector<24x128xf32>
      %c80 = arith.constant 80 : index
      %c0_239 = arith.constant 0 : index
      %c0_240 = arith.constant 0 : index
      %480 = vector.load %arg9[%c80, %c0_239, %c0_240] : memref<121x1x128xf32, #tpu.memory_space<vmem>>, vector<1x1x128xf32>
      %481 = vector.shape_cast %480 : vector<1x1x128xf32> to vector<1x128xf32>
      %482 = vector.broadcast %481 : vector<1x128xf32> to vector<24x128xf32>
      %483 = arith.mulf %482, %474 : vector<24x128xf32>
      %484 = arith.addf %470, %483 : vector<24x128xf32>
      %c8_i32_241 = arith.constant 8 : i32
      %485 = arith.addi %arg19, %c8_i32_241 : i32
      %486 = arith.index_cast %485 : i32 to index
      %c0_242 = arith.constant 0 : index
      %c0_243 = arith.constant 0 : index
      %487 = vector.load %arg17[%486, %c0_242, %c0_243] : memref<26x24x128xf32, #tpu.memory_space<vmem>>, vector<1x24x128xf32>
      %488 = vector.shape_cast %487 : vector<1x24x128xf32> to vector<24x128xf32>
      %c90 = arith.constant 90 : index
      %c0_244 = arith.constant 0 : index
      %c0_245 = arith.constant 0 : index
      %489 = vector.load %arg9[%c90, %c0_244, %c0_245] : memref<121x1x128xf32, #tpu.memory_space<vmem>>, vector<1x1x128xf32>
      %490 = vector.shape_cast %489 : vector<1x1x128xf32> to vector<1x128xf32>
      %491 = vector.broadcast %490 : vector<1x128xf32> to vector<24x128xf32>
      %492 = arith.mulf %491, %488 : vector<24x128xf32>
      %493 = arith.addf %479, %492 : vector<24x128xf32>
      %c91 = arith.constant 91 : index
      %c0_246 = arith.constant 0 : index
      %c0_247 = arith.constant 0 : index
      %494 = vector.load %arg9[%c91, %c0_246, %c0_247] : memref<121x1x128xf32, #tpu.memory_space<vmem>>, vector<1x1x128xf32>
      %495 = vector.shape_cast %494 : vector<1x1x128xf32> to vector<1x128xf32>
      %496 = vector.broadcast %495 : vector<1x128xf32> to vector<24x128xf32>
      %497 = arith.mulf %496, %488 : vector<24x128xf32>
      %498 = arith.addf %484, %497 : vector<24x128xf32>
      %c9_i32_248 = arith.constant 9 : i32
      %499 = arith.addi %arg19, %c9_i32_248 : i32
      %500 = arith.index_cast %499 : i32 to index
      %c0_249 = arith.constant 0 : index
      %c0_250 = arith.constant 0 : index
      %501 = vector.load %arg17[%500, %c0_249, %c0_250] : memref<26x24x128xf32, #tpu.memory_space<vmem>>, vector<1x24x128xf32>
      %502 = vector.shape_cast %501 : vector<1x24x128xf32> to vector<24x128xf32>
      %c101 = arith.constant 101 : index
      %c0_251 = arith.constant 0 : index
      %c0_252 = arith.constant 0 : index
      %503 = vector.load %arg9[%c101, %c0_251, %c0_252] : memref<121x1x128xf32, #tpu.memory_space<vmem>>, vector<1x1x128xf32>
      %504 = vector.shape_cast %503 : vector<1x1x128xf32> to vector<1x128xf32>
      %505 = vector.broadcast %504 : vector<1x128xf32> to vector<24x128xf32>
      %506 = arith.mulf %505, %502 : vector<24x128xf32>
      %507 = arith.addf %493, %506 : vector<24x128xf32>
      %c102 = arith.constant 102 : index
      %c0_253 = arith.constant 0 : index
      %c0_254 = arith.constant 0 : index
      %508 = vector.load %arg9[%c102, %c0_253, %c0_254] : memref<121x1x128xf32, #tpu.memory_space<vmem>>, vector<1x1x128xf32>
      %509 = vector.shape_cast %508 : vector<1x1x128xf32> to vector<1x128xf32>
      %510 = vector.broadcast %509 : vector<1x128xf32> to vector<24x128xf32>
      %511 = arith.mulf %510, %502 : vector<24x128xf32>
      %512 = arith.addf %498, %511 : vector<24x128xf32>
      %c10_i32_255 = arith.constant 10 : i32
      %513 = arith.addi %arg19, %c10_i32_255 : i32
      %514 = arith.index_cast %513 : i32 to index
      %c0_256 = arith.constant 0 : index
      %c0_257 = arith.constant 0 : index
      %515 = vector.load %arg17[%514, %c0_256, %c0_257] : memref<26x24x128xf32, #tpu.memory_space<vmem>>, vector<1x24x128xf32>
      %516 = vector.shape_cast %515 : vector<1x24x128xf32> to vector<24x128xf32>
      %c112 = arith.constant 112 : index
      %c0_258 = arith.constant 0 : index
      %c0_259 = arith.constant 0 : index
      %517 = vector.load %arg9[%c112, %c0_258, %c0_259] : memref<121x1x128xf32, #tpu.memory_space<vmem>>, vector<1x1x128xf32>
      %518 = vector.shape_cast %517 : vector<1x1x128xf32> to vector<1x128xf32>
      %519 = vector.broadcast %518 : vector<1x128xf32> to vector<24x128xf32>
      %520 = arith.mulf %519, %516 : vector<24x128xf32>
      %521 = arith.addf %507, %520 : vector<24x128xf32>
      %c113 = arith.constant 113 : index
      %c0_260 = arith.constant 0 : index
      %c0_261 = arith.constant 0 : index
      %522 = vector.load %arg9[%c113, %c0_260, %c0_261] : memref<121x1x128xf32, #tpu.memory_space<vmem>>, vector<1x1x128xf32>
      %523 = vector.shape_cast %522 : vector<1x1x128xf32> to vector<1x128xf32>
      %524 = vector.broadcast %523 : vector<1x128xf32> to vector<24x128xf32>
      %525 = arith.mulf %524, %516 : vector<24x128xf32>
      %526 = arith.addf %512, %525 : vector<24x128xf32>
      %527 = vector.extract_strided_slice %521 {offsets = [2, 0], sizes = [8, 128], strides = [1, 1]} : vector<24x128xf32> to vector<8x128xf32>
      %528 = arith.addf %370, %527 : vector<8x128xf32>
      %529 = vector.extract_strided_slice %526 {offsets = [3, 0], sizes = [8, 128], strides = [1, 1]} : vector<24x128xf32> to vector<8x128xf32>
      %530 = arith.addf %528, %529 : vector<8x128xf32>
      %cst_262 = arith.constant 0.000000e+00 : f32
      %531 = vector.broadcast %cst_262 : f32 to vector<24x128xf32>
      %cst_263 = arith.constant 0.000000e+00 : f32
      %532 = vector.broadcast %cst_263 : f32 to vector<24x128xf32>
      %c0_i32_264 = arith.constant 0 : i32
      %533 = arith.addi %arg19, %c0_i32_264 : i32
      %534 = arith.index_cast %533 : i32 to index
      %c0_265 = arith.constant 0 : index
      %c0_266 = arith.constant 0 : index
      %535 = vector.load %arg17[%534, %c0_265, %c0_266] : memref<26x24x128xf32, #tpu.memory_space<vmem>>, vector<1x24x128xf32>
      %536 = vector.shape_cast %535 : vector<1x24x128xf32> to vector<24x128xf32>
      %c4 = arith.constant 4 : index
      %c0_267 = arith.constant 0 : index
      %c0_268 = arith.constant 0 : index
      %537 = vector.load %arg9[%c4, %c0_267, %c0_268] : memref<121x1x128xf32, #tpu.memory_space<vmem>>, vector<1x1x128xf32>
      %538 = vector.shape_cast %537 : vector<1x1x128xf32> to vector<1x128xf32>
      %539 = vector.broadcast %538 : vector<1x128xf32> to vector<24x128xf32>
      %540 = arith.mulf %539, %536 : vector<24x128xf32>
      %541 = arith.addf %531, %540 : vector<24x128xf32>
      %c5 = arith.constant 5 : index
      %c0_269 = arith.constant 0 : index
      %c0_270 = arith.constant 0 : index
      %542 = vector.load %arg9[%c5, %c0_269, %c0_270] : memref<121x1x128xf32, #tpu.memory_space<vmem>>, vector<1x1x128xf32>
      %543 = vector.shape_cast %542 : vector<1x1x128xf32> to vector<1x128xf32>
      %544 = vector.broadcast %543 : vector<1x128xf32> to vector<24x128xf32>
      %545 = arith.mulf %544, %536 : vector<24x128xf32>
      %546 = arith.addf %532, %545 : vector<24x128xf32>
      %c1_i32_271 = arith.constant 1 : i32
      %547 = arith.addi %arg19, %c1_i32_271 : i32
      %548 = arith.index_cast %547 : i32 to index
      %c0_272 = arith.constant 0 : index
      %c0_273 = arith.constant 0 : index
      %549 = vector.load %arg17[%548, %c0_272, %c0_273] : memref<26x24x128xf32, #tpu.memory_space<vmem>>, vector<1x24x128xf32>
      %550 = vector.shape_cast %549 : vector<1x24x128xf32> to vector<24x128xf32>
      %c15_274 = arith.constant 15 : index
      %c0_275 = arith.constant 0 : index
      %c0_276 = arith.constant 0 : index
      %551 = vector.load %arg9[%c15_274, %c0_275, %c0_276] : memref<121x1x128xf32, #tpu.memory_space<vmem>>, vector<1x1x128xf32>
      %552 = vector.shape_cast %551 : vector<1x1x128xf32> to vector<1x128xf32>
      %553 = vector.broadcast %552 : vector<1x128xf32> to vector<24x128xf32>
      %554 = arith.mulf %553, %550 : vector<24x128xf32>
      %555 = arith.addf %541, %554 : vector<24x128xf32>
      %c16 = arith.constant 16 : index
      %c0_277 = arith.constant 0 : index
      %c0_278 = arith.constant 0 : index
      %556 = vector.load %arg9[%c16, %c0_277, %c0_278] : memref<121x1x128xf32, #tpu.memory_space<vmem>>, vector<1x1x128xf32>
      %557 = vector.shape_cast %556 : vector<1x1x128xf32> to vector<1x128xf32>
      %558 = vector.broadcast %557 : vector<1x128xf32> to vector<24x128xf32>
      %559 = arith.mulf %558, %550 : vector<24x128xf32>
      %560 = arith.addf %546, %559 : vector<24x128xf32>
      %c2_i32_279 = arith.constant 2 : i32
      %561 = arith.addi %arg19, %c2_i32_279 : i32
      %562 = arith.index_cast %561 : i32 to index
      %c0_280 = arith.constant 0 : index
      %c0_281 = arith.constant 0 : index
      %563 = vector.load %arg17[%562, %c0_280, %c0_281] : memref<26x24x128xf32, #tpu.memory_space<vmem>>, vector<1x24x128xf32>
      %564 = vector.shape_cast %563 : vector<1x24x128xf32> to vector<24x128xf32>
      %c26 = arith.constant 26 : index
      %c0_282 = arith.constant 0 : index
      %c0_283 = arith.constant 0 : index
      %565 = vector.load %arg9[%c26, %c0_282, %c0_283] : memref<121x1x128xf32, #tpu.memory_space<vmem>>, vector<1x1x128xf32>
      %566 = vector.shape_cast %565 : vector<1x1x128xf32> to vector<1x128xf32>
      %567 = vector.broadcast %566 : vector<1x128xf32> to vector<24x128xf32>
      %568 = arith.mulf %567, %564 : vector<24x128xf32>
      %569 = arith.addf %555, %568 : vector<24x128xf32>
      %c27 = arith.constant 27 : index
      %c0_284 = arith.constant 0 : index
      %c0_285 = arith.constant 0 : index
      %570 = vector.load %arg9[%c27, %c0_284, %c0_285] : memref<121x1x128xf32, #tpu.memory_space<vmem>>, vector<1x1x128xf32>
      %571 = vector.shape_cast %570 : vector<1x1x128xf32> to vector<1x128xf32>
      %572 = vector.broadcast %571 : vector<1x128xf32> to vector<24x128xf32>
      %573 = arith.mulf %572, %564 : vector<24x128xf32>
      %574 = arith.addf %560, %573 : vector<24x128xf32>
      %c3_i32_286 = arith.constant 3 : i32
      %575 = arith.addi %arg19, %c3_i32_286 : i32
      %576 = arith.index_cast %575 : i32 to index
      %c0_287 = arith.constant 0 : index
      %c0_288 = arith.constant 0 : index
      %577 = vector.load %arg17[%576, %c0_287, %c0_288] : memref<26x24x128xf32, #tpu.memory_space<vmem>>, vector<1x24x128xf32>
      %578 = vector.shape_cast %577 : vector<1x24x128xf32> to vector<24x128xf32>
      %c37 = arith.constant 37 : index
      %c0_289 = arith.constant 0 : index
      %c0_290 = arith.constant 0 : index
      %579 = vector.load %arg9[%c37, %c0_289, %c0_290] : memref<121x1x128xf32, #tpu.memory_space<vmem>>, vector<1x1x128xf32>
      %580 = vector.shape_cast %579 : vector<1x1x128xf32> to vector<1x128xf32>
      %581 = vector.broadcast %580 : vector<1x128xf32> to vector<24x128xf32>
      %582 = arith.mulf %581, %578 : vector<24x128xf32>
      %583 = arith.addf %569, %582 : vector<24x128xf32>
      %c38 = arith.constant 38 : index
      %c0_291 = arith.constant 0 : index
      %c0_292 = arith.constant 0 : index
      %584 = vector.load %arg9[%c38, %c0_291, %c0_292] : memref<121x1x128xf32, #tpu.memory_space<vmem>>, vector<1x1x128xf32>
      %585 = vector.shape_cast %584 : vector<1x1x128xf32> to vector<1x128xf32>
      %586 = vector.broadcast %585 : vector<1x128xf32> to vector<24x128xf32>
      %587 = arith.mulf %586, %578 : vector<24x128xf32>
      %588 = arith.addf %574, %587 : vector<24x128xf32>
      %c4_i32_293 = arith.constant 4 : i32
      %589 = arith.addi %arg19, %c4_i32_293 : i32
      %590 = arith.index_cast %589 : i32 to index
      %c0_294 = arith.constant 0 : index
      %c0_295 = arith.constant 0 : index
      %591 = vector.load %arg17[%590, %c0_294, %c0_295] : memref<26x24x128xf32, #tpu.memory_space<vmem>>, vector<1x24x128xf32>
      %592 = vector.shape_cast %591 : vector<1x24x128xf32> to vector<24x128xf32>
      %c48 = arith.constant 48 : index
      %c0_296 = arith.constant 0 : index
      %c0_297 = arith.constant 0 : index
      %593 = vector.load %arg9[%c48, %c0_296, %c0_297] : memref<121x1x128xf32, #tpu.memory_space<vmem>>, vector<1x1x128xf32>
      %594 = vector.shape_cast %593 : vector<1x1x128xf32> to vector<1x128xf32>
      %595 = vector.broadcast %594 : vector<1x128xf32> to vector<24x128xf32>
      %596 = arith.mulf %595, %592 : vector<24x128xf32>
      %597 = arith.addf %583, %596 : vector<24x128xf32>
      %c49 = arith.constant 49 : index
      %c0_298 = arith.constant 0 : index
      %c0_299 = arith.constant 0 : index
      %598 = vector.load %arg9[%c49, %c0_298, %c0_299] : memref<121x1x128xf32, #tpu.memory_space<vmem>>, vector<1x1x128xf32>
      %599 = vector.shape_cast %598 : vector<1x1x128xf32> to vector<1x128xf32>
      %600 = vector.broadcast %599 : vector<1x128xf32> to vector<24x128xf32>
      %601 = arith.mulf %600, %592 : vector<24x128xf32>
      %602 = arith.addf %588, %601 : vector<24x128xf32>
      %c5_i32_300 = arith.constant 5 : i32
      %603 = arith.addi %arg19, %c5_i32_300 : i32
      %604 = arith.index_cast %603 : i32 to index
      %c0_301 = arith.constant 0 : index
      %c0_302 = arith.constant 0 : index
      %605 = vector.load %arg17[%604, %c0_301, %c0_302] : memref<26x24x128xf32, #tpu.memory_space<vmem>>, vector<1x24x128xf32>
      %606 = vector.shape_cast %605 : vector<1x24x128xf32> to vector<24x128xf32>
      %c59 = arith.constant 59 : index
      %c0_303 = arith.constant 0 : index
      %c0_304 = arith.constant 0 : index
      %607 = vector.load %arg9[%c59, %c0_303, %c0_304] : memref<121x1x128xf32, #tpu.memory_space<vmem>>, vector<1x1x128xf32>
      %608 = vector.shape_cast %607 : vector<1x1x128xf32> to vector<1x128xf32>
      %609 = vector.broadcast %608 : vector<1x128xf32> to vector<24x128xf32>
      %610 = arith.mulf %609, %606 : vector<24x128xf32>
      %611 = arith.addf %597, %610 : vector<24x128xf32>
      %c60 = arith.constant 60 : index
      %c0_305 = arith.constant 0 : index
      %c0_306 = arith.constant 0 : index
      %612 = vector.load %arg9[%c60, %c0_305, %c0_306] : memref<121x1x128xf32, #tpu.memory_space<vmem>>, vector<1x1x128xf32>
      %613 = vector.shape_cast %612 : vector<1x1x128xf32> to vector<1x128xf32>
      %614 = vector.broadcast %613 : vector<1x128xf32> to vector<24x128xf32>
      %615 = arith.mulf %614, %606 : vector<24x128xf32>
      %616 = arith.addf %602, %615 : vector<24x128xf32>
      %c6_i32_307 = arith.constant 6 : i32
      %617 = arith.addi %arg19, %c6_i32_307 : i32
      %618 = arith.index_cast %617 : i32 to index
      %c0_308 = arith.constant 0 : index
      %c0_309 = arith.constant 0 : index
      %619 = vector.load %arg17[%618, %c0_308, %c0_309] : memref<26x24x128xf32, #tpu.memory_space<vmem>>, vector<1x24x128xf32>
      %620 = vector.shape_cast %619 : vector<1x24x128xf32> to vector<24x128xf32>
      %c70 = arith.constant 70 : index
      %c0_310 = arith.constant 0 : index
      %c0_311 = arith.constant 0 : index
      %621 = vector.load %arg9[%c70, %c0_310, %c0_311] : memref<121x1x128xf32, #tpu.memory_space<vmem>>, vector<1x1x128xf32>
      %622 = vector.shape_cast %621 : vector<1x1x128xf32> to vector<1x128xf32>
      %623 = vector.broadcast %622 : vector<1x128xf32> to vector<24x128xf32>
      %624 = arith.mulf %623, %620 : vector<24x128xf32>
      %625 = arith.addf %611, %624 : vector<24x128xf32>
      %c71 = arith.constant 71 : index
      %c0_312 = arith.constant 0 : index
      %c0_313 = arith.constant 0 : index
      %626 = vector.load %arg9[%c71, %c0_312, %c0_313] : memref<121x1x128xf32, #tpu.memory_space<vmem>>, vector<1x1x128xf32>
      %627 = vector.shape_cast %626 : vector<1x1x128xf32> to vector<1x128xf32>
      %628 = vector.broadcast %627 : vector<1x128xf32> to vector<24x128xf32>
      %629 = arith.mulf %628, %620 : vector<24x128xf32>
      %630 = arith.addf %616, %629 : vector<24x128xf32>
      %c7_i32_314 = arith.constant 7 : i32
      %631 = arith.addi %arg19, %c7_i32_314 : i32
      %632 = arith.index_cast %631 : i32 to index
      %c0_315 = arith.constant 0 : index
      %c0_316 = arith.constant 0 : index
      %633 = vector.load %arg17[%632, %c0_315, %c0_316] : memref<26x24x128xf32, #tpu.memory_space<vmem>>, vector<1x24x128xf32>
      %634 = vector.shape_cast %633 : vector<1x24x128xf32> to vector<24x128xf32>
      %c81 = arith.constant 81 : index
      %c0_317 = arith.constant 0 : index
      %c0_318 = arith.constant 0 : index
      %635 = vector.load %arg9[%c81, %c0_317, %c0_318] : memref<121x1x128xf32, #tpu.memory_space<vmem>>, vector<1x1x128xf32>
      %636 = vector.shape_cast %635 : vector<1x1x128xf32> to vector<1x128xf32>
      %637 = vector.broadcast %636 : vector<1x128xf32> to vector<24x128xf32>
      %638 = arith.mulf %637, %634 : vector<24x128xf32>
      %639 = arith.addf %625, %638 : vector<24x128xf32>
      %c82 = arith.constant 82 : index
      %c0_319 = arith.constant 0 : index
      %c0_320 = arith.constant 0 : index
      %640 = vector.load %arg9[%c82, %c0_319, %c0_320] : memref<121x1x128xf32, #tpu.memory_space<vmem>>, vector<1x1x128xf32>
      %641 = vector.shape_cast %640 : vector<1x1x128xf32> to vector<1x128xf32>
      %642 = vector.broadcast %641 : vector<1x128xf32> to vector<24x128xf32>
      %643 = arith.mulf %642, %634 : vector<24x128xf32>
      %644 = arith.addf %630, %643 : vector<24x128xf32>
      %c8_i32_321 = arith.constant 8 : i32
      %645 = arith.addi %arg19, %c8_i32_321 : i32
      %646 = arith.index_cast %645 : i32 to index
      %c0_322 = arith.constant 0 : index
      %c0_323 = arith.constant 0 : index
      %647 = vector.load %arg17[%646, %c0_322, %c0_323] : memref<26x24x128xf32, #tpu.memory_space<vmem>>, vector<1x24x128xf32>
      %648 = vector.shape_cast %647 : vector<1x24x128xf32> to vector<24x128xf32>
      %c92 = arith.constant 92 : index
      %c0_324 = arith.constant 0 : index
      %c0_325 = arith.constant 0 : index
      %649 = vector.load %arg9[%c92, %c0_324, %c0_325] : memref<121x1x128xf32, #tpu.memory_space<vmem>>, vector<1x1x128xf32>
      %650 = vector.shape_cast %649 : vector<1x1x128xf32> to vector<1x128xf32>
      %651 = vector.broadcast %650 : vector<1x128xf32> to vector<24x128xf32>
      %652 = arith.mulf %651, %648 : vector<24x128xf32>
      %653 = arith.addf %639, %652 : vector<24x128xf32>
      %c93 = arith.constant 93 : index
      %c0_326 = arith.constant 0 : index
      %c0_327 = arith.constant 0 : index
      %654 = vector.load %arg9[%c93, %c0_326, %c0_327] : memref<121x1x128xf32, #tpu.memory_space<vmem>>, vector<1x1x128xf32>
      %655 = vector.shape_cast %654 : vector<1x1x128xf32> to vector<1x128xf32>
      %656 = vector.broadcast %655 : vector<1x128xf32> to vector<24x128xf32>
      %657 = arith.mulf %656, %648 : vector<24x128xf32>
      %658 = arith.addf %644, %657 : vector<24x128xf32>
      %c9_i32_328 = arith.constant 9 : i32
      %659 = arith.addi %arg19, %c9_i32_328 : i32
      %660 = arith.index_cast %659 : i32 to index
      %c0_329 = arith.constant 0 : index
      %c0_330 = arith.constant 0 : index
      %661 = vector.load %arg17[%660, %c0_329, %c0_330] : memref<26x24x128xf32, #tpu.memory_space<vmem>>, vector<1x24x128xf32>
      %662 = vector.shape_cast %661 : vector<1x24x128xf32> to vector<24x128xf32>
      %c103 = arith.constant 103 : index
      %c0_331 = arith.constant 0 : index
      %c0_332 = arith.constant 0 : index
      %663 = vector.load %arg9[%c103, %c0_331, %c0_332] : memref<121x1x128xf32, #tpu.memory_space<vmem>>, vector<1x1x128xf32>
      %664 = vector.shape_cast %663 : vector<1x1x128xf32> to vector<1x128xf32>
      %665 = vector.broadcast %664 : vector<1x128xf32> to vector<24x128xf32>
      %666 = arith.mulf %665, %662 : vector<24x128xf32>
      %667 = arith.addf %653, %666 : vector<24x128xf32>
      %c104 = arith.constant 104 : index
      %c0_333 = arith.constant 0 : index
      %c0_334 = arith.constant 0 : index
      %668 = vector.load %arg9[%c104, %c0_333, %c0_334] : memref<121x1x128xf32, #tpu.memory_space<vmem>>, vector<1x1x128xf32>
      %669 = vector.shape_cast %668 : vector<1x1x128xf32> to vector<1x128xf32>
      %670 = vector.broadcast %669 : vector<1x128xf32> to vector<24x128xf32>
      %671 = arith.mulf %670, %662 : vector<24x128xf32>
      %672 = arith.addf %658, %671 : vector<24x128xf32>
      %c10_i32_335 = arith.constant 10 : i32
      %673 = arith.addi %arg19, %c10_i32_335 : i32
      %674 = arith.index_cast %673 : i32 to index
      %c0_336 = arith.constant 0 : index
      %c0_337 = arith.constant 0 : index
      %675 = vector.load %arg17[%674, %c0_336, %c0_337] : memref<26x24x128xf32, #tpu.memory_space<vmem>>, vector<1x24x128xf32>
      %676 = vector.shape_cast %675 : vector<1x24x128xf32> to vector<24x128xf32>
      %c114 = arith.constant 114 : index
      %c0_338 = arith.constant 0 : index
      %c0_339 = arith.constant 0 : index
      %677 = vector.load %arg9[%c114, %c0_338, %c0_339] : memref<121x1x128xf32, #tpu.memory_space<vmem>>, vector<1x1x128xf32>
      %678 = vector.shape_cast %677 : vector<1x1x128xf32> to vector<1x128xf32>
      %679 = vector.broadcast %678 : vector<1x128xf32> to vector<24x128xf32>
      %680 = arith.mulf %679, %676 : vector<24x128xf32>
      %681 = arith.addf %667, %680 : vector<24x128xf32>
      %c115 = arith.constant 115 : index
      %c0_340 = arith.constant 0 : index
      %c0_341 = arith.constant 0 : index
      %682 = vector.load %arg9[%c115, %c0_340, %c0_341] : memref<121x1x128xf32, #tpu.memory_space<vmem>>, vector<1x1x128xf32>
      %683 = vector.shape_cast %682 : vector<1x1x128xf32> to vector<1x128xf32>
      %684 = vector.broadcast %683 : vector<1x128xf32> to vector<24x128xf32>
      %685 = arith.mulf %684, %676 : vector<24x128xf32>
      %686 = arith.addf %672, %685 : vector<24x128xf32>
      %687 = vector.extract_strided_slice %681 {offsets = [4, 0], sizes = [8, 128], strides = [1, 1]} : vector<24x128xf32> to vector<8x128xf32>
      %688 = arith.addf %530, %687 : vector<8x128xf32>
      %689 = vector.extract_strided_slice %686 {offsets = [5, 0], sizes = [8, 128], strides = [1, 1]} : vector<24x128xf32> to vector<8x128xf32>
      %690 = arith.addf %688, %689 : vector<8x128xf32>
      %cst_342 = arith.constant 0.000000e+00 : f32
      %691 = vector.broadcast %cst_342 : f32 to vector<24x128xf32>
      %cst_343 = arith.constant 0.000000e+00 : f32
      %692 = vector.broadcast %cst_343 : f32 to vector<24x128xf32>
      %c0_i32_344 = arith.constant 0 : i32
      %693 = arith.addi %arg19, %c0_i32_344 : i32
      %694 = arith.index_cast %693 : i32 to index
      %c0_345 = arith.constant 0 : index
      %c0_346 = arith.constant 0 : index
      %695 = vector.load %arg17[%694, %c0_345, %c0_346] : memref<26x24x128xf32, #tpu.memory_space<vmem>>, vector<1x24x128xf32>
      %696 = vector.shape_cast %695 : vector<1x24x128xf32> to vector<24x128xf32>
      %c6 = arith.constant 6 : index
      %c0_347 = arith.constant 0 : index
      %c0_348 = arith.constant 0 : index
      %697 = vector.load %arg9[%c6, %c0_347, %c0_348] : memref<121x1x128xf32, #tpu.memory_space<vmem>>, vector<1x1x128xf32>
      %698 = vector.shape_cast %697 : vector<1x1x128xf32> to vector<1x128xf32>
      %699 = vector.broadcast %698 : vector<1x128xf32> to vector<24x128xf32>
      %700 = arith.mulf %699, %696 : vector<24x128xf32>
      %701 = arith.addf %691, %700 : vector<24x128xf32>
      %c7 = arith.constant 7 : index
      %c0_349 = arith.constant 0 : index
      %c0_350 = arith.constant 0 : index
      %702 = vector.load %arg9[%c7, %c0_349, %c0_350] : memref<121x1x128xf32, #tpu.memory_space<vmem>>, vector<1x1x128xf32>
      %703 = vector.shape_cast %702 : vector<1x1x128xf32> to vector<1x128xf32>
      %704 = vector.broadcast %703 : vector<1x128xf32> to vector<24x128xf32>
      %705 = arith.mulf %704, %696 : vector<24x128xf32>
      %706 = arith.addf %692, %705 : vector<24x128xf32>
      %c1_i32_351 = arith.constant 1 : i32
      %707 = arith.addi %arg19, %c1_i32_351 : i32
      %708 = arith.index_cast %707 : i32 to index
      %c0_352 = arith.constant 0 : index
      %c0_353 = arith.constant 0 : index
      %709 = vector.load %arg17[%708, %c0_352, %c0_353] : memref<26x24x128xf32, #tpu.memory_space<vmem>>, vector<1x24x128xf32>
      %710 = vector.shape_cast %709 : vector<1x24x128xf32> to vector<24x128xf32>
      %c17 = arith.constant 17 : index
      %c0_354 = arith.constant 0 : index
      %c0_355 = arith.constant 0 : index
      %711 = vector.load %arg9[%c17, %c0_354, %c0_355] : memref<121x1x128xf32, #tpu.memory_space<vmem>>, vector<1x1x128xf32>
      %712 = vector.shape_cast %711 : vector<1x1x128xf32> to vector<1x128xf32>
      %713 = vector.broadcast %712 : vector<1x128xf32> to vector<24x128xf32>
      %714 = arith.mulf %713, %710 : vector<24x128xf32>
      %715 = arith.addf %701, %714 : vector<24x128xf32>
      %c18 = arith.constant 18 : index
      %c0_356 = arith.constant 0 : index
      %c0_357 = arith.constant 0 : index
      %716 = vector.load %arg9[%c18, %c0_356, %c0_357] : memref<121x1x128xf32, #tpu.memory_space<vmem>>, vector<1x1x128xf32>
      %717 = vector.shape_cast %716 : vector<1x1x128xf32> to vector<1x128xf32>
      %718 = vector.broadcast %717 : vector<1x128xf32> to vector<24x128xf32>
      %719 = arith.mulf %718, %710 : vector<24x128xf32>
      %720 = arith.addf %706, %719 : vector<24x128xf32>
      %c2_i32_358 = arith.constant 2 : i32
      %721 = arith.addi %arg19, %c2_i32_358 : i32
      %722 = arith.index_cast %721 : i32 to index
      %c0_359 = arith.constant 0 : index
      %c0_360 = arith.constant 0 : index
      %723 = vector.load %arg17[%722, %c0_359, %c0_360] : memref<26x24x128xf32, #tpu.memory_space<vmem>>, vector<1x24x128xf32>
      %724 = vector.shape_cast %723 : vector<1x24x128xf32> to vector<24x128xf32>
      %c28 = arith.constant 28 : index
      %c0_361 = arith.constant 0 : index
      %c0_362 = arith.constant 0 : index
      %725 = vector.load %arg9[%c28, %c0_361, %c0_362] : memref<121x1x128xf32, #tpu.memory_space<vmem>>, vector<1x1x128xf32>
      %726 = vector.shape_cast %725 : vector<1x1x128xf32> to vector<1x128xf32>
      %727 = vector.broadcast %726 : vector<1x128xf32> to vector<24x128xf32>
      %728 = arith.mulf %727, %724 : vector<24x128xf32>
      %729 = arith.addf %715, %728 : vector<24x128xf32>
      %c29 = arith.constant 29 : index
      %c0_363 = arith.constant 0 : index
      %c0_364 = arith.constant 0 : index
      %730 = vector.load %arg9[%c29, %c0_363, %c0_364] : memref<121x1x128xf32, #tpu.memory_space<vmem>>, vector<1x1x128xf32>
      %731 = vector.shape_cast %730 : vector<1x1x128xf32> to vector<1x128xf32>
      %732 = vector.broadcast %731 : vector<1x128xf32> to vector<24x128xf32>
      %733 = arith.mulf %732, %724 : vector<24x128xf32>
      %734 = arith.addf %720, %733 : vector<24x128xf32>
      %c3_i32_365 = arith.constant 3 : i32
      %735 = arith.addi %arg19, %c3_i32_365 : i32
      %736 = arith.index_cast %735 : i32 to index
      %c0_366 = arith.constant 0 : index
      %c0_367 = arith.constant 0 : index
      %737 = vector.load %arg17[%736, %c0_366, %c0_367] : memref<26x24x128xf32, #tpu.memory_space<vmem>>, vector<1x24x128xf32>
      %738 = vector.shape_cast %737 : vector<1x24x128xf32> to vector<24x128xf32>
      %c39 = arith.constant 39 : index
      %c0_368 = arith.constant 0 : index
      %c0_369 = arith.constant 0 : index
      %739 = vector.load %arg9[%c39, %c0_368, %c0_369] : memref<121x1x128xf32, #tpu.memory_space<vmem>>, vector<1x1x128xf32>
      %740 = vector.shape_cast %739 : vector<1x1x128xf32> to vector<1x128xf32>
      %741 = vector.broadcast %740 : vector<1x128xf32> to vector<24x128xf32>
      %742 = arith.mulf %741, %738 : vector<24x128xf32>
      %743 = arith.addf %729, %742 : vector<24x128xf32>
      %c40 = arith.constant 40 : index
      %c0_370 = arith.constant 0 : index
      %c0_371 = arith.constant 0 : index
      %744 = vector.load %arg9[%c40, %c0_370, %c0_371] : memref<121x1x128xf32, #tpu.memory_space<vmem>>, vector<1x1x128xf32>
      %745 = vector.shape_cast %744 : vector<1x1x128xf32> to vector<1x128xf32>
      %746 = vector.broadcast %745 : vector<1x128xf32> to vector<24x128xf32>
      %747 = arith.mulf %746, %738 : vector<24x128xf32>
      %748 = arith.addf %734, %747 : vector<24x128xf32>
      %c4_i32_372 = arith.constant 4 : i32
      %749 = arith.addi %arg19, %c4_i32_372 : i32
      %750 = arith.index_cast %749 : i32 to index
      %c0_373 = arith.constant 0 : index
      %c0_374 = arith.constant 0 : index
      %751 = vector.load %arg17[%750, %c0_373, %c0_374] : memref<26x24x128xf32, #tpu.memory_space<vmem>>, vector<1x24x128xf32>
      %752 = vector.shape_cast %751 : vector<1x24x128xf32> to vector<24x128xf32>
      %c50 = arith.constant 50 : index
      %c0_375 = arith.constant 0 : index
      %c0_376 = arith.constant 0 : index
      %753 = vector.load %arg9[%c50, %c0_375, %c0_376] : memref<121x1x128xf32, #tpu.memory_space<vmem>>, vector<1x1x128xf32>
      %754 = vector.shape_cast %753 : vector<1x1x128xf32> to vector<1x128xf32>
      %755 = vector.broadcast %754 : vector<1x128xf32> to vector<24x128xf32>
      %756 = arith.mulf %755, %752 : vector<24x128xf32>
      %757 = arith.addf %743, %756 : vector<24x128xf32>
      %c51 = arith.constant 51 : index
      %c0_377 = arith.constant 0 : index
      %c0_378 = arith.constant 0 : index
      %758 = vector.load %arg9[%c51, %c0_377, %c0_378] : memref<121x1x128xf32, #tpu.memory_space<vmem>>, vector<1x1x128xf32>
      %759 = vector.shape_cast %758 : vector<1x1x128xf32> to vector<1x128xf32>
      %760 = vector.broadcast %759 : vector<1x128xf32> to vector<24x128xf32>
      %761 = arith.mulf %760, %752 : vector<24x128xf32>
      %762 = arith.addf %748, %761 : vector<24x128xf32>
      %c5_i32_379 = arith.constant 5 : i32
      %763 = arith.addi %arg19, %c5_i32_379 : i32
      %764 = arith.index_cast %763 : i32 to index
      %c0_380 = arith.constant 0 : index
      %c0_381 = arith.constant 0 : index
      %765 = vector.load %arg17[%764, %c0_380, %c0_381] : memref<26x24x128xf32, #tpu.memory_space<vmem>>, vector<1x24x128xf32>
      %766 = vector.shape_cast %765 : vector<1x24x128xf32> to vector<24x128xf32>
      %c61 = arith.constant 61 : index
      %c0_382 = arith.constant 0 : index
      %c0_383 = arith.constant 0 : index
      %767 = vector.load %arg9[%c61, %c0_382, %c0_383] : memref<121x1x128xf32, #tpu.memory_space<vmem>>, vector<1x1x128xf32>
      %768 = vector.shape_cast %767 : vector<1x1x128xf32> to vector<1x128xf32>
      %769 = vector.broadcast %768 : vector<1x128xf32> to vector<24x128xf32>
      %770 = arith.mulf %769, %766 : vector<24x128xf32>
      %771 = arith.addf %757, %770 : vector<24x128xf32>
      %c62 = arith.constant 62 : index
      %c0_384 = arith.constant 0 : index
      %c0_385 = arith.constant 0 : index
      %772 = vector.load %arg9[%c62, %c0_384, %c0_385] : memref<121x1x128xf32, #tpu.memory_space<vmem>>, vector<1x1x128xf32>
      %773 = vector.shape_cast %772 : vector<1x1x128xf32> to vector<1x128xf32>
      %774 = vector.broadcast %773 : vector<1x128xf32> to vector<24x128xf32>
      %775 = arith.mulf %774, %766 : vector<24x128xf32>
      %776 = arith.addf %762, %775 : vector<24x128xf32>
      %c6_i32_386 = arith.constant 6 : i32
      %777 = arith.addi %arg19, %c6_i32_386 : i32
      %778 = arith.index_cast %777 : i32 to index
      %c0_387 = arith.constant 0 : index
      %c0_388 = arith.constant 0 : index
      %779 = vector.load %arg17[%778, %c0_387, %c0_388] : memref<26x24x128xf32, #tpu.memory_space<vmem>>, vector<1x24x128xf32>
      %780 = vector.shape_cast %779 : vector<1x24x128xf32> to vector<24x128xf32>
      %c72 = arith.constant 72 : index
      %c0_389 = arith.constant 0 : index
      %c0_390 = arith.constant 0 : index
      %781 = vector.load %arg9[%c72, %c0_389, %c0_390] : memref<121x1x128xf32, #tpu.memory_space<vmem>>, vector<1x1x128xf32>
      %782 = vector.shape_cast %781 : vector<1x1x128xf32> to vector<1x128xf32>
      %783 = vector.broadcast %782 : vector<1x128xf32> to vector<24x128xf32>
      %784 = arith.mulf %783, %780 : vector<24x128xf32>
      %785 = arith.addf %771, %784 : vector<24x128xf32>
      %c73 = arith.constant 73 : index
      %c0_391 = arith.constant 0 : index
      %c0_392 = arith.constant 0 : index
      %786 = vector.load %arg9[%c73, %c0_391, %c0_392] : memref<121x1x128xf32, #tpu.memory_space<vmem>>, vector<1x1x128xf32>
      %787 = vector.shape_cast %786 : vector<1x1x128xf32> to vector<1x128xf32>
      %788 = vector.broadcast %787 : vector<1x128xf32> to vector<24x128xf32>
      %789 = arith.mulf %788, %780 : vector<24x128xf32>
      %790 = arith.addf %776, %789 : vector<24x128xf32>
      %c7_i32_393 = arith.constant 7 : i32
      %791 = arith.addi %arg19, %c7_i32_393 : i32
      %792 = arith.index_cast %791 : i32 to index
      %c0_394 = arith.constant 0 : index
      %c0_395 = arith.constant 0 : index
      %793 = vector.load %arg17[%792, %c0_394, %c0_395] : memref<26x24x128xf32, #tpu.memory_space<vmem>>, vector<1x24x128xf32>
      %794 = vector.shape_cast %793 : vector<1x24x128xf32> to vector<24x128xf32>
      %c83 = arith.constant 83 : index
      %c0_396 = arith.constant 0 : index
      %c0_397 = arith.constant 0 : index
      %795 = vector.load %arg9[%c83, %c0_396, %c0_397] : memref<121x1x128xf32, #tpu.memory_space<vmem>>, vector<1x1x128xf32>
      %796 = vector.shape_cast %795 : vector<1x1x128xf32> to vector<1x128xf32>
      %797 = vector.broadcast %796 : vector<1x128xf32> to vector<24x128xf32>
      %798 = arith.mulf %797, %794 : vector<24x128xf32>
      %799 = arith.addf %785, %798 : vector<24x128xf32>
      %c84 = arith.constant 84 : index
      %c0_398 = arith.constant 0 : index
      %c0_399 = arith.constant 0 : index
      %800 = vector.load %arg9[%c84, %c0_398, %c0_399] : memref<121x1x128xf32, #tpu.memory_space<vmem>>, vector<1x1x128xf32>
      %801 = vector.shape_cast %800 : vector<1x1x128xf32> to vector<1x128xf32>
      %802 = vector.broadcast %801 : vector<1x128xf32> to vector<24x128xf32>
      %803 = arith.mulf %802, %794 : vector<24x128xf32>
      %804 = arith.addf %790, %803 : vector<24x128xf32>
      %c8_i32_400 = arith.constant 8 : i32
      %805 = arith.addi %arg19, %c8_i32_400 : i32
      %806 = arith.index_cast %805 : i32 to index
      %c0_401 = arith.constant 0 : index
      %c0_402 = arith.constant 0 : index
      %807 = vector.load %arg17[%806, %c0_401, %c0_402] : memref<26x24x128xf32, #tpu.memory_space<vmem>>, vector<1x24x128xf32>
      %808 = vector.shape_cast %807 : vector<1x24x128xf32> to vector<24x128xf32>
      %c94 = arith.constant 94 : index
      %c0_403 = arith.constant 0 : index
      %c0_404 = arith.constant 0 : index
      %809 = vector.load %arg9[%c94, %c0_403, %c0_404] : memref<121x1x128xf32, #tpu.memory_space<vmem>>, vector<1x1x128xf32>
      %810 = vector.shape_cast %809 : vector<1x1x128xf32> to vector<1x128xf32>
      %811 = vector.broadcast %810 : vector<1x128xf32> to vector<24x128xf32>
      %812 = arith.mulf %811, %808 : vector<24x128xf32>
      %813 = arith.addf %799, %812 : vector<24x128xf32>
      %c95 = arith.constant 95 : index
      %c0_405 = arith.constant 0 : index
      %c0_406 = arith.constant 0 : index
      %814 = vector.load %arg9[%c95, %c0_405, %c0_406] : memref<121x1x128xf32, #tpu.memory_space<vmem>>, vector<1x1x128xf32>
      %815 = vector.shape_cast %814 : vector<1x1x128xf32> to vector<1x128xf32>
      %816 = vector.broadcast %815 : vector<1x128xf32> to vector<24x128xf32>
      %817 = arith.mulf %816, %808 : vector<24x128xf32>
      %818 = arith.addf %804, %817 : vector<24x128xf32>
      %c9_i32_407 = arith.constant 9 : i32
      %819 = arith.addi %arg19, %c9_i32_407 : i32
      %820 = arith.index_cast %819 : i32 to index
      %c0_408 = arith.constant 0 : index
      %c0_409 = arith.constant 0 : index
      %821 = vector.load %arg17[%820, %c0_408, %c0_409] : memref<26x24x128xf32, #tpu.memory_space<vmem>>, vector<1x24x128xf32>
      %822 = vector.shape_cast %821 : vector<1x24x128xf32> to vector<24x128xf32>
      %c105 = arith.constant 105 : index
      %c0_410 = arith.constant 0 : index
      %c0_411 = arith.constant 0 : index
      %823 = vector.load %arg9[%c105, %c0_410, %c0_411] : memref<121x1x128xf32, #tpu.memory_space<vmem>>, vector<1x1x128xf32>
      %824 = vector.shape_cast %823 : vector<1x1x128xf32> to vector<1x128xf32>
      %825 = vector.broadcast %824 : vector<1x128xf32> to vector<24x128xf32>
      %826 = arith.mulf %825, %822 : vector<24x128xf32>
      %827 = arith.addf %813, %826 : vector<24x128xf32>
      %c106 = arith.constant 106 : index
      %c0_412 = arith.constant 0 : index
      %c0_413 = arith.constant 0 : index
      %828 = vector.load %arg9[%c106, %c0_412, %c0_413] : memref<121x1x128xf32, #tpu.memory_space<vmem>>, vector<1x1x128xf32>
      %829 = vector.shape_cast %828 : vector<1x1x128xf32> to vector<1x128xf32>
      %830 = vector.broadcast %829 : vector<1x128xf32> to vector<24x128xf32>
      %831 = arith.mulf %830, %822 : vector<24x128xf32>
      %832 = arith.addf %818, %831 : vector<24x128xf32>
      %c10_i32_414 = arith.constant 10 : i32
      %833 = arith.addi %arg19, %c10_i32_414 : i32
      %834 = arith.index_cast %833 : i32 to index
      %c0_415 = arith.constant 0 : index
      %c0_416 = arith.constant 0 : index
      %835 = vector.load %arg17[%834, %c0_415, %c0_416] : memref<26x24x128xf32, #tpu.memory_space<vmem>>, vector<1x24x128xf32>
      %836 = vector.shape_cast %835 : vector<1x24x128xf32> to vector<24x128xf32>
      %c116 = arith.constant 116 : index
      %c0_417 = arith.constant 0 : index
      %c0_418 = arith.constant 0 : index
      %837 = vector.load %arg9[%c116, %c0_417, %c0_418] : memref<121x1x128xf32, #tpu.memory_space<vmem>>, vector<1x1x128xf32>
      %838 = vector.shape_cast %837 : vector<1x1x128xf32> to vector<1x128xf32>
      %839 = vector.broadcast %838 : vector<1x128xf32> to vector<24x128xf32>
      %840 = arith.mulf %839, %836 : vector<24x128xf32>
      %841 = arith.addf %827, %840 : vector<24x128xf32>
      %c117 = arith.constant 117 : index
      %c0_419 = arith.constant 0 : index
      %c0_420 = arith.constant 0 : index
      %842 = vector.load %arg9[%c117, %c0_419, %c0_420] : memref<121x1x128xf32, #tpu.memory_space<vmem>>, vector<1x1x128xf32>
      %843 = vector.shape_cast %842 : vector<1x1x128xf32> to vector<1x128xf32>
      %844 = vector.broadcast %843 : vector<1x128xf32> to vector<24x128xf32>
      %845 = arith.mulf %844, %836 : vector<24x128xf32>
      %846 = arith.addf %832, %845 : vector<24x128xf32>
      %847 = vector.extract_strided_slice %841 {offsets = [6, 0], sizes = [8, 128], strides = [1, 1]} : vector<24x128xf32> to vector<8x128xf32>
      %848 = arith.addf %690, %847 : vector<8x128xf32>
      %849 = vector.extract_strided_slice %846 {offsets = [7, 0], sizes = [8, 128], strides = [1, 1]} : vector<24x128xf32> to vector<8x128xf32>
      %850 = arith.addf %848, %849 : vector<8x128xf32>
      %cst_421 = arith.constant 0.000000e+00 : f32
      %851 = vector.broadcast %cst_421 : f32 to vector<24x128xf32>
      %cst_422 = arith.constant 0.000000e+00 : f32
      %852 = vector.broadcast %cst_422 : f32 to vector<24x128xf32>
      %c0_i32_423 = arith.constant 0 : i32
      %853 = arith.addi %arg19, %c0_i32_423 : i32
      %854 = arith.index_cast %853 : i32 to index
      %c0_424 = arith.constant 0 : index
      %c0_425 = arith.constant 0 : index
      %855 = vector.load %arg17[%854, %c0_424, %c0_425] : memref<26x24x128xf32, #tpu.memory_space<vmem>>, vector<1x24x128xf32>
      %856 = vector.shape_cast %855 : vector<1x24x128xf32> to vector<24x128xf32>
      %c8 = arith.constant 8 : index
      %c0_426 = arith.constant 0 : index
      %c0_427 = arith.constant 0 : index
      %857 = vector.load %arg9[%c8, %c0_426, %c0_427] : memref<121x1x128xf32, #tpu.memory_space<vmem>>, vector<1x1x128xf32>
      %858 = vector.shape_cast %857 : vector<1x1x128xf32> to vector<1x128xf32>
      %859 = vector.broadcast %858 : vector<1x128xf32> to vector<24x128xf32>
      %860 = arith.mulf %859, %856 : vector<24x128xf32>
      %861 = arith.addf %851, %860 : vector<24x128xf32>
      %c9 = arith.constant 9 : index
      %c0_428 = arith.constant 0 : index
      %c0_429 = arith.constant 0 : index
      %862 = vector.load %arg9[%c9, %c0_428, %c0_429] : memref<121x1x128xf32, #tpu.memory_space<vmem>>, vector<1x1x128xf32>
      %863 = vector.shape_cast %862 : vector<1x1x128xf32> to vector<1x128xf32>
      %864 = vector.broadcast %863 : vector<1x128xf32> to vector<24x128xf32>
      %865 = arith.mulf %864, %856 : vector<24x128xf32>
      %866 = arith.addf %852, %865 : vector<24x128xf32>
      %c1_i32_430 = arith.constant 1 : i32
      %867 = arith.addi %arg19, %c1_i32_430 : i32
      %868 = arith.index_cast %867 : i32 to index
      %c0_431 = arith.constant 0 : index
      %c0_432 = arith.constant 0 : index
      %869 = vector.load %arg17[%868, %c0_431, %c0_432] : memref<26x24x128xf32, #tpu.memory_space<vmem>>, vector<1x24x128xf32>
      %870 = vector.shape_cast %869 : vector<1x24x128xf32> to vector<24x128xf32>
      %c19 = arith.constant 19 : index
      %c0_433 = arith.constant 0 : index
      %c0_434 = arith.constant 0 : index
      %871 = vector.load %arg9[%c19, %c0_433, %c0_434] : memref<121x1x128xf32, #tpu.memory_space<vmem>>, vector<1x1x128xf32>
      %872 = vector.shape_cast %871 : vector<1x1x128xf32> to vector<1x128xf32>
      %873 = vector.broadcast %872 : vector<1x128xf32> to vector<24x128xf32>
      %874 = arith.mulf %873, %870 : vector<24x128xf32>
      %875 = arith.addf %861, %874 : vector<24x128xf32>
      %c20 = arith.constant 20 : index
      %c0_435 = arith.constant 0 : index
      %c0_436 = arith.constant 0 : index
      %876 = vector.load %arg9[%c20, %c0_435, %c0_436] : memref<121x1x128xf32, #tpu.memory_space<vmem>>, vector<1x1x128xf32>
      %877 = vector.shape_cast %876 : vector<1x1x128xf32> to vector<1x128xf32>
      %878 = vector.broadcast %877 : vector<1x128xf32> to vector<24x128xf32>
      %879 = arith.mulf %878, %870 : vector<24x128xf32>
      %880 = arith.addf %866, %879 : vector<24x128xf32>
      %c2_i32_437 = arith.constant 2 : i32
      %881 = arith.addi %arg19, %c2_i32_437 : i32
      %882 = arith.index_cast %881 : i32 to index
      %c0_438 = arith.constant 0 : index
      %c0_439 = arith.constant 0 : index
      %883 = vector.load %arg17[%882, %c0_438, %c0_439] : memref<26x24x128xf32, #tpu.memory_space<vmem>>, vector<1x24x128xf32>
      %884 = vector.shape_cast %883 : vector<1x24x128xf32> to vector<24x128xf32>
      %c30 = arith.constant 30 : index
      %c0_440 = arith.constant 0 : index
      %c0_441 = arith.constant 0 : index
      %885 = vector.load %arg9[%c30, %c0_440, %c0_441] : memref<121x1x128xf32, #tpu.memory_space<vmem>>, vector<1x1x128xf32>
      %886 = vector.shape_cast %885 : vector<1x1x128xf32> to vector<1x128xf32>
      %887 = vector.broadcast %886 : vector<1x128xf32> to vector<24x128xf32>
      %888 = arith.mulf %887, %884 : vector<24x128xf32>
      %889 = arith.addf %875, %888 : vector<24x128xf32>
      %c31 = arith.constant 31 : index
      %c0_442 = arith.constant 0 : index
      %c0_443 = arith.constant 0 : index
      %890 = vector.load %arg9[%c31, %c0_442, %c0_443] : memref<121x1x128xf32, #tpu.memory_space<vmem>>, vector<1x1x128xf32>
      %891 = vector.shape_cast %890 : vector<1x1x128xf32> to vector<1x128xf32>
      %892 = vector.broadcast %891 : vector<1x128xf32> to vector<24x128xf32>
      %893 = arith.mulf %892, %884 : vector<24x128xf32>
      %894 = arith.addf %880, %893 : vector<24x128xf32>
      %c3_i32_444 = arith.constant 3 : i32
      %895 = arith.addi %arg19, %c3_i32_444 : i32
      %896 = arith.index_cast %895 : i32 to index
      %c0_445 = arith.constant 0 : index
      %c0_446 = arith.constant 0 : index
      %897 = vector.load %arg17[%896, %c0_445, %c0_446] : memref<26x24x128xf32, #tpu.memory_space<vmem>>, vector<1x24x128xf32>
      %898 = vector.shape_cast %897 : vector<1x24x128xf32> to vector<24x128xf32>
      %c41 = arith.constant 41 : index
      %c0_447 = arith.constant 0 : index
      %c0_448 = arith.constant 0 : index
      %899 = vector.load %arg9[%c41, %c0_447, %c0_448] : memref<121x1x128xf32, #tpu.memory_space<vmem>>, vector<1x1x128xf32>
      %900 = vector.shape_cast %899 : vector<1x1x128xf32> to vector<1x128xf32>
      %901 = vector.broadcast %900 : vector<1x128xf32> to vector<24x128xf32>
      %902 = arith.mulf %901, %898 : vector<24x128xf32>
      %903 = arith.addf %889, %902 : vector<24x128xf32>
      %c42 = arith.constant 42 : index
      %c0_449 = arith.constant 0 : index
      %c0_450 = arith.constant 0 : index
      %904 = vector.load %arg9[%c42, %c0_449, %c0_450] : memref<121x1x128xf32, #tpu.memory_space<vmem>>, vector<1x1x128xf32>
      %905 = vector.shape_cast %904 : vector<1x1x128xf32> to vector<1x128xf32>
      %906 = vector.broadcast %905 : vector<1x128xf32> to vector<24x128xf32>
      %907 = arith.mulf %906, %898 : vector<24x128xf32>
      %908 = arith.addf %894, %907 : vector<24x128xf32>
      %c4_i32_451 = arith.constant 4 : i32
      %909 = arith.addi %arg19, %c4_i32_451 : i32
      %910 = arith.index_cast %909 : i32 to index
      %c0_452 = arith.constant 0 : index
      %c0_453 = arith.constant 0 : index
      %911 = vector.load %arg17[%910, %c0_452, %c0_453] : memref<26x24x128xf32, #tpu.memory_space<vmem>>, vector<1x24x128xf32>
      %912 = vector.shape_cast %911 : vector<1x24x128xf32> to vector<24x128xf32>
      %c52 = arith.constant 52 : index
      %c0_454 = arith.constant 0 : index
      %c0_455 = arith.constant 0 : index
      %913 = vector.load %arg9[%c52, %c0_454, %c0_455] : memref<121x1x128xf32, #tpu.memory_space<vmem>>, vector<1x1x128xf32>
      %914 = vector.shape_cast %913 : vector<1x1x128xf32> to vector<1x128xf32>
      %915 = vector.broadcast %914 : vector<1x128xf32> to vector<24x128xf32>
      %916 = arith.mulf %915, %912 : vector<24x128xf32>
      %917 = arith.addf %903, %916 : vector<24x128xf32>
      %c53 = arith.constant 53 : index
      %c0_456 = arith.constant 0 : index
      %c0_457 = arith.constant 0 : index
      %918 = vector.load %arg9[%c53, %c0_456, %c0_457] : memref<121x1x128xf32, #tpu.memory_space<vmem>>, vector<1x1x128xf32>
      %919 = vector.shape_cast %918 : vector<1x1x128xf32> to vector<1x128xf32>
      %920 = vector.broadcast %919 : vector<1x128xf32> to vector<24x128xf32>
      %921 = arith.mulf %920, %912 : vector<24x128xf32>
      %922 = arith.addf %908, %921 : vector<24x128xf32>
      %c5_i32_458 = arith.constant 5 : i32
      %923 = arith.addi %arg19, %c5_i32_458 : i32
      %924 = arith.index_cast %923 : i32 to index
      %c0_459 = arith.constant 0 : index
      %c0_460 = arith.constant 0 : index
      %925 = vector.load %arg17[%924, %c0_459, %c0_460] : memref<26x24x128xf32, #tpu.memory_space<vmem>>, vector<1x24x128xf32>
      %926 = vector.shape_cast %925 : vector<1x24x128xf32> to vector<24x128xf32>
      %c63 = arith.constant 63 : index
      %c0_461 = arith.constant 0 : index
      %c0_462 = arith.constant 0 : index
      %927 = vector.load %arg9[%c63, %c0_461, %c0_462] : memref<121x1x128xf32, #tpu.memory_space<vmem>>, vector<1x1x128xf32>
      %928 = vector.shape_cast %927 : vector<1x1x128xf32> to vector<1x128xf32>
      %929 = vector.broadcast %928 : vector<1x128xf32> to vector<24x128xf32>
      %930 = arith.mulf %929, %926 : vector<24x128xf32>
      %931 = arith.addf %917, %930 : vector<24x128xf32>
      %c64 = arith.constant 64 : index
      %c0_463 = arith.constant 0 : index
      %c0_464 = arith.constant 0 : index
      %932 = vector.load %arg9[%c64, %c0_463, %c0_464] : memref<121x1x128xf32, #tpu.memory_space<vmem>>, vector<1x1x128xf32>
      %933 = vector.shape_cast %932 : vector<1x1x128xf32> to vector<1x128xf32>
      %934 = vector.broadcast %933 : vector<1x128xf32> to vector<24x128xf32>
      %935 = arith.mulf %934, %926 : vector<24x128xf32>
      %936 = arith.addf %922, %935 : vector<24x128xf32>
      %c6_i32_465 = arith.constant 6 : i32
      %937 = arith.addi %arg19, %c6_i32_465 : i32
      %938 = arith.index_cast %937 : i32 to index
      %c0_466 = arith.constant 0 : index
      %c0_467 = arith.constant 0 : index
      %939 = vector.load %arg17[%938, %c0_466, %c0_467] : memref<26x24x128xf32, #tpu.memory_space<vmem>>, vector<1x24x128xf32>
      %940 = vector.shape_cast %939 : vector<1x24x128xf32> to vector<24x128xf32>
      %c74 = arith.constant 74 : index
      %c0_468 = arith.constant 0 : index
      %c0_469 = arith.constant 0 : index
      %941 = vector.load %arg9[%c74, %c0_468, %c0_469] : memref<121x1x128xf32, #tpu.memory_space<vmem>>, vector<1x1x128xf32>
      %942 = vector.shape_cast %941 : vector<1x1x128xf32> to vector<1x128xf32>
      %943 = vector.broadcast %942 : vector<1x128xf32> to vector<24x128xf32>
      %944 = arith.mulf %943, %940 : vector<24x128xf32>
      %945 = arith.addf %931, %944 : vector<24x128xf32>
      %c75 = arith.constant 75 : index
      %c0_470 = arith.constant 0 : index
      %c0_471 = arith.constant 0 : index
      %946 = vector.load %arg9[%c75, %c0_470, %c0_471] : memref<121x1x128xf32, #tpu.memory_space<vmem>>, vector<1x1x128xf32>
      %947 = vector.shape_cast %946 : vector<1x1x128xf32> to vector<1x128xf32>
      %948 = vector.broadcast %947 : vector<1x128xf32> to vector<24x128xf32>
      %949 = arith.mulf %948, %940 : vector<24x128xf32>
      %950 = arith.addf %936, %949 : vector<24x128xf32>
      %c7_i32_472 = arith.constant 7 : i32
      %951 = arith.addi %arg19, %c7_i32_472 : i32
      %952 = arith.index_cast %951 : i32 to index
      %c0_473 = arith.constant 0 : index
      %c0_474 = arith.constant 0 : index
      %953 = vector.load %arg17[%952, %c0_473, %c0_474] : memref<26x24x128xf32, #tpu.memory_space<vmem>>, vector<1x24x128xf32>
      %954 = vector.shape_cast %953 : vector<1x24x128xf32> to vector<24x128xf32>
      %c85 = arith.constant 85 : index
      %c0_475 = arith.constant 0 : index
      %c0_476 = arith.constant 0 : index
      %955 = vector.load %arg9[%c85, %c0_475, %c0_476] : memref<121x1x128xf32, #tpu.memory_space<vmem>>, vector<1x1x128xf32>
      %956 = vector.shape_cast %955 : vector<1x1x128xf32> to vector<1x128xf32>
      %957 = vector.broadcast %956 : vector<1x128xf32> to vector<24x128xf32>
      %958 = arith.mulf %957, %954 : vector<24x128xf32>
      %959 = arith.addf %945, %958 : vector<24x128xf32>
      %c86 = arith.constant 86 : index
      %c0_477 = arith.constant 0 : index
      %c0_478 = arith.constant 0 : index
      %960 = vector.load %arg9[%c86, %c0_477, %c0_478] : memref<121x1x128xf32, #tpu.memory_space<vmem>>, vector<1x1x128xf32>
      %961 = vector.shape_cast %960 : vector<1x1x128xf32> to vector<1x128xf32>
      %962 = vector.broadcast %961 : vector<1x128xf32> to vector<24x128xf32>
      %963 = arith.mulf %962, %954 : vector<24x128xf32>
      %964 = arith.addf %950, %963 : vector<24x128xf32>
      %c8_i32_479 = arith.constant 8 : i32
      %965 = arith.addi %arg19, %c8_i32_479 : i32
      %966 = arith.index_cast %965 : i32 to index
      %c0_480 = arith.constant 0 : index
      %c0_481 = arith.constant 0 : index
      %967 = vector.load %arg17[%966, %c0_480, %c0_481] : memref<26x24x128xf32, #tpu.memory_space<vmem>>, vector<1x24x128xf32>
      %968 = vector.shape_cast %967 : vector<1x24x128xf32> to vector<24x128xf32>
      %c96 = arith.constant 96 : index
      %c0_482 = arith.constant 0 : index
      %c0_483 = arith.constant 0 : index
      %969 = vector.load %arg9[%c96, %c0_482, %c0_483] : memref<121x1x128xf32, #tpu.memory_space<vmem>>, vector<1x1x128xf32>
      %970 = vector.shape_cast %969 : vector<1x1x128xf32> to vector<1x128xf32>
      %971 = vector.broadcast %970 : vector<1x128xf32> to vector<24x128xf32>
      %972 = arith.mulf %971, %968 : vector<24x128xf32>
      %973 = arith.addf %959, %972 : vector<24x128xf32>
      %c97 = arith.constant 97 : index
      %c0_484 = arith.constant 0 : index
      %c0_485 = arith.constant 0 : index
      %974 = vector.load %arg9[%c97, %c0_484, %c0_485] : memref<121x1x128xf32, #tpu.memory_space<vmem>>, vector<1x1x128xf32>
      %975 = vector.shape_cast %974 : vector<1x1x128xf32> to vector<1x128xf32>
      %976 = vector.broadcast %975 : vector<1x128xf32> to vector<24x128xf32>
      %977 = arith.mulf %976, %968 : vector<24x128xf32>
      %978 = arith.addf %964, %977 : vector<24x128xf32>
      %c9_i32_486 = arith.constant 9 : i32
      %979 = arith.addi %arg19, %c9_i32_486 : i32
      %980 = arith.index_cast %979 : i32 to index
      %c0_487 = arith.constant 0 : index
      %c0_488 = arith.constant 0 : index
      %981 = vector.load %arg17[%980, %c0_487, %c0_488] : memref<26x24x128xf32, #tpu.memory_space<vmem>>, vector<1x24x128xf32>
      %982 = vector.shape_cast %981 : vector<1x24x128xf32> to vector<24x128xf32>
      %c107 = arith.constant 107 : index
      %c0_489 = arith.constant 0 : index
      %c0_490 = arith.constant 0 : index
      %983 = vector.load %arg9[%c107, %c0_489, %c0_490] : memref<121x1x128xf32, #tpu.memory_space<vmem>>, vector<1x1x128xf32>
      %984 = vector.shape_cast %983 : vector<1x1x128xf32> to vector<1x128xf32>
      %985 = vector.broadcast %984 : vector<1x128xf32> to vector<24x128xf32>
      %986 = arith.mulf %985, %982 : vector<24x128xf32>
      %987 = arith.addf %973, %986 : vector<24x128xf32>
      %c108 = arith.constant 108 : index
      %c0_491 = arith.constant 0 : index
      %c0_492 = arith.constant 0 : index
      %988 = vector.load %arg9[%c108, %c0_491, %c0_492] : memref<121x1x128xf32, #tpu.memory_space<vmem>>, vector<1x1x128xf32>
      %989 = vector.shape_cast %988 : vector<1x1x128xf32> to vector<1x128xf32>
      %990 = vector.broadcast %989 : vector<1x128xf32> to vector<24x128xf32>
      %991 = arith.mulf %990, %982 : vector<24x128xf32>
      %992 = arith.addf %978, %991 : vector<24x128xf32>
      %c10_i32_493 = arith.constant 10 : i32
      %993 = arith.addi %arg19, %c10_i32_493 : i32
      %994 = arith.index_cast %993 : i32 to index
      %c0_494 = arith.constant 0 : index
      %c0_495 = arith.constant 0 : index
      %995 = vector.load %arg17[%994, %c0_494, %c0_495] : memref<26x24x128xf32, #tpu.memory_space<vmem>>, vector<1x24x128xf32>
      %996 = vector.shape_cast %995 : vector<1x24x128xf32> to vector<24x128xf32>
      %c118 = arith.constant 118 : index
      %c0_496 = arith.constant 0 : index
      %c0_497 = arith.constant 0 : index
      %997 = vector.load %arg9[%c118, %c0_496, %c0_497] : memref<121x1x128xf32, #tpu.memory_space<vmem>>, vector<1x1x128xf32>
      %998 = vector.shape_cast %997 : vector<1x1x128xf32> to vector<1x128xf32>
      %999 = vector.broadcast %998 : vector<1x128xf32> to vector<24x128xf32>
      %1000 = arith.mulf %999, %996 : vector<24x128xf32>
      %1001 = arith.addf %987, %1000 : vector<24x128xf32>
      %c119 = arith.constant 119 : index
      %c0_498 = arith.constant 0 : index
      %c0_499 = arith.constant 0 : index
      %1002 = vector.load %arg9[%c119, %c0_498, %c0_499] : memref<121x1x128xf32, #tpu.memory_space<vmem>>, vector<1x1x128xf32>
      %1003 = vector.shape_cast %1002 : vector<1x1x128xf32> to vector<1x128xf32>
      %1004 = vector.broadcast %1003 : vector<1x128xf32> to vector<24x128xf32>
      %1005 = arith.mulf %1004, %996 : vector<24x128xf32>
      %1006 = arith.addf %992, %1005 : vector<24x128xf32>
      %1007 = vector.extract_strided_slice %1001 {offsets = [8, 0], sizes = [8, 128], strides = [1, 1]} : vector<24x128xf32> to vector<8x128xf32>
      %1008 = arith.addf %850, %1007 : vector<8x128xf32>
      %1009 = vector.extract_strided_slice %1006 {offsets = [9, 0], sizes = [8, 128], strides = [1, 1]} : vector<24x128xf32> to vector<8x128xf32>
      %1010 = arith.addf %1008, %1009 : vector<8x128xf32>
      %cst_500 = arith.constant 0.000000e+00 : f32
      %1011 = vector.broadcast %cst_500 : f32 to vector<24x128xf32>
      %c0_i32_501 = arith.constant 0 : i32
      %1012 = arith.addi %arg19, %c0_i32_501 : i32
      %1013 = arith.index_cast %1012 : i32 to index
      %c0_502 = arith.constant 0 : index
      %c0_503 = arith.constant 0 : index
      %1014 = vector.load %arg17[%1013, %c0_502, %c0_503] : memref<26x24x128xf32, #tpu.memory_space<vmem>>, vector<1x24x128xf32>
      %1015 = vector.shape_cast %1014 : vector<1x24x128xf32> to vector<24x128xf32>
      %c10_504 = arith.constant 10 : index
      %c0_505 = arith.constant 0 : index
      %c0_506 = arith.constant 0 : index
      %1016 = vector.load %arg9[%c10_504, %c0_505, %c0_506] : memref<121x1x128xf32, #tpu.memory_space<vmem>>, vector<1x1x128xf32>
      %1017 = vector.shape_cast %1016 : vector<1x1x128xf32> to vector<1x128xf32>
      %1018 = vector.broadcast %1017 : vector<1x128xf32> to vector<24x128xf32>
      %1019 = arith.mulf %1018, %1015 : vector<24x128xf32>
      %1020 = arith.addf %1011, %1019 : vector<24x128xf32>
      %c1_i32_507 = arith.constant 1 : i32
      %1021 = arith.addi %arg19, %c1_i32_507 : i32
      %1022 = arith.index_cast %1021 : i32 to index
      %c0_508 = arith.constant 0 : index
      %c0_509 = arith.constant 0 : index
      %1023 = vector.load %arg17[%1022, %c0_508, %c0_509] : memref<26x24x128xf32, #tpu.memory_space<vmem>>, vector<1x24x128xf32>
      %1024 = vector.shape_cast %1023 : vector<1x24x128xf32> to vector<24x128xf32>
      %c21_510 = arith.constant 21 : index
      %c0_511 = arith.constant 0 : index
      %c0_512 = arith.constant 0 : index
      %1025 = vector.load %arg9[%c21_510, %c0_511, %c0_512] : memref<121x1x128xf32, #tpu.memory_space<vmem>>, vector<1x1x128xf32>
      %1026 = vector.shape_cast %1025 : vector<1x1x128xf32> to vector<1x128xf32>
      %1027 = vector.broadcast %1026 : vector<1x128xf32> to vector<24x128xf32>
      %1028 = arith.mulf %1027, %1024 : vector<24x128xf32>
      %1029 = arith.addf %1020, %1028 : vector<24x128xf32>
      %c2_i32_513 = arith.constant 2 : i32
      %1030 = arith.addi %arg19, %c2_i32_513 : i32
      %1031 = arith.index_cast %1030 : i32 to index
      %c0_514 = arith.constant 0 : index
      %c0_515 = arith.constant 0 : index
      %1032 = vector.load %arg17[%1031, %c0_514, %c0_515] : memref<26x24x128xf32, #tpu.memory_space<vmem>>, vector<1x24x128xf32>
      %1033 = vector.shape_cast %1032 : vector<1x24x128xf32> to vector<24x128xf32>
      %c32 = arith.constant 32 : index
      %c0_516 = arith.constant 0 : index
      %c0_517 = arith.constant 0 : index
      %1034 = vector.load %arg9[%c32, %c0_516, %c0_517] : memref<121x1x128xf32, #tpu.memory_space<vmem>>, vector<1x1x128xf32>
      %1035 = vector.shape_cast %1034 : vector<1x1x128xf32> to vector<1x128xf32>
      %1036 = vector.broadcast %1035 : vector<1x128xf32> to vector<24x128xf32>
      %1037 = arith.mulf %1036, %1033 : vector<24x128xf32>
      %1038 = arith.addf %1029, %1037 : vector<24x128xf32>
      %c3_i32_518 = arith.constant 3 : i32
      %1039 = arith.addi %arg19, %c3_i32_518 : i32
      %1040 = arith.index_cast %1039 : i32 to index
      %c0_519 = arith.constant 0 : index
      %c0_520 = arith.constant 0 : index
      %1041 = vector.load %arg17[%1040, %c0_519, %c0_520] : memref<26x24x128xf32, #tpu.memory_space<vmem>>, vector<1x24x128xf32>
      %1042 = vector.shape_cast %1041 : vector<1x24x128xf32> to vector<24x128xf32>
      %c43 = arith.constant 43 : index
      %c0_521 = arith.constant 0 : index
      %c0_522 = arith.constant 0 : index
      %1043 = vector.load %arg9[%c43, %c0_521, %c0_522] : memref<121x1x128xf32, #tpu.memory_space<vmem>>, vector<1x1x128xf32>
      %1044 = vector.shape_cast %1043 : vector<1x1x128xf32> to vector<1x128xf32>
      %1045 = vector.broadcast %1044 : vector<1x128xf32> to vector<24x128xf32>
      %1046 = arith.mulf %1045, %1042 : vector<24x128xf32>
      %1047 = arith.addf %1038, %1046 : vector<24x128xf32>
      %c4_i32_523 = arith.constant 4 : i32
      %1048 = arith.addi %arg19, %c4_i32_523 : i32
      %1049 = arith.index_cast %1048 : i32 to index
      %c0_524 = arith.constant 0 : index
      %c0_525 = arith.constant 0 : index
      %1050 = vector.load %arg17[%1049, %c0_524, %c0_525] : memref<26x24x128xf32, #tpu.memory_space<vmem>>, vector<1x24x128xf32>
      %1051 = vector.shape_cast %1050 : vector<1x24x128xf32> to vector<24x128xf32>
      %c54 = arith.constant 54 : index
      %c0_526 = arith.constant 0 : index
      %c0_527 = arith.constant 0 : index
      %1052 = vector.load %arg9[%c54, %c0_526, %c0_527] : memref<121x1x128xf32, #tpu.memory_space<vmem>>, vector<1x1x128xf32>
      %1053 = vector.shape_cast %1052 : vector<1x1x128xf32> to vector<1x128xf32>
      %1054 = vector.broadcast %1053 : vector<1x128xf32> to vector<24x128xf32>
      %1055 = arith.mulf %1054, %1051 : vector<24x128xf32>
      %1056 = arith.addf %1047, %1055 : vector<24x128xf32>
      %c5_i32_528 = arith.constant 5 : i32
      %1057 = arith.addi %arg19, %c5_i32_528 : i32
      %1058 = arith.index_cast %1057 : i32 to index
      %c0_529 = arith.constant 0 : index
      %c0_530 = arith.constant 0 : index
      %1059 = vector.load %arg17[%1058, %c0_529, %c0_530] : memref<26x24x128xf32, #tpu.memory_space<vmem>>, vector<1x24x128xf32>
      %1060 = vector.shape_cast %1059 : vector<1x24x128xf32> to vector<24x128xf32>
      %c65 = arith.constant 65 : index
      %c0_531 = arith.constant 0 : index
      %c0_532 = arith.constant 0 : index
      %1061 = vector.load %arg9[%c65, %c0_531, %c0_532] : memref<121x1x128xf32, #tpu.memory_space<vmem>>, vector<1x1x128xf32>
      %1062 = vector.shape_cast %1061 : vector<1x1x128xf32> to vector<1x128xf32>
      %1063 = vector.broadcast %1062 : vector<1x128xf32> to vector<24x128xf32>
      %1064 = arith.mulf %1063, %1060 : vector<24x128xf32>
      %1065 = arith.addf %1056, %1064 : vector<24x128xf32>
      %c6_i32_533 = arith.constant 6 : i32
      %1066 = arith.addi %arg19, %c6_i32_533 : i32
      %1067 = arith.index_cast %1066 : i32 to index
      %c0_534 = arith.constant 0 : index
      %c0_535 = arith.constant 0 : index
      %1068 = vector.load %arg17[%1067, %c0_534, %c0_535] : memref<26x24x128xf32, #tpu.memory_space<vmem>>, vector<1x24x128xf32>
      %1069 = vector.shape_cast %1068 : vector<1x24x128xf32> to vector<24x128xf32>
      %c76 = arith.constant 76 : index
      %c0_536 = arith.constant 0 : index
      %c0_537 = arith.constant 0 : index
      %1070 = vector.load %arg9[%c76, %c0_536, %c0_537] : memref<121x1x128xf32, #tpu.memory_space<vmem>>, vector<1x1x128xf32>
      %1071 = vector.shape_cast %1070 : vector<1x1x128xf32> to vector<1x128xf32>
      %1072 = vector.broadcast %1071 : vector<1x128xf32> to vector<24x128xf32>
      %1073 = arith.mulf %1072, %1069 : vector<24x128xf32>
      %1074 = arith.addf %1065, %1073 : vector<24x128xf32>
      %c7_i32_538 = arith.constant 7 : i32
      %1075 = arith.addi %arg19, %c7_i32_538 : i32
      %1076 = arith.index_cast %1075 : i32 to index
      %c0_539 = arith.constant 0 : index
      %c0_540 = arith.constant 0 : index
      %1077 = vector.load %arg17[%1076, %c0_539, %c0_540] : memref<26x24x128xf32, #tpu.memory_space<vmem>>, vector<1x24x128xf32>
      %1078 = vector.shape_cast %1077 : vector<1x24x128xf32> to vector<24x128xf32>
      %c87 = arith.constant 87 : index
      %c0_541 = arith.constant 0 : index
      %c0_542 = arith.constant 0 : index
      %1079 = vector.load %arg9[%c87, %c0_541, %c0_542] : memref<121x1x128xf32, #tpu.memory_space<vmem>>, vector<1x1x128xf32>
      %1080 = vector.shape_cast %1079 : vector<1x1x128xf32> to vector<1x128xf32>
      %1081 = vector.broadcast %1080 : vector<1x128xf32> to vector<24x128xf32>
      %1082 = arith.mulf %1081, %1078 : vector<24x128xf32>
      %1083 = arith.addf %1074, %1082 : vector<24x128xf32>
      %c8_i32_543 = arith.constant 8 : i32
      %1084 = arith.addi %arg19, %c8_i32_543 : i32
      %1085 = arith.index_cast %1084 : i32 to index
      %c0_544 = arith.constant 0 : index
      %c0_545 = arith.constant 0 : index
      %1086 = vector.load %arg17[%1085, %c0_544, %c0_545] : memref<26x24x128xf32, #tpu.memory_space<vmem>>, vector<1x24x128xf32>
      %1087 = vector.shape_cast %1086 : vector<1x24x128xf32> to vector<24x128xf32>
      %c98 = arith.constant 98 : index
      %c0_546 = arith.constant 0 : index
      %c0_547 = arith.constant 0 : index
      %1088 = vector.load %arg9[%c98, %c0_546, %c0_547] : memref<121x1x128xf32, #tpu.memory_space<vmem>>, vector<1x1x128xf32>
      %1089 = vector.shape_cast %1088 : vector<1x1x128xf32> to vector<1x128xf32>
      %1090 = vector.broadcast %1089 : vector<1x128xf32> to vector<24x128xf32>
      %1091 = arith.mulf %1090, %1087 : vector<24x128xf32>
      %1092 = arith.addf %1083, %1091 : vector<24x128xf32>
      %c9_i32_548 = arith.constant 9 : i32
      %1093 = arith.addi %arg19, %c9_i32_548 : i32
      %1094 = arith.index_cast %1093 : i32 to index
      %c0_549 = arith.constant 0 : index
      %c0_550 = arith.constant 0 : index
      %1095 = vector.load %arg17[%1094, %c0_549, %c0_550] : memref<26x24x128xf32, #tpu.memory_space<vmem>>, vector<1x24x128xf32>
      %1096 = vector.shape_cast %1095 : vector<1x24x128xf32> to vector<24x128xf32>
      %c109 = arith.constant 109 : index
      %c0_551 = arith.constant 0 : index
      %c0_552 = arith.constant 0 : index
      %1097 = vector.load %arg9[%c109, %c0_551, %c0_552] : memref<121x1x128xf32, #tpu.memory_space<vmem>>, vector<1x1x128xf32>
      %1098 = vector.shape_cast %1097 : vector<1x1x128xf32> to vector<1x128xf32>
      %1099 = vector.broadcast %1098 : vector<1x128xf32> to vector<24x128xf32>
      %1100 = arith.mulf %1099, %1096 : vector<24x128xf32>
      %1101 = arith.addf %1092, %1100 : vector<24x128xf32>
      %c10_i32_553 = arith.constant 10 : i32
      %1102 = arith.addi %arg19, %c10_i32_553 : i32
      %1103 = arith.index_cast %1102 : i32 to index
      %c0_554 = arith.constant 0 : index
      %c0_555 = arith.constant 0 : index
      %1104 = vector.load %arg17[%1103, %c0_554, %c0_555] : memref<26x24x128xf32, #tpu.memory_space<vmem>>, vector<1x24x128xf32>
      %1105 = vector.shape_cast %1104 : vector<1x24x128xf32> to vector<24x128xf32>
      %c120 = arith.constant 120 : index
      %c0_556 = arith.constant 0 : index
      %c0_557 = arith.constant 0 : index
      %1106 = vector.load %arg9[%c120, %c0_556, %c0_557] : memref<121x1x128xf32, #tpu.memory_space<vmem>>, vector<1x1x128xf32>
      %1107 = vector.shape_cast %1106 : vector<1x1x128xf32> to vector<1x128xf32>
      %1108 = vector.broadcast %1107 : vector<1x128xf32> to vector<24x128xf32>
      %1109 = arith.mulf %1108, %1105 : vector<24x128xf32>
      %1110 = arith.addf %1101, %1109 : vector<24x128xf32>
      %1111 = vector.extract_strided_slice %1110 {offsets = [10, 0], sizes = [8, 128], strides = [1, 1]} : vector<24x128xf32> to vector<8x128xf32>
      %1112 = arith.addf %1010, %1111 : vector<8x128xf32>
      %1113 = vector.broadcast %181 : vector<1x128xf32> to vector<8x128xf32>
      %1114 = arith.addf %1112, %1113 : vector<8x128xf32>
      %1115 = arith.index_cast %arg19 : i32 to index
      %c0_558 = arith.constant 0 : index
      %c0_559 = arith.constant 0 : index
      %1116 = vector.load %arg15[%1115, %c0_558, %c0_559] : memref<16x8x128xf32, #tpu.memory_space<vmem>>, vector<1x8x128xf32>
      %1117 = vector.shape_cast %1116 : vector<1x8x128xf32> to vector<8x128xf32>
      %1118 = vector.shape_cast %1114 : vector<8x128xf32> to vector<1x8x128xf32>
      tpu.vector_store %arg15[%1115, %c0_558, %c0_559], %1118 {strides = array<i32>} : memref<16x8x128xf32, #tpu.memory_space<vmem>>, vector<1x8x128xf32>,
    }
    %c16_i32_88 = arith.constant 16 : i32
    %c0_89 = arith.constant 0 : index
    %c0_90 = arith.constant 0 : index
    %183 = vector.load %arg11[%c0_89, %c0_90] : memref<128x128xf32, #tpu.memory_space<vmem>>, vector<128x128xf32>
    %c0_91 = arith.constant 0 : index
    %c0_92 = arith.constant 0 : index
    %184 = vector.load %arg12[%c0_91, %c0_92] : memref<1x128xf32, #tpu.memory_space<vmem>>, vector<1x128xf32>
    %c0_93 = arith.constant 0 : index
    %c0_94 = arith.constant 0 : index
    %185 = vector.load %arg13[%c0_93, %c0_94] : memref<128x128xf32, #tpu.memory_space<vmem>>, vector<128x128xf32>
    %c0_95 = arith.constant 0 : index
    %c0_96 = arith.constant 0 : index
    %186 = vector.load %arg14[%c0_95, %c0_96] : memref<1x128xf32, #tpu.memory_space<vmem>>, vector<1x128xf32>
    %c0_i32_97 = arith.constant 0 : i32
    %c16_i32_98 = arith.constant 16 : i32
    %187 = arith.muli %c0_i32_97, %c16_i32_98 : i32
    %188 = arith.index_cast %187 : i32 to index
    %c0_99 = arith.constant 0 : index
    %c0_100 = arith.constant 0 : index
    %189 = vector.load %arg2[%188, %c0_99, %c0_100] : memref<16x8x128xf32, #tpu.memory_space<vmem>>, vector<16x8x128xf32>
    %190 = vector.shape_cast %54 : vector<8x128xf32> to vector<1x8x128xf32>
    %191 = vector.broadcast %190 : vector<1x8x128xf32> to vector<16x8x128xf32>
    %192 = arith.mulf %189, %191 : vector<16x8x128xf32>
    %193 = vector.shape_cast %58 : vector<8x128xf32> to vector<1x8x128xf32>
    %194 = vector.broadcast %193 : vector<1x8x128xf32> to vector<16x8x128xf32>
    %195 = arith.addf %192, %194 : vector<16x8x128xf32>
    %196 = vector.shape_cast %195 : vector<16x8x128xf32> to vector<128x128xf32>
    %cst_101 = arith.constant dense<0.000000e+00> : vector<128x128xf32>
    %197 = tpu.matmul %196, %183, %cst_101 {dimension_numbers = #tpu.dot_dimension_numbers<[1], [0], [0], [1], [0, 0, 1, 1], [], []>} : vector<128x128xf32>, vector<128x128xf32>, vector<128x128xf32> -> vector<128x128xf32>
    %198 = vector.broadcast %184 : vector<1x128xf32> to vector<128x128xf32>
    %199 = arith.addf %197, %198 : vector<128x128xf32>
    %200 = arith.index_cast %187 : i32 to index
    %c0_102 = arith.constant 0 : index
    %c0_103 = arith.constant 0 : index
    %201 = vector.load %arg15[%200, %c0_102, %c0_103] : memref<16x8x128xf32, #tpu.memory_space<vmem>>, vector<16x8x128xf32>
    %202 = vector.shape_cast %201 : vector<16x8x128xf32> to vector<128x128xf32>
    %203 = arith.mulf %202, %199 : vector<128x128xf32>
    %cst_104 = arith.constant dense<0.000000e+00> : vector<128x128xf32>
    %204 = tpu.matmul %203, %185, %cst_104 {dimension_numbers = #tpu.dot_dimension_numbers<[1], [0], [0], [1], [0, 0, 1, 1], [], []>} : vector<128x128xf32>, vector<128x128xf32>, vector<128x128xf32> -> vector<128x128xf32>
    %205 = vector.broadcast %186 : vector<1x128xf32> to vector<128x128xf32>
    %206 = arith.addf %204, %205 : vector<128x128xf32>
    %207 = vector.shape_cast %206 : vector<128x128xf32> to vector<16x8x128xf32>
    %208 = arith.index_cast %187 : i32 to index
    %c0_105 = arith.constant 0 : index
    %c0_106 = arith.constant 0 : index
    %209 = vector.load %arg15[%208, %c0_105, %c0_106] : memref<16x8x128xf32, #tpu.memory_space<vmem>>, vector<16x8x128xf32>
    tpu.vector_store %arg15[%208, %c0_105, %c0_106], %207 {strides = array<i32>} : memref<16x8x128xf32, #tpu.memory_space<vmem>>, vector<16x8x128xf32>,
    %c1_i32_107 = arith.constant 1 : i32
    return
  }
  func.func @transform_1(%arg0: i32) -> (i32, i32, i32) {
    %c0_i32 = arith.constant 0 : i32
    %c0_i32_0 = arith.constant 0 : i32
    %c0_i32_1 = arith.constant 0 : i32
    return %c0_i32, %arg0, %c0_i32_0 : i32, i32, i32
  }
  func.func @transform_2(%arg0: i32) -> (i32, i32) {
    %c0_i32 = arith.constant 0 : i32
    %c0_i32_0 = arith.constant 0 : i32
    %c0_i32_1 = arith.constant 0 : i32
    return %c0_i32, %c0_i32_0 : i32, i32
  }
  func.func @transform_3(%arg0: i32) -> (i32, i32) {
    %c0_i32 = arith.constant 0 : i32
    %c0_i32_0 = arith.constant 0 : i32
    %c0_i32_1 = arith.constant 0 : i32
    return %c0_i32, %c0_i32_0 : i32, i32
  }
  func.func @transform_4(%arg0: i32) -> (i32, i32) {
    %c0_i32 = arith.constant 0 : i32
    %c0_i32_0 = arith.constant 0 : i32
    %c0_i32_1 = arith.constant 0 : i32
    return %c0_i32, %c0_i32_0 : i32, i32
  }
  func.func @transform_5(%arg0: i32) -> (i32, i32) {
    %c0_i32 = arith.constant 0 : i32
    %c0_i32_0 = arith.constant 0 : i32
    %c0_i32_1 = arith.constant 0 : i32
    return %c0_i32, %c0_i32_0 : i32, i32
  }
  func.func @transform_6(%arg0: i32) -> (i32, i32) {
    %c0_i32 = arith.constant 0 : i32
    %c0_i32_0 = arith.constant 0 : i32
    %c0_i32_1 = arith.constant 0 : i32
    return %c0_i32, %c0_i32_0 : i32, i32
  }
  func.func @transform_7(%arg0: i32) -> (i32, i32) {
    %c0_i32 = arith.constant 0 : i32
    %c0_i32_0 = arith.constant 0 : i32
    %c0_i32_1 = arith.constant 0 : i32
    return %c0_i32, %c0_i32_0 : i32, i32
  }
  func.func @transform_8(%arg0: i32) -> (i32, i32, i32) {
    %c0_i32 = arith.constant 0 : i32
    %c0_i32_0 = arith.constant 0 : i32
    %c0_i32_1 = arith.constant 0 : i32
    %c0_i32_2 = arith.constant 0 : i32
    return %c0_i32, %c0_i32_0, %c0_i32_1 : i32, i32, i32
  }
  func.func @transform_9(%arg0: i32) -> (i32, i32) {
    %c0_i32 = arith.constant 0 : i32
    %c0_i32_0 = arith.constant 0 : i32
    %c0_i32_1 = arith.constant 0 : i32
    return %c0_i32, %c0_i32_0 : i32, i32
  }
  func.func @transform_10(%arg0: i32) -> (i32, i32) {
    %c0_i32 = arith.constant 0 : i32
    %c0_i32_0 = arith.constant 0 : i32
    %c0_i32_1 = arith.constant 0 : i32
    return %c0_i32, %c0_i32_0 : i32, i32
  }
  func.func @transform_11(%arg0: i32) -> (i32, i32) {
    %c0_i32 = arith.constant 0 : i32
    %c0_i32_0 = arith.constant 0 : i32
    %c0_i32_1 = arith.constant 0 : i32
    return %c0_i32, %c0_i32_0 : i32, i32
  }
  func.func @transform_12(%arg0: i32) -> (i32, i32) {
    %c0_i32 = arith.constant 0 : i32
    %c0_i32_0 = arith.constant 0 : i32
    %c0_i32_1 = arith.constant 0 : i32
    return %c0_i32, %c0_i32_0 : i32, i32
  }
  func.func @transform_13(%arg0: i32) -> (i32, i32) {
    %c0_i32 = arith.constant 0 : i32
    %c0_i32_0 = arith.constant 0 : i32
    %c0_i32_1 = arith.constant 0 : i32
    return %c0_i32, %c0_i32_0 : i32, i32
  }
  func.func @transform_14(%arg0: i32) -> (i32, i32, i32) {
    %c0_i32 = arith.constant 0 : i32
    %c0_i32_0 = arith.constant 0 : i32
    %c0_i32_1 = arith.constant 0 : i32
    return %c0_i32, %arg0, %c0_i32_0 : i32, i32, i32
  }
}

</mosaic_0001>

<bundles_post_ra>
// kernel: conv_mod_pallas.1
= control target key start
LH: loop header
LB: loop body
LE: loop exit
PB: predicated region body
PF: predicated region fallthrough
CT: control target
= control target key end

     0   :  { %s8807_s0 = inlined_call_operand.vmem [shape: f32[16,32,128], index: 0, kind: input, shape index: {}]   ;;  %s8808_s1 = inlined_call_operand.vmem [shape: f32[16,16,128], index: 1, kind: input, shape index: {}]   ;;  %s8809_s2 = inlined_call_operand.vmem [shape: f32[1,128], index: 2, kind: input, shape index: {}]   ;;  %s8810_s3 = inlined_call_operand.vmem [shape: f32[1,128], index: 3, kind: input, shape index: {}]   ;;  %s8811_s4 = inlined_call_operand.vmem [shape: f32[1,128], index: 4, kind: input, shape index: {}]   ;;  %s8812_s5 = inlined_call_operand.vmem [shape: f32[1,128], index: 5, kind: input, shape index: {}]   ;;  %s8813_s6 = inlined_call_operand.vmem [shape: f32[128,128], index: 6, kind: input, shape index: {}]   ;;  %s8814_s7 = inlined_call_operand.vmem [shape: f32[1,128], index: 7, kind: input, shape index: {}]   ;;  %s8815_s8 = inlined_call_operand.vmem [shape: f32[121,1,128], index: 8, kind: input, shape index: {}]   ;;  %s8816_s9 = inlined_call_operand.vmem [shape: f32[1,128], index: 9, kind: input, shape index: {}]   ;;  %s8817_s10 = inlined_call_operand.vmem [shape: f32[128,128], index: 10, kind: input, shape index: {}]   ;;  %s8818_s11 = inlined_call_operand.vmem [shape: f32[1,128], index: 11, kind: input, shape index: {}]   ;;  %s8819_s12 = inlined_call_operand.vmem [shape: f32[128,128], index: 12, kind: input, shape index: {}]   ;;  %s8820_s13 = inlined_call_operand.vmem [shape: f32[1,128], index: 13, kind: input, shape index: {}]   ;;  %s8821_s14 = inlined_call_operand.vmem [shape: f32[16,16,128], index: 14, kind: output, shape index: {}]  }
   0x1   :  { %8822 = sst [smem:[#allocation9_spill]] %s8807_s0 }
   0x2   :  { %8823 = sst [smem:[#allocation10_spill]] %s8808_s1 }
   0x3   :  { %8824 = sst [smem:[#allocation11_spill]] %s8809_s2 }
   0x4   :  { %8825 = sst [smem:[#allocation12_spill]] %s8810_s3 }
   0x5   :  { %s5767_s29 = smov 0   ;;  %s5769_s30 = smov 0  }
   0x6   :  { %s5771_s15 = smov 0  }
   0x7 LB: > { %s4904_s16 = sadd.s32 4294967295, %s5645_s15   ;;  %s5784_s17 = sadd.s32 1, %s5645_s15   ;;  %s5645_s15 = sphi %s5771_s15, %s8939_s15   ;;  %s5641_s30 = sphi %s5769_s30, %s8938_s30   ;;  %s5637_s29 = sphi %s5767_s29, %s8937_s29  }
   0x8   : > { %s28_s18 = ssub.s32 %s5645_s15, %s5784_s17  ;;  %s31_s19 = sadd.s32 1, %s5641_s30 }
   0x9   : > { %p29_p0 = scmp.eq.s32.totalorder %s28_s18, 0  ;;  %p38_p1 = scmp.ne.s32.totalorder %s5641_s30, %s5637_s29 }
   0xa   : > { %p39_p2 = scmp.eq.s32.totalorder %s5645_s15, 0  ;;  %p320_p3 = scmp.eq.s32.totalorder %s4904_s16, 1 }
   0xb   : > { %s5795_s20 = scalar_select %p29_p0, %s5641_s30, %s31_s19  }
   0xc   : > { %p40_p4 = por %p39_p2, %p38_p1  ;;  %p5797_p5 = por %p320_p3, %p38_p1 }
   0xd   : > { %p4907_p6 = scmp.ge.s32.totalorder %s5645_s15, 2 }
   0xf   : > { %378 = sbr.rel (%p4907_p6) target bundleno = 46 (0x2e), region = 64 }
  0x14   : > { %381 = sbr.rel (!%p40_p4) target bundleno = 46 (0x2e), region = 68  ;;  %s383_s22 = sand.u32 (%p40_p4), 1, %s5641_s30  }
  0x15   : > { %s4909_s23 = sshll.u32 (%p40_p4), %s5645_s15, 3  ;;  %s4908_s24 = sshll.u32 (%p40_p4), %s383_s22, 7 }
  0x16   : > { %s8827_s1 = sld [smem:[#allocation10_spill]] (%p40_p4)  ;;  %s385_s28 = scalar_lea.vmem (%p40_p4), [#allocation5], %s4908_s24 }
  0x1c   : > { %s5807_s27 = scalar_lea.vmem %s8827_s1, %s4909_s23 }
  0x1d   : > { %v446_v0 = vld [vmem:[%s5807_s27] sm:$0xff]  ;;  %v448_v1 = vld [vmem:[%s5807_s27 + $0x10] sm:$0xff] }
  0x1e   : > { %v450_v2 = vld [vmem:[%s5807_s27 + $0x20] sm:$0xff]  ;;  %447 = vst [vmem:[%s385_s28] sm:$0xff] %v446_v0  ;;  %v452_v3 = vld [vmem:[%s5807_s27 + $0x30] sm:$0xff] }
  0x1f   : > { %449 = vst [vmem:[%s385_s28 + $0x8] sm:$0xff] %v448_v1  ;;  %v454_v4 = vld [vmem:[%s5807_s27 + $0x40] sm:$0xff]  ;;  %v456_v5 = vld [vmem:[%s5807_s27 + $0x50] sm:$0xff] }
  0x20   : > { %451 = vst [vmem:[%s385_s28 + $0x10] sm:$0xff] %v450_v2  ;;  %v458_v6 = vld [vmem:[%s5807_s27 + $0x60] sm:$0xff]  ;;  %v460_v7 = vld [vmem:[%s5807_s27 + $0x70] sm:$0xff] }
  0x21   : > { %453 = vst [vmem:[%s385_s28 + $0x18] sm:$0xff] %v452_v3  ;;  %v462_v8 = vld [vmem:[%s5807_s27 + $0x80] sm:$0xff]  ;;  %v464_v9 = vld [vmem:[%s5807_s27 + $0x90] sm:$0xff] }
  0x22   : > { %455 = vst [vmem:[%s385_s28 + $0x20] sm:$0xff] %v454_v4  ;;  %v466_v10 = vld [vmem:[%s5807_s27 + $0xa0] sm:$0xff]  ;;  %v468_v11 = vld [vmem:[%s5807_s27 + $0xb0] sm:$0xff] }
  0x23   : > { %457 = vst [vmem:[%s385_s28 + $0x28] sm:$0xff] %v456_v5  ;;  %v470_v12 = vld [vmem:[%s5807_s27 + $0xc0] sm:$0xff]  ;;  %v472_v13 = vld [vmem:[%s5807_s27 + $0xd0] sm:$0xff] }
  0x24   : > { %459 = vst [vmem:[%s385_s28 + $0x30] sm:$0xff] %v458_v6  ;;  %v474_v14 = vld [vmem:[%s5807_s27 + $0xe0] sm:$0xff]  ;;  %v476_v15 = vld [vmem:[%s5807_s27 + $0xf0] sm:$0xff] }
  0x25   : > { %461 = vst [vmem:[%s385_s28 + $0x38] sm:$0xff] %v460_v7 }
  0x26   : > { %463 = vst [vmem:[%s385_s28 + $0x40] sm:$0xff] %v462_v8 }
  0x27   : > { %465 = vst [vmem:[%s385_s28 + $0x48] sm:$0xff] %v464_v9 }
  0x28   : > { %467 = vst [vmem:[%s385_s28 + $0x50] sm:$0xff] %v466_v10 }
  0x29   : > { %469 = vst [vmem:[%s385_s28 + $0x58] sm:$0xff] %v468_v11 }
  0x2a   : > { %471 = vst [vmem:[%s385_s28 + $0x60] sm:$0xff] %v470_v12 }
  0x2b   : > { %473 = vst [vmem:[%s385_s28 + $0x68] sm:$0xff] %v472_v13 }
  0x2c   : > { %475 = vst [vmem:[%s385_s28 + $0x70] sm:$0xff] %v474_v14 }
  0x2d   : > { %477 = vst [vmem:[%s385_s28 + $0x78] sm:$0xff] %v476_v15 }
  0x2e PF: > { %p4910_p7 = scmp.ge.s32.totalorder %s5645_s15, 1  ;;  %p482_p8 = scmp.lt.s32.totalorder %s5645_s15, 3 }
  0x30   : > { %p483_p9 = pnand %p4910_p7, %p482_p8 }
  0x31   : > { %s489_s18 = sand.u32 (!%p483_p9), 1, %s5637_s29   ;;  %s5830_s19 = sshll.u32 (!%p483_p9), %s4904_s16, 3 }
  0x32   : > { %486 = sbr.rel (%p483_p9) target bundleno = 1379 (0x563), region = 106  ;;  %s5832_s22 = sshll.u32 (!%p483_p9), %s489_s18, 7 }
  0x33   : > { %s8828_s0 = sld [smem:[#allocation9_spill]] (!%p483_p9)  ;;  %s5889_s29 = scalar_lea.vmem (!%p483_p9), [#allocation5], %s5832_s22 }
  0x34   : > { %s5892_s15 = scalar_lea.vmem (!%p483_p9), [#allocation6], %s5832_s22 }
  0x39   : > { %s5838_s25 = scalar_lea.vmem %s8828_s0, %s5830_s19 }
  0x3a   : > { %v543_v16 = vld [vmem:[%s5838_s25] sm:$0xff]  ;;  %v545_v17 = vld [vmem:[%s5838_s25 + $0x8] sm:$0xff]  ;;  %v547_v18 = vld [vmem:[%s5838_s25 + $0x10] sm:$0xff] }
  0x3b   : > { %544 = vst [vmem:[#allocation2] sm:$0xff] %v543_v16  ;;  %v549_v19 = vld [vmem:[%s5838_s25 + $0x20] sm:$0xff]  ;;  %v551_v20 = vld [vmem:[%s5838_s25 + $0x28] sm:$0xff]  ;;  %v553_v21 = vld [vmem:[%s5838_s25 + $0x30] sm:$0xff] }
  0x3c   : > { %546 = vst [vmem:[#allocation2 + $0x8] sm:$0xff] %v545_v17  ;;  %v555_v22 = vld [vmem:[%s5838_s25 + $0x40] sm:$0xff]  ;;  %v557_v23 = vld [vmem:[%s5838_s25 + $0x48] sm:$0xff]  ;;  %v559_v24 = vld [vmem:[%s5838_s25 + $0x50] sm:$0xff] }
  0x3d   : > { %548 = vst [vmem:[#allocation2 + $0x10] sm:$0xff] %v547_v18  ;;  %v561_v25 = vld [vmem:[%s5838_s25 + $0x60] sm:$0xff]  ;;  %v563_v26 = vld [vmem:[%s5838_s25 + $0x68] sm:$0xff]  ;;  %v565_v27 = vld [vmem:[%s5838_s25 + $0x70] sm:$0xff] }
  0x3e   : > { %550 = vst [vmem:[#allocation2 + $0x18] sm:$0xff] %v549_v19  ;;  %v567_v28 = vld [vmem:[%s5838_s25 + $0x80] sm:$0xff]  ;;  %v569_v29 = vld [vmem:[%s5838_s25 + $0x88] sm:$0xff]  ;;  %v571_v30 = vld [vmem:[%s5838_s25 + $0x90] sm:$0xff] }
  0x3f   : > { %552 = vst [vmem:[#allocation2 + $0x20] sm:$0xff] %v551_v20  ;;  %v573_v31 = vld [vmem:[%s5838_s25 + $0xa0] sm:$0xff]  ;;  %v575_v32 = vld [vmem:[%s5838_s25 + $0xa8] sm:$0xff]  ;;  %v577_v33 = vld [vmem:[%s5838_s25 + $0xb0] sm:$0xff] }
  0x40   : > { %554 = vst [vmem:[#allocation2 + $0x28] sm:$0xff] %v553_v21  ;;  %v579_v34 = vld [vmem:[%s5838_s25 + $0xc0] sm:$0xff]  ;;  %v581_v35 = vld [vmem:[%s5838_s25 + $0xc8] sm:$0xff]  ;;  %v583_v36 = vld [vmem:[%s5838_s25 + $0xd0] sm:$0xff] }
  0x41   : > { %556 = vst [vmem:[#allocation2 + $0x30] sm:$0xff] %v555_v22  ;;  %v585_v37 = vld [vmem:[%s5838_s25 + $0xe0] sm:$0xff]  ;;  %v587_v38 = vld [vmem:[%s5838_s25 + $0xe8] sm:$0xff]  ;;  %v589_v39 = vld [vmem:[%s5838_s25 + $0xf0] sm:$0xff] }
  0x42   : > { %558 = vst [vmem:[#allocation2 + $0x38] sm:$0xff] %v557_v23  ;;  %v591_v40 = vld [vmem:[%s5838_s25 + $0x100] sm:$0xff]  ;;  %v593_v41 = vld [vmem:[%s5838_s25 + $0x108] sm:$0xff]  ;;  %v595_v42 = vld [vmem:[%s5838_s25 + $0x110] sm:$0xff] }
  0x43   : > { %560 = vst [vmem:[#allocation2 + $0x40] sm:$0xff] %v559_v24  ;;  %v597_v43 = vld [vmem:[%s5838_s25 + $0x120] sm:$0xff]  ;;  %v599_v44 = vld [vmem:[%s5838_s25 + $0x128] sm:$0xff]  ;;  %v601_v45 = vld [vmem:[%s5838_s25 + $0x130] sm:$0xff] }
  0x44   : > { %562 = vst [vmem:[#allocation2 + $0x48] sm:$0xff] %v561_v25  ;;  %v603_v46 = vld [vmem:[%s5838_s25 + $0x140] sm:$0xff]  ;;  %v605_v47 = vld [vmem:[%s5838_s25 + $0x148] sm:$0xff]  ;;  %v607_v48 = vld [vmem:[%s5838_s25 + $0x150] sm:$0xff] }
  0x45   : > { %564 = vst [vmem:[#allocation2 + $0x50] sm:$0xff] %v563_v26  ;;  %v609_v49 = vld [vmem:[%s5838_s25 + $0x160] sm:$0xff]  ;;  %v611_v50 = vld [vmem:[%s5838_s25 + $0x168] sm:$0xff]  ;;  %v613_v51 = vld [vmem:[%s5838_s25 + $0x170] sm:$0xff] }
  0x46   : > { %566 = vst [vmem:[#allocation2 + $0x58] sm:$0xff] %v565_v27  ;;  %v615_v52 = vld [vmem:[%s5838_s25 + $0x180] sm:$0xff]  ;;  %v617_v53 = vld [vmem:[%s5838_s25 + $0x188] sm:$0xff]  ;;  %v619_v54 = vld [vmem:[%s5838_s25 + $0x190] sm:$0xff] }
  0x47   : > { %568 = vst [vmem:[#allocation2 + $0x60] sm:$0xff] %v567_v28  ;;  %v621_v55 = vld [vmem:[%s5838_s25 + $0x1a0] sm:$0xff]  ;;  %v623_v56 = vld [vmem:[%s5838_s25 + $0x1a8] sm:$0xff]  ;;  %v625_v57 = vld [vmem:[%s5838_s25 + $0x1b0] sm:$0xff] }
  0x48   : > { %570 = vst [vmem:[#allocation2 + $0x68] sm:$0xff] %v569_v29  ;;  %v627_v58 = vld [vmem:[%s5838_s25 + $0x1c0] sm:$0xff]  ;;  %v629_v59 = vld [vmem:[%s5838_s25 + $0x1c8] sm:$0xff]  ;;  %v631_v60 = vld [vmem:[%s5838_s25 + $0x1d0] sm:$0xff] }
  0x49   : > { %572 = vst [vmem:[#allocation2 + $0x70] sm:$0xff] %v571_v30  ;;  %v633_v61 = vld [vmem:[%s5838_s25 + $0x1e0] sm:$0xff]  ;;  %v635_v62 = vld [vmem:[%s5838_s25 + $0x1e8] sm:$0xff]  ;;  %v637_v63 = vld [vmem:[%s5838_s25 + $0x1f0] sm:$0xff] }
  0x4a   : > { %574 = vst [vmem:[#allocation2 + $0x78] sm:$0xff] %v573_v31 }
  0x4b   : > { %576 = vst [vmem:[#allocation2 + $0x80] sm:$0xff] %v575_v32 }
  0x4c   : > { %578 = vst [vmem:[#allocation2 + $0x88] sm:$0xff] %v577_v33 }
  0x4d   : > { %580 = vst [vmem:[#allocation2 + $0x90] sm:$0xff] %v579_v34 }
  0x4e   : > { %582 = vst [vmem:[#allocation2 + $0x98] sm:$0xff] %v581_v35 }
  0x4f   : > { %584 = vst [vmem:[#allocation2 + $0xa0] sm:$0xff] %v583_v36 }
  0x50   : > { %586 = vst [vmem:[#allocation2 + $0xa8] sm:$0xff] %v585_v37 }
  0x51   : > { %588 = vst [vmem:[#allocation2 + $0xb0] sm:$0xff] %v587_v38 }
  0x52   : > { %590 = vst [vmem:[#allocation2 + $0xb8] sm:$0xff] %v589_v39 }
  0x53   : > { %592 = vst [vmem:[#allocation2 + $0xc0] sm:$0xff] %v591_v40 }
  0x54   : > { %594 = vst [vmem:[#allocation2 + $0xc8] sm:$0xff] %v593_v41 }
  0x55   : > { %596 = vst [vmem:[#allocation2 + $0xd0] sm:$0xff] %v595_v42 }
  0x56   : > { %598 = vst [vmem:[#allocation2 + $0xd8] sm:$0xff] %v597_v43 }
  0x57   : > { %600 = vst [vmem:[#allocation2 + $0xe0] sm:$0xff] %v599_v44 }
  0x58   : > { %602 = vst [vmem:[#allocation2 + $0xe8] sm:$0xff] %v601_v45 }
  0x59   : > { %604 = vst [vmem:[#allocation2 + $0xf0] sm:$0xff] %v603_v46 }
  0x5a   : > { %606 = vst [vmem:[#allocation2 + $0xf8] sm:$0xff] %v605_v47 }
  0x5b   : > { %608 = vst [vmem:[#allocation2 + $0x100] sm:$0xff] %v607_v48 }
  0x5c   : > { %610 = vst [vmem:[#allocation2 + $0x108] sm:$0xff] %v609_v49 }
  0x5d   : > { %612 = vst [vmem:[#allocation2 + $0x110] sm:$0xff] %v611_v50 }
  0x5e   : > { %614 = vst [vmem:[#allocation2 + $0x118] sm:$0xff] %v613_v51 }
  0x5f   : > { %616 = vst [vmem:[#allocation2 + $0x120] sm:$0xff] %v615_v52 }
  0x60   : > { %618 = vst [vmem:[#allocation2 + $0x128] sm:$0xff] %v617_v53 }
  0x61   : > { %620 = vst [vmem:[#allocation2 + $0x130] sm:$0xff] %v619_v54 }
  0x62   : > { %622 = vst [vmem:[#allocation2 + $0x138] sm:$0xff] %v621_v55 }
  0x63   : > { %624 = vst [vmem:[#allocation2 + $0x140] sm:$0xff] %v623_v56 }
  0x64   : > { %626 = vst [vmem:[#allocation2 + $0x148] sm:$0xff] %v625_v57 }
  0x65   : > { %628 = vst [vmem:[#allocation2 + $0x150] sm:$0xff] %v627_v58 }
  0x66   : > { %630 = vst [vmem:[#allocation2 + $0x158] sm:$0xff] %v629_v59 }
  0x67   : > { %632 = vst [vmem:[#allocation2 + $0x160] sm:$0xff] %v631_v60 }
  0x68   : > { %634 = vst [vmem:[#allocation2 + $0x168] sm:$0xff] %v633_v61 }
  0x69   : > { %636 = vst [vmem:[#allocation2 + $0x170] sm:$0xff] %v635_v62 }
  0x6a   : > { %638 = vst [vmem:[#allocation2 + $0x178] sm:$0xff] %v637_v63 }
  0x6b   : > { %644 = vsyncadd [#allocation4], 6144 }
  0x6c   : > { %5633 = dma.done.wait [#allocation4], 6144 }
  0x6d   : > { %5634 = vsyncadd [#allocation4], 4294961152  ;;  %v649_v0 = vlaneseq  ;;  %s653_s16 = ssub.s32 5, %s5830_s19  ;;  %s658_s26 = ssub.s32 21, %s5830_s19  ;;  %v5691_v6 = vmov 0.0   ;;  %v5647_v10 = vmov 0.0  }
  0x6e   : > { %v654_v1 = vstv %s653_s16  ;;  %v659_v2 = vstv %s658_s26  ;;  %v5651_v11 = vmov 0.0   ;;  %v5655_v12 = vmov 0.0   ;;  %s5905_s27 = smov 0  }
  0x6f   : > { %v650_v3 = vshrl.u32 %v649_v0, 7  ;;  %v5659_v13 = vmov 0.0   ;;  %v5663_v14 = vmov 0.0   ;;  %v5667_v15 = vmov 0.0  }
  0x71   : > { %v651_v4 = vadd.s32 8, %v650_v3  ;;  %v652_v5 = vadd.s32 16, %v650_v3  ;;  %vm655_vm0 = vcmp.ge.s32.totalorder %v650_v3, %v654_v1  ;;  %vm660_vm1 = vcmp.lt.s32.totalorder %v650_v3, %v659_v2 }
  0x72   : > { %vm663_vm2 = vmand %vm655_vm0, %vm660_vm1 }
  0x73   : > { %vm656_vm3 = vcmp.ge.s32.totalorder %v651_v4, %v654_v1  ;;  %vm657_vm4 = vcmp.ge.s32.totalorder %v652_v5, %v654_v1  ;;  %vm661_vm5 = vcmp.lt.s32.totalorder %v651_v4, %v659_v2  ;;  %vm662_vm6 = vcmp.lt.s32.totalorder %v652_v5, %v659_v2 }
  0x74   : > { %vm664_vm7 = vmand %vm656_vm3, %vm661_vm5  ;;  %v5897_v7 = vsel %vm663_vm2, 1.0, %v5691_v6 }
  0x75   : > { %vm665_vm8 = vmand %vm657_vm4, %vm662_vm6  ;;  %v5900_v8 = vsel %vm664_vm7, 1.0, %v5691_v6 }
  0x76   : > { %v5903_v9 = vsel %vm665_vm8, 1.0, %v5691_v6 }
  0x77 LB: >> { %s684_s28 = smul.u32 24, %s5673_s27  ;;  %s677_s27 = sadd.s32 1, %s5673_s27   ;;  %s5673_s27 = sphi %s5905_s27, %s677_s27   ;;  %v5669_v15 = vphi %v5667_v15, %v5668_v15   ;;  %v5665_v14 = vphi %v5663_v14, %v5664_v14   ;;  %v5661_v13 = vphi %v5659_v13, %v5660_v13   ;;  %v5657_v12 = vphi %v5655_v12, %v5656_v12   ;;  %v5653_v11 = vphi %v5651_v11, %v5652_v11   ;;  %v5649_v10 = vphi %v5647_v10, %v5648_v10  }
  0x78   : >> { %p674_p10 = scmp.ge.s32.totalorder %s677_s27, 16  }
  0x79   : >> { %s685_s18 = scalar_lea.vmem [#allocation2], %s684_s28  ;;  %s8829_s2 = sld [smem:[#allocation11_spill]] (%p674_p10) }
  0x7a   : >> { %v686_v16 = vld [vmem:[%s685_s18] sm:$0xff]  ;;  %v687_v17 = vld [vmem:[%s685_s18 + $0x8] sm:$0xff]  ;;  %v688_v18 = vld [vmem:[%s685_s18 + $0x10] sm:$0xff]  ;;  %s8830_s3 = sld [smem:[#allocation12_spill]] (%p674_p10)  ;;  %s5683_s16 = smov (%p674_p10), 0  }
  0x7b   : >> { %v689_v19 = vadd.f32 %v5669_v15, %v686_v16   ;;  %v690_v20 = vadd.f32 %v5665_v14, %v687_v17   ;;  %v691_v21 = vadd.f32 %v5661_v13, %v688_v18   ;;  %v692_v22 = vmul.f32 %v686_v16, %v686_v16 }
  0x7c   : >> { %v693_v23 = vmul.f32 %v687_v17, %v687_v17  ;;  %v694_v24 = vmul.f32 %v688_v18, %v688_v18  ;;  %676 = sbr.rel (!%p674_p10) target bundleno = 119 (0x77), region = 366  ;;  %v5675_v18 = vmov (%p674_p10), 0.0  }
  0x7d   : >> { %v695_v25 = vadd.f32 %v5657_v12, %v692_v22   ;;  %v5660_v13 = vmov %v691_v21   ;;  %v5664_v14 = vmov %v690_v20   ;;  %v5668_v15 = vmov %v689_v19  }
  0x7e   : >> { %v696_v26 = vadd.f32 %v5653_v11, %v693_v23   ;;  %v697_v27 = vadd.f32 %v5649_v10, %v694_v24   ;;  %v698_v28 = vmul.f32 (%p674_p10), 0.0625, %v689_v19  ;;  %v699_v29 = vmul.f32 (%p674_p10), 0.0625, %v690_v20 }
  0x7f   : >> { %v5656_v12 = vmov %v695_v25   ;;  %v700_v30 = vmul.f32 (%p674_p10), 0.0625, %v691_v21  ;;  %v701_v31 = vmul.f32 (%p674_p10), 0.0625, %v695_v25  ;;  %v5235_v60 = vld [vmem:[%s8829_s2] ss:$0 sm:$0xff] (%p674_p10)  ;;  %v5679_v19 = vmov (%p674_p10), 0.0  }
  0x80   : >> { %v5648_v10 = vmov %v697_v27   ;;  %v5652_v11 = vmov %v696_v26   ;;  %v702_v32 = vmul.f32 (%p674_p10), 0.0625, %v696_v26  ;;  %v703_v33 = vmul.f32 (%p674_p10), 0.0625, %v697_v27  ;;  %v5236_v4 = vld [vmem:[%s8830_s3] ss:$0 sm:$0xff] (%p674_p10) }
  0x81   : > { %v704_v34 = vmul.f32 %v698_v28, %v698_v28  ;;  %v705_v35 = vmul.f32 %v699_v29, %v699_v29  ;;  %v706_v36 = vmul.f32 %v700_v30, %v700_v30 }
  0x83   : > { %v707_v37 = vsub.f32 %v701_v31, %v704_v34  ;;  %v708_v38 = vsub.f32 %v702_v32, %v705_v35  ;;  %v709_v39 = vsub.f32 %v703_v33, %v706_v36 }
  0x85   : > { %v710_v40 = vmax.f32 %v707_v37, 0.0  ;;  %v711_v41 = vmax.f32 %v708_v38, 0.0  ;;  %v712_v42 = vmax.f32 %v709_v39, 0.0 }
  0x87   : > { %v713_v43 = vadd.f32 1e-06, %v710_v40  ;;  %v714_v44 = vadd.f32 1e-06, %v711_v41  ;;  %v715_v45 = vadd.f32 1e-06, %v712_v42 }
  0x89   : > { %5237 = vrsqrt.f32 %v713_v43  ;;  %vm722_vm9 = vweird.f32 %v713_v43  ;;  %vm732_vm11 = vweird.f32 %v714_v44  ;;  %vm742_vm13 = vweird.f32 %v715_v45 }
  0x8a   : > { %5239 = vrsqrt.f32 %v714_v44 }
  0x8b   : > { %5241 = vrsqrt.f32 %v715_v45 }
  0x8f   : > { %v5238_v46 = vpop.eup %5237 }
  0x90   : > { %v5240_v47 = vpop.eup %5239  ;;  %v717_v48 = vmul.f32 %v5238_v46, %v713_v43  ;;  %vm723_vm10 = vweird.f32 %v5238_v46 }
  0x91   : > { %v5242_v49 = vpop.eup %5241  ;;  %v727_v50 = vmul.f32 %v5240_v47, %v714_v44  ;;  %vm733_vm12 = vweird.f32 %v5240_v47  ;;  %vm724_vm15 = vmor %vm722_vm9, %vm723_vm10 }
  0x92   : > { %v718_v51 = vmul.f32 %v5238_v46, %v717_v48  ;;  %v737_v52 = vmul.f32 %v5242_v49, %v715_v45  ;;  %vm743_vm14 = vweird.f32 %v5242_v49  ;;  %vm734_vm0 = vmor %vm732_vm11, %vm733_vm12 }
  0x93   : > { %v728_v53 = vmul.f32 %v5240_v47, %v727_v50  ;;  %vm744_vm1 = vmor %vm742_vm13, %vm743_vm14 }
  0x94   : > { %v719_v54 = vmul.f32 0.5, %v718_v51  ;;  %v738_v55 = vmul.f32 %v5242_v49, %v737_v52 }
  0x95   : > { %v729_v56 = vmul.f32 0.5, %v728_v53 }
  0x96   : > { %v720_v57 = vsub.f32 1.5, %v719_v54  ;;  %v739_v58 = vmul.f32 0.5, %v738_v55 }
  0x97   : > { %v730_v59 = vsub.f32 1.5, %v729_v56 }
  0x98   : > { %v721_v61 = vmul.f32 %v5238_v46, %v720_v57  ;;  %v740_v62 = vsub.f32 1.5, %v739_v58 }
  0x99   : > { %v731_v63 = vmul.f32 %v5240_v47, %v730_v59 }
  0x9a   : > { %v725_v0 = vsel %vm724_vm15, %v5238_v46, %v721_v61  ;;  %v741_v1 = vmul.f32 %v5242_v49, %v740_v62 }
  0x9b   : > { %v735_v2 = vsel %vm734_vm0, %v5240_v47, %v731_v63  ;;  %v5913_v3 = vmul.f32 %v5235_v60, %v725_v0 }
  0x9c   : > { %v745_v5 = vsel %vm744_vm1, %v5242_v49, %v741_v1  ;;  %v5918_v10 = vmul.f32 %v5235_v60, %v735_v2 }
  0x9d   : > { %v5920_v11 = vmul.f32 %v5235_v60, %v745_v5  ;;  %v754_v12 = vmul.f32 %v5913_v3, %v698_v28 }
  0x9e   : > { %v755_v13 = vmul.f32 %v5918_v10, %v699_v29 }
  0x9f   : > { %v756_v14 = vmul.f32 %v5920_v11, %v700_v30  ;;  %v5925_v15 = vsub.f32 %v5236_v4, %v754_v12 }
  0xa0   : > { %v5927_v16 = vsub.f32 %v5236_v4, %v755_v13 }
  0xa1   : > { %v5929_v17 = vsub.f32 %v5236_v4, %v756_v14 }
  0xa2 LB: >> { %s4917_s26 = sshll.u32 %s5685_s16, 3  ;;  %s768_s16 = sadd.s32 1, %s5685_s16   ;;  %s5685_s16 = sphi %s5683_s16, %s768_s16   ;;  %v5681_v19 = vphi %v5679_v19, %v5680_v19   ;;  %v5677_v18 = vphi %v5675_v18, %v5676_v18  }
  0xa3   : >> { %s772_s27 = scalar_lea.vmem %s5889_s29, %s4917_s26 [#allocation5]  ;;  %p765_p11 = scmp.ge.s32.totalorder %s768_s16, 16  }
  0xa4   : >> { %v773_v20 = vld [vmem:[%s772_s27] sm:$0xff]  ;;  %804 = vst [vmem:[#allocation3] sm:$0xff] (%p765_p11), %v5691_v6  ;;  %v850_v26 = vld [vmem:[%s8813_s6 + $0x78] sm:$0xff] (%p765_p11)  ;;  %v849_v28 = vld [vmem:[%s8813_s6 + $0x70] sm:$0xff] (%p765_p11)  ;;  %s7780_s18 = smov (%p765_p11), 0  }
  0xa5   : >> { %v774_v21 = vadd.f32 %v5681_v19, %v773_v20   ;;  %v775_v22 = vmul.f32 %v773_v20, %v773_v20  ;;  %767 = sbr.rel (!%p765_p11) target bundleno = 162 (0xa2), region = 377  ;;  %805 = vst [vmem:[#allocation3 + $0x8] sm:$0xff] (%p765_p11), %v5691_v6  ;;  %945 = vmatpush.msra.mxu0 (%p765_p11), %v850_v26  ;;  %2368 = vmatpush.msra.mxu1 (%p765_p11), %v850_v26  ;;  %v848_v29 = vld [vmem:[%s8813_s6 + $0x68] sm:$0xff] (%p765_p11)  ;;  %v847_v31 = vld [vmem:[%s8813_s6 + $0x60] sm:$0xff] (%p765_p11)  ;;  %v846_v33 = vld [vmem:[%s8813_s6 + $0x58] sm:$0xff] (%p765_p11) }
  0xa6   : > { %806 = vst [vmem:[#allocation3 + $0x10] sm:$0xff] (%p765_p11), %v5691_v6  ;;  %5075 = vmatpush.msra.mxu3 (%p765_p11), %v850_v26  ;;  %5074 = vmatpush.msra.mxu2 (%p765_p11), %v850_v26  ;;  %v845_v35 = vld [vmem:[%s8813_s6 + $0x50] sm:$0xff] (%p765_p11)  ;;  %v844_v36 = vld [vmem:[%s8813_s6 + $0x48] sm:$0xff] (%p765_p11)  ;;  %v843_v37 = vld [vmem:[%s8813_s6 + $0x40] sm:$0xff] (%p765_p11) }
  0xa7   : >> { %v776_v23 = vadd.f32 %v5677_v18, %v775_v22   ;;  %v5680_v19 = vmov %v774_v21   ;;  %v5932_v24 = vmul.f32 (%p765_p11), 0.0625, %v774_v21  ;;  %807 = vst [vmem:[#allocation3 + $0x18] sm:$0xff] (%p765_p11), %v5691_v6  ;;  %946 = vmatpush.msra.mxu0 (%p765_p11), %v849_v28  ;;  %2369 = vmatpush.msra.mxu1 (%p765_p11), %v849_v28  ;;  %v842_v38 = vld [vmem:[%s8813_s6 + $0x38] sm:$0xff] (%p765_p11)  ;;  %v841_v41 = vld [vmem:[%s8813_s6 + $0x30] sm:$0xff] (%p765_p11)  ;;  %v840_v43 = vld [vmem:[%s8813_s6 + $0x28] sm:$0xff] (%p765_p11) }
  0xa8   : > { %808 = vst [vmem:[#allocation3 + $0x20] sm:$0xff] (%p765_p11), %v5691_v6  ;;  %5077 = vmatpush.msra.mxu3 (%p765_p11), %v849_v28  ;;  %5076 = vmatpush.msra.mxu2 (%p765_p11), %v849_v28  ;;  %v839_v45 = vld [vmem:[%s8813_s6 + $0x20] sm:$0xff] (%p765_p11)  ;;  %v2314_v47 = vld [vmem:[#allocation2 + $0xf0] sm:$0xff] (%p765_p11)  ;;  %v838_v49 = vld [vmem:[%s8813_s6 + $0x18] sm:$0xff] (%p765_p11) }
  0xa9   : >> { %v5676_v18 = vmov %v776_v23   ;;  %v778_v25 = vmul.f32 (%p765_p11), 0.0625, %v776_v23  ;;  %v779_v27 = vmul.f32 (%p765_p11), %v5932_v24, %v5932_v24  ;;  %809 = vst [vmem:[#allocation3 + $0x28] sm:$0xff] (%p765_p11), %v5691_v6  ;;  %947 = vmatpush.msra.mxu0 (%p765_p11), %v848_v29  ;;  %2370 = vmatpush.msra.mxu1 (%p765_p11), %v848_v29  ;;  %v852_v46 = vld [vmem:[#allocation2] sm:$0xff] (%p765_p11)  ;;  %v837_v53 = vld [vmem:[%s8813_s6 + $0x10] sm:$0xff] (%p765_p11)  ;;  %v2332_v55 = vmul.f32 (%p765_p11), %v2314_v47, %v5913_v3  ;;  %v836_v57 = vld [vmem:[%s8813_s6 + $0x8] sm:$0xff] (%p765_p11) }
  0xaa   : > { %810 = vst [vmem:[#allocation3 + $0x30] sm:$0xff] %v5691_v6  ;;  %5079 = vmatpush.msra.mxu3 %v848_v29  ;;  %5078 = vmatpush.msra.mxu2 %v848_v29  ;;  %v5243_v51 = vld [vmem:[%s8811_s4] ss:$0 sm:$0xff]  ;;  %v882_v54 = vmul.f32 %v852_v46, %v5913_v3  ;;  %v853_v0 = vld [vmem:[#allocation2 + $0x8] sm:$0xff]  ;;  %v2315_v1 = vld [vmem:[#allocation2 + $0xf8] sm:$0xff] }
  0xab   : > { %v780_v30 = vsub.f32 %v778_v25, %v779_v27  ;;  %811 = vst [vmem:[#allocation3 + $0x38] sm:$0xff] %v5691_v6  ;;  %948 = vmatpush.msra.mxu0 %v847_v31  ;;  %2371 = vmatpush.msra.mxu1 %v847_v31  ;;  %v5244_v59 = vld [vmem:[%s8812_s5] ss:$0 sm:$0xff]  ;;  %v2350_v62 = vadd.f32 %v2332_v55, %v5925_v15  ;;  %v854_v13 = vld [vmem:[#allocation2 + $0x10] sm:$0xff]  ;;  %v855_v22 = vld [vmem:[#allocation2 + $0x18] sm:$0xff] }
  0xac   : > { %812 = vst [vmem:[#allocation3 + $0x40] sm:$0xff] %v5691_v6  ;;  %5081 = vmatpush.msra.mxu3 %v847_v31  ;;  %5080 = vmatpush.msra.mxu2 %v847_v31  ;;  %v835_v60 = vld [vmem:[%s8813_s6] sm:$0xff]  ;;  %v912_v61 = vadd.f32 %v882_v54, %v5925_v15  ;;  %v883_v4 = vmul.f32 %v853_v0, %v5918_v10  ;;  %v2317_v23 = vld [vmem:[#allocation2 + $0x108] sm:$0xff]  ;;  %v2318_v31 = vld [vmem:[#allocation2 + $0x110] sm:$0xff] }
  0xad   : > { %v781_v32 = vmax.f32 %v780_v30, 0.0  ;;  %813 = vst [vmem:[#allocation3 + $0x48] sm:$0xff] %v5691_v6  ;;  %949 = vmatpush.msra.mxu0 %v846_v33  ;;  %2372 = vmatpush.msra.mxu1 %v846_v33  ;;  %v2333_v5 = vmul.f32 %v2315_v1, %v5918_v10  ;;  %v2316_v14 = vld [vmem:[#allocation2 + $0x100] sm:$0xff]  ;;  %v884_v18 = vmul.f32 %v854_v13, %v5920_v11  ;;  %v858_v50 = vld [vmem:[#allocation2 + $0x30] sm:$0xff]  ;;  %v2321_v0 = vld [vmem:[#allocation2 + $0x128] sm:$0xff] }
  0xae   : > { %814 = vst [vmem:[#allocation3 + $0x50] sm:$0xff] %v5691_v6  ;;  %5083 = vmatpush.msra.mxu3 %v846_v33  ;;  %5082 = vmatpush.msra.mxu2 %v846_v33  ;;  %v2334_v19 = vmul.f32 %v2316_v14, %v5920_v11  ;;  %v2335_v25 = vmul.f32 %v2317_v23, %v5913_v3  ;;  %v876_v26 = vld [vmem:[#allocation2 + $0xc0] sm:$0xff] }
  0xaf   : > { %v5958_v34 = vadd.f32 1e-06, %v781_v32  ;;  %815 = vst [vmem:[#allocation3 + $0x58] sm:$0xff] %v5691_v6  ;;  %950 = vmatpush.msra.mxu0 %v845_v35  ;;  %2373 = vmatpush.msra.mxu1 %v845_v35  ;;  %v2351_v12 = vadd.f32 %v2333_v5, %v5927_v16  ;;  %v914_v20 = vadd.f32 %v884_v18, %v5929_v17  ;;  %v856_v30 = vld [vmem:[#allocation2 + $0x20] sm:$0xff] }
  0xb0   : > { %816 = vst [vmem:[#allocation3 + $0x60] sm:$0xff] %v5691_v6  ;;  %5085 = vmatpush.msra.mxu3 %v845_v35  ;;  %5084 = vmatpush.msra.mxu2 %v845_v35  ;;  %v2352_v21 = vadd.f32 %v2334_v19, %v5929_v17  ;;  %v2353_v28 = vadd.f32 %v2335_v25, %v5925_v15  ;;  %v877_v35 = vld [vmem:[#allocation2 + $0xc8] sm:$0xff]  ;;  %v880_v13 = vld [vmem:[#allocation2 + $0xe0] sm:$0xff] }
  0xb1   : > { %5246 = vrsqrt.f32 %v5958_v34  ;;  %817 = vst [vmem:[#allocation3 + $0x68] sm:$0xff] %v5691_v6  ;;  %951 = vmatpush.msra.mxu0 %v844_v36  ;;  %2374 = vmatpush.msra.mxu1 %v844_v36  ;;  %vm789_vm2 = vweird.f32 %v5958_v34  ;;  %v906_v29 = vmul.f32 %v876_v26, %v5913_v3  ;;  %v886_v33 = vmul.f32 %v856_v30, %v5918_v10 }
  0xb2   : > { %818 = vst [vmem:[#allocation3 + $0x70] sm:$0xff] %v5691_v6  ;;  %5087 = vmatpush.msra.mxu3 %v844_v36  ;;  %5086 = vmatpush.msra.mxu2 %v844_v36  ;;  %v888_v54 = vmul.f32 %v858_v50, %v5913_v3 }
  0xb3   : > { %820 = vst [vmem:[#allocation3 + $0x1f8] sm:$0xff] %v5691_v6  ;;  %952 = vmatpush.msra.mxu0 %v843_v37  ;;  %2375 = vmatpush.msra.mxu1 %v843_v37  ;;  %v936_v32 = vadd.f32 %v906_v29, %v5925_v15  ;;  %v916_v36 = vadd.f32 %v886_v33, %v5927_v16  ;;  %v861_v33 = vld [vmem:[#allocation2 + $0x48] sm:$0xff] }
  0xb4   : > { %821 = vst [vmem:[#allocation3 + $0x200] sm:$0xff] %v5691_v6  ;;  %5089 = vmatpush.msra.mxu3 %v843_v37  ;;  %5088 = vmatpush.msra.mxu2 %v843_v37 }
  0xb5   : > { %822 = vst [vmem:[#allocation3 + $0x208] sm:$0xff] %v5691_v6  ;;  %953 = vmatpush.msra.mxu0 %v842_v38  ;;  %2376 = vmatpush.msra.mxu1 %v842_v38 }
  0xb6   : > { %823 = vst [vmem:[#allocation3 + $0x210] sm:$0xff] %v5691_v6  ;;  %5091 = vmatpush.msra.mxu3 %v842_v38  ;;  %5090 = vmatpush.msra.mxu2 %v842_v38  ;;  %v907_v38 = vmul.f32 %v877_v35, %v5918_v10 }
  0xb7   : > { %v5247_v39 = vpop.eup %5246  ;;  %824 = vst [vmem:[#allocation3 + $0x218] sm:$0xff] %v5691_v6  ;;  %954 = vmatpush.msra.mxu0 %v841_v41  ;;  %2377 = vmatpush.msra.mxu1 %v841_v41 }
  0xb8   : > { %v784_v40 = vmul.f32 %v5247_v39, %v5958_v34  ;;  %vm790_vm3 = vweird.f32 %v5247_v39  ;;  %825 = vst [vmem:[#allocation3 + $0x220] sm:$0xff] %v5691_v6  ;;  %5093 = vmatpush.msra.mxu3 %v841_v41  ;;  %5092 = vmatpush.msra.mxu2 %v841_v41  ;;  %v2336_v34 = vmul.f32 %v2318_v31, %v5918_v10 }
  0xb9   : > { %826 = vst [vmem:[#allocation3 + $0x228] sm:$0xff] %v5691_v6  ;;  %955 = vmatpush.msra.mxu0 %v840_v43  ;;  %2378 = vmatpush.msra.mxu1 %v840_v43  ;;  %vm6006_vm4 = vmor %vm789_vm2, %vm790_vm3  ;;  %v937_v41 = vadd.f32 %v907_v38, %v5927_v16 }
  0xba   : > { %v785_v42 = vmul.f32 %v5247_v39, %v784_v40  ;;  %827 = vst [vmem:[#allocation3 + $0x230] sm:$0xff] %v5691_v6  ;;  %5095 = vmatpush.msra.mxu3 %v840_v43  ;;  %5094 = vmatpush.msra.mxu2 %v840_v43  ;;  %v2354_v37 = vadd.f32 %v2336_v34, %v5927_v16  ;;  %v2319_v40 = vld [vmem:[#allocation2 + $0x118] sm:$0xff] }
  0xbb   : > { %828 = vst [vmem:[#allocation3 + $0x238] sm:$0xff] %v5691_v6  ;;  %956 = vmatpush.msra.mxu0 %v839_v45  ;;  %2379 = vmatpush.msra.mxu1 %v839_v45  ;;  %v2337_v43 = vmul.f32 %v2319_v40, %v5920_v11  ;;  %v2323_v34 = vld [vmem:[#allocation2 + $0x138] sm:$0xff] }
  0xbc   : > { %v786_v44 = vmul.f32 0.5, %v785_v42  ;;  %829 = vst [vmem:[#allocation3 + $0x240] sm:$0xff] %v5691_v6  ;;  %5097 = vmatpush.msra.mxu3 %v839_v45  ;;  %5096 = vmatpush.msra.mxu2 %v839_v45  ;;  %v878_v45 = vld [vmem:[#allocation2 + $0xd0] sm:$0xff]  ;;  %v2341_v38 = vmul.f32 %v2323_v34, %v5913_v3  ;;  %v2331_v34 = vld [vmem:[#allocation2 + $0x178] sm:$0xff] }
  0xbd   : > { %830 = vst [vmem:[#allocation3 + $0x248] sm:$0xff] %v5691_v6  ;;  %957 = vmatpush.msra.mxu0 %v838_v49  ;;  %2380 = vmatpush.msra.mxu1 %v838_v49  ;;  %v2355_v47 = vadd.f32 %v2337_v43, %v5929_v17 }
  0xbe   : > { %v787_v48 = vsub.f32 1.5, %v786_v44  ;;  %831 = vst [vmem:[#allocation3 + $0x250] sm:$0xff] %v5691_v6  ;;  %5099 = vmatpush.msra.mxu3 %v838_v49  ;;  %5098 = vmatpush.msra.mxu2 %v838_v49  ;;  %v872_v44 = vld [vmem:[#allocation2 + $0xa0] sm:$0xff]  ;;  %v908_v49 = vmul.f32 %v878_v45, %v5920_v11  ;;  %v2359_v40 = vadd.f32 %v2341_v38, %v5925_v15 }
  0xbf   : > { %832 = vst [vmem:[#allocation3 + $0x258] sm:$0xff] %v5691_v6  ;;  %958 = vmatpush.msra.mxu0 %v837_v53  ;;  %2381 = vmatpush.msra.mxu1 %v837_v53 }
  0xc0   : > { %v788_v52 = vmul.f32 %v5247_v39, %v787_v48  ;;  %833 = vst [vmem:[#allocation3 + $0x260] sm:$0xff] %v5691_v6  ;;  %5101 = vmatpush.msra.mxu3 %v837_v53  ;;  %5100 = vmatpush.msra.mxu2 %v837_v53  ;;  %v902_v48 = vmul.f32 %v872_v44, %v5920_v11 }
  0xc1   : > { %834 = vst [vmem:[#allocation3 + $0x268] sm:$0xff] %v5691_v6  ;;  %959 = vmatpush.msra.mxu0 %v836_v57  ;;  %2382 = vmatpush.msra.mxu1 %v836_v57  ;;  %v913_v6 = vadd.f32 %v883_v4, %v5927_v16  ;;  %v938_v53 = vadd.f32 %v908_v49, %v5929_v17 }
  0xc2   : > { %v792_v56 = vsel %vm6006_vm4, %v5247_v39, %v788_v52  ;;  %5103 = vmatpush.msra.mxu3 %v836_v57  ;;  %5102 = vmatpush.msra.mxu2 %v836_v57  ;;  %v857_v39 = vld [vmem:[#allocation2 + $0x28] sm:$0xff]  ;;  %v932_v52 = vadd.f32 %v902_v48, %v5929_v17  ;;  %v879_v57 = vld [vmem:[#allocation2 + $0xd8] sm:$0xff] }
  0xc3   : > { %v6027_v58 = vmul.f32 %v5243_v51, %v792_v56  ;;  %960 = vmatpush.msra.mxu0 %v835_v60  ;;  %2383 = vmatpush.msra.mxu1 %v835_v60  ;;  %v887_v42 = vmul.f32 %v857_v39, %v5920_v11  ;;  %v2320_v51 = vld [vmem:[#allocation2 + $0x120] sm:$0xff]  ;;  %v873_v56 = vld [vmem:[#allocation2 + $0xa8] sm:$0xff] }
  0xc4   : > { %961 = vmatmul.f32.vlgmr.msra.gmra.mxu0 %v912_v61  ;;  %2384 = vmatmul.f32.vlgmr.msra.gmra.mxu1 %v2350_v62  ;;  %v2338_v55 = vmul.f32 %v2320_v51, %v5913_v3  ;;  %v903_v61 = vmul.f32 %v873_v56, %v5913_v3  ;;  %v909_v62 = vmul.f32 %v879_v57, %v5913_v3  ;;  %v2325_v48 = vld [vmem:[#allocation2 + $0x148] sm:$0xff] }
  0xc5   : > { %v799_v63 = vmul.f32 %v6027_v58, %v5932_v24  ;;  %5105 = vmatpush.msra.mxu3 %v835_v60  ;;  %5104 = vmatpush.msra.mxu2 %v835_v60  ;;  %v885_v24 = vmul.f32 %v855_v22, %v5913_v3  ;;  %v917_v46 = vadd.f32 %v887_v42, %v5929_v17  ;;  %v2322_v22 = vld [vmem:[#allocation2 + $0x130] sm:$0xff]  ;;  %v2324_v42 = vld [vmem:[#allocation2 + $0x140] sm:$0xff] }
  0xc6   : > { %1033 = vmatmul.f32.vlgmr.msra.gmra.mxu3 %v936_v32  ;;  %1021 = vmatmul.f32.vlgmr.msra.gmra.mxu2 %v932_v52  ;;  %v2356_v60 = vadd.f32 %v2338_v55, %v5925_v15  ;;  %v933_v1 = vadd.f32 %v903_v61, %v5925_v15  ;;  %v939_v4 = vadd.f32 %v909_v62, %v5925_v15  ;;  %v2327_v61 = vld [vmem:[#allocation2 + $0x158] sm:$0xff] }
  0xc7   : > { %v6042_v2 = vsub.f32 %v5244_v59, %v799_v63  ;;  %v915_v27 = vadd.f32 %v885_v24, %v5925_v15  ;;  %v918_v59 = vadd.f32 %v888_v54, %v5925_v15  ;;  %v859_v63 = vld [vmem:[#allocation2 + $0x38] sm:$0xff]  ;;  %v2340_v26 = vmul.f32 %v2322_v22, %v5920_v11  ;;  %v2326_v54 = vld [vmem:[#allocation2 + $0x150] sm:$0xff] }
  0xc8   : > { %v889_v5 = vmul.f32 %v859_v63, %v5918_v10  ;;  %v2342_v44 = vmul.f32 %v2324_v42, %v5918_v10  ;;  %v2343_v50 = vmul.f32 %v2325_v48, %v5920_v11  ;;  %v2344_v56 = vmul.f32 %v2326_v54, %v5913_v3 }
  0xc9   : > { %v2358_v30 = vadd.f32 %v2340_v26, %v5929_v17  ;;  %v2345_v63 = vmul.f32 %v2327_v61, %v5918_v10 }
  0xca   : > { %v919_v14 = vadd.f32 %v889_v5, %v5927_v16  ;;  %v2361_v52 = vadd.f32 %v2343_v50, %v5929_v17  ;;  %v2328_v5 = vld [vmem:[#allocation2 + $0x160] sm:$0xff] }
  0xcc   : > { %964 = vmatmul.f32.gmra.mxu0 %v913_v6  ;;  %2387 = vmatmul.f32.gmra.mxu1 %v2351_v12  ;;  %v2339_v6 = vmul.f32 %v2321_v0, %v5918_v10  ;;  %v874_v12 = vld [vmem:[#allocation2 + $0xb0] sm:$0xff] }
  0xcd   : > { %v904_v19 = vmul.f32 %v874_v12, %v5918_v10  ;;  %v2346_v12 = vmul.f32 %v2328_v5, %v5920_v11 }
  0xce   : > { %1036 = vmatmul.f32.gmra.mxu3 %v937_v41  ;;  %1024 = vmatmul.f32.gmra.mxu2 %v933_v1  ;;  %v2357_v18 = vadd.f32 %v2339_v6, %v5927_v16  ;;  %v862_v41 = vld [vmem:[#allocation2 + $0x50] sm:$0xff]  ;;  %v2363_v1 = vadd.f32 %v2345_v63, %v5927_v16 }
  0xcf   : > { %v934_v23 = vadd.f32 %v904_v19, %v5927_v16  ;;  %v892_v43 = vmul.f32 %v862_v41, %v5918_v10  ;;  %v2329_v19 = vld [vmem:[#allocation2 + $0x168] sm:$0xff] }
  0xd1   : > { %v922_v45 = vadd.f32 %v892_v43, %v5927_v16 }
  0xd4   : > { %967 = vmatmul.f32.gmra.mxu0 %v914_v20  ;;  %2390 = vmatmul.f32.gmra.mxu1 %v2352_v21  ;;  %v910_v20 = vmul.f32 %v880_v13, %v5918_v10  ;;  %v860_v21 = vld [vmem:[#allocation2 + $0x40] sm:$0xff] }
  0xd5   : > { %v890_v25 = vmul.f32 %v860_v21, %v5920_v11  ;;  %v2347_v21 = vmul.f32 %v2329_v19, %v5913_v3 }
  0xd6   : > { %1039 = vmatmul.f32.gmra.mxu3 %v938_v53  ;;  %v940_v24 = vadd.f32 %v910_v20, %v5927_v16  ;;  %1027 = vmatmul.f32.gmra.mxu2 %v934_v23  ;;  %v864_v53 = vld [vmem:[#allocation2 + $0x60] sm:$0xff] }
  0xd7   : > { %v920_v29 = vadd.f32 %v890_v25, %v5929_v17  ;;  %v894_v55 = vmul.f32 %v864_v53, %v5913_v3  ;;  %v2365_v23 = vadd.f32 %v2347_v21, %v5925_v15  ;;  %v2330_v25 = vld [vmem:[#allocation2 + $0x170] sm:$0xff] }
  0xd9   : > { %v924_v57 = vadd.f32 %v894_v55, %v5925_v15 }
  0xdc   : > { %970 = vmatmul.f32.gmra.mxu0 %v915_v27  ;;  %2393 = vmatmul.f32.gmra.mxu1 %v2353_v28  ;;  %v875_v27 = vld [vmem:[#allocation2 + $0xb8] sm:$0xff]  ;;  %v881_v28 = vld [vmem:[#allocation2 + $0xe8] sm:$0xff] }
  0xdd   : > { %v905_v31 = vmul.f32 %v875_v27, %v5920_v11  ;;  %v911_v32 = vmul.f32 %v881_v28, %v5920_v11  ;;  %v2348_v27 = vmul.f32 %v2330_v25, %v5918_v10  ;;  %v6129_v28 = vld [vmem:[%s8814_s7] ss:$0 sm:$0xff] }
  0xde   : > { %1042 = vmatmul.f32.gmra.mxu3 %v939_v4  ;;  %v866_v4 = vld [vmem:[#allocation2 + $0x70] sm:$0xff] }
  0xdf   : > { %v935_v35 = vadd.f32 %v905_v31, %v5929_v17  ;;  %v896_v6 = vmul.f32 %v866_v4, %v5920_v11 }
  0xe1   : > { %1030 = vmatmul.f32.gmra.mxu2 %v935_v35  ;;  %v926_v13 = vadd.f32 %v896_v6, %v5929_v17 }
  0xe4   : > { %973 = vmatmul.f32.gmra.mxu0 %v916_v36  ;;  %2396 = vmatmul.f32.gmra.mxu1 %v2354_v37  ;;  %v941_v36 = vadd.f32 %v911_v32, %v5929_v17  ;;  %v891_v37 = vmul.f32 %v861_v33, %v5913_v3  ;;  %v869_v33 = vld [vmem:[#allocation2 + $0x88] sm:$0xff] }
  0xe6   : > { %1045 = vmatmul.f32.gmra.mxu3 %v940_v24  ;;  %v921_v39 = vadd.f32 %v891_v37, %v5925_v15  ;;  %v868_v24 = vld [vmem:[#allocation2 + $0x80] sm:$0xff] }
  0xe7   : > { %v898_v26 = vmul.f32 %v868_v24, %v5918_v10 }
  0xec   : > { %976 = vmatmul.f32.gmra.mxu0 %v917_v46  ;;  %2399 = vmatmul.f32.gmra.mxu1 %v2355_v47  ;;  %v2360_v46 = vadd.f32 %v2342_v44, %v5927_v16  ;;  %v863_v47 = vld [vmem:[#allocation2 + $0x58] sm:$0xff] }
  0xed   : > { %v893_v49 = vmul.f32 %v863_v47, %v5920_v11 }
  0xee   : > { %1048 = vmatmul.f32.gmra.mxu3 %v941_v36 }
  0xef   : > { %v923_v51 = vadd.f32 %v893_v49, %v5929_v17  ;;  %v870_v49 = vld [vmem:[#allocation2 + $0x90] sm:$0xff] }
  0xf0   : > { %v900_v54 = vmul.f32 %v870_v49, %v5913_v3 }
  0xf2   : > { %v930_v61 = vadd.f32 %v900_v54, %v5925_v15 }
  0xf4   : > { %979 = vmatmul.f32.gmra.mxu0 %v918_v59  ;;  %2402 = vmatmul.f32.gmra.mxu1 %v2356_v60  ;;  %v2362_v59 = vadd.f32 %v2344_v56, %v5925_v15  ;;  %v865_v60 = vld [vmem:[#allocation2 + $0x68] sm:$0xff] }
  0xf5   : > { %v895_v62 = vmul.f32 %v865_v60, %v5918_v10 }
  0xf7   : > { %v925_v0 = vadd.f32 %v895_v62, %v5927_v16 }
  0xfc   : > { %982 = vmatmul.f32.gmra.mxu0 %v919_v14  ;;  %2405 = vmatmul.f32.gmra.mxu1 %v2357_v18  ;;  %v2364_v14 = vadd.f32 %v2346_v12, %v5929_v17  ;;  %v867_v18 = vld [vmem:[#allocation2 + $0x78] sm:$0xff] }
  0xfd   : > { %v897_v20 = vmul.f32 %v867_v18, %v5913_v3 }
  0xff   : > { %v927_v22 = vadd.f32 %v897_v20, %v5925_v15 }
 0x104   : > { %985 = vmatmul.f32.gmra.mxu0 %v920_v29  ;;  %2408 = vmatmul.f32.gmra.mxu1 %v2358_v30  ;;  %v928_v29 = vadd.f32 %v898_v26, %v5927_v16  ;;  %v2366_v30 = vadd.f32 %v2348_v27, %v5927_v16 }
 0x10c   : > { %988 = vmatmul.f32.gmra.mxu0 %v921_v39  ;;  %2411 = vmatmul.f32.gmra.mxu1 %v2359_v40  ;;  %v899_v39 = vmul.f32 %v869_v33, %v5920_v11  ;;  %v2349_v40 = vmul.f32 %v2331_v34, %v5920_v11 }
 0x114   : > { %991 = vmatmul.f32.gmra.mxu0 %v922_v45  ;;  %2414 = vmatmul.f32.gmra.mxu1 %v2360_v46  ;;  %v929_v45 = vadd.f32 %v899_v39, %v5929_v17  ;;  %v2367_v46 = vadd.f32 %v2349_v40, %v5929_v17 }
 0x11c   : > { %994 = vmatmul.f32.gmra.mxu0 %v923_v51  ;;  %2417 = vmatmul.f32.gmra.mxu1 %v2361_v52 }
 0x124   : > { %997 = vmatmul.f32.gmra.mxu0 %v924_v57  ;;  %2420 = vmatmul.f32.gmra.mxu1 %v2362_v59 }
 0x12c   : > { %1000 = vmatmul.f32.gmra.mxu0 %v925_v0  ;;  %2423 = vmatmul.f32.gmra.mxu1 %v2363_v1 }
 0x134   : > { %1003 = vmatmul.f32.gmra.mxu0 %v926_v13  ;;  %2426 = vmatmul.f32.gmra.mxu1 %v2364_v14 }
 0x13c   : > { %1006 = vmatmul.f32.gmra.mxu0 %v927_v22  ;;  %2429 = vmatmul.f32.gmra.mxu1 %v2365_v23 }
 0x141   : > { %v962_v31 = vpop.f32.mrf.mxu0  ;;  %v2385_v32 = vpop.f32.mrf.mxu1 }
 0x142   : > { %v6134_v35 = vadd.f32 %v6129_v28, %v962_v31  ;;  %v6137_v36 = vadd.f32 %v6129_v28, %v2385_v32 }
 0x144   : > { %v1052_v37 = vand.u32 2147483647, %v6134_v35  ;;  %v2439_v38 = vand.u32 2147483647, %v6137_v36  ;;  %1009 = vmatmul.f32.gmra.mxu0 %v928_v29  ;;  %2432 = vmatmul.f32.gmra.mxu1 %v2366_v30  ;;  %v6154_v59 = vmul.f32 0.5, %v6134_v35  ;;  %v6159_v63 = vmul.f32 0.5, %v6137_v36 }
 0x146   : > { %v1082_v41 = vmul.f32 0.70710677, %v1052_v37  ;;  %v2457_v42 = vmul.f32 0.70710677, %v2439_v38 }
 0x148   : > { %v1112_v43 = vmul.f32 0.3275911, %v1082_v41  ;;  %v2475_v44 = vmul.f32 0.3275911, %v2457_v42  ;;  %v1892_v51 = vsub.f32 0.0, %v1082_v41  ;;  %v2943_v55 = vsub.f32 0.0, %v2457_v42 }
 0x149   : > { %v965_v47 = vpop.f32.mrf.mxu0  ;;  %v2388_v48 = vpop.f32.mrf.mxu1 }
 0x14a   : > { %v1142_v50 = vadd.f32 1.0, %v1112_v43  ;;  %v2493_v52 = vadd.f32 1.0, %v2475_v44  ;;  %v6146_v53 = vadd.f32 %v6129_v28, %v965_v47  ;;  %v6149_v11 = vadd.f32 %v6129_v28, %v2388_v48 }
 0x14b   : > { %v1922_v17 = vmul.f32 %v1892_v51, %v1082_v41  ;;  %v2961_v62 = vmul.f32 %v2943_v55, %v2457_v42 }
 0x14c   : > { %5248 = vrcp.f32 %v1142_v50  ;;  %1012 = vmatmul.f32.gmra.mxu0 %v929_v45  ;;  %2435 = vmatmul.f32.gmra.mxu1 %v2367_v46  ;;  %v1053_v56 = vand.u32 2147483647, %v6146_v53  ;;  %v1181_v57 = vand.u32 2147483647, %v1142_v50  ;;  %v2440_v60 = vand.u32 2147483647, %v6149_v11 }
 0x14d   : > { %5250 = vrcp.f32 %v2493_v52  ;;  %vm1177_vm5 = vweird.f32 %v1142_v50  ;;  %v1183_v4 = vand.u32 2147483648, %v1142_v50  ;;  %v1952_v5 = vmul.f32 1.442695, %v1922_v17 }
 0x14e   : > { %v1083_v0 = vmul.f32 0.70710677, %v1053_v56  ;;  %vm2516_vm6 = vweird.f32 %v2493_v52  ;;  %v2458_v6 = vmul.f32 0.70710677, %v2440_v60  ;;  %v2520_v14 = vand.u32 2147483647, %v2493_v52 }
 0x14f   : > { %vm6164_vm7 = vcmp.eq.f32.partialorder %v1181_v57, 8.507059e+37  ;;  %v2522_v24 = vand.u32 2147483648, %v2493_v52  ;;  %v2979_v25 = vmul.f32 1.442695, %v2961_v62  ;;  %v1184_v33 = vor.u32 1.1754944e-38, %v1183_v4 }
 0x150   : > { %v1113_v18 = vmul.f32 0.3275911, %v1083_v0  ;;  %v1893_v21 = vsub.f32 0.0, %v1083_v0  ;;  %v2476_v22 = vmul.f32 0.3275911, %v2458_v6  ;;  %v2944_v31 = vsub.f32 0.0, %v2458_v6 }
 0x151   : > { %v968_v3 = vpop.f32.mrf.mxu0  ;;  %v2391_v38 = vpop.f32.mrf.mxu1  ;;  %vm6180_vm11 = vcmp.eq.f32.partialorder %v2520_v14, 8.507059e+37  ;;  %v2523_v42 = vor.u32 1.1754944e-38, %v2522_v24 }
 0x152   : > { %v5249_v1 = vpop.eup %5248  ;;  %v6162_v19 = vadd.f32 %v6129_v28, %v968_v3  ;;  %v6168_v26 = vadd.f32 1.0, %v1113_v18  ;;  %v6170_v29 = vadd.f32 1.0, %v2476_v22  ;;  %v1923_v37 = vmul.f32 %v1893_v21, %v1083_v0 }
 0x153   : > { %v5251_v12 = vpop.eup %5250  ;;  %v1173_v13 = vmul.f32 %v5249_v1, %v1142_v50  ;;  %vm1178_vm8 = vweird.f32 %v5249_v1  ;;  %v2962_v47 = vmul.f32 %v2944_v31, %v2458_v6  ;;  %v6189_v49 = vadd.f32 %v6129_v28, %v2391_v38 }
 0x154   : > { %v2512_v20 = vmul.f32 %v5251_v12, %v2493_v52  ;;  %1015 = vmatmul.f32.gmra.mxu0 %v930_v61  ;;  %vm2517_vm9 = vweird.f32 %v5251_v12  ;;  %5252 = vrcp.f32 %v6168_v26  ;;  %v1054_v32 = vand.u32 2147483647, %v6162_v19  ;;  %vm1179_vm12 = vmor %vm1177_vm5, %vm1178_vm8 }
 0x155   : > { %v1174_v23 = vsub.f32 1.0, %v1173_v13  ;;  %5254 = vrcp.f32 %v6170_v29  ;;  %vm6176_vm10 = vmor %vm2516_vm6, %vm2517_vm9  ;;  %v1196_v44 = vand.u32 2147483647, %v6168_v26  ;;  %v1198_v45 = vand.u32 2147483648, %v6168_v26 }
 0x156   : > { %v2513_v27 = vsub.f32 1.0, %v2512_v20  ;;  %5256 = vpow2.f32 %v1952_v5  ;;  %v1084_v48 = vmul.f32 0.70710677, %v1054_v32  ;;  %vm1192_vm13 = vweird.f32 %v6168_v26 }
 0x157   : > { %v1175_v30 = vmul.f32 %v5249_v1, %v1174_v23  ;;  %5258 = vpow2.f32 %v2979_v25  ;;  %v1954_v52 = vmul.f32 1.442695, %v1923_v37  ;;  %vm2531_vm14 = vweird.f32 %v6170_v29 }
 0x158   : > { %v2514_v34 = vmul.f32 %v5251_v12, %v2513_v27  ;;  %v2535_v56 = vand.u32 2147483647, %v6170_v29  ;;  %v1114_v57 = vmul.f32 0.3275911, %v1084_v48  ;;  %vm6207_vm15 = vcmp.eq.f32.partialorder %v1196_v44, 8.507059e+37 }
 0x159   : > { %v1176_v39 = vadd.f32 %v5249_v1, %v1175_v30  ;;  %v1199_v3 = vor.u32 1.1754944e-38, %v1198_v45  ;;  %v1894_v20 = vsub.f32 0.0, %v1084_v48  ;;  %v2441_v21 = vand.u32 2147483647, %v6189_v49 }
 0x15a   : > { %v2515_v43 = vadd.f32 %v5251_v12, %v2514_v34  ;;  %v5253_v54 = vpop.eup %5252  ;;  %v6215_v13 = vadd.f32 1.0, %v1114_v57  ;;  %vm6223_vm2 = vcmp.eq.f32.partialorder %v2535_v56, 8.507059e+37  ;;  %vm3051_vm9 = vcmp.ge.f32.partialorder %v6137_v36, 0.0 }
 0x15b   : > { %v1180_v46 = vsel %vm1179_vm12, %v5249_v1, %v1176_v39  ;;  %v5255_v60 = vpop.eup %5254  ;;  %v1188_v62 = vmul.f32 %v5253_v54, %v6168_v26  ;;  %v2537_v1 = vand.u32 2147483648, %v6170_v29  ;;  %vm1193_vm1 = vweird.f32 %v5253_v54 }
 0x15c   : > { %v6193_v51 = vsel %vm6164_vm7, %v1184_v33, %v1180_v46  ;;  %v2519_v50 = vsel %vm6176_vm10, %v5251_v12, %v2515_v43  ;;  %v6212_v4 = vpop.eup %5256  ;;  %v2527_v6 = vmul.f32 %v5255_v60, %v6170_v29  ;;  %v2981_v12 = vmul.f32 1.442695, %v2962_v47  ;;  %vm1194_vm4 = vmor %vm1192_vm13, %vm1193_vm1 }
 0x15d   : > { %v1622_v55 = vmul.f32 1.0614054, %v6193_v51  ;;  %v6202_v17 = vsel %vm6180_vm11, %v2523_v42, %v2519_v50  ;;  %v6217_v14 = vpop.eup %5258  ;;  %v1189_v15 = vsub.f32 1.0, %v1188_v62  ;;  %vm2532_vm0 = vweird.f32 %v5255_v60 }
 0x15e   : > { %v2781_v61 = vmul.f32 1.0614054, %v6202_v17  ;;  %v2528_v23 = vsub.f32 1.0, %v2527_v6  ;;  %5260 = vrcp.f32 %v6215_v13  ;;  %v2459_v32 = vmul.f32 0.70710677, %v2441_v21  ;;  %vm6229_vm3 = vmor %vm2531_vm14, %vm2532_vm0 }
 0x15f   : > { %v1652_v5 = vadd.f32 -1.4531521, %v1622_v55  ;;  %v1190_v25 = vmul.f32 %v5253_v54, %v1189_v15  ;;  %5262 = vpow2.f32 %v1954_v52  ;;  %v2538_v38 = vor.u32 1.1754944e-38, %v2537_v1 }
 0x160   : > { %v2799_v18 = vadd.f32 -1.4531521, %v2781_v61  ;;  %v2529_v30 = vmul.f32 %v5255_v60, %v2528_v23  ;;  %5264 = vpow2.f32 %v2981_v12  ;;  %v1924_v41 = vmul.f32 %v1894_v20, %v1084_v48 }
 0x161   : > { %v1682_v22 = vmul.f32 %v1652_v5, %v6193_v51  ;;  %v1191_v34 = vadd.f32 %v5253_v54, %v1190_v25  ;;  %v2477_v42 = vmul.f32 0.3275911, %v2459_v32  ;;  %vm1207_vm5 = vweird.f32 %v6215_v13 }
 0x162   : > { %v2817_v24 = vmul.f32 %v2799_v18, %v6202_v17  ;;  %v2530_v40 = vadd.f32 %v5255_v60, %v2529_v30  ;;  %v1211_v29 = vand.u32 2147483647, %v6215_v13  ;;  %v1213_v62 = vand.u32 2147483648, %v6215_v13 }
 0x163   : > { %v1712_v27 = vadd.f32 1.4214138, %v1682_v22  ;;  %v1195_v44 = vsel %vm1194_vm4, %v5253_v54, %v1191_v34  ;;  %v6245_v50 = vadd.f32 1.0, %v2477_v42  ;;  %v6262_v5 = vmul.f32 1.442695, %v1924_v41 }
 0x164   : > { %v2835_v33 = vadd.f32 1.4214138, %v2817_v24  ;;  %v5261_v45 = vpop.eup %5260  ;;  %v6241_v47 = vsel %vm6207_vm15, %v1199_v3, %v1195_v44  ;;  %v2534_v26 = vsel %vm6229_vm3, %v5255_v60, %v2530_v40  ;;  %vm6264_vm6 = vcmp.eq.f32.partialorder %v1211_v29, 8.507059e+37 }
 0x165   : > { %v1742_v39 = vmul.f32 %v1712_v27, %v6193_v51  ;;  %v6247_v48 = vpop.eup %5262  ;;  %v1623_v54 = vmul.f32 1.0614054, %v6241_v47  ;;  %v6252_v55 = vsel %vm6223_vm2, %v2538_v38, %v2534_v26  ;;  %v1203_v56 = vmul.f32 %v5261_v45, %v6215_v13 }
 0x166   : > { %v2853_v43 = vmul.f32 %v2835_v33, %v6202_v17  ;;  %v2782_v61 = vmul.f32 1.0614054, %v6252_v55  ;;  %5266 = vrcp.f32 %v6245_v50  ;;  %v6259_v60 = vpop.eup %5264  ;;  %v2945_v15 = vsub.f32 0.0, %v2459_v32 }
 0x167   : > { %v1772_v46 = vadd.f32 -0.28449672, %v1742_v39  ;;  %v1653_v3 = vadd.f32 -1.4531521, %v1623_v54  ;;  %v1204_v1 = vsub.f32 1.0, %v1203_v56  ;;  %vm2072_vm7 = vcmp.ge.f32.partialorder %v6134_v35, 0.0 }
 0x168   : > { %v2871_v52 = vadd.f32 -0.28449672, %v2853_v43  ;;  %v2800_v12 = vadd.f32 -1.4531521, %v2782_v61  ;;  %vm1208_vm8 = vweird.f32 %v5261_v45  ;;  %v1214_v25 = vor.u32 1.1754944e-38, %v1213_v62  ;;  %v971_v43 = vpop.f32.mrf.mxu0 }
 0x169   : > { %v1802_v57 = vmul.f32 %v1772_v46, %v6193_v51  ;;  %v1683_v21 = vmul.f32 %v1653_v3, %v6241_v47  ;;  %v1205_v22 = vmul.f32 %v5261_v45, %v1204_v1  ;;  %v2550_v27 = vand.u32 2147483647, %v6245_v50  ;;  %vm1209_vm11 = vmor %vm1207_vm5, %vm1208_vm8 }
 0x16a   : > { %v2889_v0 = vmul.f32 %v2871_v52, %v6202_v17  ;;  %v2818_v24 = vmul.f32 %v2800_v12, %v6252_v55  ;;  %vm2546_vm10 = vweird.f32 %v6245_v50  ;;  %v6280_v39 = vmul.f32 %v2945_v15, %v2459_v32  ;;  %v2394_v12 = vpop.f32.mrf.mxu1 }
 0x16b   : > { %v1832_v6 = vadd.f32 0.2548296, %v1802_v57  ;;  %v1713_v31 = vadd.f32 1.4214138, %v1683_v21  ;;  %v1206_v33 = vadd.f32 %v5261_v45, %v1205_v22  ;;  %vm6290_vm12 = vcmp.eq.f32.partialorder %v2550_v27, 8.507059e+37 }
 0x16c   : > { %v2907_v20 = vadd.f32 0.2548296, %v2889_v0  ;;  %v5267_v34 = vpop.eup %5266  ;;  %v2836_v38 = vadd.f32 1.4214138, %v2818_v24  ;;  %v6296_v54 = vadd.f32 %v6129_v28, %v971_v43  ;;  %5268 = vpow2.f32 %v6262_v5 }
 0x16d   : > { %v1862_v23 = vmul.f32 %v1832_v6, %v6193_v51  ;;  %v2552_v51 = vand.u32 2147483648, %v6245_v50  ;;  %v1743_v41 = vmul.f32 %v1713_v31, %v6241_v47  ;;  %v2542_v42 = vmul.f32 %v5267_v34, %v6245_v50 }
 0x16e   : > { %v2925_v30 = vmul.f32 %v2907_v20, %v6202_v17  ;;  %v1210_v17 = vsel %vm1209_vm11, %v5261_v45, %v1206_v33  ;;  %v2854_v29 = vmul.f32 %v2836_v38, %v6252_v55  ;;  %vm2547_vm13 = vweird.f32 %v5267_v34 }
 0x16f   : > { %v2012_v37 = vmul.f32 %v6212_v4, %v1862_v23  ;;  %v6288_v4 = vsel %vm6264_vm6, %v1214_v25, %v1210_v17  ;;  %v1773_v46 = vadd.f32 -0.28449672, %v1743_v41  ;;  %v2543_v26 = vsub.f32 1.0, %v2542_v42  ;;  %vm6309_vm14 = vmor %vm2546_vm10, %vm2547_vm13 }
 0x170   : > { %v3015_v40 = vmul.f32 %v6217_v14, %v2925_v30  ;;  %v1624_v14 = vmul.f32 1.0614054, %v6288_v4  ;;  %v2872_v52 = vadd.f32 -0.28449672, %v2854_v29  ;;  %v2553_v1 = vor.u32 1.1754944e-38, %v2552_v51 }
 0x171   : > { %v2042_v44 = vsub.f32 1.0, %v2012_v37  ;;  %v1803_v57 = vmul.f32 %v1773_v46, %v6241_v47  ;;  %v2544_v62 = vmul.f32 %v5267_v34, %v2543_v26  ;;  %v1055_v6 = vand.u32 2147483647, %v6296_v54 }
 0x172   : > { %v3033_v32 = vsub.f32 1.0, %v3015_v40  ;;  %v1654_v61 = vadd.f32 -1.4531521, %v1624_v14  ;;  %v2890_v3 = vmul.f32 %v2872_v52, %v6252_v55  ;;  %v6318_v31 = vadd.f32 %v6129_v28, %v2394_v12 }
 0x173   : > { %v2102_v45 = vsub.f32 0.0, %v2042_v44  ;;  %v1833_v20 = vadd.f32 0.2548296, %v1803_v57  ;;  %v2545_v24 = vadd.f32 %v5267_v34, %v2544_v62  ;;  %v6313_v25 = vmul.f32 0.70710677, %v1055_v6  ;;  %v5269_v62 = vpop.eup %5268 }
 0x174   : > { %v3069_v56 = vsub.f32 0.0, %v3033_v32  ;;  %v1684_v21 = vmul.f32 %v1654_v61, %v6288_v4  ;;  %v2908_v23 = vadd.f32 0.2548296, %v2890_v3  ;;  %vm2073_vm15 = vcmp.ge.f32.partialorder %v6146_v53, 0.0 }
 0x175   : > { %v2132_v0 = vsel %vm2072_vm7, %v2042_v44, %v2102_v45  ;;  %v1863_v36 = vmul.f32 %v1833_v20, %v6241_v47  ;;  %v2549_v37 = vsel %vm6309_vm14, %v5267_v34, %v2545_v24  ;;  %v1115_v38 = vmul.f32 0.3275911, %v6313_v25  ;;  %v871_v45 = vld [vmem:[#allocation2 + $0x98] sm:$0xff] }
 0x176   : > { %v2192_v18 = vadd.f32 1.0, %v2132_v0  ;;  %v3087_v15 = vsel %vm3051_vm9, %v3033_v32, %v3069_v56  ;;  %v1714_v30 = vadd.f32 1.4214138, %v1684_v21  ;;  %v2926_v50 = vmul.f32 %v2908_v23, %v6252_v55  ;;  %v974_v21 = vpop.f32.mrf.mxu0 }
 0x177   : > { %v3123_v35 = vadd.f32 1.0, %v3087_v15  ;;  %v2013_v40 = vmul.f32 %v6247_v48, %v1863_v36  ;;  %v6330_v47 = vsel %vm6290_vm12, %v2553_v1, %v2549_v37  ;;  %v6335_v17 = vadd.f32 1.0, %v1115_v38  ;;  %v2397_v38 = vpop.f32.mrf.mxu1 }
 0x178   : > { %v2222_v27 = vmul.f32 %v2192_v18, %v6154_v59  ;;  %v1744_v59 = vmul.f32 %v1714_v30, %v6288_v4  ;;  %v2783_v55 = vmul.f32 1.0614054, %v6330_v47  ;;  %v2983_v32 = vmul.f32 1.442695, %v6280_v39 }
 0x179   : > { %v3141_v33 = vmul.f32 %v3123_v35, %v6159_v63  ;;  %v3016_v63 = vmul.f32 %v6259_v60, %v2926_v50  ;;  %v2043_v34 = vsub.f32 1.0, %v2013_v40  ;;  %5270 = vrcp.f32 %v6335_v17 }
 0x17a   : > { %v2252_v51 = vmul.f32 %v5897_v7, %v2222_v27  ;;  %v1774_v42 = vadd.f32 -0.28449672, %v1744_v59  ;;  %v2801_v43 = vadd.f32 -1.4531521, %v2783_v55  ;;  %v2442_v46 = vand.u32 2147483647, %v6318_v31 }
 0x17b   : > { %v3159_v41 = vmul.f32 %v5897_v7, %v3141_v33  ;;  %v3034_v48 = vsub.f32 1.0, %v3016_v63  ;;  %v2103_v44 = vsub.f32 0.0, %v2043_v34  ;;  %v2163_v5 = vmul.f32 0.5, %v6146_v53 }
 0x17c   : > { %2283 = vst [vmem:[#allocation3 + $0x78] sm:$0xff] %v2252_v51  ;;  %v1804_v29 = vmul.f32 %v1774_v42, %v6288_v4  ;;  %v2819_v13 = vmul.f32 %v2801_v43, %v6330_v47  ;;  %vm3052_vm0 = vcmp.ge.f32.partialorder %v6149_v11, 0.0  ;;  %v3106_v57 = vmul.f32 0.5, %v6149_v11 }
 0x17d   : > { %3178 = vst [vmem:[#allocation3 + $0x168] sm:$0xff] %v3159_v41  ;;  %v3070_v60 = vsub.f32 0.0, %v3034_v48  ;;  %v2133_v14 = vsel %vm2073_vm15, %v2043_v34, %v2103_v44  ;;  %vm2074_vm1 = vcmp.ge.f32.partialorder %v6162_v19, 0.0  ;;  %v2460_v39 = vmul.f32 0.70710677, %v2442_v46 }
 0x17e   : > { %v1834_v26 = vadd.f32 0.2548296, %v1804_v29  ;;  %v2193_v52 = vadd.f32 1.0, %v2133_v14  ;;  %v2837_v61 = vadd.f32 1.4214138, %v2819_v13  ;;  %5272 = vpow2.f32 %v2983_v32 }
 0x17f   : > { %v3088_v56 = vsel %vm3052_vm0, %v3034_v48, %v3070_v60  ;;  %v5271_v1 = vpop.eup %5270  ;;  %v901_v12 = vmul.f32 %v871_v45, %v5918_v10  ;;  %v1895_v11 = vsub.f32 0.0, %v6313_v25  ;;  %v1228_v35 = vand.u32 2147483648, %v6335_v17 }
 0x180   : > { %v3124_v0 = vadd.f32 1.0, %v3088_v56  ;;  %v1864_v3 = vmul.f32 %v1834_v26, %v6288_v4  ;;  %v2223_v6 = vmul.f32 %v2193_v52, %v2163_v5  ;;  %v2855_v53 = vmul.f32 %v2837_v61, %v6330_v47 }
 0x181   : > { %v1218_v20 = vmul.f32 %v5271_v1, %v6335_v17  ;;  %v2478_v23 = vmul.f32 0.3275911, %v2460_v39  ;;  %v931_v30 = vadd.f32 %v901_v12, %v5927_v16  ;;  %v2164_v10 = vmul.f32 0.5, %v6162_v19 }
 0x182   : > { %v3142_v18 = vmul.f32 %v3124_v0, %v3106_v57  ;;  %v2014_v15 = vmul.f32 %v5269_v62, %v1864_v3  ;;  %v2253_v22 = vmul.f32 %v5900_v8, %v2223_v6  ;;  %v2873_v4 = vadd.f32 -0.28449672, %v2855_v53 }
 0x183   : > { %v1219_v36 = vsub.f32 1.0, %v1218_v20  ;;  %v6359_v50 = vadd.f32 1.0, %v2478_v23  ;;  %v6362_v37 = vadd.f32 %v6129_v28, %v974_v21  ;;  %vm1223_vm2 = vweird.f32 %v5271_v1  ;;  %1018 = vmatmul.f32.gmra.mxu0 %v931_v30 }
 0x184   : > { %v3160_v24 = vmul.f32 %v5900_v8, %v3142_v18  ;;  %v2044_v27 = vsub.f32 1.0, %v2014_v15  ;;  %2284 = vst [vmem:[#allocation3 + $0x80] sm:$0xff] %v2253_v22  ;;  %v2891_v33 = vmul.f32 %v2873_v4, %v6330_v47  ;;  %v1226_v59 = vand.u32 2147483647, %v6335_v17  ;;  %v5273_v41 = vpop.eup %5272  ;;  %v977_v4 = vpop.f32.mrf.mxu0 }
 0x185   : > { %v1220_v40 = vmul.f32 %v5271_v1, %v1219_v36  ;;  %vm1222_vm3 = vweird.f32 %v6335_v17  ;;  %v1925_v63 = vmul.f32 %v1895_v11, %v6313_v25  ;;  %5274 = vrcp.f32 %v6359_v50 }
 0x186   : > { %3179 = vst [vmem:[#allocation3 + $0x170] sm:$0xff] %v3160_v24  ;;  %v2104_v51 = vsub.f32 0.0, %v2044_v27  ;;  %v2909_v16 = vadd.f32 0.2548296, %v2891_v33  ;;  %v1229_v42 = vor.u32 1.1754944e-38, %v1228_v35  ;;  %v6371_v48 = vadd.f32 %v6129_v28, %v2397_v38  ;;  %vm1224_vm4 = vmor %vm1222_vm3, %vm1223_vm2 }
 0x187   : > { %v1221_v34 = vadd.f32 %v5271_v1, %v1220_v40  ;;  %v2946_v29 = vsub.f32 0.0, %v2460_v39  ;;  %v1056_v60 = vand.u32 2147483647, %v6362_v37  ;;  %vm3053_vm5 = vcmp.ge.f32.partialorder %v6189_v49, 0.0 }
 0x188   : > { %v2134_v55 = vsel %vm2074_vm1, %v2044_v27, %v2104_v51  ;;  %v2927_v44 = vmul.f32 %v2909_v16, %v6330_v47  ;;  %vm1227_vm6 = vcmp.eq.f32.partialorder %v1226_v59, 8.507059e+37  ;;  %v1958_v14 = vmul.f32 1.442695, %v1925_v63 }
 0x189   : > { %v2194_v43 = vadd.f32 1.0, %v2134_v55  ;;  %v1225_v25 = vsel %vm1224_vm4, %v5271_v1, %v1221_v34  ;;  %v1086_v32 = vmul.f32 0.70710677, %v1056_v60  ;;  %v2443_v5 = vand.u32 2147483647, %v6371_v48  ;;  %v2400_v34 = vpop.f32.mrf.mxu1 }
 0x18a   : > { %v3017_v13 = vmul.f32 %v5273_v41, %v2927_v44  ;;  %v6376_v19 = vsel %vm1227_vm6, %v1229_v42, %v1225_v25  ;;  %v2964_v52 = vmul.f32 %v2946_v29, %v2460_v39  ;;  %vm2561_vm7 = vweird.f32 %v6359_v50 }
 0x18b   : > { %v2224_v17 = vmul.f32 %v2194_v43, %v2164_v10  ;;  %v1625_v46 = vmul.f32 1.0614054, %v6376_v19  ;;  %v5275_v26 = vpop.eup %5274  ;;  %v1116_v56 = vmul.f32 0.3275911, %v1086_v32  ;;  %v2461_v62 = vmul.f32 0.70710677, %v2443_v5 }
 0x18c   : > { %v3035_v45 = vsub.f32 1.0, %v3017_v13  ;;  %v2557_v61 = vmul.f32 %v5275_v26, %v6359_v50  ;;  %v2565_v3 = vand.u32 2147483647, %v6359_v50  ;;  %v2567_v1 = vand.u32 2147483648, %v6359_v50 }
 0x18d   : > { %v2254_v47 = vmul.f32 %v5903_v9, %v2224_v17  ;;  %v1655_v57 = vadd.f32 -1.4531521, %v1625_v46  ;;  %v6385_v6 = vadd.f32 1.0, %v1116_v56  ;;  %vm2562_vm8 = vweird.f32 %v5275_v26 }
 0x18e   : > { %v3071_v0 = vsub.f32 0.0, %v3035_v45  ;;  %v2558_v12 = vsub.f32 1.0, %v2557_v61  ;;  %v2479_v39 = vmul.f32 0.3275911, %v2461_v62  ;;  %v1896_v15 = vsub.f32 0.0, %v1086_v32  ;;  %vm6394_vm9 = vmor %vm2561_vm7, %vm2562_vm8 }
 0x18f   : > { %2285 = vst [vmem:[#allocation3 + $0x88] sm:$0xff] %v2254_v47  ;;  %v1685_v53 = vmul.f32 %v1655_v57, %v6376_v19  ;;  %5276 = vrcp.f32 %v6385_v6  ;;  %v3107_v20 = vmul.f32 0.5, %v6189_v49  ;;  %v2568_v23 = vor.u32 1.1754944e-38, %v2567_v1 }
 0x190   : > { %v3089_v18 = vsel %vm3053_vm5, %v3035_v45, %v3071_v0  ;;  %v2559_v22 = vmul.f32 %v5275_v26, %v2558_v12  ;;  %5278 = vpow2.f32 %v1958_v14  ;;  %v2985_v24 = vmul.f32 1.442695, %v2964_v52 }
 0x191   : > { %v3125_v11 = vadd.f32 1.0, %v3089_v18  ;;  %v1715_v21 = vadd.f32 1.4214138, %v1685_v53  ;;  %v6398_v27 = vadd.f32 1.0, %v2479_v39  ;;  %vm2566_vm10 = vcmp.eq.f32.partialorder %v2565_v3, 8.507059e+37 }
 0x192   : > { %v2560_v10 = vadd.f32 %v5275_v26, %v2559_v22  ;;  %v1241_v49 = vand.u32 2147483647, %v6385_v6  ;;  %v1926_v33 = vmul.f32 %v1896_v15, %v1086_v32  ;;  %v2947_v38 = vsub.f32 0.0, %v2461_v62 }
 0x193   : > { %v3143_v36 = vmul.f32 %v3125_v11, %v3107_v20  ;;  %v1745_v30 = vmul.f32 %v1715_v21, %v6376_v19  ;;  %v6403_v51 = vadd.f32 %v6129_v28, %v977_v4  ;;  %5280 = vrcp.f32 %v6398_v27 }
 0x194   : > { %v2564_v59 = vsel %vm6394_vm9, %v5275_v26, %v2560_v10  ;;  %v6410_v16 = vmul.f32 0.5, %v6296_v54  ;;  %5282 = vpow2.f32 %v2985_v24  ;;  %v1243_v55 = vand.u32 2147483648, %v6385_v6 }
 0x195   : > { %v3161_v50 = vmul.f32 %v5903_v9, %v3143_v36  ;;  %v1775_v40 = vadd.f32 -0.28449672, %v1745_v30  ;;  %v5277_v41 = vpop.eup %5276  ;;  %v6412_v63 = vsel %vm2566_vm10, %v2568_v23, %v2564_v59  ;;  %vm1237_vm11 = vweird.f32 %v6385_v6 }
 0x196   : > { %v2784_v43 = vmul.f32 1.0614054, %v6412_v63  ;;  %v1233_v44 = vmul.f32 %v5277_v41, %v6385_v6  ;;  %v5279_v29 = vpop.eup %5278  ;;  %vm6419_vm12 = vcmp.eq.f32.partialorder %v1241_v49, 8.507059e+37  ;;  %v1960_v25 = vmul.f32 1.442695, %v1926_v33 }
 0x197   : > { %3180 = vst [vmem:[#allocation3 + $0x178] sm:$0xff] %v3161_v50  ;;  %v1805_v42 = vmul.f32 %v1775_v40, %v6376_v19  ;;  %v2965_v17 = vmul.f32 %v2947_v38, %v2461_v62  ;;  %v1057_v13 = vand.u32 2147483647, %v6403_v51  ;;  %v6425_v5 = vadd.f32 %v6129_v28, %v2400_v34 }
 0x198   : > { %v2802_v46 = vadd.f32 -1.4531521, %v2784_v43  ;;  %v1234_v14 = vsub.f32 1.0, %v1233_v44  ;;  %vm2075_vm13 = vcmp.ge.f32.partialorder %v6296_v54, 0.0  ;;  %vm1238_vm14 = vweird.f32 %v5277_v41  ;;  %v2403_v44 = vpop.f32.mrf.mxu1 }
 0x199   : > { %v1835_v32 = vadd.f32 0.2548296, %v1805_v42  ;;  %v1244_v26 = vor.u32 1.1754944e-38, %v1243_v55  ;;  %vm2576_vm15 = vweird.f32 %v6398_v27  ;;  %v6429_v47 = vmul.f32 0.70710677, %v1057_v13  ;;  %v5281_v45 = vpop.eup %5280  ;;  %vm1239_vm0 = vmor %vm1237_vm11, %vm1238_vm14  ;;  %v980_v55 = vpop.f32.mrf.mxu0 }
 0x19a   : > { %v2820_v56 = vmul.f32 %v2802_v46, %v6412_v63  ;;  %v1235_v57 = vmul.f32 %v5277_v41, %v1234_v14  ;;  %v2444_v61 = vand.u32 2147483647, %v6425_v5  ;;  %v5283_v62 = vpop.eup %5282  ;;  %v2572_v0 = vmul.f32 %v5281_v45, %v6398_v27 }
 0x19b   : > { %v1865_v52 = vmul.f32 %v1835_v32, %v6376_v19  ;;  %v2580_v3 = vand.u32 2147483647, %v6398_v27  ;;  %v2582_v1 = vand.u32 2147483648, %v6398_v27  ;;  %v1117_v53 = vmul.f32 0.3275911, %v6429_v47 }
 0x19c   : > { %v2838_v39 = vadd.f32 1.4214138, %v2820_v56  ;;  %v1236_v18 = vadd.f32 %v5277_v41, %v1235_v57  ;;  %v6438_v15 = vmul.f32 0.70710677, %v2444_v61  ;;  %v2573_v19 = vsub.f32 1.0, %v2572_v0 }
 0x19d   : > { %v2015_v12 = vmul.f32 %v5279_v29, %v1865_v52  ;;  %vm2577_vm1 = vweird.f32 %v5281_v45  ;;  %v2987_v20 = vmul.f32 1.442695, %v2965_v17  ;;  %v6443_v11 = vadd.f32 1.0, %v1117_v53 }
 0x19e   : > { %v2856_v22 = vmul.f32 %v2838_v39, %v6412_v63  ;;  %v1240_v4 = vsel %vm1239_vm0, %v5277_v41, %v1236_v18  ;;  %v2480_v35 = vmul.f32 0.3275911, %v6438_v15  ;;  %v6448_v23 = vmul.f32 0.5, %v6318_v31  ;;  %vm6458_vm2 = vmor %vm2576_vm15, %vm2577_vm1 }
 0x19f   : > { %v2045_v21 = vsub.f32 1.0, %v2015_v12  ;;  %v6452_v24 = vsel %vm6419_vm12, %v1244_v26, %v1240_v4  ;;  %v2574_v6 = vmul.f32 %v5281_v45, %v2573_v19  ;;  %5284 = vrcp.f32 %v6443_v11 }
 0x1a0   : > { %v2874_v30 = vadd.f32 -0.28449672, %v2856_v22  ;;  %v1626_v10 = vmul.f32 1.0614054, %v6452_v24  ;;  %v2583_v33 = vor.u32 1.1754944e-38, %v2582_v1  ;;  %5286 = vpow2.f32 %v1960_v25 }
 0x1a1   : > { %v2105_v36 = vsub.f32 0.0, %v2045_v21  ;;  %v2575_v38 = vadd.f32 %v5281_v45, %v2574_v6  ;;  %vm2581_vm3 = vcmp.eq.f32.partialorder %v2580_v3, 8.507059e+37  ;;  %v6462_v50 = vadd.f32 1.0, %v2480_v35 }
 0x1a2   : > { %v2892_v59 = vmul.f32 %v2874_v30, %v6412_v63  ;;  %v1656_v41 = vadd.f32 -1.4531521, %v1626_v10  ;;  %5288 = vpow2.f32 %v2987_v20  ;;  %v1258_v42 = vand.u32 2147483648, %v6443_v11 }
 0x1a3   : > { %v2135_v40 = vsel %vm2075_vm13, %v2045_v21, %v2105_v36  ;;  %v2579_v27 = vsel %vm6458_vm2, %v5281_v45, %v2575_v38  ;;  %v1897_v43 = vsub.f32 0.0, %v6429_v47  ;;  %5290 = vrcp.f32 %v6462_v50 }
 0x1a4   : > { %v2195_v34 = vadd.f32 1.0, %v2135_v40  ;;  %v2910_v29 = vadd.f32 0.2548296, %v2892_v59  ;;  %v1686_v60 = vmul.f32 %v1656_v41, %v6452_v24  ;;  %v6472_v25 = vsel %vm2581_vm3, %v2583_v33, %v2579_v27 }
 0x1a5   : > { %v5285_v54 = vpop.eup %5284  ;;  %vm3054_vm4 = vcmp.ge.f32.partialorder %v6318_v31, 0.0  ;;  %v2785_v13 = vmul.f32 1.0614054, %v6472_v25  ;;  %v1256_v32 = vand.u32 2147483647, %v6443_v11  ;;  %v6480_v46 = vadd.f32 %v6129_v28, %v980_v55 }
 0x1a6   : > { %v2225_v17 = vmul.f32 %v2195_v34, %v6410_v16  ;;  %v2928_v14 = vmul.f32 %v2910_v29, %v6412_v63  ;;  %v1716_v26 = vadd.f32 1.4214138, %v1686_v60  ;;  %v1248_v45 = vmul.f32 %v5285_v54, %v6443_v11  ;;  %v5287_v56 = vpop.eup %5286 }
 0x1a7   : > { %v6485_v52 = vadd.f32 %v6129_v28, %v2403_v44  ;;  %v2803_v57 = vadd.f32 -1.4531521, %v2785_v13  ;;  %vm1252_vm5 = vweird.f32 %v6443_v11  ;;  %v1927_v61 = vmul.f32 %v1897_v43, %v6429_v47 }
 0x1a8   : > { %v2255_v16 = vmul.f32 %v5897_v7, %v2225_v17  ;;  %v6490_v0 = vpop.eup %5288  ;;  %v3018_v3 = vmul.f32 %v5283_v62, %v2928_v14  ;;  %v1746_v1 = vmul.f32 %v1716_v26, %v6452_v24  ;;  %v1249_v63 = vsub.f32 1.0, %v1248_v45 }
 0x1a9   : > { %v1259_v53 = vor.u32 1.1754944e-38, %v1258_v42  ;;  %v2821_v12 = vmul.f32 %v2803_v57, %v6472_v25  ;;  %vm6494_vm6 = vcmp.eq.f32.partialorder %v1256_v32, 8.507059e+37  ;;  %vm2591_vm7 = vweird.f32 %v6462_v50  ;;  %v5291_v18 = vpop.eup %5290 }
 0x1aa   : > { %2286 = vst [vmem:[#allocation3 + $0x90] sm:$0xff] %v2255_v16  ;;  %v1058_v39 = vand.u32 2147483647, %v6480_v46  ;;  %v3036_v47 = vsub.f32 1.0, %v3018_v3  ;;  %v1776_v19 = vadd.f32 -0.28449672, %v1746_v1  ;;  %v1250_v20 = vmul.f32 %v5285_v54, %v1249_v63 }
 0x1ab   : > { %vm1253_vm8 = vweird.f32 %v5285_v54  ;;  %v2839_v62 = vadd.f32 1.4214138, %v2821_v12  ;;  %v2587_v21 = vmul.f32 %v5291_v18, %v6462_v50  ;;  %v2595_v22 = vand.u32 2147483647, %v6462_v50 }
 0x1ac   : > { %v6502_v4 = vmul.f32 0.70710677, %v1058_v39  ;;  %v3072_v35 = vsub.f32 0.0, %v3036_v47  ;;  %v1806_v6 = vmul.f32 %v1776_v19, %v6452_v24  ;;  %v1251_v36 = vadd.f32 %v5285_v54, %v1250_v20  ;;  %vm1254_vm9 = vmor %vm1252_vm5, %vm1253_vm8 }
 0x1ad   : > { %v2597_v30 = vand.u32 2147483648, %v6462_v50  ;;  %v2857_v10 = vmul.f32 %v2839_v62, %v6472_v25  ;;  %v2588_v49 = vsub.f32 1.0, %v2587_v21  ;;  %vm2592_vm10 = vweird.f32 %v5291_v18 }
 0x1ae   : > { %v1118_v33 = vmul.f32 0.3275911, %v6502_v4  ;;  %v3090_v38 = vsel %vm3054_vm4, %v3036_v47, %v3072_v35  ;;  %v1836_v40 = vadd.f32 0.2548296, %v1806_v6  ;;  %v1255_v59 = vsel %vm1254_vm9, %v5285_v54, %v1251_v36  ;;  %vm6521_vm11 = vmor %vm2591_vm7, %vm2592_vm10 }
 0x1af   : > { %v2948_v41 = vsub.f32 0.0, %v6438_v15  ;;  %v3126_v55 = vadd.f32 1.0, %v3090_v38  ;;  %v2875_v34 = vadd.f32 -0.28449672, %v2857_v10  ;;  %v6515_v27 = vsel %vm6494_vm6, %v1259_v53, %v1255_v59 }
 0x1b0   : > { %v2589_v42 = vmul.f32 %v5291_v18, %v2588_v49  ;;  %v1866_v11 = vmul.f32 %v1836_v40, %v6452_v24  ;;  %v1627_v43 = vmul.f32 1.0614054, %v6515_v27  ;;  %v2598_v44 = vor.u32 1.1754944e-38, %v2597_v30 }
 0x1b1   : > { %v6525_v29 = vadd.f32 1.0, %v1118_v33  ;;  %v3144_v60 = vmul.f32 %v3126_v55, %v6448_v23  ;;  %v2893_v54 = vmul.f32 %v2875_v34, %v6472_v25  ;;  %vm2596_vm12 = vcmp.eq.f32.partialorder %v2595_v22, 8.507059e+37 }
 0x1b2   : > { %v2590_v17 = vadd.f32 %v5291_v18, %v2589_v42  ;;  %v2016_v13 = vmul.f32 %v5287_v56, %v1866_v11  ;;  %v1657_v32 = vadd.f32 -1.4531521, %v1627_v43  ;;  %v1962_v24 = vmul.f32 1.442695, %v1927_v61 }
 0x1b3   : > { %5292 = vrcp.f32 %v6525_v29  ;;  %v3162_v50 = vmul.f32 %v5897_v7, %v3144_v60  ;;  %v2911_v14 = vadd.f32 0.2548296, %v2893_v54  ;;  %v2966_v45 = vmul.f32 %v2948_v41, %v6438_v15 }
 0x1b4   : > { %v2594_v26 = vsel %vm6521_vm11, %v5291_v18, %v2590_v17  ;;  %v2046_v16 = vsub.f32 1.0, %v2016_v13  ;;  %vm2076_vm13 = vcmp.ge.f32.partialorder %v6362_v37, 0.0  ;;  %v1687_v23 = vmul.f32 %v1657_v32, %v6515_v27  ;;  %v983_v18 = vpop.f32.mrf.mxu0 }
 0x1b5   : > { %v6536_v57 = vsel %vm2596_vm12, %v2598_v44, %v2594_v26  ;;  %3181 = vst [vmem:[#allocation3 + $0x180] sm:$0xff] %v3162_v50  ;;  %v2166_v56 = vmul.f32 0.5, %v6362_v37  ;;  %v2929_v61 = vmul.f32 %v2911_v14, %v6472_v25  ;;  %vm3055_vm14 = vcmp.ge.f32.partialorder %v6371_v48, 0.0  ;;  %v6558_v37 = vld [vmem:[%s8814_s7] ss:$0 sm:$0xff] }
 0x1b6   : > { %v2786_v3 = vmul.f32 1.0614054, %v6536_v57  ;;  %v2106_v1 = vsub.f32 0.0, %v2046_v16  ;;  %v3109_v63 = vmul.f32 0.5, %v6371_v48  ;;  %v1717_v15 = vadd.f32 1.4214138, %v1687_v23 }
 0x1b7   : > { %5294 = vpow2.f32 %v1962_v24  ;;  %v3019_v53 = vmul.f32 %v6490_v0, %v2929_v61  ;;  %v2989_v28 = vmul.f32 1.442695, %v2966_v45  ;;  %v2445_v39 = vand.u32 2147483647, %v6485_v52 }
 0x1b8   : > { %v2804_v12 = vadd.f32 -1.4531521, %v2786_v3  ;;  %v2136_v25 = vsel %vm2076_vm13, %v2046_v16, %v2106_v1  ;;  %v1747_v19 = vmul.f32 %v1717_v15, %v6515_v27  ;;  %v1271_v20 = vand.u32 2147483647, %v6525_v29  ;;  %v2406_v3 = vpop.f32.mrf.mxu1 }
 0x1b9   : > { %v5293_v47 = vpop.eup %5292  ;;  %v1898_v62 = vsub.f32 0.0, %v6502_v4  ;;  %v2196_v21 = vadd.f32 1.0, %v2136_v25  ;;  %v3037_v22 = vsub.f32 1.0, %v3019_v53  ;;  %v1273_v36 = vand.u32 2147483648, %v6525_v29 }
 0x1ba   : > { %v2822_v35 = vmul.f32 %v2804_v12, %v6536_v57  ;;  %v1263_v0 = vmul.f32 %v5293_v47, %v6525_v29  ;;  %v1777_v6 = vadd.f32 -0.28449672, %v1747_v19  ;;  %v6553_v30 = vmul.f32 0.70710677, %v2445_v39 }
 0x1bb   : > { %v6561_v10 = vadd.f32 %v6558_v37, %v983_v18  ;;  %v2226_v49 = vmul.f32 %v2196_v21, %v2166_v56  ;;  %v3073_v33 = vsub.f32 0.0, %v3037_v22  ;;  %vm1268_vm15 = vweird.f32 %v5293_v47 }
 0x1bc   : > { %v2840_v38 = vadd.f32 1.4214138, %v2822_v35  ;;  %v1264_v40 = vsub.f32 1.0, %v1263_v0  ;;  %v1807_v41 = vmul.f32 %v1777_v6, %v6515_v27  ;;  %v2481_v55 = vmul.f32 0.3275911, %v6553_v30 }
 0x1bd   : > { %v5295_v59 = vpop.eup %5294  ;;  %v1059_v34 = vand.u32 2147483647, %v6561_v10  ;;  %v2256_v42 = vmul.f32 %v5900_v8, %v2226_v49  ;;  %v3091_v11 = vsel %vm3055_vm14, %v3037_v22, %v3073_v33  ;;  %5296 = vpow2.f32 %v2989_v28 }
 0x1be   : > { %v2858_v43 = vmul.f32 %v2840_v38, %v6536_v57  ;;  %v1265_v31 = vmul.f32 %v5293_v47, %v1264_v40  ;;  %v3127_v44 = vadd.f32 1.0, %v3091_v11  ;;  %v1837_v60 = vadd.f32 0.2548296, %v1807_v41 }
 0x1bf   : > { %v2499_v54 = vadd.f32 1.0, %v2481_v55  ;;  %2287 = vst [vmem:[#allocation3 + $0x98] sm:$0xff] %v2256_v42  ;;  %vm1267_vm0 = vweird.f32 %v6525_v29  ;;  %v1274_v32 = vor.u32 1.1754944e-38, %v1273_v36  ;;  %v6573_v48 = vmul.f32 0.70710677, %v1059_v34 }
 0x1c0   : > { %v2876_v17 = vadd.f32 -0.28449672, %v2858_v43  ;;  %v1266_v13 = vadd.f32 %v5293_v47, %v1265_v31  ;;  %v3145_v24 = vmul.f32 %v3127_v44, %v3109_v63  ;;  %v1867_v50 = vmul.f32 %v1837_v60, %v6515_v27  ;;  %vm1269_vm1 = vmor %vm1267_vm0, %vm1268_vm15  ;;  %v1034_v31 = vpop.f32.mrf.mxu3 }
 0x1c1   : > { %5298 = vrcp.f32 %v2499_v54  ;;  %vm1272_vm2 = vcmp.eq.f32.partialorder %v1271_v20, 8.507059e+37  ;;  %v1928_v45 = vmul.f32 %v1898_v62, %v6502_v4  ;;  %vm2077_vm3 = vcmp.ge.f32.partialorder %v6403_v51, 0.0 }
 0x1c2   : > { %v2894_v14 = vmul.f32 %v2876_v17, %v6536_v57  ;;  %v1270_v26 = vsel %vm1269_vm1, %v5293_v47, %v1266_v13  ;;  %v3163_v16 = vmul.f32 %v5900_v8, %v3145_v24  ;;  %v2017_v23 = vmul.f32 %v5295_v59, %v1867_v50 }
 0x1c3   : > { %v6578_v56 = vsel %vm1272_vm2, %v1274_v32, %v1270_v26  ;;  %v2167_v27 = vmul.f32 0.5, %v6403_v51  ;;  %v5297_v1 = vpop.eup %5296  ;;  %vm3056_vm4 = vcmp.ge.f32.partialorder %v6425_v5, 0.0  ;;  %v3110_v4 = vmul.f32 0.5, %v6425_v5  ;;  %v986_v5 = vpop.f32.mrf.mxu0 }
 0x1c4   : > { %v2912_v29 = vadd.f32 0.2548296, %v2894_v14  ;;  %v1628_v61 = vmul.f32 1.0614054, %v6578_v56  ;;  %3182 = vst [vmem:[#allocation3 + $0x188] sm:$0xff] %v3163_v16  ;;  %v2047_v63 = vsub.f32 1.0, %v2017_v23  ;;  %vm2606_vm5 = vweird.f32 %v2499_v54 }
 0x1c5   : > { %v1119_v15 = vmul.f32 0.3275911, %v6573_v48  ;;  %v1964_v28 = vmul.f32 1.442695, %v1928_v45  ;;  %v2949_v39 = vsub.f32 0.0, %v6553_v30  ;;  %v6591_v19 = vadd.f32 %v6558_v37, %v2406_v3 }
 0x1c6   : > { %v2930_v53 = vmul.f32 %v2912_v29, %v6536_v57  ;;  %v1658_v12 = vadd.f32 -1.4531521, %v1628_v61  ;;  %v2107_v47 = vsub.f32 0.0, %v2047_v63  ;;  %v2610_v22 = vand.u32 2147483647, %v2499_v54 }
 0x1c7   : > { %v5299_v18 = vpop.eup %5298  ;;  %v6588_v25 = vadd.f32 1.0, %v1119_v15  ;;  %v2612_v35 = vand.u32 2147483648, %v2499_v54  ;;  %v6598_v33 = vmul.f32 0.5, %v6480_v46  ;;  %v2967_v38 = vmul.f32 %v2949_v39, %v6553_v30 }
 0x1c8   : > { %v3020_v20 = vmul.f32 %v5297_v1, %v2930_v53  ;;  %v1688_v62 = vmul.f32 %v1658_v12, %v6578_v56  ;;  %v2602_v21 = vmul.f32 %v5299_v18, %v2499_v54  ;;  %v2137_v57 = vsel %vm2077_vm3, %v2047_v63, %v2107_v47 }
 0x1c9   : > { %vm2607_vm6 = vweird.f32 %v5299_v18  ;;  %5300 = vrcp.f32 %v6588_v25  ;;  %v2197_v0 = vadd.f32 1.0, %v2137_v57  ;;  %v2446_v40 = vand.u32 2147483647, %v6591_v19 }
 0x1ca   : > { %v3038_v6 = vsub.f32 1.0, %v3020_v20  ;;  %v1718_v36 = vadd.f32 1.4214138, %v1688_v62  ;;  %v2603_v49 = vsub.f32 1.0, %v2602_v21  ;;  %5302 = vpow2.f32 %v1964_v28  ;;  %vm6605_vm7 = vmor %vm2606_vm5, %vm2607_vm6 }
 0x1cb   : > { %v2227_v59 = vmul.f32 %v2197_v0, %v2167_v27  ;;  %vm6609_vm8 = vcmp.eq.f32.partialorder %v2610_v22, 8.507059e+37  ;;  %v2613_v11 = vor.u32 1.1754944e-38, %v2612_v35  ;;  %v6614_v30 = vmul.f32 0.5, %v6485_v52 }
 0x1cc   : > { %v3074_v41 = vsub.f32 0.0, %v3038_v6  ;;  %v1748_v51 = vmul.f32 %v1718_v36, %v6578_v56  ;;  %v2604_v55 = vmul.f32 %v5299_v18, %v2603_v49  ;;  %v2464_v43 = vmul.f32 0.70710677, %v2446_v40 }
 0x1cd   : > { %v2257_v44 = vmul.f32 %v5903_v9, %v2227_v59  ;;  %v2991_v24 = vmul.f32 1.442695, %v2967_v38  ;;  %v1899_v50 = vsub.f32 0.0, %v6573_v48  ;;  %v6625_v23 = vadd.f32 %v6558_v37, %v1034_v31 }
 0x1ce   : > { %v3092_v60 = vsel %vm3056_vm4, %v3038_v6, %v3074_v41  ;;  %v1778_v54 = vadd.f32 -0.28449672, %v1748_v51  ;;  %v2605_v17 = vadd.f32 %v5299_v18, %v2604_v55  ;;  %v2482_v14 = vmul.f32 0.3275911, %v2464_v43 }
 0x1cf   : > { %v5301_v13 = vpop.eup %5300  ;;  %v3128_v32 = vadd.f32 1.0, %v3092_v60  ;;  %2288 = vst [vmem:[#allocation3 + $0xa0] sm:$0xff] %v2257_v44  ;;  %v1286_v3 = vand.u32 2147483647, %v6588_v25  ;;  %v1288_v12 = vand.u32 2147483648, %v6588_v25  ;;  %vm2078_vm9 = vcmp.ge.f32.partialorder %v6480_v46, 0.0 }
 0x1d0   : > { %v1808_v26 = vmul.f32 %v1778_v54, %v6578_v56  ;;  %v2609_v45 = vsel %vm6605_vm7, %v5299_v18, %v2605_v17  ;;  %v1278_v16 = vmul.f32 %v5301_v13, %v6588_v25  ;;  %v5303_v27 = vpop.eup %5302  ;;  %v6632_v1 = vadd.f32 1.0, %v2482_v14 }
 0x1d1   : > { %v3146_v29 = vmul.f32 %v3128_v32, %v3110_v4  ;;  %v6629_v61 = vsel %vm6609_vm8, %v2613_v11, %v2609_v45  ;;  %v2950_v4 = vsub.f32 0.0, %v2464_v43  ;;  %v6640_v39 = vadd.f32 %v6558_v37, %v986_v5 }
 0x1d2   : > { %v1838_v63 = vadd.f32 0.2548296, %v1808_v26  ;;  %v2787_v15 = vmul.f32 1.0614054, %v6629_v61  ;;  %v1279_v53 = vsub.f32 1.0, %v1278_v16  ;;  %5304 = vrcp.f32 %v6632_v1 }
 0x1d3   : > { %v3164_v28 = vmul.f32 %v5903_v9, %v3146_v29  ;;  %vm1283_vm10 = vweird.f32 %v5301_v13  ;;  %5306 = vpow2.f32 %v2991_v24  ;;  %vm1282_vm11 = vweird.f32 %v6588_v25 }
 0x1d4   : > { %v1868_v18 = vmul.f32 %v1838_v63, %v6578_v56  ;;  %v2805_v47 = vadd.f32 -1.4531521, %v2787_v15  ;;  %v1280_v20 = vmul.f32 %v5301_v13, %v1279_v53  ;;  %v1929_v62 = vmul.f32 %v1899_v50, %v6573_v48  ;;  %vm1284_vm13 = vmor %vm1282_vm11, %vm1283_vm10 }
 0x1d5   : > { %3183 = vst [vmem:[#allocation3 + $0x190] sm:$0xff] %v3164_v28  ;;  %v1076_v21 = vand.u32 2147483647, %v6625_v23  ;;  %vm1287_vm12 = vcmp.eq.f32.partialorder %v1286_v3, 8.507059e+37  ;;  %v1289_v0 = vor.u32 1.1754944e-38, %v1288_v12  ;;  %v2968_v6 = vmul.f32 %v2950_v4, %v2464_v43 }
 0x1d6   : > { %v2018_v22 = vmul.f32 %v5303_v27, %v1868_v18  ;;  %v2823_v57 = vmul.f32 %v2805_v47, %v6629_v61  ;;  %v1281_v35 = vadd.f32 %v5301_v13, %v1280_v20  ;;  %v1060_v36 = vand.u32 2147483647, %v6640_v39  ;;  %v2409_v27 = vpop.f32.mrf.mxu1 }
 0x1d7   : > { %v1106_v56 = vmul.f32 0.70710677, %v1076_v21  ;;  %vm2621_vm14 = vweird.f32 %v6632_v1  ;;  %v2625_v59 = vand.u32 2147483647, %v6632_v1  ;;  %v2627_v31 = vand.u32 2147483648, %v6632_v1 }
 0x1d8   : > { %v2048_v49 = vsub.f32 1.0, %v2018_v22  ;;  %v2841_v38 = vadd.f32 1.4214138, %v2823_v57  ;;  %v1285_v40 = vsel %vm1284_vm13, %v5301_v13, %v1281_v35  ;;  %v5305_v25 = vpop.eup %5304  ;;  %v6652_v51 = vmul.f32 0.70710677, %v1060_v36 }
 0x1d9   : > { %v6649_v48 = vsel %vm1287_vm12, %v1289_v0, %v1285_v40  ;;  %v1136_v41 = vmul.f32 0.3275911, %v1106_v56  ;;  %v2617_v11 = vmul.f32 %v5305_v25, %v6632_v1  ;;  %v5307_v43 = vpop.eup %5306  ;;  %vm2622_vm15 = vweird.f32 %v5305_v25 }
 0x1da   : > { %v2108_v55 = vsub.f32 0.0, %v2048_v49  ;;  %v2859_v34 = vmul.f32 %v2841_v38, %v6629_v61  ;;  %v1629_v42 = vmul.f32 1.0614054, %v6649_v48  ;;  %v1120_v60 = vmul.f32 0.3275911, %v6652_v51  ;;  %vm6673_vm0 = vmor %vm2621_vm14, %vm2622_vm15 }
 0x1db   : > { %v6658_v44 = vadd.f32 1.0, %v1136_v41  ;;  %v2618_v32 = vsub.f32 1.0, %v2617_v11  ;;  %v1966_v50 = vmul.f32 1.442695, %v1929_v62  ;;  %v6664_v14 = vmul.f32 0.5, %v6561_v10 }
 0x1dc   : > { %v2138_v54 = vsel %vm2078_vm9, %v2048_v49, %v2108_v55  ;;  %v2877_v17 = vadd.f32 -0.28449672, %v2859_v34  ;;  %v1659_v13 = vadd.f32 -1.4531521, %v1629_v42  ;;  %v2993_v5 = vmul.f32 1.442695, %v2968_v6 }
 0x1dd   : > { %v2198_v24 = vadd.f32 1.0, %v2138_v54  ;;  %5308 = vrcp.f32 %v6658_v44  ;;  %v2619_v16 = vmul.f32 %v5305_v25, %v2618_v32  ;;  %v2628_v3 = vor.u32 1.1754944e-38, %v2627_v31 }
 0x1de   : > { %v2895_v26 = vmul.f32 %v2877_v17, %v6629_v61  ;;  %v1689_v45 = vmul.f32 %v1659_v13, %v6649_v48  ;;  %v1916_v63 = vsub.f32 0.0, %v1106_v56  ;;  %v6677_v15 = vadd.f32 1.0, %v1120_v60 }
 0x1df   : > { %v2228_v46 = vmul.f32 %v2198_v24, %v6598_v33  ;;  %v2620_v28 = vadd.f32 %v5305_v25, %v2619_v16  ;;  %vm2626_vm1 = vcmp.eq.f32.partialorder %v2625_v59, 8.507059e+37  ;;  %vm3057_vm2 = vcmp.ge.f32.partialorder %v6485_v52, 0.0 }
 0x1e0   : > { %v2913_v53 = vadd.f32 0.2548296, %v2895_v26  ;;  %v1719_v12 = vadd.f32 1.4214138, %v1689_v45  ;;  %5310 = vpow2.f32 %v1966_v50  ;;  %v1541_v33 = vand.u32 2147483647, %v6658_v44 }
 0x1e1   : > { %v2258_v4 = vmul.f32 %v5897_v7, %v2228_v46  ;;  %v6683_v1 = vadd.f32 %v6558_v37, %v2409_v27  ;;  %v2624_v20 = vsel %vm6673_vm0, %v5305_v25, %v2620_v28  ;;  %5312 = vrcp.f32 %v6677_v15 }
 0x1e2   : > { %v2931_v18 = vmul.f32 %v2913_v53, %v6629_v61  ;;  %v1749_v47 = vmul.f32 %v1719_v12, %v6649_v48  ;;  %v6690_v21 = vsel %vm2626_vm1, %v2628_v3, %v2624_v20  ;;  %5314 = vpow2.f32 %v2993_v5 }
 0x1e3   : > { %v5309_v62 = vpop.eup %5308  ;;  %2289 = vst [vmem:[#allocation3 + $0xa8] sm:$0xff] %v2258_v4  ;;  %v1543_v22 = vand.u32 2147483648, %v6658_v44  ;;  %v1946_v57 = vmul.f32 %v1916_v63, %v1106_v56  ;;  %v2788_v6 = vmul.f32 1.0614054, %v6690_v21  ;;  %vm1537_vm3 = vweird.f32 %v6658_v44 }
 0x1e4   : > { %v3021_v35 = vmul.f32 %v5307_v43, %v2931_v18  ;;  %v1779_v0 = vadd.f32 -0.28449672, %v1749_v47  ;;  %v1533_v61 = vmul.f32 %v5309_v62, %v6658_v44  ;;  %vm1538_vm4 = vweird.f32 %v5309_v62 }
 0x1e5   : > { %vm6696_vm5 = vcmp.eq.f32.partialorder %v1541_v33, 8.507059e+37  ;;  %v2447_v49 = vand.u32 2147483647, %v6683_v1  ;;  %v2806_v25 = vadd.f32 -1.4531521, %v2788_v6  ;;  %v1544_v41 = vor.u32 1.1754944e-38, %v1543_v22  ;;  %vm6710_vm7 = vmor %vm1537_vm3, %vm1538_vm4 }
 0x1e6   : > { %v3039_v38 = vsub.f32 1.0, %v3021_v35  ;;  %v1809_v40 = vmul.f32 %v1779_v0, %v6649_v48  ;;  %v1534_v56 = vsub.f32 1.0, %v1533_v61  ;;  %v5311_v59 = vpop.eup %5310  ;;  %v2000_v55 = vmul.f32 1.442695, %v1946_v57  ;;  %v1037_v57 = vpop.f32.mrf.mxu3 }
 0x1e7   : > { %v1900_v34 = vsub.f32 0.0, %v6652_v51  ;;  %v6703_v42 = vmul.f32 0.70710677, %v2447_v49  ;;  %v5313_v11 = vpop.eup %5312  ;;  %v2824_v60 = vmul.f32 %v2806_v25, %v6690_v21  ;;  %vm2079_vm6 = vcmp.ge.f32.partialorder %v6561_v10, 0.0 }
 0x1e8   : > { %v3075_v43 = vsub.f32 0.0, %v3039_v38  ;;  %v1839_v31 = vadd.f32 0.2548296, %v1809_v40  ;;  %v1535_v54 = vmul.f32 %v5309_v62, %v1534_v56  ;;  %v5315_v17 = vpop.eup %5314  ;;  %v1293_v32 = vmul.f32 %v5313_v11, %v6677_v15 }
 0x1e9   : > { %v1301_v24 = vand.u32 2147483647, %v6677_v15  ;;  %v1303_v50 = vand.u32 2147483648, %v6677_v15  ;;  %v2483_v26 = vmul.f32 0.3275911, %v6703_v42  ;;  %v1930_v29 = vmul.f32 %v1900_v34, %v6652_v51 }
 0x1ea   : > { %v3093_v45 = vsel %vm3057_vm2, %v3039_v38, %v3075_v43  ;;  %v1869_v16 = vmul.f32 %v1839_v31, %v6649_v48  ;;  %v2842_v5 = vadd.f32 1.4214138, %v2824_v60  ;;  %v1536_v27 = vadd.f32 %v5309_v62, %v1535_v54 }
 0x1eb   : > { %v3129_v44 = vadd.f32 1.0, %v3093_v45  ;;  %v1294_v46 = vsub.f32 1.0, %v1293_v32  ;;  %v6722_v3 = vadd.f32 1.0, %v2483_v26  ;;  %vm1298_vm8 = vweird.f32 %v5313_v11 }
 0x1ec   : > { %v2019_v63 = vmul.f32 %v5311_v59, %v1869_v16  ;;  %v2860_v53 = vmul.f32 %v2842_v5, %v6690_v21  ;;  %v1540_v12 = vsel %vm6710_vm7, %v5309_v62, %v1536_v27  ;;  %vm1297_vm9 = vweird.f32 %v6677_v15 }
 0x1ed   : > { %v3147_v52 = vmul.f32 %v3129_v44, %v6614_v30  ;;  %v6730_v48 = vsel %vm6696_vm5, %v1544_v41, %v1540_v12  ;;  %v1295_v28 = vmul.f32 %v5313_v11, %v1294_v46  ;;  %5316 = vrcp.f32 %v6722_v3  ;;  %vm1299_vm11 = vmor %vm1297_vm9, %vm1298_vm8  ;;  %v989_v41 = vpop.f32.mrf.mxu0 }
 0x1ee   : > { %v2049_v4 = vsub.f32 1.0, %v2019_v63  ;;  %v2878_v51 = vadd.f32 -0.28449672, %v2860_v53  ;;  %v1646_v33 = vmul.f32 1.0614054, %v6730_v48  ;;  %5318 = vpow2.f32 %v2000_v55 }
 0x1ef   : > { %v3165_v18 = vmul.f32 %v5897_v7, %v3147_v52  ;;  %v1296_v47 = vadd.f32 %v5313_v11, %v1295_v28  ;;  %vm1302_vm10 = vcmp.eq.f32.partialorder %v1301_v24, 8.507059e+37  ;;  %v1304_v22 = vor.u32 1.1754944e-38, %v1303_v50 }
 0x1f0   : > { %v2109_v20 = vsub.f32 0.0, %v2049_v4  ;;  %v2896_v30 = vmul.f32 %v2878_v51, %v6690_v21  ;;  %v1676_v62 = vadd.f32 -1.4531521, %v1646_v33  ;;  %v1968_v0 = vmul.f32 1.442695, %v1930_v29 }
 0x1f1   : > { %3184 = vst [vmem:[#allocation3 + $0x198] sm:$0xff] %v3165_v18  ;;  %v1300_v35 = vsel %vm1299_vm11, %v5313_v11, %v1296_v47  ;;  %vm2636_vm12 = vweird.f32 %v6722_v3  ;;  %v2951_v6 = vsub.f32 0.0, %v6703_v42  ;;  %vm3058_vm13 = vcmp.ge.f32.partialorder %v6591_v19, 0.0 }
 0x1f2   : > { %v2139_v61 = vsel %vm2079_vm6, %v2049_v4, %v2109_v20  ;;  %v2914_v15 = vadd.f32 0.2548296, %v2896_v30  ;;  %v1706_v36 = vmul.f32 %v1676_v62, %v6730_v48  ;;  %v6743_v49 = vsel %vm1302_vm10, %v1304_v22, %v1300_v35 }
 0x1f3   : > { %v5317_v38 = vpop.eup %5316  ;;  %v2199_v40 = vadd.f32 1.0, %v2139_v61  ;;  %v1630_v25 = vmul.f32 1.0614054, %v6743_v49  ;;  %v2640_v56 = vand.u32 2147483647, %v6722_v3  ;;  %v6749_v59 = vadd.f32 %v6558_v37, %v1037_v57 }
 0x1f4   : > { %v5319_v55 = vpop.eup %5318  ;;  %v2932_v10 = vmul.f32 %v2914_v15, %v6690_v21  ;;  %v1736_v34 = vadd.f32 1.4214138, %v1706_v36  ;;  %v2632_v11 = vmul.f32 %v5317_v38, %v6722_v3  ;;  %v2642_v43 = vand.u32 2147483648, %v6722_v3 }
 0x1f5   : > { %v2229_v31 = vmul.f32 %v2199_v40, %v6664_v14  ;;  %v1660_v60 = vadd.f32 -1.4531521, %v1630_v25  ;;  %vm2637_vm14 = vweird.f32 %v5317_v38  ;;  %v1077_v54 = vand.u32 2147483647, %v6749_v59  ;;  %v2412_v25 = vpop.f32.mrf.mxu1 }
 0x1f6   : > { %v3022_v13 = vmul.f32 %v5315_v17, %v2932_v10  ;;  %v1766_v32 = vmul.f32 %v1736_v34, %v6730_v48  ;;  %v2633_v24 = vsub.f32 1.0, %v2632_v11  ;;  %v6758_v50 = vadd.f32 %v6558_v37, %v989_v41  ;;  %vm6770_vm0 = vmor %vm2636_vm12, %vm2637_vm14  ;;  %v1022_v34 = vpop.f32.mrf.mxu2 }
 0x1f7   : > { %v2259_v21 = vmul.f32 %v5900_v8, %v2229_v31  ;;  %v1690_v26 = vmul.f32 %v1660_v60, %v6743_v49  ;;  %vm6762_vm15 = vcmp.eq.f32.partialorder %v2640_v56, 8.507059e+37  ;;  %v1107_v14 = vmul.f32 0.70710677, %v1077_v54 }
 0x1f8   : > { %v3040_v16 = vsub.f32 1.0, %v3022_v13  ;;  %v1796_v5 = vadd.f32 -0.28449672, %v1766_v32  ;;  %v2634_v27 = vmul.f32 %v5317_v38, %v2633_v24  ;;  %v1061_v17 = vand.u32 2147483647, %v6758_v50 }
 0x1f9   : > { %2290 = vst [vmem:[#allocation3 + $0xb0] sm:$0xff] %v2259_v21  ;;  %v1720_v44 = vadd.f32 1.4214138, %v1690_v26  ;;  %v2643_v29 = vor.u32 1.1754944e-38, %v2642_v43  ;;  %v1137_v63 = vmul.f32 0.3275911, %v1107_v14  ;;  %v2969_v33 = vmul.f32 %v2951_v6, %v6703_v42 }
 0x1fa   : > { %v3076_v53 = vsub.f32 0.0, %v3040_v16  ;;  %v1826_v12 = vmul.f32 %v1796_v5, %v6730_v48  ;;  %v2635_v52 = vadd.f32 %v5317_v38, %v2634_v27  ;;  %v6775_v28 = vmul.f32 0.70710677, %v1061_v17 }
 0x1fb   : > { %v3112_v4 = vmul.f32 0.5, %v6591_v19  ;;  %v1750_v51 = vmul.f32 %v1720_v44, %v6743_v49  ;;  %v1167_v18 = vadd.f32 1.0, %v1137_v63  ;;  %v1917_v61 = vsub.f32 0.0, %v1107_v14 }
 0x1fc   : > { %v3094_v3 = vsel %vm3058_vm13, %v3040_v16, %v3076_v53  ;;  %v1856_v47 = vadd.f32 0.2548296, %v1826_v12  ;;  %v2639_v20 = vsel %vm6770_vm0, %v5317_v38, %v2635_v52  ;;  %v1121_v30 = vmul.f32 0.3275911, %v6775_v28 }
 0x1fd   : > { %v3130_v62 = vadd.f32 1.0, %v3094_v3  ;;  %v1780_v22 = vadd.f32 -0.28449672, %v1750_v51  ;;  %v6787_v57 = vsel %vm6762_vm15, %v2643_v29, %v2639_v20  ;;  %5320 = vrcp.f32 %v1167_v18 }
 0x1fe   : > { %v1886_v35 = vmul.f32 %v1856_v47, %v6730_v48  ;;  %5322 = vpow2.f32 %v1968_v0  ;;  %v2789_v42 = vmul.f32 1.0614054, %v6787_v57  ;;  %v6793_v36 = vmul.f32 0.5, %v6640_v39 }
 0x1ff   : > { %v3148_v19 = vmul.f32 %v3130_v62, %v3112_v4  ;;  %v1810_v6 = vmul.f32 %v1780_v22, %v6743_v49  ;;  %v6795_v40 = vadd.f32 1.0, %v1121_v30  ;;  %vm2096_vm1 = vcmp.ge.f32.partialorder %v6625_v23, 0.0 }
 0x200   : > { %v2036_v15 = vmul.f32 %v5319_v55, %v1886_v35  ;;  %v2807_v38 = vadd.f32 -1.4531521, %v2789_v42  ;;  %v2995_v0 = vmul.f32 1.442695, %v2969_v33  ;;  %v2186_v10 = vmul.f32 0.5, %v6625_v23 }
 0x201   : > { %v3166_v56 = vmul.f32 %v5900_v8, %v3148_v19  ;;  %v1840_v48 = vadd.f32 0.2548296, %v1810_v6  ;;  %vm2080_vm2 = vcmp.ge.f32.partialorder %v6640_v39, 0.0  ;;  %5324 = vrcp.f32 %v6795_v40 }
 0x202   : > { %v2066_v41 = vsub.f32 1.0, %v2036_v15  ;;  %v2825_v55 = vmul.f32 %v2807_v38, %v6787_v57  ;;  %v1556_v31 = vand.u32 2147483647, %v1167_v18  ;;  %v1947_v60 = vmul.f32 %v1917_v61, %v1107_v14 }
 0x203   : > { %v5321_v11 = vpop.eup %5320  ;;  %3185 = vst [vmem:[#allocation3 + $0x1a0] sm:$0xff] %v3166_v56  ;;  %v1870_v43 = vmul.f32 %v1840_v48, %v6743_v49  ;;  %v6805_v54 = vadd.f32 %v6558_v37, %v2412_v25  ;;  %v1558_v26 = vand.u32 2147483648, %v1167_v18  ;;  %5326 = vpow2.f32 %v2995_v0 }
 0x204   : > { %v5323_v13 = vpop.eup %5322  ;;  %v2126_v32 = vsub.f32 0.0, %v2066_v41  ;;  %v2843_v24 = vadd.f32 1.4214138, %v2825_v55  ;;  %v1548_v21 = vmul.f32 %v5321_v11, %v1167_v18  ;;  %vm1552_vm3 = vweird.f32 %v1167_v18 }
 0x205   : > { %v2020_v45 = vmul.f32 %v5323_v13, %v1870_v43  ;;  %v6808_v16 = vadd.f32 %v6558_v37, %v1022_v34  ;;  %vm1553_vm4 = vweird.f32 %v5321_v11  ;;  %vm6813_vm5 = vcmp.eq.f32.partialorder %v1556_v31, 8.507059e+37 }
 0x206   : > { %v2156_v5 = vsel %vm2096_vm1, %v2066_v41, %v2126_v32  ;;  %v2861_v49 = vmul.f32 %v2843_v24, %v6787_v57  ;;  %v1549_v14 = vsub.f32 1.0, %v1548_v21  ;;  %v2002_v46 = vmul.f32 1.442695, %v1947_v60  ;;  %vm6819_vm6 = vmor %vm1552_vm3, %vm1553_vm4 }
 0x207   : > { %v2216_v27 = vadd.f32 1.0, %v2156_v5  ;;  %v2050_v17 = vsub.f32 1.0, %v2020_v45  ;;  %v5325_v29 = vpop.eup %5324  ;;  %v1559_v12 = vor.u32 1.1754944e-38, %v1558_v26  ;;  %v2448_v52 = vand.u32 2147483647, %v6805_v54 }
 0x208   : > { %v2879_v63 = vadd.f32 -0.28449672, %v2861_v49  ;;  %v1550_v53 = vmul.f32 %v5321_v11, %v1549_v14  ;;  %v1308_v33 = vmul.f32 %v5325_v29, %v6795_v40  ;;  %vm1312_vm7 = vweird.f32 %v6795_v40 }
 0x209   : > { %v2246_v4 = vmul.f32 %v2216_v27, %v2186_v10  ;;  %v2110_v23 = vsub.f32 0.0, %v2050_v17  ;;  %v1316_v20 = vand.u32 2147483647, %v6795_v40  ;;  %v6827_v30 = vmul.f32 0.70710677, %v2448_v52  ;;  %v5327_v62 = vpop.eup %5326  ;;  %v1040_v10 = vpop.f32.mrf.mxu3 }
 0x20a   : > { %v2897_v3 = vmul.f32 %v2879_v63, %v6787_v57  ;;  %v1551_v47 = vadd.f32 %v5321_v11, %v1550_v53  ;;  %v1309_v35 = vsub.f32 1.0, %v1308_v33  ;;  %v1318_v42 = vand.u32 2147483648, %v6795_v40 }
 0x20b   : > { %v2276_v22 = vmul.f32 %v5897_v7, %v2246_v4  ;;  %v2140_v18 = vsel %vm2080_vm2, %v2050_v17, %v2110_v23  ;;  %v1901_v15 = vsub.f32 0.0, %v6775_v28  ;;  %vm1313_vm8 = vweird.f32 %v5325_v29 }
 0x20c   : > { %v2200_v19 = vadd.f32 1.0, %v2140_v18  ;;  %v2915_v6 = vadd.f32 0.2548296, %v2897_v3  ;;  %v1555_v61 = vsel %vm6819_vm6, %v5321_v11, %v1551_v47  ;;  %v1310_v25 = vmul.f32 %v5325_v29, %v1309_v35  ;;  %vm1314_vm10 = vmor %vm1312_vm7, %vm1313_vm8  ;;  %v992_v47 = vpop.f32.mrf.mxu0 }
 0x20d   : > { %2307 = vst [vmem:[#allocation3 + $0x138] sm:$0xff] %v2276_v22  ;;  %v6838_v38 = vsel %vm6813_vm5, %v1559_v12, %v1555_v61  ;;  %v2484_v39 = vmul.f32 0.3275911, %v6827_v30  ;;  %v1072_v41 = vand.u32 2147483647, %v6808_v16  ;;  %vm1317_vm9 = vcmp.eq.f32.partialorder %v1316_v20, 8.507059e+37 }
 0x20e   : > { %v2230_v56 = vmul.f32 %v2200_v19, %v6793_v36  ;;  %v2933_v48 = vmul.f32 %v2915_v6, %v6787_v57  ;;  %v1647_v0 = vmul.f32 1.0614054, %v6838_v38  ;;  %v1311_v55 = vadd.f32 %v5325_v29, %v1310_v25 }
 0x20f   : > { %v1319_v34 = vor.u32 1.1754944e-38, %v1318_v42  ;;  %v2502_v11 = vadd.f32 1.0, %v2484_v39  ;;  %v6848_v13 = vmul.f32 0.70710677, %v1072_v41  ;;  %v1931_v57 = vmul.f32 %v1901_v15, %v6775_v28 }
 0x210   : > { %v2260_v43 = vmul.f32 %v5903_v9, %v2230_v56  ;;  %v3023_v31 = vmul.f32 %v5327_v62, %v2933_v48  ;;  %v1677_v60 = vadd.f32 -1.4531521, %v1647_v0  ;;  %v1315_v36 = vsel %vm1314_vm10, %v5325_v29, %v1311_v55 }
 0x211   : > { %5328 = vrcp.f32 %v2502_v11  ;;  %v6852_v32 = vadd.f32 %v6558_v37, %v1040_v10  ;;  %v6855_v26 = vsel %vm1317_vm9, %v1319_v34, %v1315_v36  ;;  %vm3059_vm11 = vcmp.ge.f32.partialorder %v6683_v1, 0.0 }
 0x212   : > { %2291 = vst [vmem:[#allocation3 + $0xb8] sm:$0xff] %v2260_v43  ;;  %v3041_v24 = vsub.f32 1.0, %v3023_v31  ;;  %v1707_v21 = vmul.f32 %v1677_v60, %v6838_v38  ;;  %v3113_v40 = vmul.f32 0.5, %v6683_v1  ;;  %v1631_v45 = vmul.f32 1.0614054, %v6855_v26 }
 0x213   : > { %v6861_v28 = vmul.f32 0.5, %v6749_v59  ;;  %v1132_v14 = vmul.f32 0.3275911, %v6848_v13  ;;  %5330 = vpow2.f32 %v2002_v46  ;;  %v1970_v17 = vmul.f32 1.442695, %v1931_v57 }
 0x214   : > { %v3077_v5 = vsub.f32 0.0, %v3041_v24  ;;  %v1737_v49 = vadd.f32 1.4214138, %v1707_v21  ;;  %v1661_v27 = vadd.f32 -1.4531521, %v1631_v45  ;;  %v6867_v53 = vmul.f32 0.5, %v6758_v50 }
 0x215   : > { %v1078_v44 = vand.u32 2147483647, %v6852_v32  ;;  %v6869_v1 = vadd.f32 1.0, %v1132_v14  ;;  %v2952_v23 = vsub.f32 0.0, %v6827_v30  ;;  %v2655_v3 = vand.u32 2147483647, %v2502_v11 }
 0x216   : > { %v3095_v29 = vsel %vm3059_vm11, %v3041_v24, %v3077_v5  ;;  %v1767_v63 = vmul.f32 %v1737_v49, %v6838_v38  ;;  %v1691_v4 = vmul.f32 %v1661_v27, %v6855_v26  ;;  %v2657_v22 = vand.u32 2147483648, %v2502_v11  ;;  %v2415_v27 = vpop.f32.mrf.mxu1 }
 0x217   : > { %v5329_v12 = vpop.eup %5328  ;;  %v3131_v52 = vadd.f32 1.0, %v3095_v29  ;;  %v6873_v51 = vmul.f32 0.70710677, %v1078_v44  ;;  %5332 = vrcp.f32 %v6869_v1  ;;  %vm2651_vm12 = vweird.f32 %v2502_v11 }
 0x218   : > { %v1797_v46 = vadd.f32 -0.28449672, %v1767_v63  ;;  %v2647_v33 = vmul.f32 %v5329_v12, %v2502_v11  ;;  %v1721_v62 = vadd.f32 1.4214138, %v1691_v4  ;;  %5334 = vpow2.f32 %v1970_v17 }
 0x219   : > { %v3149_v20 = vmul.f32 %v3131_v52, %v3113_v40  ;;  %vm2652_vm13 = vweird.f32 %v5329_v12  ;;  %v5331_v42 = vpop.eup %5330  ;;  %vm2097_vm14 = vcmp.ge.f32.partialorder %v6749_v59, 0.0  ;;  %v1138_v61 = vmul.f32 0.3275911, %v6873_v51 }
 0x21a   : > { %v1827_v18 = vmul.f32 %v1797_v46, %v6838_v38  ;;  %v2648_v35 = vsub.f32 1.0, %v2647_v33  ;;  %v1751_v6 = vmul.f32 %v1721_v62, %v6855_v26  ;;  %v6882_v15 = vadd.f32 %v6558_v37, %v992_v47  ;;  %vm6889_vm0 = vmor %vm2651_vm12, %vm2652_vm13 }
 0x21b   : > { %v3167_v19 = vmul.f32 %v5903_v9, %v3149_v20  ;;  %vm6884_vm15 = vcmp.eq.f32.partialorder %v2655_v3, 8.507059e+37  ;;  %v2970_v48 = vmul.f32 %v2952_v23, %v6827_v30  ;;  %v2658_v10 = vor.u32 1.1754944e-38, %v2657_v22 }
 0x21c   : > { %v1857_v25 = vadd.f32 0.2548296, %v1827_v18  ;;  %v2649_v39 = vmul.f32 %v5329_v12, %v2648_v35  ;;  %v1781_v0 = vadd.f32 -0.28449672, %v1751_v6  ;;  %v1912_v55 = vsub.f32 0.0, %v6848_v13 }
 0x21d   : > { %3186 = vst [vmem:[#allocation3 + $0x1a8] sm:$0xff] %v3167_v19  ;;  %v6894_v34 = vadd.f32 1.0, %v1138_v61  ;;  %v5333_v11 = vpop.eup %5332  ;;  %v1481_v60 = vand.u32 2147483647, %v6869_v1  ;;  %v1483_v36 = vand.u32 2147483648, %v6869_v1  ;;  %vm1477_vm1 = vweird.f32 %v6869_v1 }
 0x21e   : > { %v1887_v43 = vmul.f32 %v1857_v25, %v6838_v38  ;;  %v2650_v31 = vadd.f32 %v5329_v12, %v2649_v39  ;;  %v5335_v30 = vpop.eup %5334  ;;  %v1811_v57 = vmul.f32 %v1781_v0, %v6855_v26  ;;  %v1473_v24 = vmul.f32 %v5333_v11, %v6869_v1 }
 0x21f   : > { %5336 = vrcp.f32 %v6894_v34  ;;  %v1062_v21 = vand.u32 2147483647, %v6882_v15  ;;  %v2997_v5 = vmul.f32 1.442695, %v2970_v48  ;;  %vm1478_vm2 = vweird.f32 %v5333_v11 }
 0x220   : > { %v2037_v40 = vmul.f32 %v5331_v42, %v1887_v43  ;;  %v2654_v45 = vsel %vm6889_vm0, %v5329_v12, %v2650_v31  ;;  %v1841_v38 = vadd.f32 0.2548296, %v1811_v57  ;;  %v1474_v14 = vsub.f32 1.0, %v1473_v24  ;;  %vm6922_vm5 = vmor %vm1477_vm1, %vm1478_vm2 }
 0x221   : > { %v6908_v49 = vsel %vm6884_vm15, %v2658_v10, %v2654_v45  ;;  %vm2081_vm3 = vcmp.ge.f32.partialorder %v6758_v50, 0.0  ;;  %vm6912_vm4 = vcmp.eq.f32.partialorder %v1481_v60, 8.507059e+37  ;;  %v1942_v63 = vmul.f32 %v1912_v55, %v6848_v13 }
 0x222   : > { %v2067_v17 = vsub.f32 1.0, %v2037_v40  ;;  %v2790_v44 = vmul.f32 1.0614054, %v6908_v49  ;;  %v1871_v12 = vmul.f32 %v1841_v38, %v6855_v26  ;;  %v1475_v52 = vmul.f32 %v5333_v11, %v1474_v14 }
 0x223   : > { %v1484_v4 = vor.u32 1.1754944e-38, %v1483_v36  ;;  %v6918_v23 = vmul.f32 0.70710677, %v1062_v21  ;;  %v1918_v47 = vsub.f32 0.0, %v6873_v51  ;;  %v6928_v20 = vadd.f32 %v6558_v37, %v2415_v27 }
 0x224   : > { %v2127_v46 = vsub.f32 0.0, %v2067_v17  ;;  %v2808_v33 = vadd.f32 -1.4531521, %v2790_v44  ;;  %v2021_v62 = vmul.f32 %v5335_v30, %v1871_v12  ;;  %v1476_v26 = vadd.f32 %v5333_v11, %v1475_v52  ;;  %v1025_v52 = vpop.f32.mrf.mxu2 }
 0x225   : > { %v5337_v13 = vpop.eup %5336  ;;  %vm1567_vm6 = vweird.f32 %v6894_v34  ;;  %v1122_v22 = vmul.f32 0.3275911, %v6918_v23  ;;  %v1573_v42 = vand.u32 2147483648, %v6894_v34  ;;  %v1571_v61 = vand.u32 2147483647, %v6894_v34 }
 0x226   : > { %v2157_v18 = vsel %vm2097_vm14, %v2067_v17, %v2127_v46  ;;  %v2826_v1 = vmul.f32 %v2808_v33, %v6908_v49  ;;  %v1563_v35 = vmul.f32 %v5337_v13, %v6894_v34  ;;  %v2051_v6 = vsub.f32 1.0, %v2021_v62 }
 0x227   : > { %v2217_v19 = vadd.f32 1.0, %v2157_v18  ;;  %v1480_v37 = vsel %vm6922_vm5, %v5333_v11, %v1476_v26  ;;  %vm1568_vm7 = vweird.f32 %v5337_v13  ;;  %v6946_v41 = vadd.f32 1.0, %v1122_v22 }
 0x228   : > { %v2844_v25 = vadd.f32 1.4214138, %v2826_v1  ;;  %v6942_v39 = vsel %vm6912_vm4, %v1484_v4, %v1480_v37  ;;  %v1564_v59 = vsub.f32 1.0, %v1563_v35  ;;  %v2111_v48 = vsub.f32 0.0, %v2051_v6  ;;  %vm6955_vm8 = vmor %vm1567_vm6, %vm1568_vm7  ;;  %v6983_v1 = vld [vmem:[%s8814_s7] ss:$0 sm:$0xff] }
 0x229   : > { %v2247_v56 = vmul.f32 %v2217_v19, %v6861_v28  ;;  %v1642_v0 = vmul.f32 1.0614054, %v6942_v39  ;;  %v1574_v11 = vor.u32 1.1754944e-38, %v1573_v42  ;;  %v1948_v43 = vmul.f32 %v1918_v47, %v6873_v51 }
 0x22a   : > { %v2862_v10 = vmul.f32 %v2844_v25, %v6908_v49  ;;  %v1565_v55 = vmul.f32 %v5337_v13, %v1564_v59  ;;  %v2141_v60 = vsel %vm2081_vm3, %v2051_v6, %v2111_v48  ;;  %5338 = vrcp.f32 %v6946_v41  ;;  %v1043_v59 = vpop.f32.mrf.mxu3 }
 0x22b   : > { %v2277_v31 = vmul.f32 %v5900_v8, %v2247_v56  ;;  %v1672_v36 = vadd.f32 -1.4531521, %v1642_v0  ;;  %v2201_v30 = vadd.f32 1.0, %v2141_v60  ;;  %vm1572_vm9 = vcmp.eq.f32.partialorder %v1571_v61, 8.507059e+37 }
 0x22c   : > { %v2880_v57 = vadd.f32 -0.28449672, %v2862_v10  ;;  %v1566_v24 = vadd.f32 %v5337_v13, %v1565_v55  ;;  %5340 = vpow2.f32 %v2997_v5  ;;  %v1992_v21 = vmul.f32 1.442695, %v1942_v63 }
 0x22d   : > { %2308 = vst [vmem:[#allocation3 + $0x140] sm:$0xff] %v2277_v31  ;;  %v1702_v51 = vmul.f32 %v1672_v36, %v6942_v39  ;;  %v2231_v50 = vmul.f32 %v2201_v30, %v6867_v53  ;;  %v2449_v45 = vand.u32 2147483647, %v6928_v20  ;;  %v2004_v27 = vmul.f32 1.442695, %v1948_v43 }
 0x22e   : > { %v2898_v40 = vmul.f32 %v2880_v57, %v6908_v49  ;;  %v1570_v34 = vsel %vm6955_vm8, %v5337_v13, %v1566_v24  ;;  %vm3060_vm10 = vcmp.ge.f32.partialorder %v6805_v54, 0.0  ;;  %v3114_v53 = vmul.f32 0.5, %v6805_v54 }
 0x22f   : > { %v1732_v38 = vadd.f32 1.4214138, %v1702_v51  ;;  %v6966_v14 = vsel %vm1572_vm9, %v1574_v11, %v1570_v34  ;;  %v2261_v17 = vmul.f32 %v5897_v7, %v2231_v50  ;;  %v6973_v12 = vmul.f32 0.70710677, %v2449_v45 }
 0x230   : > { %v2916_v44 = vadd.f32 0.2548296, %v2898_v40  ;;  %v1648_v5 = vmul.f32 1.0614054, %v6966_v14  ;;  %v5339_v29 = vpop.eup %5338  ;;  %5342 = vpow2.f32 %v1992_v21  ;;  %v1331_v13 = vand.u32 2147483647, %v6946_v41 }
 0x231   : > { %v1762_v63 = vmul.f32 %v1732_v38, %v6942_v39  ;;  %2292 = vst [vmem:[#allocation3 + $0xc0] sm:$0xff] %v2261_v17  ;;  %v1323_v33 = vmul.f32 %v5339_v29, %v6946_v41  ;;  %5344 = vpow2.f32 %v2004_v27  ;;  %v2485_v62 = vmul.f32 0.3275911, %v6973_v12 }
 0x232   : > { %v2934_v4 = vmul.f32 %v2916_v44, %v6908_v49  ;;  %v1678_v46 = vadd.f32 -1.4531521, %v1648_v5  ;;  %v5341_v3 = vpop.eup %5340  ;;  %v6986_v49 = vadd.f32 %v6983_v1, %v1025_v52  ;;  %vm1328_vm11 = vweird.f32 %v5339_v29 }
 0x233   : > { %v1792_v47 = vadd.f32 -0.28449672, %v1762_v63  ;;  %v1324_v18 = vsub.f32 1.0, %v1323_v33  ;;  %v1333_v42 = vand.u32 2147483648, %v6946_v41  ;;  %v6990_v19 = vadd.f32 1.0, %v2485_v62 }
 0x234   : > { %v3024_v26 = vmul.f32 %v5341_v3, %v2934_v4  ;;  %v1708_v22 = vmul.f32 %v1678_v46, %v6966_v14  ;;  %vm2092_vm12 = vcmp.ge.f32.partialorder %v6808_v16, 0.0  ;;  %v1073_v25 = vand.u32 2147483647, %v6986_v49 }
 0x235   : > { %v1822_v35 = vmul.f32 %v1792_v47, %v6942_v39  ;;  %v1325_v61 = vmul.f32 %v5339_v29, %v1324_v18  ;;  %v2182_v48 = vmul.f32 0.5, %v6808_v16  ;;  %v1902_v0 = vsub.f32 0.0, %v6918_v23 }
 0x236   : > { %v3042_v6 = vsub.f32 1.0, %v3024_v26  ;;  %v1738_v37 = vadd.f32 1.4214138, %v1708_v22  ;;  %5346 = vrcp.f32 %v6990_v19  ;;  %v5343_v10 = vpop.eup %5342  ;;  %vm1327_vm13 = vweird.f32 %v6946_v41 }
 0x237   : > { %v1852_v56 = vadd.f32 0.2548296, %v1822_v35  ;;  %v1326_v43 = vadd.f32 %v5339_v29, %v1325_v61  ;;  %v5345_v31 = vpop.eup %5344  ;;  %vm1329_vm14 = vmor %vm1327_vm13, %vm1328_vm11  ;;  %v1334_v36 = vor.u32 1.1754944e-38, %v1333_v42  ;;  %v7001_v28 = vmul.f32 0.70710677, %v1073_v25 }
 0x238   : > { %v3078_v55 = vsub.f32 0.0, %v3042_v6  ;;  %v1768_v11 = vmul.f32 %v1738_v37, %v6966_v14  ;;  %v7004_v30 = vadd.f32 %v6983_v1, %v1043_v59  ;;  %vm1332_vm15 = vcmp.eq.f32.partialorder %v1331_v13, 8.507059e+37 }
 0x239   : > { %v1882_v60 = vmul.f32 %v1852_v56, %v6942_v39  ;;  %v1330_v51 = vsel %vm1329_vm14, %v5339_v29, %v1326_v43  ;;  %v1932_v39 = vmul.f32 %v1902_v0, %v6918_v23  ;;  %vm2666_vm0 = vweird.f32 %v6990_v19  ;;  %v995_v0 = vpop.f32.mrf.mxu0 }
 0x23a   : > { %v3096_v57 = vsel %vm3060_vm10, %v3042_v6, %v3078_v55  ;;  %v1798_v24 = vadd.f32 -0.28449672, %v1768_v11  ;;  %v7008_v41 = vsel %vm1332_vm15, %v1334_v36, %v1330_v51  ;;  %v1133_v45 = vmul.f32 0.3275911, %v7001_v28 }
 0x23b   : > { %v3132_v21 = vadd.f32 1.0, %v3096_v57  ;;  %v2032_v50 = vmul.f32 %v5343_v10, %v1882_v60  ;;  %v1632_v34 = vmul.f32 1.0614054, %v7008_v41  ;;  %v2670_v17 = vand.u32 2147483647, %v6990_v19 }
 0x23c   : > { %v1828_v40 = vmul.f32 %v1798_v24, %v6966_v14  ;;  %v5347_v38 = vpop.eup %5346  ;;  %v1079_v44 = vand.u32 2147483647, %v7004_v30  ;;  %v2672_v23 = vand.u32 2147483648, %v6990_v19  ;;  %v1163_v46 = vadd.f32 1.0, %v1133_v45 }
 0x23d   : > { %v3150_v54 = vmul.f32 %v3132_v21, %v3114_v53  ;;  %v2062_v27 = vsub.f32 1.0, %v2032_v50  ;;  %v1662_v29 = vadd.f32 -1.4531521, %v1632_v34  ;;  %v2662_v63 = vmul.f32 %v5347_v38, %v6990_v19 }
 0x23e   : > { %v1858_v5 = vadd.f32 0.2548296, %v1828_v40  ;;  %vm2667_vm1 = vweird.f32 %v5347_v38  ;;  %v7022_v47 = vmul.f32 0.70710677, %v1079_v44  ;;  %v1972_v62 = vmul.f32 1.442695, %v1932_v39 }
 0x23f   : > { %v3168_v52 = vmul.f32 %v5897_v7, %v3150_v54  ;;  %v2122_v4 = vsub.f32 0.0, %v2062_v27  ;;  %v1692_v53 = vmul.f32 %v1662_v29, %v7008_v41  ;;  %v2663_v3 = vsub.f32 1.0, %v2662_v63  ;;  %vm7031_vm3 = vmor %vm2666_vm0, %vm2667_vm1 }
 0x240   : > { %v1888_v33 = vmul.f32 %v1858_v5, %v6966_v14  ;;  %v2953_v26 = vsub.f32 0.0, %v6973_v12  ;;  %5348 = vrcp.f32 %v1163_v46  ;;  %vm2098_vm2 = vcmp.ge.f32.partialorder %v6852_v32, 0.0 }
 0x241   : > { %3187 = vst [vmem:[#allocation3 + $0x1b0] sm:$0xff] %v3168_v52  ;;  %v2152_v13 = vsel %vm2092_vm12, %v2062_v27, %v2122_v4  ;;  %v1722_v35 = vadd.f32 1.4214138, %v1692_v53  ;;  %v2664_v42 = vmul.f32 %v5347_v38, %v2663_v3  ;;  %vm7035_vm4 = vcmp.eq.f32.partialorder %v2670_v17, 8.507059e+37 }
 0x242   : > { %v2212_v22 = vadd.f32 1.0, %v2152_v13  ;;  %v2038_v18 = vmul.f32 %v5345_v31, %v1888_v33  ;;  %v2673_v6 = vor.u32 1.1754944e-38, %v2672_v23  ;;  %v1139_v37 = vmul.f32 0.3275911, %v7022_v47 }
 0x243   : > { %v1752_v59 = vmul.f32 %v1722_v35, %v7008_v41  ;;  %v2665_v56 = vadd.f32 %v5347_v38, %v2664_v42  ;;  %v2188_v10 = vmul.f32 0.5, %v6852_v32  ;;  %5350 = vpow2.f32 %v1972_v62 }
 0x244   : > { %v2242_v61 = vmul.f32 %v2212_v22, %v2182_v48  ;;  %v2068_v25 = vsub.f32 1.0, %v2038_v18  ;;  %v2971_v19 = vmul.f32 %v2953_v26, %v6973_v12  ;;  %v1169_v55 = vadd.f32 1.0, %v1139_v37 }
 0x245   : > { %v1782_v31 = vadd.f32 -0.28449672, %v1752_v59  ;;  %v2669_v60 = vsel %vm7031_vm3, %v5347_v38, %v2665_v56  ;;  %v1496_v57 = vand.u32 2147483647, %v1163_v46  ;;  %v7051_v24 = vadd.f32 %v6983_v1, %v995_v0 }
 0x246   : > { %v2272_v11 = vmul.f32 %v5903_v9, %v2242_v61  ;;  %v2128_v43 = vsub.f32 0.0, %v2068_v25  ;;  %v5349_v36 = vpop.eup %5348  ;;  %v7048_v48 = vsel %vm7035_vm4, %v2673_v6, %v2669_v60  ;;  %5352 = vrcp.f32 %v1169_v55 }
 0x247   : > { %v1812_v51 = vmul.f32 %v1782_v31, %v7008_v41  ;;  %v2791_v21 = vmul.f32 1.0614054, %v7048_v48  ;;  %v1488_v50 = vmul.f32 %v5349_v36, %v1163_v46  ;;  %vm1492_vm5 = vweird.f32 %v1163_v46 }
 0x248   : > { %2303 = vst [vmem:[#allocation3 + $0x118] sm:$0xff] %v2272_v11  ;;  %v2158_v12 = vsel %vm2098_vm2, %v2068_v25, %v2128_v43  ;;  %v1498_v40 = vand.u32 2147483648, %v1163_v46  ;;  %vm1493_vm6 = vweird.f32 %v5349_v36  ;;  %vm2082_vm7 = vcmp.ge.f32.partialorder %v6882_v15, 0.0 }
 0x249   : > { %v2218_v39 = vadd.f32 1.0, %v2158_v12  ;;  %v1842_v34 = vadd.f32 0.2548296, %v1812_v51  ;;  %v2809_v45 = vadd.f32 -1.4531521, %v2791_v21  ;;  %v1489_v38 = vsub.f32 1.0, %v1488_v50  ;;  %v5351_v54 = vpop.eup %5350  ;;  %vm7068_vm9 = vmor %vm1492_vm5, %vm1493_vm6  ;;  %v1028_v12 = vpop.f32.mrf.mxu2 }
 0x24a   : > { %v2999_v17 = vmul.f32 1.442695, %v2971_v19  ;;  %vm7058_vm8 = vcmp.eq.f32.partialorder %v1496_v57, 8.507059e+37  ;;  %v1913_v44 = vsub.f32 0.0, %v7001_v28  ;;  %v1063_v23 = vand.u32 2147483647, %v7051_v24 }
 0x24b   : > { %v2248_v27 = vmul.f32 %v2218_v39, %v2188_v10  ;;  %v1872_v5 = vmul.f32 %v1842_v34, %v7008_v41  ;;  %v2827_v29 = vmul.f32 %v2809_v45, %v7048_v48  ;;  %v1490_v63 = vmul.f32 %v5349_v36, %v1489_v38  ;;  %v2418_v10 = vpop.f32.mrf.mxu1 }
 0x24c   : > { %v5353_v52 = vpop.eup %5352  ;;  %v1499_v53 = vor.u32 1.1754944e-38, %v1498_v40  ;;  %vm1582_vm10 = vweird.f32 %v1169_v55  ;;  %v1919_v3 = vsub.f32 0.0, %v7022_v47  ;;  %v1586_v22 = vand.u32 2147483647, %v1169_v55 }
 0x24d   : > { %v2278_v4 = vmul.f32 %v5903_v9, %v2248_v27  ;;  %v2022_v13 = vmul.f32 %v5351_v54, %v1872_v5  ;;  %v2845_v62 = vadd.f32 1.4214138, %v2827_v29  ;;  %v1491_v41 = vadd.f32 %v5349_v36, %v1490_v63 }
 0x24e   : > { %v1578_v26 = vmul.f32 %v5353_v52, %v1169_v55  ;;  %vm1583_vm11 = vweird.f32 %v5353_v52  ;;  %v1588_v18 = vand.u32 2147483648, %v1169_v55  ;;  %v1093_v35 = vmul.f32 0.70710677, %v1063_v23 }
 0x24f   : > { %2309 = vst [vmem:[#allocation3 + $0x148] sm:$0xff] %v2278_v4  ;;  %v2052_v42 = vsub.f32 1.0, %v2022_v13  ;;  %v2863_v46 = vmul.f32 %v2845_v62, %v7048_v48  ;;  %v1495_v14 = vsel %vm7068_vm9, %v5349_v36, %v1491_v41  ;;  %5354 = vpow2.f32 %v2999_v17  ;;  %vm7084_vm12 = vmor %vm1582_vm10, %vm1583_vm11 }
 0x250   : > { %v1579_v16 = vsub.f32 1.0, %v1578_v26  ;;  %v7078_v6 = vsel %vm7058_vm8, %v1499_v53, %v1495_v14  ;;  %v1943_v37 = vmul.f32 %v1913_v44, %v7001_v28  ;;  %v1123_v61 = vmul.f32 0.3275911, %v1093_v35 }
 0x251   : > { %v2112_v25 = vsub.f32 0.0, %v2052_v42  ;;  %v2881_v59 = vadd.f32 -0.28449672, %v2863_v46  ;;  %v1643_v56 = vmul.f32 1.0614054, %v7078_v6  ;;  %vm7088_vm13 = vcmp.eq.f32.partialorder %v1586_v22, 8.507059e+37 }
 0x252   : > { %v1580_v0 = vmul.f32 %v5353_v52, %v1579_v16  ;;  %v1589_v43 = vor.u32 1.1754944e-38, %v1588_v18  ;;  %v1949_v28 = vmul.f32 %v1919_v3, %v7022_v47  ;;  %v7093_v31 = vadd.f32 1.0, %v1123_v61 }
 0x253   : > { %v2142_v60 = vsel %vm2082_vm7, %v2052_v42, %v2112_v25  ;;  %v2899_v36 = vmul.f32 %v2881_v59, %v7048_v48  ;;  %v1673_v57 = vadd.f32 -1.4531521, %v1643_v56  ;;  %v2172_v51 = vmul.f32 0.5, %v6882_v15 }
 0x254   : > { %v1581_v55 = vadd.f32 %v5353_v52, %v1580_v0  ;;  %v2202_v21 = vadd.f32 1.0, %v2142_v60  ;;  %5356 = vrcp.f32 %v7093_v31  ;;  %v7101_v50 = vadd.f32 %v6983_v1, %v2418_v10 }
 0x255   : > { %v2917_v39 = vadd.f32 0.2548296, %v2899_v36  ;;  %v1703_v47 = vmul.f32 %v1673_v57, %v7078_v6  ;;  %v1994_v40 = vmul.f32 1.442695, %v1943_v37  ;;  %v5355_v45 = vpop.eup %5354  ;;  %v2006_v15 = vmul.f32 1.442695, %v1949_v28  ;;  %v1046_v28 = vpop.f32.mrf.mxu3 }
 0x256   : > { %v1585_v34 = vsel %vm7084_vm12, %v5353_v52, %v1581_v55  ;;  %v2232_v38 = vmul.f32 %v2202_v21, %v2172_v51  ;;  %v7111_v27 = vadd.f32 %v6983_v1, %v1028_v12  ;;  %vm3061_vm14 = vcmp.ge.f32.partialorder %v6928_v20, 0.0 }
 0x257   : > { %v7108_v54 = vsel %vm7088_vm13, %v1589_v43, %v1585_v34  ;;  %v2935_v17 = vmul.f32 %v2917_v39, %v7048_v48  ;;  %v1733_v32 = vadd.f32 1.4214138, %v1703_v47  ;;  %v3115_v29 = vmul.f32 0.5, %v6928_v20 }
 0x258   : > { %v1649_v44 = vmul.f32 1.0614054, %v7108_v54  ;;  %v2262_v5 = vmul.f32 %v5900_v8, %v2232_v38  ;;  %v1903_v63 = vsub.f32 0.0, %v1093_v35  ;;  %v2450_v23 = vand.u32 2147483647, %v7101_v50 }
 0x259   : > { %v3025_v52 = vmul.f32 %v5355_v45, %v2935_v17  ;;  %v1763_v4 = vmul.f32 %v1733_v32, %v7078_v6  ;;  %5358 = vpow2.f32 %v1994_v40  ;;  %v7121_v48 = vmul.f32 0.5, %v6986_v49 }
 0x25a   : > { %v1679_v33 = vadd.f32 -1.4531521, %v1649_v44  ;;  %v5357_v53 = vpop.eup %5356  ;;  %2293 = vst [vmem:[#allocation3 + $0xc8] sm:$0xff] %v2262_v5  ;;  %5360 = vpow2.f32 %v2006_v15  ;;  %v7123_v3 = vmul.f32 0.70710677, %v2450_v23  ;;  %v1933_v42 = vmul.f32 %v1903_v63, %v1093_v35  ;;  %v998_v15 = vpop.f32.mrf.mxu0 }
 0x25b   : > { %v1074_v13 = vand.u32 2147483647, %v7111_v27  ;;  %v3043_v62 = vsub.f32 1.0, %v3025_v52  ;;  %v1793_v41 = vadd.f32 -0.28449672, %v1763_v4  ;;  %v1338_v22 = vmul.f32 %v5357_v53, %v7093_v31 }
 0x25c   : > { %v1709_v26 = vmul.f32 %v1679_v33, %v7108_v54  ;;  %v1346_v18 = vand.u32 2147483647, %v7093_v31  ;;  %v2486_v46 = vmul.f32 0.3275911, %v7123_v3  ;;  %vm2093_vm15 = vcmp.ge.f32.partialorder %v6986_v49, 0.0 }
 0x25d   : > { %v7130_v14 = vmul.f32 0.70710677, %v1074_v13  ;;  %v3079_v16 = vsub.f32 0.0, %v3043_v62  ;;  %v1823_v37 = vmul.f32 %v1793_v41, %v7078_v6  ;;  %v1339_v25 = vsub.f32 1.0, %v1338_v22 }
 0x25e   : > { %v1739_v61 = vadd.f32 1.4214138, %v1709_v26  ;;  %vm1343_vm0 = vweird.f32 %v5357_v53  ;;  %v1348_v59 = vand.u32 2147483648, %v7093_v31  ;;  %v7135_v56 = vadd.f32 1.0, %v2486_v46 }
 0x25f   : > { %v1134_v0 = vmul.f32 0.3275911, %v7130_v14  ;;  %v5359_v10 = vpop.eup %5358  ;;  %v3097_v35 = vsel %vm3061_vm14, %v3043_v62, %v3079_v16  ;;  %v1853_v19 = vadd.f32 0.2548296, %v1823_v37  ;;  %v1340_v43 = vmul.f32 %v5357_v53, %v1339_v25 }
 0x260   : > { %v1769_v11 = vmul.f32 %v1739_v61, %v7108_v54  ;;  %v5361_v60 = vpop.eup %5360  ;;  %v3133_v36 = vadd.f32 1.0, %v3097_v35  ;;  %v7142_v57 = vmul.f32 0.5, %v7004_v30  ;;  %v1974_v55 = vmul.f32 1.442695, %v1933_v42 }
 0x261   : > { %5362 = vrcp.f32 %v7135_v56  ;;  %v1883_v12 = vmul.f32 %v1853_v19, %v7078_v6  ;;  %v1341_v21 = vadd.f32 %v5357_v53, %v1340_v43  ;;  %vm1342_vm1 = vweird.f32 %v7093_v31 }
 0x262   : > { %v1799_v51 = vadd.f32 -0.28449672, %v1769_v11  ;;  %v3151_v20 = vmul.f32 %v3133_v36, %v3115_v29  ;;  %vm1344_vm2 = vmor %vm1342_vm1, %vm1343_vm0  ;;  %v1349_v39 = vor.u32 1.1754944e-38, %v1348_v59  ;;  %v7148_v47 = vadd.f32 1.0, %v1134_v0 }
 0x263   : > { %v7151_v40 = vadd.f32 %v6983_v1, %v1046_v28  ;;  %v2033_v34 = vmul.f32 %v5359_v10, %v1883_v12  ;;  %v1345_v38 = vsel %vm1344_vm2, %v5357_v53, %v1341_v21  ;;  %vm1347_vm3 = vcmp.eq.f32.partialorder %v1346_v18, 8.507059e+37 }
 0x264   : > { %v1829_v45 = vmul.f32 %v1799_v51, %v7108_v54  ;;  %v3169_v6 = vmul.f32 %v5900_v8, %v3151_v20  ;;  %vm2099_vm4 = vcmp.ge.f32.partialorder %v7004_v30, 0.0  ;;  %v7156_v31 = vsel %vm1347_vm3, %v1349_v39, %v1345_v38 }
 0x265   : > { %5364 = vpow2.f32 %v1974_v55  ;;  %v2954_v17 = vsub.f32 0.0, %v7123_v3  ;;  %v2063_v32 = vsub.f32 1.0, %v2033_v34  ;;  %v1633_v5 = vmul.f32 1.0614054, %v7156_v31 }
 0x266   : > { %v1859_v44 = vadd.f32 0.2548296, %v1829_v45  ;;  %5366 = vrcp.f32 %v7148_v47  ;;  %3188 = vst [vmem:[#allocation3 + $0x1b8] sm:$0xff] %v3169_v6  ;;  %v2685_v63 = vand.u32 2147483647, %v7135_v56  ;;  %v2687_v23 = vand.u32 2147483648, %v7135_v56  ;;  %v2421_v6 = vpop.f32.mrf.mxu1 }
 0x267   : > { %v5363_v29 = vpop.eup %5362  ;;  %v1080_v52 = vand.u32 2147483647, %v7151_v40  ;;  %v7165_v4 = vadd.f32 %v6983_v1, %v998_v15  ;;  %v2123_v33 = vsub.f32 0.0, %v2063_v32  ;;  %v1663_v13 = vadd.f32 -1.4531521, %v1633_v5 }
 0x268   : > { %v1889_v53 = vmul.f32 %v1859_v44, %v7108_v54  ;;  %v2677_v62 = vmul.f32 %v5363_v29, %v7135_v56  ;;  %vm2681_vm5 = vweird.f32 %v7135_v56  ;;  %vm2682_vm6 = vweird.f32 %v5363_v29 }
 0x269   : > { %v2972_v41 = vmul.f32 %v2954_v17, %v7123_v3  ;;  %v1914_v26 = vsub.f32 0.0, %v7130_v14  ;;  %v2153_v22 = vsel %vm2093_vm15, %v2063_v32, %v2123_v33  ;;  %v1693_v42 = vmul.f32 %v1663_v13, %v7156_v31  ;;  %vm7186_vm9 = vmor %vm2681_vm5, %vm2682_vm6 }
 0x26a   : > { %v2039_v18 = vmul.f32 %v5361_v60, %v1889_v53  ;;  %v2678_v46 = vsub.f32 1.0, %v2677_v62  ;;  %v2213_v37 = vadd.f32 1.0, %v2153_v22  ;;  %vm7175_vm7 = vcmp.eq.f32.partialorder %v2685_v63, 8.507059e+37 }
 0x26b   : > { %v5365_v16 = vpop.eup %5364  ;;  %v2688_v61 = vor.u32 1.1754944e-38, %v2687_v23  ;;  %v7179_v25 = vmul.f32 0.70710677, %v1080_v52  ;;  %v1723_v0 = vadd.f32 1.4214138, %v1693_v42  ;;  %vm1507_vm8 = vweird.f32 %v7148_v47 }
 0x26c   : > { %v5367_v59 = vpop.eup %5366  ;;  %v2069_v3 = vsub.f32 1.0, %v2039_v18  ;;  %v2679_v10 = vmul.f32 %v5363_v29, %v2678_v46  ;;  %v2243_v49 = vmul.f32 %v2213_v37, %v7121_v48  ;;  %v1511_v11 = vand.u32 2147483647, %v7148_v47 }
 0x26d   : > { %v1503_v19 = vmul.f32 %v5367_v59, %v7148_v47  ;;  %v1140_v43 = vmul.f32 0.3275911, %v7179_v25  ;;  %v1753_v60 = vmul.f32 %v1723_v0, %v7156_v31  ;;  %v1513_v55 = vand.u32 2147483648, %v7148_v47 }
 0x26e   : > { %v2129_v28 = vsub.f32 0.0, %v2069_v3  ;;  %v2680_v36 = vadd.f32 %v5363_v29, %v2679_v10  ;;  %v2273_v48 = vmul.f32 %v5897_v7, %v2243_v49  ;;  %vm1508_vm10 = vweird.f32 %v5367_v59 }
 0x26f   : > { %v1504_v12 = vsub.f32 1.0, %v1503_v19  ;;  %v7196_v56 = vadd.f32 1.0, %v1140_v43  ;;  %v1783_v21 = vadd.f32 -0.28449672, %v1753_v60  ;;  %v3001_v39 = vmul.f32 1.442695, %v2972_v41  ;;  %vm7211_vm11 = vmor %vm1507_vm8, %vm1508_vm10 }
 0x270   : > { %v2159_v51 = vsel %vm2099_vm4, %v2069_v3, %v2129_v28  ;;  %v2684_v20 = vsel %vm7186_vm9, %v5363_v29, %v2680_v36  ;;  %2304 = vst [vmem:[#allocation3 + $0x120] sm:$0xff] %v2273_v48  ;;  %v1944_v15 = vmul.f32 %v1914_v26, %v7130_v14  ;;  %v1514_v44 = vor.u32 1.1754944e-38, %v1513_v55 }
 0x271   : > { %v2219_v34 = vadd.f32 1.0, %v2159_v51  ;;  %v7204_v45 = vsel %vm7175_vm7, %v2688_v61, %v2684_v20  ;;  %v1505_v38 = vmul.f32 %v5367_v59, %v1504_v12  ;;  %v1813_v17 = vmul.f32 %v1783_v21, %v7156_v31 }
 0x272   : > { %v2792_v30 = vmul.f32 1.0614054, %v7204_v45  ;;  %5368 = vrcp.f32 %v7196_v56  ;;  %vm1512_vm12 = vcmp.eq.f32.partialorder %v1511_v11, 8.507059e+37  ;;  %v1064_v14 = vand.u32 2147483647, %v7165_v4 }
 0x273   : > { %v2249_v5 = vmul.f32 %v2219_v34, %v7142_v57  ;;  %v1506_v29 = vadd.f32 %v5367_v59, %v1505_v38  ;;  %v1843_v63 = vadd.f32 0.2548296, %v1813_v17  ;;  %v7219_v52 = vadd.f32 %v6983_v1, %v2421_v6 }
 0x274   : > { %v2810_v23 = vadd.f32 -1.4531521, %v2792_v30  ;;  %vm2083_vm13 = vcmp.ge.f32.partialorder %v7051_v24, 0.0  ;;  %v2173_v33 = vmul.f32 0.5, %v7051_v24  ;;  %v1996_v41 = vmul.f32 1.442695, %v1944_v15 }
 0x275   : > { %v2279_v47 = vmul.f32 %v5897_v7, %v2249_v5  ;;  %v1510_v53 = vsel %vm7211_vm11, %v5367_v59, %v1506_v29  ;;  %v1873_v57 = vmul.f32 %v1843_v63, %v7156_v31  ;;  %5370 = vpow2.f32 %v3001_v39  ;;  %v1031_v29 = vpop.f32.mrf.mxu2 }
 0x276   : > { %v2828_v13 = vmul.f32 %v2810_v23, %v7204_v45  ;;  %v7228_v62 = vsel %vm1512_vm12, %v1514_v44, %v1510_v53  ;;  %v1920_v22 = vsub.f32 0.0, %v7179_v25  ;;  %v1094_v18 = vmul.f32 0.70710677, %v1064_v14 }
 0x277   : > { %2310 = vst [vmem:[#allocation3 + $0x150] sm:$0xff] %v2279_v47  ;;  %v1644_v26 = vmul.f32 1.0614054, %v7228_v62  ;;  %v2023_v46 = vmul.f32 %v5365_v16, %v1873_v57  ;;  %vm1597_vm14 = vweird.f32 %v7196_v56  ;;  %v2451_v54 = vand.u32 2147483647, %v7219_v52 }
 0x278   : > { %v5369_v42 = vpop.eup %5368  ;;  %v2846_v37 = vadd.f32 1.4214138, %v2828_v13  ;;  %v1601_v59 = vand.u32 2147483647, %v7196_v56  ;;  %v1124_v3 = vmul.f32 0.3275911, %v1094_v18  ;;  %v1950_v60 = vmul.f32 %v1920_v22, %v7179_v25 }
 0x279   : > { %v1674_v31 = vadd.f32 -1.4531521, %v1644_v26  ;;  %v1593_v61 = vmul.f32 %v5369_v42, %v7196_v56  ;;  %v2053_v0 = vsub.f32 1.0, %v2023_v46  ;;  %v1603_v49 = vand.u32 2147483648, %v7196_v56 }
 0x27a   : > { %v2864_v10 = vmul.f32 %v2846_v37, %v7204_v45  ;;  %v7238_v35 = vmul.f32 0.70710677, %v2451_v54  ;;  %vm1598_vm15 = vweird.f32 %v5369_v42  ;;  %v7241_v11 = vadd.f32 1.0, %v1124_v3 }
 0x27b   : > { %v1704_v16 = vmul.f32 %v1674_v31, %v7228_v62  ;;  %v1594_v19 = vsub.f32 1.0, %v1593_v61  ;;  %v2113_v43 = vsub.f32 0.0, %v2053_v0  ;;  %v5371_v55 = vpop.eup %5370  ;;  %v1904_v51 = vsub.f32 0.0, %v1094_v18  ;;  %vm7254_vm0 = vmor %vm1597_vm14, %vm1598_vm15 }
 0x27c   : > { %v2882_v28 = vadd.f32 -0.28449672, %v2864_v10  ;;  %v2487_v36 = vmul.f32 0.3275911, %v7238_v35  ;;  %5372 = vrcp.f32 %v7241_v11  ;;  %v7250_v39 = vmul.f32 0.5, %v7101_v50 }
 0x27d   : > { %v1734_v48 = vadd.f32 1.4214138, %v1704_v16  ;;  %v1595_v12 = vmul.f32 %v5369_v42, %v1594_v19  ;;  %v2143_v21 = vsel %vm2083_vm13, %v2053_v0, %v2113_v43  ;;  %v1604_v34 = vor.u32 1.1754944e-38, %v1603_v49 }
 0x27e   : > { %v2900_v20 = vmul.f32 %v2882_v28, %v7204_v45  ;;  %v2203_v38 = vadd.f32 1.0, %v2143_v21  ;;  %vm1602_vm1 = vcmp.eq.f32.partialorder %v1601_v59, 8.507059e+37  ;;  %5374 = vpow2.f32 %v1996_v41 }
 0x27f   : > { %v1764_v15 = vmul.f32 %v1734_v48, %v7228_v62  ;;  %v1596_v6 = vadd.f32 %v5369_v42, %v1595_v12  ;;  %v2008_v24 = vmul.f32 1.442695, %v1950_v60  ;;  %v7259_v30 = vadd.f32 1.0, %v2487_v36 }
 0x280   : > { %v2918_v17 = vadd.f32 0.2548296, %v2900_v20  ;;  %v2233_v32 = vmul.f32 %v2203_v38, %v2173_v33  ;;  %vm3062_vm2 = vcmp.ge.f32.partialorder %v7101_v50, 0.0  ;;  %v1934_v5 = vmul.f32 %v1904_v51, %v1094_v18 }
 0x281   : > { %v1794_v44 = vadd.f32 -0.28449672, %v1764_v15  ;;  %v1600_v56 = vsel %vm7254_vm0, %v5369_v42, %v1596_v6  ;;  %v1361_v23 = vand.u32 2147483647, %v7241_v11  ;;  %5376 = vrcp.f32 %v7259_v30 }
 0x282   : > { %v2936_v14 = vmul.f32 %v2918_v17, %v7204_v45  ;;  %v7265_v63 = vsel %vm1602_vm1, %v1604_v34, %v1600_v56  ;;  %v5373_v47 = vpop.eup %5372  ;;  %v2263_v53 = vmul.f32 %v5903_v9, %v2233_v32  ;;  %v1363_v13 = vand.u32 2147483648, %v7241_v11 }
 0x283   : > { %v1824_v33 = vmul.f32 %v1794_v44, %v7228_v62  ;;  %v1650_v57 = vmul.f32 1.0614054, %v7265_v63  ;;  %vm2094_vm3 = vcmp.ge.f32.partialorder %v7111_v27, 0.0  ;;  %v2184_v45 = vmul.f32 0.5, %v7111_v27 }
 0x284   : > { %v3026_v41 = vmul.f32 %v5371_v55, %v2936_v14  ;;  %v1353_v26 = vmul.f32 %v5373_v47, %v7241_v11  ;;  %v7277_v22 = vadd.f32 %v6983_v1, %v1031_v29  ;;  %2294 = vst [vmem:[#allocation3 + $0xd0] sm:$0xff] %v2263_v53  ;;  %5378 = vpow2.f32 %v2008_v24  ;;  %v5375_v46 = vpop.eup %5374  ;;  %v1049_v55 = vpop.f32.mrf.mxu3 }
 0x285   : > { %v1854_v18 = vadd.f32 0.2548296, %v1824_v33  ;;  %v1680_v42 = vadd.f32 -1.4531521, %v1650_v57  ;;  %vm1357_vm4 = vweird.f32 %v7241_v11  ;;  %vm7280_vm5 = vcmp.eq.f32.partialorder %v1361_v23, 8.507059e+37 }
 0x286   : > { %v3044_v37 = vsub.f32 1.0, %v3026_v41  ;;  %v1354_v54 = vsub.f32 1.0, %v1353_v26  ;;  %v1976_v61 = vmul.f32 1.442695, %v1934_v5  ;;  %v1364_v0 = vor.u32 1.1754944e-38, %v1363_v13 }
 0x287   : > { %v1884_v59 = vmul.f32 %v1854_v18, %v7228_v62  ;;  %v1710_v3 = vmul.f32 %v1680_v42, %v7265_v63  ;;  %vm2696_vm6 = vweird.f32 %v7259_v30  ;;  %v5377_v10 = vpop.eup %5376  ;;  %vm1358_vm7 = vweird.f32 %v5373_v47 }
 0x288   : > { %v3080_v49 = vsub.f32 0.0, %v3044_v37  ;;  %v1355_v16 = vmul.f32 %v5373_v47, %v1354_v54  ;;  %v1075_v19 = vand.u32 2147483647, %v7277_v22  ;;  %v2692_v60 = vmul.f32 %v5377_v10, %v7259_v30  ;;  %vm1359_vm8 = vmor %vm1357_vm4, %vm1358_vm7 }
 0x289   : > { %v2034_v43 = vmul.f32 %v5375_v46, %v1884_v59  ;;  %v1740_v28 = vadd.f32 1.4214138, %v1710_v3  ;;  %v2700_v36 = vand.u32 2147483647, %v7259_v30  ;;  %v2702_v12 = vand.u32 2147483648, %v7259_v30  ;;  %v1001_v46 = vpop.f32.mrf.mxu0 }
 0x28a   : > { %v3098_v62 = vsel %vm3062_vm2, %v3044_v37, %v3080_v49  ;;  %v1356_v48 = vadd.f32 %v5373_v47, %v1355_v16  ;;  %v7293_v51 = vmul.f32 0.70710677, %v1075_v19  ;;  %v5379_v21 = vpop.eup %5378  ;;  %v2693_v38 = vsub.f32 1.0, %v2692_v60 }
 0x28b   : > { %v3134_v20 = vadd.f32 1.0, %v3098_v62  ;;  %v2064_v25 = vsub.f32 1.0, %v2034_v43  ;;  %v1770_v34 = vmul.f32 %v1740_v28, %v7265_v63  ;;  %vm2697_vm9 = vweird.f32 %v5377_v10 }
 0x28c   : > { %v1360_v15 = vsel %vm1359_vm8, %v5373_v47, %v1356_v48  ;;  %v1135_v50 = vmul.f32 0.3275911, %v7293_v51  ;;  %v7301_v6 = vadd.f32 %v6983_v1, %v1049_v55  ;;  %v2694_v11 = vmul.f32 %v5377_v10, %v2693_v38  ;;  %vm7319_vm11 = vmor %vm2696_vm6, %vm2697_vm9 }
 0x28d   : > { %v3152_v17 = vmul.f32 %v3134_v20, %v7250_v39  ;;  %v2124_v24 = vsub.f32 0.0, %v2064_v25  ;;  %v1800_v32 = vadd.f32 -0.28449672, %v1770_v34  ;;  %v7306_v44 = vsel %vm7280_vm5, %v1364_v0, %v1360_v15 }
 0x28e   : > { %v1634_v56 = vmul.f32 1.0614054, %v7306_v44  ;;  %vm7309_vm10 = vcmp.eq.f32.partialorder %v2700_v36, 8.507059e+37  ;;  %v1165_v29 = vadd.f32 1.0, %v1135_v50  ;;  %v2703_v53 = vor.u32 1.1754944e-38, %v2702_v12 }
 0x28f   : > { %v3170_v14 = vmul.f32 %v5903_v9, %v3152_v17  ;;  %v2154_v23 = vsel %vm2094_vm3, %v2064_v25, %v2124_v24  ;;  %v1830_v39 = vmul.f32 %v1800_v32, %v7265_v63  ;;  %v2695_v13 = vadd.f32 %v5377_v10, %v2694_v11 }
 0x290   : > { %v2214_v33 = vadd.f32 1.0, %v2154_v23  ;;  %v1664_v57 = vadd.f32 -1.4531521, %v1634_v56  ;;  %5380 = vrcp.f32 %v1165_v29  ;;  %v2955_v26 = vsub.f32 0.0, %v7238_v35 }
 0x291   : > { %3189 = vst [vmem:[#allocation3 + $0x1c0] sm:$0xff] %v3170_v14  ;;  %v1860_v41 = vadd.f32 0.2548296, %v1830_v39  ;;  %v1081_v27 = vand.u32 2147483647, %v7301_v6  ;;  %v2699_v30 = vsel %vm7319_vm11, %v5377_v10, %v2695_v13  ;;  %vm2100_vm12 = vcmp.ge.f32.partialorder %v7151_v40, 0.0 }
 0x292   : > { %v2244_v18 = vmul.f32 %v2214_v33, %v2184_v45  ;;  %v1694_v42 = vmul.f32 %v1664_v57, %v7306_v44  ;;  %v7332_v54 = vsel %vm7309_vm10, %v2703_v53, %v2699_v30  ;;  %5382 = vpow2.f32 %v1976_v61 }
 0x293   : > { %v1890_v37 = vmul.f32 %v1860_v41, %v7265_v63  ;;  %v2793_v45 = vmul.f32 1.0614054, %v7332_v54  ;;  %v2973_v0 = vmul.f32 %v2955_v26, %v7238_v35  ;;  %v1111_v49 = vmul.f32 0.70710677, %v1081_v27 }
 0x294   : > { %v2274_v31 = vmul.f32 %v5900_v8, %v2244_v18  ;;  %v1724_v59 = vadd.f32 1.4214138, %v1694_v42  ;;  %v7338_v10 = vadd.f32 %v6983_v1, %v1001_v46  ;;  %vm1522_vm13 = vweird.f32 %v1165_v29 }
 0x295   : > { %v2040_v3 = vmul.f32 %v5379_v21, %v1890_v37  ;;  %v2811_v19 = vadd.f32 -1.4531521, %v2793_v45  ;;  %v1915_v43 = vsub.f32 0.0, %v7293_v51  ;;  %v1526_v61 = vand.u32 2147483647, %v1165_v29 }
 0x296   : > { %v5381_v63 = vpop.eup %5380  ;;  %2305 = vst [vmem:[#allocation3 + $0x128] sm:$0xff] %v2274_v31  ;;  %v1754_v16 = vmul.f32 %v1724_v59, %v7306_v44  ;;  %v1141_v36 = vmul.f32 0.3275911, %v1111_v49  ;;  %v1528_v35 = vand.u32 2147483648, %v1165_v29  ;;  %v1065_v48 = vand.u32 2147483647, %v7338_v10 }
 0x297   : > { %v2070_v28 = vsub.f32 1.0, %v2040_v3  ;;  %v1518_v60 = vmul.f32 %v5381_v63, %v1165_v29  ;;  %v2829_v62 = vmul.f32 %v2811_v19, %v7332_v54  ;;  %vm1523_vm14 = vweird.f32 %v5381_v63  ;;  %v2424_v3 = vpop.f32.mrf.mxu1  ;;  %v1004_v19 = vpop.f32.mrf.mxu0 }
 0x298   : > { %v1784_v55 = vadd.f32 -0.28449672, %v1754_v16  ;;  %v7344_v20 = vadd.f32 1.0, %v1141_v36  ;;  %v5383_v25 = vpop.eup %5382  ;;  %v2190_v34 = vmul.f32 0.5, %v7151_v40  ;;  %v7348_v50 = vmul.f32 0.70710677, %v1065_v48  ;;  %vm7355_vm15 = vmor %vm1522_vm13, %vm1523_vm14 }
 0x299   : > { %v2130_v12 = vsub.f32 0.0, %v2070_v28  ;;  %v1519_v21 = vsub.f32 1.0, %v1518_v60  ;;  %v2847_v15 = vadd.f32 1.4214138, %v2829_v62  ;;  %v3003_v24 = vmul.f32 1.442695, %v2973_v0 }
 0x29a   : > { %v1814_v38 = vmul.f32 %v1784_v55, %v7306_v44  ;;  %5384 = vrcp.f32 %v7344_v20  ;;  %v1529_v23 = vor.u32 1.1754944e-38, %v1528_v35  ;;  %vm1527_vm0 = vcmp.eq.f32.partialorder %v1526_v61, 8.507059e+37 }
 0x29b   : > { %v2160_v17 = vsel %vm2100_vm12, %v2070_v28, %v2130_v12  ;;  %v1520_v32 = vmul.f32 %v5381_v63, %v1519_v21  ;;  %v2865_v5 = vmul.f32 %v2847_v15, %v7332_v54  ;;  %v1945_v47 = vmul.f32 %v1915_v43, %v7293_v51 }
 0x29c   : > { %v2220_v56 = vadd.f32 1.0, %v2160_v17  ;;  %v1844_v11 = vadd.f32 0.2548296, %v1814_v38  ;;  %v1125_v40 = vmul.f32 0.3275911, %v7348_v50  ;;  %v1921_v13 = vsub.f32 0.0, %v1111_v49 }
 0x29d   : > { %v1521_v39 = vadd.f32 %v5381_v63, %v1520_v32  ;;  %v2883_v57 = vadd.f32 -0.28449672, %v2865_v5  ;;  %vm2084_vm1 = vcmp.ge.f32.partialorder %v7165_v4, 0.0  ;;  %5386 = vpow2.f32 %v3003_v24 }
 0x29e   : > { %v2250_v53 = vmul.f32 %v2220_v56, %v2190_v34  ;;  %v1874_v33 = vmul.f32 %v1844_v11, %v7306_v44  ;;  %v7365_v41 = vadd.f32 1.0, %v1125_v40  ;;  %v2174_v44 = vmul.f32 0.5, %v7165_v4 }
 0x29f   : > { %v1525_v29 = vsel %vm7355_vm15, %v5381_v63, %v1521_v39  ;;  %v2901_v51 = vmul.f32 %v2883_v57, %v7332_v54  ;;  %v1998_v46 = vmul.f32 1.442695, %v1945_v47  ;;  %v1951_v45 = vmul.f32 %v1921_v13, %v1111_v49 }
 0x2a0   : > { %v2280_v26 = vmul.f32 %v5900_v8, %v2250_v53  ;;  %v2024_v27 = vmul.f32 %v5383_v25, %v1874_v33  ;;  %v7369_v18 = vsel %vm1527_vm0, %v1529_v23, %v1525_v29  ;;  %v5385_v42 = vpop.eup %5384  ;;  %5388 = vrcp.f32 %v7365_v41 }
 0x2a1   : > { %v1645_v30 = vmul.f32 1.0614054, %v7369_v18  ;;  %v2919_v31 = vadd.f32 0.2548296, %v2901_v51  ;;  %v1608_v59 = vmul.f32 %v5385_v42, %v7344_v20  ;;  %vm3063_vm2 = vcmp.ge.f32.partialorder %v7219_v52, 0.0 }
 0x2a2   : > { %2311 = vst [vmem:[#allocation3 + $0x158] sm:$0xff] %v2280_v26  ;;  %v2054_v37 = vsub.f32 1.0, %v2024_v27  ;;  %vm1612_vm3 = vweird.f32 %v7344_v20  ;;  %v1616_v63 = vand.u32 2147483647, %v7344_v20  ;;  %v1618_v16 = vand.u32 2147483648, %v7344_v20 }
 0x2a3   : > { %v1675_v0 = vadd.f32 -1.4531521, %v1645_v30  ;;  %v2937_v28 = vmul.f32 %v2919_v31, %v7332_v54  ;;  %v1609_v60 = vsub.f32 1.0, %v1608_v59  ;;  %vm1613_vm4 = vweird.f32 %v5385_v42  ;;  %v5387_v61 = vpop.eup %5386  ;;  %v7390_v54 = vld [vmem:[%s8814_s7] ss:$0 sm:$0xff] }
 0x2a4   : > { %v2114_v43 = vsub.f32 0.0, %v2054_v37  ;;  %v3117_v36 = vmul.f32 0.5, %v7219_v52  ;;  %5390 = vpow2.f32 %v1998_v46  ;;  %v7383_v55 = vadd.f32 %v6983_v1, %v2424_v3  ;;  %vm7397_vm5 = vmor %vm1612_vm3, %vm1613_vm4 }
 0x2a5   : > { %v1705_v49 = vmul.f32 %v1675_v0, %v7369_v18  ;;  %v3027_v35 = vmul.f32 %v5387_v61, %v2937_v28  ;;  %v1610_v48 = vmul.f32 %v5385_v42, %v1609_v60  ;;  %v7393_v12 = vadd.f32 %v7390_v54, %v1004_v19 }
 0x2a6   : > { %v2144_v62 = vsel %vm2084_vm1, %v2054_v37, %v2114_v43  ;;  %v5389_v21 = vpop.eup %5388  ;;  %v1619_v4 = vor.u32 1.1754944e-38, %v1618_v16  ;;  %v2010_v38 = vmul.f32 1.442695, %v1951_v45  ;;  %vm1617_vm6 = vcmp.eq.f32.partialorder %v1616_v63, 8.507059e+37 }
 0x2a7   : > { %v2204_v25 = vadd.f32 1.0, %v2144_v62  ;;  %v1735_v34 = vadd.f32 1.4214138, %v1705_v49  ;;  %v3045_v15 = vsub.f32 1.0, %v3027_v35  ;;  %v1611_v17 = vadd.f32 %v5385_v42, %v1610_v48  ;;  %v2427_v35 = vpop.f32.mrf.mxu1 }
 0x2a8   : > { %v1368_v24 = vmul.f32 %v5389_v21, %v7365_v41  ;;  %v1376_v11 = vand.u32 2147483647, %v7365_v41  ;;  %v2452_v5 = vand.u32 2147483647, %v7383_v55  ;;  %v1378_v39 = vand.u32 2147483648, %v7365_v41 }
 0x2a9   : > { %v2234_v32 = vmul.f32 %v2204_v25, %v2174_v44  ;;  %v1765_v56 = vmul.f32 %v1735_v34, %v7369_v18  ;;  %v3081_v14 = vsub.f32 0.0, %v3045_v15  ;;  %v1615_v20 = vsel %vm7397_vm5, %v5385_v42, %v1611_v17 }
 0x2aa   : > { %v1369_v23 = vsub.f32 1.0, %v1368_v24  ;;  %v5391_v47 = vpop.eup %5390  ;;  %v7409_v33 = vsel %vm1617_vm6, %v1619_v4, %v1615_v20  ;;  %v7411_v57 = vmul.f32 0.70710677, %v2452_v5  ;;  %vm1373_vm7 = vweird.f32 %v5389_v21 }
 0x2ab   : > { %v2264_v40 = vmul.f32 %v5897_v7, %v2234_v32  ;;  %v1795_v53 = vadd.f32 -0.28449672, %v1765_v56  ;;  %v3099_v13 = vsel %vm3063_vm2, %v3045_v15, %v3081_v14  ;;  %v1651_v29 = vmul.f32 1.0614054, %v7409_v33 }
 0x2ac   : > { %v1370_v26 = vmul.f32 %v5389_v21, %v1369_v23  ;;  %v3135_v27 = vadd.f32 1.0, %v3099_v13  ;;  %vm1372_vm8 = vweird.f32 %v7365_v41  ;;  %v2488_v42 = vmul.f32 0.3275911, %v7411_v57 }
 0x2ad   : > { %2295 = vst [vmem:[#allocation3 + $0xd8] sm:$0xff] %v2264_v40  ;;  %v1825_v51 = vmul.f32 %v1795_v53, %v7369_v18  ;;  %v1681_v44 = vadd.f32 -1.4531521, %v1651_v29  ;;  %v1905_v46 = vsub.f32 0.0, %v7348_v50  ;;  %v1066_v37 = vand.u32 2147483647, %v7393_v12  ;;  %vm1374_vm9 = vmor %vm1372_vm8, %vm1373_vm7  ;;  %v1007_v40 = vpop.f32.mrf.mxu0 }
 0x2ae   : > { %v1371_v30 = vadd.f32 %v5389_v21, %v1370_v26  ;;  %v3153_v52 = vmul.f32 %v3135_v27, %v3117_v36  ;;  %v1379_v59 = vor.u32 1.1754944e-38, %v1378_v39  ;;  %v2506_v45 = vadd.f32 1.0, %v2488_v42 }
 0x2af   : > { %v1855_v31 = vadd.f32 0.2548296, %v1825_v51  ;;  %v1711_v3 = vmul.f32 %v1681_v44, %v7409_v33  ;;  %vm1377_vm10 = vcmp.eq.f32.partialorder %v1376_v11, 8.507059e+37  ;;  %v7422_v63 = vmul.f32 0.70710677, %v1066_v37 }
 0x2b0   : > { %v1375_v0 = vsel %vm1374_vm9, %v5389_v21, %v1371_v30  ;;  %v3171_v41 = vmul.f32 %v5897_v7, %v3153_v52  ;;  %5392 = vrcp.f32 %v2506_v45  ;;  %v1935_v60 = vmul.f32 %v1905_v46, %v7348_v50 }
 0x2b1   : > { %v1885_v16 = vmul.f32 %v1855_v31, %v7369_v18  ;;  %v7426_v19 = vsel %vm1377_vm10, %v1379_v59, %v1375_v0  ;;  %v1741_v43 = vadd.f32 1.4214138, %v1711_v3  ;;  %v1126_v36 = vmul.f32 0.3275911, %v7422_v63 }
 0x2b2   : > { %v1635_v28 = vmul.f32 1.0614054, %v7426_v19  ;;  %3190 = vst [vmem:[#allocation3 + $0x1c8] sm:$0xff] %v3171_v41  ;;  %vm2095_vm11 = vcmp.ge.f32.partialorder %v7277_v22, 0.0  ;;  %v2185_v18 = vmul.f32 0.5, %v7277_v22  ;;  %5394 = vpow2.f32 %v2010_v38 }
 0x2b3   : > { %v2035_v61 = vmul.f32 %v5391_v47, %v1885_v16  ;;  %v1771_v49 = vmul.f32 %v1741_v43, %v7409_v33  ;;  %v7434_v21 = vadd.f32 1.0, %v1126_v36  ;;  %v7437_v34 = vmul.f32 0.5, %v7301_v6 }
 0x2b4   : > { %v1665_v62 = vadd.f32 -1.4531521, %v1635_v28  ;;  %v1978_v1 = vmul.f32 1.442695, %v1935_v60  ;;  %v7441_v17 = vmul.f32 0.5, %v7338_v10  ;;  %v7445_v24 = vadd.f32 %v7390_v54, %v2427_v35 }
 0x2b5   : > { %v2065_v48 = vsub.f32 1.0, %v2035_v61  ;;  %v1801_v25 = vadd.f32 -0.28449672, %v1771_v49  ;;  %5396 = vrcp.f32 %v7434_v21  ;;  %vm2711_vm12 = vweird.f32 %v2506_v45 }
 0x2b6   : > { %v1695_v50 = vmul.f32 %v1665_v62, %v7426_v19  ;;  %v5393_v4 = vpop.eup %5392  ;;  %vm2101_vm13 = vcmp.ge.f32.partialorder %v7301_v6, 0.0  ;;  %v2715_v5 = vand.u32 2147483647, %v2506_v45  ;;  %v2717_v14 = vand.u32 2147483648, %v2506_v45 }
 0x2b7   : > { %v2125_v15 = vsub.f32 0.0, %v2065_v48  ;;  %v1831_v38 = vmul.f32 %v1801_v25, %v7409_v33  ;;  %v2707_v56 = vmul.f32 %v5393_v4, %v2506_v45  ;;  %vm2712_vm14 = vweird.f32 %v5393_v4 }
 0x2b8   : > { %v1725_v32 = vadd.f32 1.4214138, %v1695_v50  ;;  %v5395_v53 = vpop.eup %5394  ;;  %5398 = vpow2.f32 %v1978_v1  ;;  %v2956_v13 = vsub.f32 0.0, %v7411_v57  ;;  %v1906_v29 = vsub.f32 0.0, %v7422_v63  ;;  %vm7458_vm15 = vmor %vm2711_vm12, %vm2712_vm14 }
 0x2b9   : > { %v2155_v11 = vsel %vm2095_vm11, %v2065_v48, %v2125_v15  ;;  %v1861_v23 = vadd.f32 0.2548296, %v1831_v38  ;;  %v2708_v47 = vsub.f32 1.0, %v2707_v56  ;;  %v2453_v22 = vand.u32 2147483647, %v7445_v24 }
 0x2ba   : > { %v2215_v20 = vadd.f32 1.0, %v2155_v11  ;;  %v1755_v39 = vmul.f32 %v1725_v32, %v7426_v19  ;;  %vm7462_vm0 = vcmp.eq.f32.partialorder %v2715_v5, 8.507059e+37  ;;  %v2718_v37 = vor.u32 1.1754944e-38, %v2717_v14 }
 0x2bb   : > { %v1891_v27 = vmul.f32 %v1861_v23, %v7409_v33  ;;  %v2709_v42 = vmul.f32 %v5393_v4, %v2708_v47  ;;  %v5397_v44 = vpop.eup %5396  ;;  %v2471_v52 = vmul.f32 0.70710677, %v2453_v22  ;;  %v7467_v31 = vadd.f32 %v7390_v54, %v1007_v40  ;;  %v2430_v47 = vpop.f32.mrf.mxu1 }
 0x2bc   : > { %v2245_v26 = vmul.f32 %v2215_v20, %v2185_v18  ;;  %v1785_v51 = vadd.f32 -0.28449672, %v1755_v39  ;;  %v2974_v45 = vmul.f32 %v2956_v13, %v7411_v57  ;;  %v1383_v41 = vmul.f32 %v5397_v44, %v7434_v21 }
 0x2bd   : > { %v2041_v59 = vmul.f32 %v5395_v53, %v1891_v27  ;;  %v2710_v0 = vadd.f32 %v5393_v4, %v2709_v42  ;;  %v1936_v16 = vmul.f32 %v1906_v29, %v7422_v63  ;;  %v2489_v43 = vmul.f32 0.3275911, %v2471_v52 }
 0x2be   : > { %v2275_v33 = vmul.f32 %v5903_v9, %v2245_v26  ;;  %v1815_v3 = vmul.f32 %v1785_v51, %v7426_v19  ;;  %v1067_v36 = vand.u32 2147483647, %v7467_v31  ;;  %v5399_v49 = vpop.eup %5398  ;;  %vm2085_vm1 = vcmp.ge.f32.partialorder %v7338_v10, 0.0 }
 0x2bf   : > { %v2071_v28 = vsub.f32 1.0, %v2041_v59  ;;  %v2714_v61 = vsel %vm7458_vm15, %v5393_v4, %v2710_v0  ;;  %v1384_v57 = vsub.f32 1.0, %v1383_v41  ;;  %v1393_v35 = vand.u32 2147483648, %v7434_v21 }
 0x2c0   : > { %2306 = vst [vmem:[#allocation3 + $0x130] sm:$0xff] %v2275_v33  ;;  %v1845_v60 = vadd.f32 0.2548296, %v1815_v3  ;;  %v7480_v62 = vsel %vm7462_vm0, %v2718_v37, %v2714_v61  ;;  %v7483_v63 = vadd.f32 1.0, %v2489_v43  ;;  %v7487_v50 = vmul.f32 0.70710677, %v1067_v36 }
 0x2c1   : > { %v2131_v48 = vsub.f32 0.0, %v2071_v28  ;;  %v2794_v25 = vmul.f32 1.0614054, %v7480_v62  ;;  %v1385_v1 = vmul.f32 %v5397_v44, %v1384_v57  ;;  %vm1388_vm2 = vweird.f32 %v5397_v44 }
 0x2c2   : > { %v1875_v18 = vmul.f32 %v1845_v60, %v7426_v19  ;;  %v1391_v4 = vand.u32 2147483647, %v7434_v21  ;;  %5400 = vrcp.f32 %v7483_v63  ;;  %v3005_v56 = vmul.f32 1.442695, %v2974_v45  ;;  %v1010_v60 = vpop.f32.mrf.mxu0 }
 0x2c3   : > { %v2161_v15 = vsel %vm2101_vm13, %v2071_v28, %v2131_v48  ;;  %v2812_v32 = vadd.f32 -1.4531521, %v2794_v25  ;;  %v1386_v5 = vadd.f32 %v5397_v44, %v1385_v1  ;;  %vm1387_vm3 = vweird.f32 %v7434_v21 }
 0x2c4   : > { %v2025_v38 = vmul.f32 %v5399_v49, %v1875_v18  ;;  %v2221_v11 = vadd.f32 1.0, %v2161_v15  ;;  %v2957_v19 = vsub.f32 0.0, %v2471_v52  ;;  %vm1389_vm4 = vmor %vm1387_vm3, %vm1388_vm2  ;;  %v1394_v23 = vor.u32 1.1754944e-38, %v1393_v35 }
 0x2c5   : > { %v2830_v20 = vmul.f32 %v2812_v32, %v7480_v62  ;;  %v1127_v39 = vmul.f32 0.3275911, %v7487_v50  ;;  %v1390_v6 = vsel %vm1389_vm4, %v5397_v44, %v1386_v5  ;;  %vm1392_vm5 = vcmp.eq.f32.partialorder %v1391_v4, 8.507059e+37 }
 0x2c6   : > { %v2055_v14 = vsub.f32 1.0, %v2025_v38  ;;  %v2251_v40 = vmul.f32 %v2221_v11, %v7437_v34  ;;  %v1980_v53 = vmul.f32 1.442695, %v1936_v16  ;;  %v7497_v22 = vsel %vm1392_vm5, %v1394_v23, %v1390_v6 }
 0x2c7   : > { %v2848_v29 = vadd.f32 1.4214138, %v2830_v20  ;;  %v7499_v26 = vadd.f32 1.0, %v1127_v39  ;;  %v1636_v51 = vmul.f32 1.0614054, %v7497_v22  ;;  %v2975_v42 = vmul.f32 %v2957_v19, %v2471_v52 }
 0x2c8   : > { %v2115_v13 = vsub.f32 0.0, %v2055_v14  ;;  %v5401_v21 = vpop.eup %5400  ;;  %v2281_v27 = vmul.f32 %v5903_v9, %v2251_v40  ;;  %v7504_v30 = vadd.f32 %v7390_v54, %v2430_v47  ;;  %vm2726_vm6 = vweird.f32 %v7483_v63 }
 0x2c9   : > { %v2866_v44 = vmul.f32 %v2848_v29, %v7480_v62  ;;  %v2722_v46 = vmul.f32 %v5401_v21, %v7483_v63  ;;  %v1666_v33 = vadd.f32 -1.4531521, %v1636_v51  ;;  %v2732_v59 = vand.u32 2147483648, %v7483_v63  ;;  %v2433_v51 = vpop.f32.mrf.mxu1 }
 0x2ca   : > { %v2145_v34 = vsel %vm2085_vm1, %v2055_v14, %v2115_v13  ;;  %2312 = vst [vmem:[#allocation3 + $0x160] sm:$0xff] %v2281_v27  ;;  %5402 = vrcp.f32 %v7499_v26  ;;  %vm2727_vm7 = vweird.f32 %v5401_v21  ;;  %v2730_v0 = vand.u32 2147483647, %v7483_v63 }
 0x2cb   : > { %v2205_v37 = vadd.f32 1.0, %v2145_v34  ;;  %v2884_v52 = vadd.f32 -0.28449672, %v2866_v44  ;;  %v2723_v3 = vsub.f32 1.0, %v2722_v46  ;;  %5404 = vpow2.f32 %v3005_v56  ;;  %vm7523_vm8 = vmor %vm2726_vm6, %vm2727_vm7 }
 0x2cc   : > { %v1696_v45 = vmul.f32 %v1666_v33, %v7497_v22  ;;  %v3007_v41 = vmul.f32 1.442695, %v2975_v42  ;;  %v7518_v43 = vmul.f32 0.5, %v7383_v55  ;;  %v2454_v57 = vand.u32 2147483647, %v7504_v30 }
 0x2cd   : > { %v2235_v10 = vmul.f32 %v2205_v37, %v7441_v17  ;;  %v2902_v16 = vmul.f32 %v2884_v52, %v7480_v62  ;;  %v2724_v28 = vmul.f32 %v5401_v21, %v2723_v3  ;;  %v2733_v17 = vor.u32 1.1754944e-38, %v2732_v59 }
 0x2ce   : > { %v1726_v36 = vadd.f32 1.4214138, %v1696_v45  ;;  %5406 = vpow2.f32 %v1980_v53  ;;  %vm2731_vm9 = vcmp.eq.f32.partialorder %v2730_v0, 8.507059e+37  ;;  %vm3064_vm10 = vcmp.ge.f32.partialorder %v7383_v55, 0.0 }
 0x2cf   : > { %v2265_v61 = vmul.f32 %v5900_v8, %v2235_v10  ;;  %v2920_v35 = vadd.f32 0.2548296, %v2902_v16  ;;  %v2725_v48 = vadd.f32 %v5401_v21, %v2724_v28  ;;  %5408 = vpow2.f32 %v3007_v41 }
 0x2d0   : > { %v5403_v18 = vpop.eup %5402  ;;  %v1756_v25 = vmul.f32 %v1726_v36, %v7497_v22  ;;  %v7530_v1 = vmul.f32 0.70710677, %v2454_v57  ;;  %v7533_v63 = vadd.f32 %v7390_v54, %v1010_v60  ;;  %v1907_v32 = vsub.f32 0.0, %v7487_v50 }
 0x2d1   : > { %2296 = vst [vmem:[#allocation3 + $0xe0] sm:$0xff] %v2265_v61  ;;  %v2938_v4 = vmul.f32 %v2920_v35, %v7480_v62  ;;  %v2729_v15 = vsel %vm7523_vm8, %v5401_v21, %v2725_v48  ;;  %v1398_v38 = vmul.f32 %v5403_v18, %v7499_v26  ;;  %v5405_v56 = vpop.eup %5404  ;;  %v1406_v19 = vand.u32 2147483647, %v7499_v26 }
 0x2d2   : > { %v1786_v11 = vadd.f32 -0.28449672, %v1756_v25  ;;  %v7540_v5 = vsel %vm2731_vm9, %v2733_v17, %v2729_v15  ;;  %v2490_v14 = vmul.f32 0.3275911, %v7530_v1  ;;  %v1068_v62 = vand.u32 2147483647, %v7533_v63 }
 0x2d3   : > { %v3028_v20 = vmul.f32 %v5405_v56, %v2938_v4  ;;  %v2795_v23 = vmul.f32 1.0614054, %v7540_v5  ;;  %v1399_v39 = vsub.f32 1.0, %v1398_v38  ;;  %vm1403_vm11 = vweird.f32 %v5403_v18 }
 0x2d4   : > { %v1816_v47 = vmul.f32 %v1786_v11, %v7497_v22  ;;  %v1408_v40 = vand.u32 2147483648, %v7499_v26  ;;  %v7548_v6 = vadd.f32 1.0, %v2490_v14  ;;  %v5407_v53 = vpop.eup %5406  ;;  %v7550_v27 = vmul.f32 0.70710677, %v1068_v62 }
 0x2d5   : > { %v3046_v13 = vsub.f32 1.0, %v3028_v20  ;;  %v2813_v29 = vadd.f32 -1.4531521, %v2795_v23  ;;  %v1400_v21 = vmul.f32 %v5403_v18, %v1399_v39  ;;  %v7552_v42 = vpop.eup %5408  ;;  %v2176_v44 = vmul.f32 0.5, %v7393_v12 }
 0x2d6   : > { %v1846_v34 = vadd.f32 0.2548296, %v1816_v47  ;;  %v1937_v46 = vmul.f32 %v1907_v32, %v7487_v50  ;;  %5410 = vrcp.f32 %v7548_v6  ;;  %vm2086_vm12 = vcmp.ge.f32.partialorder %v7393_v12, 0.0 }
 0x2d7   : > { %v3082_v37 = vsub.f32 0.0, %v3046_v13  ;;  %v2831_v33 = vmul.f32 %v2813_v29, %v7540_v5  ;;  %v1401_v59 = vadd.f32 %v5403_v18, %v1400_v21  ;;  %vm1402_vm13 = vweird.f32 %v7499_v26 }
 0x2d8   : > { %v1876_v52 = vmul.f32 %v1846_v34, %v7497_v22  ;;  %vm1404_vm14 = vmor %vm1402_vm13, %vm1403_vm11  ;;  %v1409_v3 = vor.u32 1.1754944e-38, %v1408_v40  ;;  %v1128_v0 = vmul.f32 0.3275911, %v7550_v27  ;;  %v7564_v10 = vadd.f32 %v7390_v54, %v2433_v51 }
 0x2d9   : > { %v3100_v50 = vsel %vm3064_vm10, %v3046_v13, %v3082_v37  ;;  %v2849_v45 = vadd.f32 1.4214138, %v2831_v33  ;;  %v1405_v41 = vsel %vm1404_vm14, %v5403_v18, %v1401_v59  ;;  %vm1407_vm15 = vcmp.eq.f32.partialorder %v1406_v19, 8.507059e+37 }
 0x2da   : > { %v3136_v16 = vadd.f32 1.0, %v3100_v50  ;;  %v2026_v28 = vmul.f32 %v5407_v53, %v1876_v52  ;;  %v7568_v60 = vsel %vm1407_vm15, %v1409_v3, %v1405_v41  ;;  %v1982_v26 = vmul.f32 1.442695, %v1937_v46 }
 0x2db   : > { %v2867_v22 = vmul.f32 %v2849_v45, %v7540_v5  ;;  %v1637_v61 = vmul.f32 1.0614054, %v7568_v60  ;;  %v2958_v36 = vsub.f32 0.0, %v7530_v1  ;;  %v7573_v49 = vadd.f32 1.0, %v1128_v0 }
 0x2dc   : > { %v5411_v17 = vpop.eup %5410  ;;  %v3154_v55 = vmul.f32 %v3136_v16, %v7518_v43  ;;  %v2056_v57 = vsub.f32 1.0, %v2026_v28  ;;  %vm2741_vm0 = vweird.f32 %v7548_v6  ;;  %v2455_v35 = vand.u32 2147483647, %v7564_v10 }
 0x2dd   : > { %v2885_v48 = vadd.f32 -0.28449672, %v2867_v22  ;;  %v1667_v18 = vadd.f32 -1.4531521, %v1637_v61  ;;  %v2737_v25 = vmul.f32 %v5411_v17, %v7548_v6  ;;  %v2745_v4 = vand.u32 2147483647, %v7548_v6 }
 0x2de   : > { %v3172_v15 = vmul.f32 %v5900_v8, %v3154_v55  ;;  %v2116_v38 = vsub.f32 0.0, %v2056_v57  ;;  %v2747_v32 = vand.u32 2147483648, %v7548_v6  ;;  %5412 = vrcp.f32 %v7573_v49 }
 0x2df   : > { %v2903_v43 = vmul.f32 %v2885_v48, %v7540_v5  ;;  %v1697_v56 = vmul.f32 %v1667_v18, %v7568_v60  ;;  %v2738_v11 = vsub.f32 1.0, %v2737_v25  ;;  %vm2742_vm1 = vweird.f32 %v5411_v17 }
 0x2e0   : > { %3191 = vst [vmem:[#allocation3 + $0x1d0] sm:$0xff] %v3172_v15  ;;  %v2146_v19 = vsel %vm2086_vm12, %v2056_v57, %v2116_v38  ;;  %v7588_v14 = vmul.f32 0.5, %v7445_v24  ;;  %5414 = vpow2.f32 %v1982_v26  ;;  %v7590_v20 = vmul.f32 0.70710677, %v2455_v35  ;;  %vm7595_vm3 = vmor %vm2741_vm0, %vm2742_vm1 }
 0x2e1   : > { %v2206_v23 = vadd.f32 1.0, %v2146_v19  ;;  %v2921_v39 = vadd.f32 0.2548296, %v2903_v43  ;;  %v1727_v62 = vadd.f32 1.4214138, %v1697_v56  ;;  %v2739_v47 = vmul.f32 %v5411_v17, %v2738_v11 }
 0x2e2   : > { %vm3065_vm2 = vcmp.ge.f32.partialorder %v7445_v24, 0.0  ;;  %vm7599_vm4 = vcmp.eq.f32.partialorder %v2745_v4, 8.507059e+37  ;;  %v2748_v53 = vor.u32 1.1754944e-38, %v2747_v32  ;;  %v2976_v13 = vmul.f32 %v2958_v36, %v7530_v1  ;;  %v2436_v4 = vpop.f32.mrf.mxu1 }
 0x2e3   : > { %v2491_v29 = vmul.f32 0.3275911, %v7590_v20  ;;  %v2236_v21 = vmul.f32 %v2206_v23, %v2176_v44  ;;  %v2939_v51 = vmul.f32 %v2921_v39, %v7540_v5  ;;  %v1757_v34 = vmul.f32 %v1727_v62, %v7568_v60 }
 0x2e4   : > { %v2740_v46 = vadd.f32 %v5411_v17, %v2739_v47  ;;  %v5413_v6 = vpop.eup %5412  ;;  %v1421_v37 = vand.u32 2147483647, %v7573_v49  ;;  %v1423_v33 = vand.u32 2147483648, %v7573_v49  ;;  %v1908_v59 = vsub.f32 0.0, %v7550_v27 }
 0x2e5   : > { %v7610_v52 = vadd.f32 1.0, %v2491_v29  ;;  %v2266_v3 = vmul.f32 %v5903_v9, %v2236_v21  ;;  %v3029_v1 = vmul.f32 %v7552_v42, %v2939_v51  ;;  %v1787_v0 = vadd.f32 -0.28449672, %v1757_v34 }
 0x2e6   : > { %v2744_v5 = vsel %vm7595_vm3, %v5411_v17, %v2740_v46  ;;  %v5415_v44 = vpop.eup %5414  ;;  %v7617_v50 = vmul.f32 0.5, %v7467_v31  ;;  %v1413_v41 = vmul.f32 %v5413_v6, %v7573_v49  ;;  %v3009_v26 = vmul.f32 1.442695, %v2976_v13  ;;  %v1013_v17 = vpop.f32.mrf.mxu0 }
 0x2e7   : > { %v7621_v45 = vsel %vm7599_vm4, %v2748_v53, %v2744_v5  ;;  %5416 = vrcp.f32 %v7610_v52  ;;  %2297 = vst [vmem:[#allocation3 + $0xe8] sm:$0xff] %v2266_v3  ;;  %v3047_v16 = vsub.f32 1.0, %v3029_v1  ;;  %v1817_v42 = vmul.f32 %v1787_v0, %v7568_v60 }
 0x2e8   : > { %v2796_v28 = vmul.f32 1.0614054, %v7621_v45  ;;  %v1414_v22 = vsub.f32 1.0, %v1413_v41  ;;  %vm1417_vm5 = vweird.f32 %v7573_v49  ;;  %vm7628_vm6 = vcmp.eq.f32.partialorder %v1421_v37, 8.507059e+37 }
 0x2e9   : > { %v1938_v36 = vmul.f32 %v1908_v59, %v7550_v27  ;;  %v3083_v55 = vsub.f32 0.0, %v3047_v16  ;;  %v1847_v57 = vadd.f32 0.2548296, %v1817_v42  ;;  %v1424_v48 = vor.u32 1.1754944e-38, %v1423_v33 }
 0x2ea   : > { %v2814_v35 = vadd.f32 -1.4531521, %v2796_v28  ;;  %vm2087_vm7 = vcmp.ge.f32.partialorder %v7467_v31, 0.0  ;;  %v1415_v18 = vmul.f32 %v5413_v6, %v1414_v22  ;;  %vm1418_vm8 = vweird.f32 %v5413_v6 }
 0x2eb   : > { %vm2756_vm9 = vweird.f32 %v7610_v52  ;;  %v2959_v25 = vsub.f32 0.0, %v7590_v20  ;;  %v3101_v15 = vsel %vm3065_vm2, %v3047_v16, %v3083_v55  ;;  %v1877_v38 = vmul.f32 %v1847_v57, %v7568_v60  ;;  %vm1419_vm10 = vmor %vm1417_vm5, %vm1418_vm8 }
 0x2ec   : > { %v2832_v27 = vmul.f32 %v2814_v35, %v7621_v45  ;;  %v7641_v32 = vadd.f32 %v7390_v54, %v1013_v17  ;;  %v3137_v56 = vadd.f32 1.0, %v3101_v15  ;;  %v1416_v11 = vadd.f32 %v5413_v6, %v1415_v18 }
 0x2ed   : > { %v5417_v43 = vpop.eup %5416  ;;  %v2760_v19 = vand.u32 2147483647, %v7610_v52  ;;  %v2762_v23 = vand.u32 2147483648, %v7610_v52  ;;  %v2027_v39 = vmul.f32 %v5415_v44, %v1877_v38  ;;  %v7650_v60 = vadd.f32 %v7390_v54, %v2436_v4 }
 0x2ee   : > { %v2850_v62 = vadd.f32 1.4214138, %v2832_v27  ;;  %v2752_v24 = vmul.f32 %v5417_v43, %v7610_v52  ;;  %v3155_v47 = vmul.f32 %v3137_v56, %v7588_v14  ;;  %v1420_v40 = vsel %vm1419_vm10, %v5413_v6, %v1416_v11 }
 0x2ef   : > { %vm2757_vm11 = vweird.f32 %v5417_v43  ;;  %v1069_v12 = vand.u32 2147483647, %v7641_v32  ;;  %v2057_v53 = vsub.f32 1.0, %v2027_v39  ;;  %v7657_v29 = vsel %vm7628_vm6, %v1424_v48, %v1420_v40 }
 0x2f0   : > { %v2868_v13 = vmul.f32 %v2850_v62, %v7621_v45  ;;  %v2753_v49 = vsub.f32 1.0, %v2752_v24  ;;  %v3173_v21 = vmul.f32 %v5903_v9, %v3155_v47  ;;  %v1638_v51 = vmul.f32 1.0614054, %v7657_v29  ;;  %vm7671_vm13 = vmor %vm2756_vm9, %vm2757_vm11 }
 0x2f1   : > { %vm7661_vm12 = vcmp.eq.f32.partialorder %v2760_v19, 8.507059e+37  ;;  %v7665_v14 = vmul.f32 0.70710677, %v1069_v12  ;;  %v2117_v46 = vsub.f32 0.0, %v2057_v53  ;;  %v2456_v33 = vand.u32 2147483647, %v7650_v60 }
 0x2f2   : > { %v2886_v6 = vadd.f32 -0.28449672, %v2868_v13  ;;  %v2754_v37 = vmul.f32 %v5417_v43, %v2753_v49  ;;  %3192 = vst [vmem:[#allocation3 + $0x1d8] sm:$0xff] %v3173_v21  ;;  %5418 = vpow2.f32 %v3009_v26  ;;  %v1668_v59 = vadd.f32 -1.4531521, %v1638_v51 }
 0x2f3   : > { %v2763_v1 = vor.u32 1.1754944e-38, %v2762_v23  ;;  %v1129_v0 = vmul.f32 0.3275911, %v7665_v14  ;;  %v2147_v5 = vsel %vm2087_vm7, %v2057_v53, %v2117_v46  ;;  %v7679_v16 = vmul.f32 0.70710677, %v2456_v33 }
 0x2f4   : > { %v2904_v44 = vmul.f32 %v2886_v6, %v7621_v45  ;;  %v2755_v41 = vadd.f32 %v5417_v43, %v2754_v37  ;;  %v2207_v42 = vadd.f32 1.0, %v2147_v5  ;;  %v1698_v28 = vmul.f32 %v1668_v59, %v7657_v29 }
 0x2f5   : > { %v1984_v26 = vmul.f32 1.442695, %v1938_v36  ;;  %v7682_v52 = vadd.f32 1.0, %v1129_v0  ;;  %v2977_v17 = vmul.f32 %v2959_v25, %v7590_v20  ;;  %v2492_v31 = vmul.f32 0.3275911, %v7679_v16  ;;  %v1016_v36 = vpop.f32.mrf.mxu0 }
 0x2f6   : > { %v2922_v22 = vadd.f32 0.2548296, %v2904_v44  ;;  %v2759_v61 = vsel %vm7671_vm13, %v5417_v43, %v2755_v41  ;;  %v2237_v55 = vmul.f32 %v2207_v42, %v7617_v50  ;;  %v1728_v57 = vadd.f32 1.4214138, %v1698_v28 }
 0x2f7   : > { %v7691_v35 = vsel %vm7661_vm12, %v2763_v1, %v2759_v61  ;;  %5420 = vrcp.f32 %v7682_v52  ;;  %v3011_v50 = vmul.f32 1.442695, %v2977_v17  ;;  %v7698_v27 = vadd.f32 1.0, %v2492_v31 }
 0x2f8   : > { %v2940_v48 = vmul.f32 %v2922_v22, %v7621_v45  ;;  %v2797_v18 = vmul.f32 1.0614054, %v7691_v35  ;;  %v5419_v4 = vpop.eup %5418  ;;  %v2267_v15 = vmul.f32 %v5897_v7, %v2237_v55  ;;  %v1758_v20 = vmul.f32 %v1728_v57, %v7657_v29 }
 0x2f9   : > { %vm3066_vm14 = vcmp.ge.f32.partialorder %v7504_v30, 0.0  ;;  %5422 = vpow2.f32 %v1984_v26  ;;  %v1438_v11 = vand.u32 2147483648, %v7682_v52  ;;  %v3120_v23 = vmul.f32 0.5, %v7504_v30 }
 0x2fa   : > { %v3030_v25 = vmul.f32 %v5419_v4, %v2940_v48  ;;  %v2815_v38 = vadd.f32 -1.4531521, %v2797_v18  ;;  %2298 = vst [vmem:[#allocation3 + $0xf0] sm:$0xff] %v2267_v15  ;;  %v1788_v43 = vadd.f32 -0.28449672, %v1758_v20  ;;  %5424 = vrcp.f32 %v7698_v27 }
 0x2fb   : > { %v7707_v62 = vmul.f32 0.5, %v7533_v63  ;;  %v7710_v24 = vadd.f32 %v7390_v54, %v1016_v36  ;;  %5426 = vpow2.f32 %v3011_v50  ;;  %vm1432_vm15 = vweird.f32 %v7682_v52 }
 0x2fc   : > { %v3048_v56 = vsub.f32 1.0, %v3030_v25  ;;  %v2833_v45 = vmul.f32 %v2815_v38, %v7691_v35  ;;  %v1818_v39 = vmul.f32 %v1788_v43, %v7657_v29  ;;  %v1436_v13 = vand.u32 2147483647, %v7682_v52 }
 0x2fd   : > { %v5421_v19 = vpop.eup %5420  ;;  %v1909_v49 = vsub.f32 0.0, %v7665_v14  ;;  %vm2088_vm0 = vcmp.ge.f32.partialorder %v7533_v63, 0.0  ;;  %v1439_v46 = vor.u32 1.1754944e-38, %v1438_v11  ;;  %vm2771_vm1 = vweird.f32 %v7698_v27  ;;  %v1019_v3 = vpop.f32.mrf.mxu0 }
 0x2fe   : > { %v3084_v47 = vsub.f32 0.0, %v3048_v56  ;;  %v2851_v40 = vadd.f32 1.4214138, %v2833_v45  ;;  %v1428_v12 = vmul.f32 %v5421_v19, %v7682_v52  ;;  %v1848_v53 = vadd.f32 0.2548296, %v1818_v39 }
 0x2ff   : > { %v5423_v6 = vpop.eup %5422  ;;  %v1070_v59 = vand.u32 2147483647, %v7710_v24  ;;  %vm1433_vm2 = vweird.f32 %v5421_v19  ;;  %v2775_v30 = vand.u32 2147483647, %v7698_v27  ;;  %v2777_v28 = vand.u32 2147483648, %v7698_v27 }
 0x300   : > { %v3102_v21 = vsel %vm3066_vm14, %v3048_v56, %v3084_v47  ;;  %v2869_v51 = vmul.f32 %v2851_v40, %v7691_v35  ;;  %v1429_v34 = vsub.f32 1.0, %v1428_v12  ;;  %v1878_v33 = vmul.f32 %v1848_v53, %v7657_v29  ;;  %v5425_v1 = vpop.eup %5424  ;;  %vm1434_vm3 = vmor %vm1432_vm15, %vm1433_vm2 }
 0x301   : > { %v3138_v37 = vadd.f32 1.0, %v3102_v21  ;;  %v2767_v42 = vmul.f32 %v5425_v1, %v7698_v27  ;;  %v5427_v26 = vpop.eup %5426  ;;  %v7727_v61 = vmul.f32 0.70710677, %v1070_v59  ;;  %v7730_v17 = vadd.f32 %v7390_v54, %v1019_v3 }
 0x302   : > { %v2887_v0 = vadd.f32 -0.28449672, %v2869_v51  ;;  %v1430_v5 = vmul.f32 %v5421_v19, %v1429_v34  ;;  %v2028_v41 = vmul.f32 %v5423_v6, %v1878_v33  ;;  %vm2772_vm4 = vweird.f32 %v5425_v1 }
 0x303   : > { %v3156_v44 = vmul.f32 %v3138_v37, %v3120_v23  ;;  %v2768_v57 = vsub.f32 1.0, %v2767_v42  ;;  %vm1437_vm5 = vcmp.eq.f32.partialorder %v1436_v13, 8.507059e+37  ;;  %v1130_v18 = vmul.f32 0.3275911, %v7727_v61  ;;  %vm7740_vm6 = vmor %vm2771_vm1, %vm2772_vm4 }
 0x304   : > { %v2905_v29 = vmul.f32 %v2887_v0, %v7691_v35  ;;  %v1431_v22 = vadd.f32 %v5421_v19, %v1430_v5  ;;  %v2058_v55 = vsub.f32 1.0, %v2028_v41  ;;  %v1071_v54 = vand.u32 2147483647, %v7730_v17 }
 0x305   : > { %v3174_v31 = vmul.f32 %v5897_v7, %v3156_v44  ;;  %v2769_v20 = vmul.f32 %v5425_v1, %v2768_v57  ;;  %v2778_v50 = vor.u32 1.1754944e-38, %v2777_v28  ;;  %v1160_v43 = vadd.f32 1.0, %v1130_v18 }
 0x306   : > { %v2923_v36 = vadd.f32 0.2548296, %v2905_v29  ;;  %v1435_v48 = vsel %vm1434_vm3, %v5421_v19, %v1431_v22  ;;  %v2118_v4 = vsub.f32 0.0, %v2058_v55  ;;  %vm2776_vm7 = vcmp.eq.f32.partialorder %v2775_v30, 8.507059e+37 }
 0x307   : > { %3193 = vst [vmem:[#allocation3 + $0x1e0] sm:$0xff] %v3174_v31  ;;  %v1440_v15 = vsel %vm1437_vm5, %v1439_v46, %v1435_v48  ;;  %v2770_v45 = vadd.f32 %v5425_v1, %v2769_v20  ;;  %v7746_v11 = vmul.f32 0.70710677, %v1071_v54  ;;  %5428 = vrcp.f32 %v1160_v43 }
 0x308   : > { %v2941_v25 = vmul.f32 %v2923_v36, %v7691_v35  ;;  %v1639_v38 = vmul.f32 1.0614054, %v1440_v15  ;;  %v2148_v56 = vsel %vm2088_vm0, %v2058_v55, %v2118_v4  ;;  %v1939_v35 = vmul.f32 %v1909_v49, %v7665_v14 }
 0x309   : > { %v2208_v19 = vadd.f32 1.0, %v2148_v56  ;;  %v2774_v27 = vsel %vm7740_vm6, %v5425_v1, %v2770_v45  ;;  %v2960_v47 = vsub.f32 0.0, %v7679_v16  ;;  %v1131_v46 = vmul.f32 0.3275911, %v7746_v11 }
 0x30a   : > { %v3031_v23 = vmul.f32 %v5427_v26, %v2941_v25  ;;  %v1669_v39 = vadd.f32 -1.4531521, %v1639_v38  ;;  %v2779_v53 = vsel %vm2776_vm7, %v2778_v50, %v2774_v27  ;;  %vm3067_vm8 = vcmp.ge.f32.partialorder %v7564_v10, 0.0 }
 0x30b   : > { %v2238_v40 = vmul.f32 %v2208_v19, %v7707_v62  ;;  %v2798_v13 = vmul.f32 1.0614054, %v2779_v53  ;;  %v1986_v14 = vmul.f32 1.442695, %v1939_v35  ;;  %v2978_v62 = vmul.f32 %v2960_v47, %v7679_v16 }
 0x30c   : > { %v3049_v12 = vsub.f32 1.0, %v3031_v23  ;;  %v1699_v63 = vmul.f32 %v1669_v39, %v1440_v15  ;;  %v1161_v59 = vadd.f32 1.0, %v1131_v46  ;;  %v3121_v3 = vmul.f32 0.5, %v7564_v10 }
 0x30d   : > { %v2268_v21 = vmul.f32 %v5900_v8, %v2238_v40  ;;  %v2816_v49 = vadd.f32 -1.4531521, %v2798_v13  ;;  %v5429_v6 = vpop.eup %5428  ;;  %v3013_v26 = vmul.f32 1.442695, %v2978_v62  ;;  %v1451_v29 = vand.u32 2147483647, %v1160_v43 }
 0x30e   : > { %v3085_v51 = vsub.f32 0.0, %v3049_v12  ;;  %v1729_v34 = vadd.f32 1.4214138, %v1699_v63  ;;  %v1443_v5 = vmul.f32 %v5429_v6, %v1160_v43  ;;  %5430 = vrcp.f32 %v1161_v59 }
 0x30f   : > { %2299 = vst [vmem:[#allocation3 + $0xf8] sm:$0xff] %v2268_v21  ;;  %v2834_v0 = vmul.f32 %v2816_v49, %v2779_v53  ;;  %5432 = vpow2.f32 %v1986_v14  ;;  %v1453_v22 = vand.u32 2147483648, %v1160_v43  ;;  %vm1448_vm9 = vweird.f32 %v5429_v6 }
 0x310   : > { %v3103_v37 = vsel %vm3067_vm8, %v3049_v12, %v3085_v51  ;;  %v1759_v33 = vmul.f32 %v1729_v34, %v1440_v15  ;;  %v1444_v42 = vsub.f32 1.0, %v1443_v5  ;;  %vm1447_vm10 = vweird.f32 %v1160_v43 }
 0x311   : > { %v3139_v1 = vadd.f32 1.0, %v3103_v37  ;;  %v2852_v41 = vadd.f32 1.4214138, %v2834_v0  ;;  %5434 = vpow2.f32 %v3013_v26  ;;  %vm1449_vm11 = vmor %vm1447_vm10, %vm1448_vm9  ;;  %v1454_v4 = vor.u32 1.1754944e-38, %v1453_v22 }
 0x312   : > { %v1789_v30 = vadd.f32 -0.28449672, %v1759_v33  ;;  %v1445_v16 = vmul.f32 %v5429_v6, %v1444_v42  ;;  %vm1452_vm12 = vcmp.eq.f32.partialorder %v1451_v29, 8.507059e+37  ;;  %v1910_v56 = vsub.f32 0.0, %v7727_v61 }
 0x313   : > { %v3157_v44 = vmul.f32 %v3139_v1, %v3121_v3  ;;  %v2870_v55 = vmul.f32 %v2852_v41, %v2779_v53  ;;  %v1466_v35 = vand.u32 2147483647, %v1161_v59  ;;  %v1468_v43 = vand.u32 2147483648, %v1161_v59 }
 0x314   : > { %v1819_v28 = vmul.f32 %v1789_v30, %v1440_v15  ;;  %v1446_v36 = vadd.f32 %v5429_v6, %v1445_v16  ;;  %v5431_v48 = vpop.eup %5430  ;;  %vm2089_vm14 = vcmp.ge.f32.partialorder %v7641_v32, 0.0  ;;  %v1940_v63 = vmul.f32 %v1910_v56, %v7727_v61  ;;  %v7767_v61 = vld [vmem:[%s8816_s9] sm:$0x1] }
 0x315   : > { %v3175_v31 = vmul.f32 %v5900_v8, %v3157_v44  ;;  %v2888_v10 = vadd.f32 -0.28449672, %v2870_v55  ;;  %v5433_v20 = vpop.eup %5432  ;;  %v1458_v38 = vmul.f32 %v5431_v48, %v1161_v59  ;;  %vm1463_vm13 = vweird.f32 %v5431_v48 }
 0x316   : > { %v1849_v57 = vadd.f32 0.2548296, %v1819_v28  ;;  %v1450_v25 = vsel %vm1449_vm11, %v5429_v6, %v1446_v36  ;;  %vm1462_vm15 = vweird.f32 %v1161_v59  ;;  %v2179_v46 = vmul.f32 0.5, %v7641_v32 }
 0x317   : > { %3194 = vst [vmem:[#allocation3 + $0x1e8] sm:$0xff] %v3175_v31  ;;  %v2906_v54 = vmul.f32 %v2888_v10, %v2779_v53  ;;  %v1455_v50 = vsel %vm1452_vm12, %v1454_v4, %v1450_v25  ;;  %v1459_v23 = vsub.f32 1.0, %v1458_v38  ;;  %v5435_v40 = vpop.eup %5434  ;;  %vm1464_vm0 = vmor %vm1462_vm15, %vm1463_vm13  ;;  %vm1467_vm1 = vcmp.eq.f32.partialorder %v1466_v35, 8.507059e+37 }
 0x318   : > { %v1879_v18 = vmul.f32 %v1849_v57, %v1440_v15  ;;  %v1640_v19 = vmul.f32 1.0614054, %v1455_v50  ;;  %v1469_v14 = vor.u32 1.1754944e-38, %v1468_v43  ;;  %v1988_v33 = vmul.f32 1.442695, %v1940_v63 }
 0x319   : > { %v2924_v45 = vadd.f32 0.2548296, %v2906_v54  ;;  %v1460_v47 = vmul.f32 %v5431_v48, %v1459_v23  ;;  %v1911_v3 = vsub.f32 0.0, %v7746_v11  ;;  %vm3068_vm2 = vcmp.ge.f32.partialorder %v7650_v60, 0.0 }
 0x31a   : > { %v2029_v52 = vmul.f32 %v5433_v20, %v1879_v18  ;;  %v1670_v15 = vadd.f32 -1.4531521, %v1640_v19  ;;  %v3122_v42 = vmul.f32 0.5, %v7650_v60  ;;  %5436 = vpow2.f32 %v1988_v33 }
 0x31b   : > { %v2942_v27 = vmul.f32 %v2924_v45, %v2779_v53  ;;  %v1461_v51 = vadd.f32 %v5431_v48, %v1460_v47  ;;  %v1941_v26 = vmul.f32 %v1911_v3, %v7746_v11  ;;  %vm2090_vm3 = vcmp.ge.f32.partialorder %v7710_v24, 0.0 }
 0x31c   : > { %v2059_v39 = vsub.f32 1.0, %v2029_v52  ;;  %v1700_v21 = vmul.f32 %v1670_v15, %v1455_v50  ;;  %v2180_v45 = vmul.f32 0.5, %v7710_v24  ;;  %vm2091_vm4 = vcmp.ge.f32.partialorder %v7730_v17, 0.0 }
 0x31d   : > { %v3032_v13 = vmul.f32 %v5435_v40, %v2942_v27  ;;  %v1465_v37 = vsel %vm1464_vm0, %v5431_v48, %v1461_v51  ;;  %v1990_v10 = vmul.f32 1.442695, %v1941_v26  ;;  %v2181_v27 = vmul.f32 0.5, %v7730_v17 }
 0x31e   : > { %v2119_v12 = vsub.f32 0.0, %v2059_v39  ;;  %v1730_v6 = vadd.f32 1.4214138, %v1700_v21  ;;  %v1470_v62 = vsel %vm1467_vm1, %v1469_v14, %v1465_v37 }
 0x31f   : > { %v3050_v49 = vsub.f32 1.0, %v3032_v13  ;;  %v1641_v32 = vmul.f32 1.0614054, %v1470_v62  ;;  %5438 = vpow2.f32 %v1990_v10 }
 0x320   : > { %v2149_v34 = vsel %vm2089_vm14, %v2059_v39, %v2119_v12  ;;  %v1760_v0 = vmul.f32 %v1730_v6, %v1455_v50  ;;  %v5437_v18 = vpop.eup %5436 }
 0x321   : > { %v2209_v53 = vadd.f32 1.0, %v2149_v34  ;;  %v3086_v1 = vsub.f32 0.0, %v3050_v49  ;;  %v1671_v41 = vadd.f32 -1.4531521, %v1641_v32 }
 0x322   : > { %v1790_v44 = vadd.f32 -0.28449672, %v1760_v0 }
 0x323   : > { %v2239_v59 = vmul.f32 %v2209_v53, %v2179_v46  ;;  %v3104_v30 = vsel %vm3068_vm2, %v3050_v49, %v3086_v1  ;;  %v1701_v22 = vmul.f32 %v1671_v41, %v1470_v62 }
 0x324   : > { %v3140_v28 = vadd.f32 1.0, %v3104_v30  ;;  %v1820_v29 = vmul.f32 %v1790_v44, %v1455_v50 }
 0x325   : > { %v2269_v5 = vmul.f32 %v5903_v9, %v2239_v59  ;;  %v1731_v16 = vadd.f32 1.4214138, %v1701_v22  ;;  %v5439_v56 = vpop.eup %5438 }
 0x326   : > { %v3158_v31 = vmul.f32 %v3140_v28, %v3122_v42  ;;  %v1850_v55 = vadd.f32 0.2548296, %v1820_v29 }
 0x327   : > { %2300 = vst [vmem:[#allocation3 + $0x100] sm:$0xff] %v2269_v5  ;;  %v1761_v48 = vmul.f32 %v1731_v16, %v1470_v62 }
 0x328   : > { %v3176_v57 = vmul.f32 %v5903_v9, %v3158_v31  ;;  %v1880_v36 = vmul.f32 %v1850_v55, %v1455_v50 }
 0x329   : > { %v1791_v20 = vadd.f32 -0.28449672, %v1761_v48 }
 0x32a   : > { %3195 = vst [vmem:[#allocation3 + $0x1f0] sm:$0xff] %v3176_v57  ;;  %v2030_v4 = vmul.f32 %v5437_v18, %v1880_v36 }
 0x32b   : > { %v1821_v54 = vmul.f32 %v1791_v20, %v1470_v62 }
 0x32c   : > { %v2060_v60 = vsub.f32 1.0, %v2030_v4 }
 0x32d   : > { %v1851_v11 = vadd.f32 0.2548296, %v1821_v54 }
 0x32e   : > { %v2120_v25 = vsub.f32 0.0, %v2060_v60 }
 0x32f   : > { %v1881_v52 = vmul.f32 %v1851_v11, %v1470_v62 }
 0x330   : > { %v2150_v38 = vsel %vm2090_vm3, %v2060_v60, %v2120_v25 }
 0x331   : > { %v2210_v9 = vadd.f32 1.0, %v2150_v38  ;;  %v2031_v19 = vmul.f32 %v5439_v56, %v1881_v52 }
 0x333   : > { %v2240_v50 = vmul.f32 %v2210_v9, %v2180_v45  ;;  %v2061_v23 = vsub.f32 1.0, %v2031_v19 }
 0x335   : > { %v2270_v39 = vmul.f32 %v5897_v7, %v2240_v50  ;;  %v2121_v35 = vsub.f32 0.0, %v2061_v23 }
 0x337   : > { %2301 = vst [vmem:[#allocation3 + $0x108] sm:$0xff] %v2270_v39  ;;  %v2151_v43 = vsel %vm2091_vm4, %v2061_v23, %v2121_v35 }
 0x338   : > { %v2211_v15 = vadd.f32 1.0, %v2151_v43 }
 0x33a   : > { %v2241_v47 = vmul.f32 %v2211_v15, %v2181_v27 }
 0x33c   : > { %v2271_v40 = vmul.f32 %v5900_v8, %v2241_v47 }
 0x33e   : > { %2302 = vst [vmem:[#allocation3 + $0x110] sm:$0xff] %v2271_v40 }
 0x33f LB: >> { %v5443_v7 = vld [vmem:[%s8815_s8] ss:$0 sm:$0xff]  ;;  %v5444_v24 = vld [vmem:[%s8815_s8 + $0x1] ss:$0 sm:$0xff]  ;;  %v5445_v8 = vld [vmem:[%s8815_s8 + $0xb] ss:$0 sm:$0xff]  ;;  %s5689_s18 = sphi %s7780_s18, %s3202_s18  }
 0x340   : >> { %s3203_s27 = smul.u32 24, %s5689_s18  ;;  %v5446_v17 = vld [vmem:[%s8815_s8 + $0xc] ss:$0 sm:$0xff]  ;;  %v5447_v12 = vld [vmem:[%s8815_s8 + $0x16] ss:$0 sm:$0xff]  ;;  %vm3446_vm5 = vcmask 1046528  }
 0x341   : >> { %v5448_v63 = vld [vmem:[%s8815_s8 + $0x17] ss:$0 sm:$0xff]  ;;  %v5449_v41 = vld [vmem:[%s8815_s8 + $0x21] ss:$0 sm:$0xff]  ;;  %v5450_v42 = vld [vmem:[%s8815_s8 + $0x22] ss:$0 sm:$0xff] }
 0x342   : >> { %s7804_s3 = scalar_lea.vmem [#allocation3], %s3203_s27  ;;  %v5451_v16 = vld [vmem:[%s8815_s8 + $0x2c] ss:$0 sm:$0xff]  ;;  %v5452_v36 = vld [vmem:[%s8815_s8 + $0x2d] ss:$0 sm:$0xff]  ;;  %vm3652_vm6 = vcmask 1045504  }
 0x343   : >> { %v5453_v60 = vld [vmem:[%s8815_s8 + $0x37] ss:$0 sm:$0xff]  ;;  %v5454_v52 = vld [vmem:[%s8815_s8 + $0x38] ss:$0 sm:$0xff]  ;;  %v5455_v43 = vld [vmem:[%s8815_s8 + $0x42] ss:$0 sm:$0xff] }
 0x344   : >> { %v5456_v27 = vld [vmem:[%s8815_s8 + $0x43] ss:$0 sm:$0xff]  ;;  %vm3660_vm7 = vcmask 1044480   ;;  %vm3866_vm8 = vcmask 1043456   ;;  %vm3874_vm9 = vcmask 1042432   ;;  %vm4080_vm10 = vcmask 1041408  }
 0x345   : >> { %v7807_v13 = vld [vmem:[%s7804_s3] sm:$0xff]  ;;  %v7810_v21 = vld [vmem:[%s7804_s3 + $0x8] sm:$0xff]  ;;  %v7816_v14 = vld [vmem:[%s7804_s3 + $0x18] sm:$0xff]  ;;  %vm4088_vm11 = vcmask 1040384   ;;  %s5068_s22 = sshll.u32 %s5689_s18, 3  ;;  %s3202_s18 = sadd.s32 1, %s5689_s18  }
 0x346   : >> { %v3212_v51 = vmul.f32 %v5443_v7, %v7807_v13  ;;  %v3219_v34 = vmul.f32 %v5444_v24, %v7807_v13  ;;  %v3220_v46 = vmul.f32 %v5444_v24, %v7810_v21  ;;  %v7819_v53 = vld [vmem:[%s7804_s3 + $0x20] sm:$0xff]  ;;  %v3234_v49 = vmul.f32 %v5445_v8, %v7816_v14  ;;  %v7825_v33 = vld [vmem:[%s7804_s3 + $0x30] sm:$0xff]  ;;  %v7828_v62 = vld [vmem:[%s7804_s3 + $0x38] sm:$0xff]  ;;  %s4389_s23 = scalar_lea.vmem %s5892_s15, %s5068_s22 [#allocation6]  ;;  %p3199_p12 = scmp.ge.s32.totalorder %s3202_s18, 16  }
 0x347   : >> { %v3241_v6 = vmul.f32 %v5446_v17, %v7816_v14  ;;  %v3242_v37 = vmul.f32 %v5446_v17, %v7819_v53  ;;  %v3256_v3 = vmul.f32 %v5447_v12, %v7825_v33  ;;  %v3263_v59 = vmul.f32 %v5448_v63, %v7825_v33  ;;  %v7834_v0 = vld [vmem:[%s7804_s3 + $0x48] sm:$0xff]  ;;  %v7837_v32 = vld [vmem:[%s7804_s3 + $0x50] sm:$0xff]  ;;  %v7846_v28 = vld [vmem:[%s7804_s3 + $0x60] sm:$0xff] }
 0x348   : >> { %v3264_v1 = vmul.f32 %v5448_v63, %v7828_v62  ;;  %v3235_v5 = vadd.f32 %v3234_v49, %v3212_v51  ;;  %v7849_v26 = vld [vmem:[%s7804_s3 + $0x68] sm:$0xff]  ;;  %v3278_v55 = vmul.f32 %v5449_v41, %v7834_v0  ;;  %v3285_v57 = vmul.f32 %v5450_v42, %v7834_v0  ;;  %v7861_v48 = vld [vmem:[%s7804_s3 + $0x78] sm:$0xff]  ;;  %v7865_v20 = vld [vmem:[%s7804_s3 + $0x80] sm:$0xff] }
 0x349   : >> { %v3243_v30 = vadd.f32 %v3241_v6, %v3219_v34  ;;  %v3244_v44 = vadd.f32 %v3242_v37, %v3220_v46  ;;  %v3286_v10 = vmul.f32 %v5450_v42, %v7837_v32  ;;  %v3300_v4 = vmul.f32 %v5451_v16, %v7846_v28  ;;  %v7877_v9 = vld [vmem:[%s7804_s3 + $0x90] sm:$0xff]  ;;  %v7880_v19 = vld [vmem:[%s7804_s3 + $0x98] sm:$0xff]  ;;  %v7891_v47 = vld [vmem:[%s7804_s3 + $0xa8] sm:$0xff] }
 0x34a   : >> { %v3257_v29 = vadd.f32 %v3256_v3, %v3235_v5  ;;  %v3307_v11 = vmul.f32 %v5452_v36, %v7846_v28  ;;  %v3308_v38 = vmul.f32 %v5452_v36, %v7849_v26  ;;  %v3322_v45 = vmul.f32 %v5453_v60, %v7861_v48  ;;  %v7894_v40 = vld [vmem:[%s7804_s3 + $0xb0] sm:$0xff]  ;;  %v5457_v12 = vld [vmem:[%s8815_s8 + $0x4d] ss:$0 sm:$0xff]  ;;  %v5458_v51 = vld [vmem:[%s8815_s8 + $0x4e] ss:$0 sm:$0xff] }
 0x34b   : >> { %v3265_v22 = vadd.f32 %v3263_v59, %v3243_v30  ;;  %v3266_v31 = vadd.f32 %v3264_v1, %v3244_v44  ;;  %v3329_v39 = vmul.f32 %v5454_v52, %v7861_v48  ;;  %v3330_v35 = vmul.f32 %v5454_v52, %v7865_v20  ;;  %v7906_v34 = vld [vmem:[%s7804_s3 + $0xc0] sm:$0xff]  ;;  %v7910_v37 = vld [vmem:[%s7804_s3 + $0xc8] sm:$0xff]  ;;  %v5459_v3 = vld [vmem:[%s8815_s8 + $0x58] ss:$0 sm:$0xff] }
 0x34c   : >> { %v3279_v18 = vadd.f32 %v3278_v55, %v3257_v29  ;;  %v3344_v8 = vmul.f32 %v5455_v43, %v7877_v9  ;;  %v3351_v17 = vmul.f32 %v5456_v27, %v7877_v9  ;;  %v3352_v63 = vmul.f32 %v5456_v27, %v7880_v19  ;;  %v5460_v30 = vld [vmem:[%s8815_s8 + $0x59] ss:$0 sm:$0xff]  ;;  %v7925_v29 = vld [vmem:[%s7804_s3 + $0xe0] sm:$0xff] }
 0x34d   : >> { %v3287_v54 = vadd.f32 %v3285_v57, %v3265_v22  ;;  %v3288_v25 = vadd.f32 %v3286_v10, %v3266_v31  ;;  %v3366_v6 = vmul.f32 %v5457_v12, %v7891_v47  ;;  %v3373_v1 = vmul.f32 %v5458_v51, %v7891_v47  ;;  %v7922_v42 = vld [vmem:[%s7804_s3 + $0xd8] sm:$0xff]  ;;  %v5461_v57 = vld [vmem:[%s8815_s8 + $0x63] ss:$0 sm:$0xff]  ;;  %v5462_v10 = vld [vmem:[%s8815_s8 + $0x64] ss:$0 sm:$0xff] }
 0x34e   : >> { %v3301_v56 = vadd.f32 %v3300_v4, %v3279_v18  ;;  %v3374_v5 = vmul.f32 %v5458_v51, %v7894_v40  ;;  %v3388_v41 = vmul.f32 %v5459_v3, %v7906_v34  ;;  %v3395_v55 = vmul.f32 %v5460_v30, %v7906_v34  ;;  %v7936_v18 = vld [vmem:[%s7804_s3 + $0xf0] sm:$0xff]  ;;  %v7939_v4 = vld [vmem:[%s7804_s3 + $0xf8] sm:$0xff] }
 0x34f   : >> { %v3309_v50 = vadd.f32 %v3307_v11, %v3287_v54  ;;  %v3310_v23 = vadd.f32 %v3308_v38, %v3288_v25  ;;  %v3396_v16 = vmul.f32 %v5460_v30, %v7910_v37  ;;  %v3410_v25 = vmul.f32 %v5461_v57, %v7922_v42  ;;  %v5463_v38 = vld [vmem:[%s8815_s8 + $0x6e] ss:$0 sm:$0xff]  ;;  %v5469_v51 = vld [vmem:[%s8815_s8 + $0x18] ss:$0 sm:$0xff] }
 0x350   : >> { %v3323_v15 = vadd.f32 %v3322_v45, %v3301_v56  ;;  %v3417_v11 = vmul.f32 %v5462_v10, %v7922_v42  ;;  %v3418_v52 = vmul.f32 %v5462_v10, %v7925_v29  ;;  %v5464_v56 = vld [vmem:[%s8815_s8 + $0x6f] ss:$0 sm:$0xff]  ;;  %v5465_v45 = vld [vmem:[%s8815_s8 + $0x2] ss:$0 sm:$0xff]  ;;  %v5473_v10 = vld [vmem:[%s8815_s8 + $0x2e] ss:$0 sm:$0xff] }
 0x351   : >> { %v3331_v7 = vadd.f32 %v3329_v39, %v3309_v50  ;;  %v3332_v24 = vadd.f32 %v3330_v35, %v3310_v23  ;;  %v5466_v39 = vld [vmem:[%s8815_s8 + $0x3] ss:$0 sm:$0xff]  ;;  %v3439_v43 = vmul.f32 %v5464_v56, %v7936_v18  ;;  %v3440_v27 = vmul.f32 %v5464_v56, %v7939_v4 }
 0x352   : >> { %v3345_v46 = vadd.f32 %v3344_v8, %v3323_v15  ;;  %v3457_v15 = vmul.f32 %v5465_v45, %v7807_v13  ;;  %v3432_v8 = vmul.f32 %v5463_v38, %v7936_v18  ;;  %v3466_v12 = vmul.f32 %v5466_v39, %v7807_v13 }
 0x353   : >> { %v3353_v49 = vadd.f32 %v3351_v17, %v3331_v7  ;;  %v3354_v59 = vadd.f32 %v3352_v63, %v3332_v24  ;;  %v5467_v7 = vld [vmem:[%s8815_s8 + $0xd] ss:$0 sm:$0xff]  ;;  %v5468_v24 = vld [vmem:[%s8815_s8 + $0xe] ss:$0 sm:$0xff]  ;;  %v3458_v17 = vmul.f32 %v5465_v45, %v7810_v21  ;;  %v3467_v63 = vmul.f32 %v5466_v39, %v7810_v21 }
 0x354   : >> { %v3367_v44 = vadd.f32 %v3366_v6, %v3345_v46  ;;  %v3475_v6 = vmul.f32 %v5467_v7, %v7816_v14  ;;  %v3476_v3 = vmul.f32 %v5467_v7, %v7819_v53  ;;  %v3485_v30 = vmul.f32 %v5468_v24, %v7819_v53 }
 0x355   : >> { %v3375_v22 = vadd.f32 %v3373_v1, %v3353_v49  ;;  %v3376_v31 = vadd.f32 %v3374_v5, %v3354_v59  ;;  %v5470_v59 = vld [vmem:[%s8815_s8 + $0x19] ss:$0 sm:$0xff]  ;;  %v5471_v1 = vld [vmem:[%s8815_s8 + $0x23] ss:$0 sm:$0xff]  ;;  %v3484_v5 = vmul.f32 %v5468_v24, %v7816_v14 }
 0x356   : >> { %v3389_v36 = vadd.f32 %v3388_v41, %v3367_v44  ;;  %v3493_v44 = vmul.f32 %v5469_v51, %v7825_v33  ;;  %v3494_v41 = vmul.f32 %v5469_v51, %v7828_v62  ;;  %v3478_v57 = vadd.f32 %v3476_v3, %v3458_v17  ;;  %v5477_v17 = vld [vmem:[%s8815_s8 + $0x44] ss:$0 sm:$0xff] }
 0x357   : >> { %v3397_v60 = vadd.f32 %v3395_v55, %v3375_v22  ;;  %v3398_v54 = vadd.f32 %v3396_v16, %v3376_v31  ;;  %v5472_v22 = vld [vmem:[%s8815_s8 + $0x24] ss:$0 sm:$0xff]  ;;  %v3477_v16 = vadd.f32 %v3475_v6, %v3457_v15  ;;  %v3511_v45 = vmul.f32 %v5471_v1, %v7834_v0 }
 0x358   : >> { %v3411_v50 = vadd.f32 %v3410_v25, %v3389_v36  ;;  %v3486_v36 = vadd.f32 %v3484_v5, %v3466_v12  ;;  %v3503_v25 = vmul.f32 %v5470_v59, %v7828_v62  ;;  %v3496_v56 = vadd.f32 %v3494_v41, %v3478_v57  ;;  %v5479_v5 = vld [vmem:[%s8815_s8 + $0x4f] ss:$0 sm:$0xff] }
 0x359   : >> { %v3419_v23 = vadd.f32 %v3417_v11, %v3397_v60  ;;  %v3420_v35 = vadd.f32 %v3418_v52, %v3398_v54  ;;  %v3487_v60 = vadd.f32 %v3485_v30, %v3467_v63  ;;  %v3502_v54 = vmul.f32 %v5470_v59, %v7825_v33  ;;  %v5474_v11 = vld [vmem:[%s8815_s8 + $0x2f] ss:$0 sm:$0xff] }
 0x35a   : >> { %v7995_v38 = vadd.f32 %v3432_v8, %v3411_v50  ;;  %v3495_v52 = vadd.f32 %v3493_v44, %v3477_v16  ;;  %v5476_v50 = vld [vmem:[%s8815_s8 + $0x3a] ss:$0 sm:$0xff]  ;;  %v3520_v7 = vmul.f32 %v5472_v22, %v7834_v0  ;;  %v3521_v24 = vmul.f32 %v5472_v22, %v7837_v32 }
 0x35b   : >> { %v3441_v46 = vadd.f32 %v3439_v43, %v3419_v23  ;;  %v3442_v49 = vadd.f32 %v3440_v27, %v3420_v35  ;;  %v5475_v23 = vld [vmem:[%s8815_s8 + $0x39] ss:$0 sm:$0xff]  ;;  %v3504_v35 = vadd.f32 %v3502_v54, %v3486_v36  ;;  %v3505_v43 = vadd.f32 %v3503_v25, %v3487_v60  ;;  %v5481_v36 = vld [vmem:[%s8815_s8 + $0x5a] ss:$0 sm:$0xff] }
 0x35c   : >> { %v3512_v27 = vmul.f32 %v5471_v1, %v7837_v32  ;;  %v3513_v15 = vadd.f32 %v3511_v45, %v3495_v52  ;;  %v3529_v8 = vmul.f32 %v5473_v10, %v7846_v28  ;;  %v3530_v63 = vmul.f32 %v5473_v10, %v7849_v26  ;;  %v5482_v52 = vld [vmem:[%s8815_s8 + $0x5b] ss:$0 sm:$0xff] }
 0x35d   : >> { %v3447_v31 = vrot.slane %v3441_v46, 1  ;;  %v3448_v55 = vrot.slane %v3442_v49, 1  ;;  %v3538_v51 = vmul.f32 %v5474_v11, %v7846_v28  ;;  %v3539_v46 = vmul.f32 %v5474_v11, %v7849_v26  ;;  %v5478_v49 = vld [vmem:[%s8815_s8 + $0x45] ss:$0 sm:$0xff] }
 0x35e   : >> { %v3514_v12 = vadd.f32 %v3512_v27, %v3496_v56  ;;  %v3522_v6 = vadd.f32 %v3520_v7, %v3504_v35  ;;  %v3523_v3 = vadd.f32 %v3521_v24, %v3505_v43  ;;  %v3531_v59 = vadd.f32 %v3529_v8, %v3513_v15  ;;  %v5483_v43 = vld [vmem:[%s8815_s8 + $0x65] ss:$0 sm:$0xff]  ;;  %v5484_v24 = vld [vmem:[%s8815_s8 + $0x66] ss:$0 sm:$0xff] }
 0x35f   : >> { %v8002_v39 = vsel %vm3446_vm5, %v3447_v31, %v3448_v55  ;;  %v3547_v1 = vmul.f32 %v5475_v23, %v7861_v48  ;;  %v3548_v44 = vmul.f32 %v5475_v23, %v7865_v20  ;;  %v3556_v41 = vmul.f32 %v5476_v50, %v7861_v48  ;;  %v5480_v31 = vld [vmem:[%s8815_s8 + $0x50] ss:$0 sm:$0xff] }
 0x360   : >> { %v3532_v30 = vadd.f32 %v3530_v63, %v3514_v12  ;;  %v3557_v22 = vmul.f32 %v5476_v50, %v7865_v20  ;;  %v3540_v55 = vadd.f32 %v3538_v51, %v3522_v6  ;;  %v3541_v16 = vadd.f32 %v3539_v46, %v3523_v3  ;;  %v5485_v51 = vld [vmem:[%s8815_s8 + $0x70] ss:$0 sm:$0xff] }
 0x361   : >> { %v3549_v57 = vadd.f32 %v3547_v1, %v3531_v59  ;;  %v3565_v10 = vmul.f32 %v5477_v17, %v7877_v9  ;;  %v3566_v54 = vmul.f32 %v5477_v17, %v7880_v19  ;;  %v3574_v25 = vmul.f32 %v5478_v49, %v7877_v9  ;;  %v5486_v59 = vld [vmem:[%s8815_s8 + $0x71] ss:$0 sm:$0xff] }
 0x362   : >> { %v3550_v60 = vadd.f32 %v3548_v44, %v3532_v30  ;;  %v3575_v11 = vmul.f32 %v5478_v49, %v7880_v19  ;;  %v3558_v56 = vadd.f32 %v3556_v41, %v3540_v55  ;;  %v3559_v45 = vadd.f32 %v3557_v22, %v3541_v16  ;;  %v5487_v41 = vld [vmem:[%s8815_s8 + $0x4] ss:$0 sm:$0xff] }
 0x363   : >> { %v3567_v23 = vadd.f32 %v3565_v10, %v3549_v57  ;;  %v3583_v35 = vmul.f32 %v5479_v5, %v7891_v47  ;;  %v3584_v50 = vmul.f32 %v5479_v5, %v7894_v40  ;;  %v3592_v15 = vmul.f32 %v5480_v31, %v7891_v47  ;;  %v5488_v57 = vld [vmem:[%s8815_s8 + $0x5] ss:$0 sm:$0xff] }
 0x364   : >> { %v3568_v27 = vadd.f32 %v3566_v54, %v3550_v60  ;;  %v3593_v7 = vmul.f32 %v5480_v31, %v7894_v40  ;;  %v3576_v8 = vadd.f32 %v3574_v25, %v3558_v56  ;;  %v3577_v17 = vadd.f32 %v3575_v11, %v3559_v45  ;;  %v5489_v25 = vld [vmem:[%s8815_s8 + $0xf] ss:$0 sm:$0xff] }
 0x365   : >> { %v3585_v12 = vadd.f32 %v3583_v35, %v3567_v23  ;;  %v3601_v63 = vmul.f32 %v5481_v36, %v7906_v34  ;;  %v3602_v49 = vmul.f32 %v5481_v36, %v7910_v37  ;;  %v3610_v6 = vmul.f32 %v5482_v52, %v7906_v34  ;;  %v5490_v23 = vld [vmem:[%s8815_s8 + $0x10] ss:$0 sm:$0xff] }
 0x366   : >> { %v3586_v46 = vadd.f32 %v3584_v50, %v3568_v27  ;;  %v3611_v3 = vmul.f32 %v5482_v52, %v7910_v37  ;;  %v3594_v1 = vadd.f32 %v3592_v15, %v3576_v8  ;;  %v3595_v5 = vadd.f32 %v3593_v7, %v3577_v17  ;;  %v5491_v15 = vld [vmem:[%s8815_s8 + $0x1a] ss:$0 sm:$0xff] }
 0x367   : >> { %v3603_v30 = vadd.f32 %v3601_v63, %v3585_v12  ;;  %v3619_v44 = vmul.f32 %v5483_v43, %v7922_v42  ;;  %v3620_v31 = vmul.f32 %v5483_v43, %v7925_v29  ;;  %v3628_v55 = vmul.f32 %v5484_v24, %v7922_v42 }
 0x368   : >> { %v3604_v22 = vadd.f32 %v3602_v49, %v3586_v46  ;;  %v3629_v16 = vmul.f32 %v5484_v24, %v7925_v29  ;;  %v3612_v10 = vadd.f32 %v3610_v6, %v3594_v1  ;;  %v3613_v36 = vadd.f32 %v3611_v3, %v3595_v5  ;;  %v5492_v49 = vld [vmem:[%s8815_s8 + $0x1b] ss:$0 sm:$0xff]  ;;  %v5493_v5 = vld [vmem:[%s8815_s8 + $0x25] ss:$0 sm:$0xff] }
 0x369   : >> { %v3621_v60 = vadd.f32 %v3619_v44, %v3603_v30  ;;  %v3637_v54 = vmul.f32 %v5485_v51, %v7936_v18  ;;  %v3638_v52 = vmul.f32 %v5485_v51, %v7939_v4  ;;  %v3646_v56 = vmul.f32 %v5486_v59, %v7936_v18 }
 0x36a   : >> { %v3622_v11 = vadd.f32 %v3620_v31, %v3604_v22  ;;  %v3647_v45 = vmul.f32 %v5486_v59, %v7939_v4  ;;  %v3630_v35 = vadd.f32 %v3628_v55, %v3612_v10  ;;  %v3631_v43 = vadd.f32 %v3629_v16, %v3613_v36  ;;  %v5494_v22 = vld [vmem:[%s8815_s8 + $0x26] ss:$0 sm:$0xff]  ;;  %v5495_v10 = vld [vmem:[%s8815_s8 + $0x30] ss:$0 sm:$0xff] }
 0x36b   : >> { %v3639_v27 = vadd.f32 %v3637_v54, %v3621_v60  ;;  %v3671_v50 = vmul.f32 %v5487_v41, %v7807_v13  ;;  %v3672_v24 = vmul.f32 %v5487_v41, %v7810_v21  ;;  %v3680_v8 = vmul.f32 %v5488_v57, %v7807_v13  ;;  %v5496_v54 = vld [vmem:[%s8815_s8 + $0x31] ss:$0 sm:$0xff] }
 0x36c   : >> { %v3640_v7 = vadd.f32 %v3638_v52, %v3622_v11  ;;  %v3681_v17 = vmul.f32 %v5488_v57, %v7810_v21  ;;  %v8087_v12 = vadd.f32 %v3646_v56, %v3630_v35  ;;  %v8089_v63 = vadd.f32 %v3647_v45, %v3631_v43  ;;  %v5497_v45 = vld [vmem:[%s8815_s8 + $0x3b] ss:$0 sm:$0xff] }
 0x36d   : >> { %v3653_v51 = vrot.slane %v3639_v27, 2  ;;  %v3689_v46 = vmul.f32 %v5489_v25, %v7816_v14  ;;  %v3690_v3 = vmul.f32 %v5489_v25, %v7819_v53  ;;  %v3698_v59 = vmul.f32 %v5490_v23, %v7816_v14 }
 0x36e   : >> { %v3654_v6 = vrot.slane %v3640_v7, 2  ;;  %v3699_v1 = vmul.f32 %v5490_v23, %v7819_v53  ;;  %v3451_v30 = vadd.f32 %v8002_v39, %v7995_v38  ;;  %v3707_v41 = vmul.f32 %v5491_v15, %v7825_v33 }
 0x36f   : >> { %v3691_v44 = vadd.f32 %v3689_v46, %v3671_v50  ;;  %v3692_v55 = vadd.f32 %v3690_v3, %v3672_v24  ;;  %v3700_v16 = vadd.f32 %v3698_v59, %v3680_v8  ;;  %v3661_v36 = vrot.slane %v8087_v12, 3  ;;  %v5498_v50 = vld [vmem:[%s8815_s8 + $0x3c] ss:$0 sm:$0xff]  ;;  %v5500_v3 = vld [vmem:[%s8815_s8 + $0x47] ss:$0 sm:$0xff] }
 0x370   : >> { %v3655_v31 = vsel %vm3652_vm6, %v3653_v51, %v3654_v6  ;;  %v3701_v57 = vadd.f32 %v3699_v1, %v3681_v17  ;;  %v3662_v38 = vrot.slane %v8089_v63, 3  ;;  %v3708_v39 = vmul.f32 %v5491_v15, %v7828_v62  ;;  %v5499_v17 = vld [vmem:[%s8815_s8 + $0x46] ss:$0 sm:$0xff]  ;;  %v5513_v63 = vld [vmem:[%s8815_s8 + $0x1c] ss:$0 sm:$0xff] }
 0x371   : >> { %v3709_v60 = vadd.f32 %v3707_v41, %v3691_v44  ;;  %v3716_v25 = vmul.f32 %v5492_v49, %v7825_v33  ;;  %v3717_v11 = vmul.f32 %v5492_v49, %v7828_v62  ;;  %v3725_v52 = vmul.f32 %v5493_v5, %v7834_v0  ;;  %v5501_v44 = vld [vmem:[%s8815_s8 + $0x51] ss:$0 sm:$0xff] }
 0x372   : >> { %v3726_v56 = vmul.f32 %v5493_v5, %v7837_v32  ;;  %v8124_v23 = vadd.f32 %v3655_v31, %v3451_v30  ;;  %v3710_v35 = vadd.f32 %v3708_v39, %v3692_v55  ;;  %v3734_v43 = vmul.f32 %v5494_v22, %v7834_v0 }
 0x373   : >> { %v3735_v27 = vmul.f32 %v5494_v22, %v7837_v32  ;;  %v3718_v15 = vadd.f32 %v3716_v25, %v3700_v16  ;;  %v3719_v7 = vadd.f32 %v3717_v11, %v3701_v57  ;;  %v3727_v24 = vadd.f32 %v3725_v52, %v3709_v60  ;;  %v5502_v16 = vld [vmem:[%s8815_s8 + $0x52] ss:$0 sm:$0xff] }
 0x374   : >> { %v3743_v8 = vmul.f32 %v5495_v10, %v7846_v28  ;;  %v3728_v51 = vadd.f32 %v3726_v56, %v3710_v35  ;;  %v3744_v46 = vmul.f32 %v5495_v10, %v7849_v26  ;;  %v3752_v49 = vmul.f32 %v5496_v54, %v7846_v28 }
 0x375   : >> { %v3753_v6 = vmul.f32 %v5496_v54, %v7849_v26  ;;  %v3736_v59 = vadd.f32 %v3734_v43, %v3718_v15  ;;  %v3737_v1 = vadd.f32 %v3735_v27, %v3719_v7  ;;  %v3761_v30 = vmul.f32 %v5497_v45, %v7861_v48  ;;  %v5503_v54 = vld [vmem:[%s8815_s8 + $0x5c] ss:$0 sm:$0xff]  ;;  %v5505_v15 = vld [vmem:[%s8815_s8 + $0x67] ss:$0 sm:$0xff] }
 0x376   : >> { %v3745_v5 = vadd.f32 %v3743_v8, %v3727_v24  ;;  %v3746_v41 = vadd.f32 %v3744_v46, %v3728_v51  ;;  %v3762_v22 = vmul.f32 %v5497_v45, %v7865_v20  ;;  %v3770_v31 = vmul.f32 %v5498_v50, %v7861_v48  ;;  %v5504_v45 = vld [vmem:[%s8815_s8 + $0x5d] ss:$0 sm:$0xff]  ;;  %v5506_v51 = vld [vmem:[%s8815_s8 + $0x68] ss:$0 sm:$0xff] }
 0x377   : >> { %v3771_v55 = vmul.f32 %v5498_v50, %v7865_v20  ;;  %v3754_v57 = vadd.f32 %v3752_v49, %v3736_v59  ;;  %v3755_v10 = vadd.f32 %v3753_v6, %v3737_v1  ;;  %v3779_v60 = vmul.f32 %v5499_v17, %v7877_v9  ;;  %v5507_v59 = vld [vmem:[%s8815_s8 + $0x72] ss:$0 sm:$0xff] }
 0x378   : >> { %v3763_v39 = vadd.f32 %v3761_v30, %v3745_v5  ;;  %v3764_v25 = vadd.f32 %v3762_v22, %v3746_v41  ;;  %v3780_v11 = vmul.f32 %v5499_v17, %v7880_v19  ;;  %v3788_v52 = vmul.f32 %v5500_v3, %v7877_v9  ;;  %v5508_v41 = vld [vmem:[%s8815_s8 + $0x73] ss:$0 sm:$0xff] }
 0x379   : >> { %v3789_v56 = vmul.f32 %v5500_v3, %v7880_v19  ;;  %v3772_v35 = vadd.f32 %v3770_v31, %v3754_v57  ;;  %v3773_v43 = vadd.f32 %v3771_v55, %v3755_v10  ;;  %v3797_v50 = vmul.f32 %v5501_v44, %v7891_v47 }
 0x37a   : >> { %v3781_v27 = vadd.f32 %v3779_v60, %v3763_v39  ;;  %v3782_v7 = vadd.f32 %v3780_v11, %v3764_v25  ;;  %v3798_v24 = vmul.f32 %v5501_v44, %v7894_v40  ;;  %v3806_v8 = vmul.f32 %v5502_v16, %v7891_v47 }
 0x37b   : >> { %v3807_v17 = vmul.f32 %v5502_v16, %v7894_v40  ;;  %v3790_v46 = vadd.f32 %v3788_v52, %v3772_v35  ;;  %v3791_v49 = vadd.f32 %v3789_v56, %v3773_v43  ;;  %v3815_v3 = vmul.f32 %v5503_v54, %v7906_v34 }
 0x37c   : >> { %v3799_v6 = vadd.f32 %v3797_v50, %v3781_v27  ;;  %v3800_v1 = vadd.f32 %v3798_v24, %v3782_v7  ;;  %v3816_v5 = vmul.f32 %v5503_v54, %v7910_v37  ;;  %v3824_v30 = vmul.f32 %v5504_v45, %v7906_v34  ;;  %v5509_v54 = vld [vmem:[%s8815_s8 + $0x6] ss:$0 sm:$0xff] }
 0x37d   : >> { %v3825_v44 = vmul.f32 %v5504_v45, %v7910_v37  ;;  %v3808_v22 = vadd.f32 %v3806_v8, %v3790_v46  ;;  %v3809_v31 = vadd.f32 %v3807_v17, %v3791_v49  ;;  %v3833_v16 = vmul.f32 %v5505_v15, %v7922_v42  ;;  %v5510_v45 = vld [vmem:[%s8815_s8 + $0x7] ss:$0 sm:$0xff] }
 0x37e   : >> { %v3817_v55 = vadd.f32 %v3815_v3, %v3799_v6  ;;  %v3818_v57 = vadd.f32 %v3816_v5, %v3800_v1  ;;  %v3834_v10 = vmul.f32 %v5505_v15, %v7925_v29  ;;  %v3842_v39 = vmul.f32 %v5506_v51, %v7922_v42  ;;  %v5511_v15 = vld [vmem:[%s8815_s8 + $0x11] ss:$0 sm:$0xff] }
 0x37f   : >> { %v3843_v60 = vmul.f32 %v5506_v51, %v7925_v29  ;;  %v3826_v25 = vadd.f32 %v3824_v30, %v3808_v22  ;;  %v3827_v11 = vadd.f32 %v3825_v44, %v3809_v31  ;;  %v3851_v56 = vmul.f32 %v5507_v59, %v7936_v18  ;;  %v5512_v51 = vld [vmem:[%s8815_s8 + $0x12] ss:$0 sm:$0xff]  ;;  %v5515_v44 = vld [vmem:[%s8815_s8 + $0x27] ss:$0 sm:$0xff] }
 0x380   : >> { %v3835_v52 = vadd.f32 %v3833_v16, %v3817_v55  ;;  %v3836_v35 = vadd.f32 %v3834_v10, %v3818_v57  ;;  %v3852_v43 = vmul.f32 %v5507_v59, %v7939_v4  ;;  %v3860_v27 = vmul.f32 %v5508_v41, %v7936_v18 }
 0x381   : >> { %v3861_v50 = vmul.f32 %v5508_v41, %v7939_v4  ;;  %v3663_v7 = vsel %vm3660_vm7, %v3661_v36, %v3662_v38  ;;  %v3844_v24 = vadd.f32 %v3842_v39, %v3826_v25  ;;  %v3845_v8 = vadd.f32 %v3843_v60, %v3827_v11  ;;  %v5514_v38 = vld [vmem:[%s8815_s8 + $0x1d] ss:$0 sm:$0xff] }
 0x382   : >> { %v3853_v17 = vadd.f32 %v3851_v56, %v3835_v52  ;;  %v3854_v46 = vadd.f32 %v3852_v43, %v3836_v35  ;;  %v3885_v49 = vmul.f32 %v5509_v54, %v7807_v13  ;;  %v3886_v6 = vmul.f32 %v5509_v54, %v7810_v21 }
 0x383   : >> { %v8211_v3 = vadd.f32 %v3860_v27, %v3844_v24  ;;  %v8213_v12 = vadd.f32 %v3861_v50, %v3845_v8  ;;  %v3894_v36 = vmul.f32 %v5510_v45, %v7807_v13  ;;  %v8220_v59 = vadd.f32 %v3663_v7, %v8124_v23  ;;  %v5516_v13 = vld [vmem:[%s8815_s8 + $0x28] ss:$0 sm:$0xff]  ;;  %v5519_v27 = vld [vmem:[%s8815_s8 + $0x3d] ss:$0 sm:$0xff]  ;;  %v5520_v50 = vld [vmem:[%s8815_s8 + $0x3e] ss:$0 sm:$0xff] }
 0x384   : >> { %v3895_v1 = vmul.f32 %v5510_v45, %v7810_v21  ;;  %v3903_v5 = vmul.f32 %v5511_v15, %v7816_v14  ;;  %v3904_v30 = vmul.f32 %v5511_v15, %v7819_v53  ;;  %v3867_v41 = vrot.slane %v3853_v17, 4  ;;  %v5517_v21 = vld [vmem:[%s8815_s8 + $0x32] ss:$0 sm:$0xff] }
 0x385   : >> { %v3868_v22 = vrot.slane %v3854_v46, 4  ;;  %v3912_v31 = vmul.f32 %v5512_v51, %v7816_v14  ;;  %v3913_v23 = vmul.f32 %v5512_v51, %v7819_v53  ;;  %v3921_v57 = vmul.f32 %v5513_v63, %v7825_v33  ;;  %v5518_v14 = vld [vmem:[%s8815_s8 + $0x33] ss:$0 sm:$0xff]  ;;  %v5521_v51 = vld [vmem:[%s8815_s8 + $0x48] ss:$0 sm:$0xff] }
 0x386   : >> { %v3905_v55 = vadd.f32 %v3903_v5, %v3885_v49  ;;  %v3906_v16 = vadd.f32 %v3904_v30, %v3886_v6  ;;  %v3875_v10 = vrot.slane %v8211_v3, 5  ;;  %v3876_v39 = vrot.slane %v8213_v12, 5  ;;  %v5522_v46 = vld [vmem:[%s8815_s8 + $0x49] ss:$0 sm:$0xff]  ;;  %v5523_v5 = vld [vmem:[%s8815_s8 + $0x53] ss:$0 sm:$0xff] }
 0x387   : >> { %v3914_v60 = vadd.f32 %v3912_v31, %v3894_v36  ;;  %v3915_v54 = vadd.f32 %v3913_v23, %v3895_v1  ;;  %v3922_v53 = vmul.f32 %v5513_v63, %v7828_v62  ;;  %v3930_v11 = vmul.f32 %v5514_v38, %v7825_v33  ;;  %v5524_v30 = vld [vmem:[%s8815_s8 + $0x54] ss:$0 sm:$0xff]  ;;  %v5533_v3 = vld [vmem:[%s8815_s8 + $0x13] ss:$0 sm:$0xff] }
 0x388   : >> { %v3923_v25 = vadd.f32 %v3921_v57, %v3905_v55  ;;  %v3931_v52 = vmul.f32 %v5514_v38, %v7828_v62  ;;  %v3869_v56 = vsel %vm3866_vm8, %v3867_v41, %v3868_v22  ;;  %v3939_v45 = vmul.f32 %v5515_v44, %v7834_v0  ;;  %v5526_v55 = vld [vmem:[%s8815_s8 + $0x5f] ss:$0 sm:$0xff] }
 0x389   : >> { %v3940_v35 = vmul.f32 %v5515_v44, %v7837_v32  ;;  %v3948_v43 = vmul.f32 %v5516_v13, %v7834_v0  ;;  %v3924_v15 = vadd.f32 %v3922_v53, %v3906_v16  ;;  %v3932_v7 = vadd.f32 %v3930_v11, %v3914_v60 }
 0x38a   : >> { %v3933_v33 = vadd.f32 %v3931_v52, %v3915_v54  ;;  %v3949_v62 = vmul.f32 %v5516_v13, %v7837_v32  ;;  %v3941_v24 = vadd.f32 %v3939_v45, %v3923_v25  ;;  %v3957_v8 = vmul.f32 %v5517_v21, %v7846_v28 }
 0x38b   : >> { %v3958_v17 = vmul.f32 %v5517_v21, %v7849_v26  ;;  %v3966_v0 = vmul.f32 %v5518_v14, %v7846_v28  ;;  %v3942_v49 = vadd.f32 %v3940_v35, %v3924_v15  ;;  %v3950_v6 = vadd.f32 %v3948_v43, %v3932_v7  ;;  %v5525_v21 = vld [vmem:[%s8815_s8 + $0x5e] ss:$0 sm:$0xff]  ;;  %v5527_v35 = vld [vmem:[%s8815_s8 + $0x69] ss:$0 sm:$0xff] }
 0x38c   : >> { %v3951_v63 = vadd.f32 %v3949_v62, %v3933_v33  ;;  %v3967_v32 = vmul.f32 %v5518_v14, %v7849_v26  ;;  %v3959_v36 = vadd.f32 %v3957_v8, %v3941_v24  ;;  %v3975_v38 = vmul.f32 %v5519_v27, %v7861_v48  ;;  %v5531_v24 = vld [vmem:[%s8815_s8 + $0x8] ss:$0 sm:$0xff] }
 0x38d   : >> { %v3976_v1 = vmul.f32 %v5519_v27, %v7865_v20  ;;  %v3984_v28 = vmul.f32 %v5520_v50, %v7861_v48  ;;  %v3960_v44 = vadd.f32 %v3958_v17, %v3942_v49  ;;  %v3968_v13 = vadd.f32 %v3966_v0, %v3950_v6  ;;  %v5529_v17 = vld [vmem:[%s8815_s8 + $0x74] ss:$0 sm:$0xff]  ;;  %v5530_v6 = vld [vmem:[%s8815_s8 + $0x75] ss:$0 sm:$0xff] }
 0x38e   : >> { %v3969_v41 = vadd.f32 %v3967_v32, %v3951_v63  ;;  %v3985_v26 = vmul.f32 %v5520_v50, %v7865_v20  ;;  %v3977_v22 = vadd.f32 %v3975_v38, %v3959_v36  ;;  %v3993_v31 = vmul.f32 %v5521_v51, %v7877_v9  ;;  %v8331_v63 = vld [vmem:[%s7804_s3 + $0x28] sm:$0xff] }
 0x38f   : >> { %v3994_v23 = vmul.f32 %v5521_v51, %v7880_v19  ;;  %v4002_v48 = vmul.f32 %v5522_v46, %v7877_v9  ;;  %v3978_v16 = vadd.f32 %v3976_v1, %v3960_v44  ;;  %v3986_v57 = vadd.f32 %v3984_v28, %v3968_v13  ;;  %v8336_v36 = vld [vmem:[%s7804_s3 + $0x8] sm:$0xff]  ;;  %v5535_v1 = vld [vmem:[%s8815_s8 + $0x1e] ss:$0 sm:$0xff]  ;;  %v8349_v44 = vld [vmem:[%s7804_s3 + $0x40] sm:$0xff] }
 0x390   : >> { %v3987_v60 = vadd.f32 %v3985_v26, %v3969_v41  ;;  %v4003_v20 = vmul.f32 %v5522_v46, %v7880_v19  ;;  %v3995_v54 = vadd.f32 %v3993_v31, %v3977_v22  ;;  %v4011_v14 = vmul.f32 %v5523_v5, %v7891_v47  ;;  %v8353_v26 = vld [vmem:[%s7804_s3 + $0x20] sm:$0xff] }
 0x391   : >> { %v4012_v53 = vmul.f32 %v5523_v5, %v7894_v40  ;;  %v4020_v9 = vmul.f32 %v5524_v30, %v7891_v47  ;;  %v3996_v25 = vadd.f32 %v3994_v23, %v3978_v16  ;;  %v4004_v11 = vadd.f32 %v4002_v48, %v3986_v57  ;;  %v5537_v23 = vld [vmem:[%s8815_s8 + $0x29] ss:$0 sm:$0xff]  ;;  %v5538_v57 = vld [vmem:[%s8815_s8 + $0x2a] ss:$0 sm:$0xff] }
 0x392   : >> { %v4005_v52 = vadd.f32 %v4003_v20, %v3987_v60  ;;  %v4021_v45 = vmul.f32 %v5524_v30, %v7894_v40  ;;  %v4013_v43 = vadd.f32 %v4011_v14, %v3995_v54  ;;  %v4029_v27 = vmul.f32 %v5525_v21, %v7906_v34  ;;  %v5528_v40 = vld [vmem:[%s8815_s8 + $0x6a] ss:$0 sm:$0xff]  ;;  %v5539_v60 = vld [vmem:[%s8815_s8 + $0x34] ss:$0 sm:$0xff]  ;;  %v8369_v20 = vld [vmem:[%s7804_s3 + $0x58] sm:$0xff] }
 0x393   : >> { %v4030_v19 = vmul.f32 %v5525_v21, %v7910_v37  ;;  %v4038_v50 = vmul.f32 %v5526_v55, %v7906_v34  ;;  %v4014_v15 = vadd.f32 %v4012_v53, %v3996_v25  ;;  %v4022_v7 = vadd.f32 %v4020_v9, %v4004_v11  ;;  %v8372_v53 = vld [vmem:[%s7804_s3 + $0x38] sm:$0xff]  ;;  %v5540_v25 = vld [vmem:[%s8815_s8 + $0x35] ss:$0 sm:$0xff] }
 0x394   : >> { %v4023_v47 = vadd.f32 %v4021_v45, %v4005_v52  ;;  %v4039_v33 = vmul.f32 %v5526_v55, %v7910_v37  ;;  %v3871_v62 = vadd.f32 %v3869_v56, %v8220_v59  ;;  %v3877_v34 = vsel %vm3874_vm9, %v3875_v10, %v3876_v39  ;;  %v5532_v59 = vld [vmem:[%s8815_s8 + $0x9] ss:$0 sm:$0xff]  ;;  %v5534_v10 = vld [vmem:[%s8815_s8 + $0x14] ss:$0 sm:$0xff] }
 0x395   : >> { %v4031_v8 = vadd.f32 %v4029_v27, %v4013_v43  ;;  %v4047_v37 = vmul.f32 %v5527_v35, %v7922_v42  ;;  %v4032_v56 = vadd.f32 %v4030_v19, %v4014_v15  ;;  %v4048_v12 = vmul.f32 %v5527_v35, %v7925_v29  ;;  %v8323_v39 = vld [vmem:[%s7804_s3 + $0x10] sm:$0xff]  ;;  %v5541_v27 = vld [vmem:[%s8815_s8 + $0x3f] ss:$0 sm:$0xff]  ;;  %v5542_v19 = vld [vmem:[%s8815_s8 + $0x40] ss:$0 sm:$0xff] }
 0x396   : >> { %v4040_v0 = vadd.f32 %v4038_v50, %v4022_v7  ;;  %v4041_v51 = vadd.f32 %v4039_v33, %v4023_v47  ;;  %v4056_v46 = vmul.f32 %v5528_v40, %v7922_v42  ;;  %v4057_v49 = vmul.f32 %v5528_v40, %v7925_v29  ;;  %v5536_v42 = vld [vmem:[%s8815_s8 + $0x1f] ss:$0 sm:$0xff]  ;;  %v8380_v11 = vld [vmem:[%s7804_s3 + $0x70] sm:$0xff]  ;;  %v5543_v33 = vld [vmem:[%s8815_s8 + $0x4a] ss:$0 sm:$0xff] }
 0x397   : >> { %v8333_v32 = vadd.f32 %v3877_v34, %v3871_v62  ;;  %v4099_v38 = vmul.f32 %v8336_v36, %v5531_v24  ;;  %v4049_v29 = vadd.f32 %v4047_v37, %v4031_v8  ;;  %v4065_v28 = vmul.f32 %v5529_v17, %v7936_v18  ;;  %v8395_v47 = vld [vmem:[%s7804_s3 + $0x50] sm:$0xff]  ;;  %v8402_v40 = vld [vmem:[%s7804_s3 + $0x88] sm:$0xff] }
 0x398   : >> { %v4066_v5 = vmul.f32 %v5529_v17, %v7939_v4  ;;  %v4106_v30 = vmul.f32 %v8336_v36, %v5532_v59  ;;  %v4050_v13 = vadd.f32 %v4048_v12, %v4032_v56  ;;  %v4107_v41 = vmul.f32 %v5532_v59, %v8323_v39  ;;  %v8407_v8 = vld [vmem:[%s7804_s3 + $0x68] sm:$0xff]  ;;  %v8414_v59 = vld [vmem:[%s7804_s3 + $0xa0] sm:$0xff] }
 0x399   : >> { %v4115_v22 = vmul.f32 %v8353_v26, %v5533_v3  ;;  %v4122_v31 = vmul.f32 %v8353_v26, %v5534_v10  ;;  %v4058_v48 = vadd.f32 %v4056_v46, %v4040_v0  ;;  %v4059_v21 = vadd.f32 %v4057_v49, %v4041_v51  ;;  %v5544_v17 = vld [vmem:[%s8815_s8 + $0x4b] ss:$0 sm:$0xff]  ;;  %v8421_v46 = vld [vmem:[%s7804_s3 + $0x80] sm:$0xff] }
 0x39a   : >> { %v4074_v55 = vmul.f32 %v5530_v6, %v7936_v18  ;;  %v4123_v16 = vmul.f32 %v5534_v10, %v8331_v63  ;;  %v4131_v9 = vmul.f32 %v8372_v53, %v5535_v1  ;;  %v4138_v18 = vmul.f32 %v8372_v53, %v5536_v42  ;;  %v8429_v1 = vld [vmem:[%s7804_s3 + $0xb8] sm:$0xff] }
 0x39b   : >> { %v4116_v54 = vadd.f32 %v4115_v22, %v4099_v38  ;;  %v4124_v14 = vadd.f32 %v4122_v31, %v4106_v30  ;;  %v8382_v52 = vadd.f32 %v4065_v28, %v4049_v29  ;;  %v4075_v45 = vmul.f32 %v5530_v6, %v7939_v4  ;;  %v5546_v38 = vld [vmem:[%s8815_s8 + $0x56] ss:$0 sm:$0xff] }
 0x39c   : >> { %v4125_v35 = vadd.f32 %v4123_v16, %v4107_v41  ;;  %v4139_v43 = vmul.f32 %v5536_v42, %v8349_v44  ;;  %v8392_v50 = vadd.f32 %v4066_v5, %v4050_v13  ;;  %v4147_v4 = vmul.f32 %v8395_v47, %v5537_v23  ;;  %v8435_v5 = vld [vmem:[%s7804_s3 + $0x98] sm:$0xff]  ;;  %v5545_v13 = vld [vmem:[%s8815_s8 + $0x55] ss:$0 sm:$0xff]  ;;  %v5547_v41 = vld [vmem:[%s8815_s8 + $0x60] ss:$0 sm:$0xff] }
 0x39d   : >> { %v4132_v15 = vadd.f32 %v4131_v9, %v4116_v54  ;;  %v4140_v7 = vadd.f32 %v4138_v18, %v4124_v14  ;;  %v4154_v24 = vmul.f32 %v8395_v47, %v5538_v57  ;;  %v4155_v34 = vmul.f32 %v5538_v57, %v8369_v20  ;;  %v8453_v16 = vld [vmem:[%s7804_s3 + $0xd0] sm:$0xff]  ;;  %v5553_v9 = vld [vmem:[%s8815_s8 + $0xa] ss:$0 sm:$0xff] }
 0x39e   : >> { %v4141_v62 = vadd.f32 %v4139_v43, %v4125_v35  ;;  %v4163_v37 = vmul.f32 %v8407_v8, %v5539_v60  ;;  %v8416_v56 = vadd.f32 %v4074_v55, %v4058_v48  ;;  %v4170_v3 = vmul.f32 %v8407_v8, %v5540_v25  ;;  %v5550_v55 = vld [vmem:[%s8815_s8 + $0x6c] ss:$0 sm:$0xff]  ;;  %v8465_v35 = vld [vmem:[%s7804_s3 + $0xb0] sm:$0xff] }
 0x39f   : >> { %v4148_v12 = vadd.f32 %v4147_v4, %v4132_v15  ;;  %v4171_v10 = vmul.f32 %v5540_v25, %v8380_v11  ;;  %v4156_v0 = vadd.f32 %v4154_v24, %v4140_v7  ;;  %v4179_v49 = vmul.f32 %v8421_v46, %v5541_v27  ;;  %v8462_v18 = vld [vmem:[%s7804_s3 + $0xe8] sm:$0xff]  ;;  %v5554_v27 = vld [vmem:[%s8815_s8 + $0x15] ss:$0 sm:$0xff] }
 0x3a0   : >> { %v4157_v51 = vadd.f32 %v4155_v34, %v4141_v62  ;;  %v4186_v6 = vmul.f32 %v8421_v46, %v5542_v19  ;;  %v8431_v42 = vadd.f32 %v4075_v45, %v4059_v21  ;;  %v4187_v28 = vmul.f32 %v5542_v19, %v8402_v40  ;;  %v5548_v21 = vld [vmem:[%s8815_s8 + $0x61] ss:$0 sm:$0xff]  ;;  %v8475_v7 = vld [vmem:[%s7804_s3 + $0xc8] sm:$0xff] }
 0x3a1   : >> { %v4164_v29 = vadd.f32 %v4163_v37, %v4148_v12  ;;  %v4195_v30 = vmul.f32 %v8435_v5, %v5543_v33  ;;  %v4172_v22 = vadd.f32 %v4170_v3, %v4156_v0  ;;  %v4202_v23 = vmul.f32 %v8435_v5, %v5544_v17  ;;  %v5555_v33 = vld [vmem:[%s8815_s8 + $0x20] ss:$0 sm:$0xff]  ;;  %v5556_v62 = vld [vmem:[%s8815_s8 + $0x2b] ss:$0 sm:$0xff] }
 0x3a2   : >> { %v4173_v31 = vadd.f32 %v4171_v10, %v4157_v51  ;;  %v4203_v48 = vmul.f32 %v5544_v17, %v8414_v59  ;;  %v4081_v57 = vrot.slane %v8382_v52, 6  ;;  %v4082_v60 = vrot.slane %v8392_v50, 6  ;;  %v5549_v12 = vld [vmem:[%s8815_s8 + $0x6b] ss:$0 sm:$0xff]  ;;  %v8490_v3 = vld [vmem:[%s7804_s3 + $0xe0] sm:$0xff] }
 0x3a3   : >> { %v4089_v54 = vrot.slane %v8416_v56, 7  ;;  %v4180_v14 = vadd.f32 %v4179_v49, %v4164_v29  ;;  %v4188_v25 = vadd.f32 %v4186_v6, %v4172_v22  ;;  %v4218_v52 = vmul.f32 %v8465_v35, %v5546_v38  ;;  %v5552_v51 = vld [vmem:[%s8815_s8 + $0x77] ss:$0 sm:$0xff] }
 0x3a4   : >> { %v4189_v45 = vadd.f32 %v4187_v28, %v4173_v31  ;;  %v4219_v43 = vmul.f32 %v5546_v38, %v8429_v1  ;;  %v4090_v19 = vrot.slane %v8431_v42, 7  ;;  %v4211_v15 = vmul.f32 %v8465_v35, %v5545_v13  ;;  %v4966_v31 = vld [vmem:[%s7804_s3 + $0x100] sm:$0xff] }
 0x3a5   : >> { %v4196_v50 = vadd.f32 %v4195_v30, %v4180_v14  ;;  %v4227_v4 = vmul.f32 %v8475_v7, %v5547_v41  ;;  %v4204_v24 = vadd.f32 %v4202_v23, %v4188_v25  ;;  %v4234_v37 = vmul.f32 %v8475_v7, %v5548_v21  ;;  %v5557_v30 = vld [vmem:[%s8815_s8 + $0x36] ss:$0 sm:$0xff]  ;;  %v5574_v14 = vld [vmem:[%s7804_s3 + $0xf8] sm:$0xff] }
 0x3a6   : >> { %v4205_v34 = vadd.f32 %v4203_v48, %v4189_v45  ;;  %v4235_v17 = vmul.f32 %v5548_v21, %v8453_v16  ;;  %v4250_v10 = vmul.f32 %v8490_v3, %v5550_v55  ;;  %v4251_v0 = vmul.f32 %v5550_v55, %v8462_v18 }
 0x3a7   : >> { %v4283_v49 = vmul.f32 %v8336_v36, %v5553_v9  ;;  %v4284_v6 = vmul.f32 %v5553_v9, %v8323_v39  ;;  %v4220_v38 = vadd.f32 %v4218_v52, %v4204_v24  ;;  %v4292_v29 = vmul.f32 %v8353_v26, %v5554_v27  ;;  %v5559_v52 = vld [vmem:[%s8815_s8 + $0x4c] ss:$0 sm:$0xff] }
 0x3a8   : >> { %v4221_v42 = vadd.f32 %v4219_v43, %v4205_v34  ;;  %v4293_v28 = vmul.f32 %v5554_v27, %v8331_v63  ;;  %v4212_v13 = vadd.f32 %v4211_v15, %v4196_v50  ;;  %v4301_v41 = vmul.f32 %v8372_v53, %v5555_v33  ;;  %v5558_v63 = vld [vmem:[%s8815_s8 + $0x41] ss:$0 sm:$0xff] }
 0x3a9   : >> { %v4302_v22 = vmul.f32 %v5555_v33, %v8349_v44  ;;  %v4310_v36 = vmul.f32 %v8395_v47, %v5556_v62  ;;  %v4236_v39 = vadd.f32 %v4234_v37, %v4220_v38  ;;  %v4294_v48 = vadd.f32 %v4292_v29, %v4283_v49  ;;  %v5563_v38 = vld [vmem:[%s8815_s8 + $0x78] ss:$0 sm:$0xff] }
 0x3aa   : >> { %v4237_v23 = vadd.f32 %v4235_v17, %v4221_v42  ;;  %v4295_v21 = vadd.f32 %v4293_v28, %v4284_v6  ;;  %v4083_v26 = vsel %vm4080_vm10, %v4081_v57, %v4082_v60  ;;  %v4243_v55 = vmul.f32 %v8490_v3, %v5549_v12  ;;  %v5551_v57 = vld [vmem:[%s8815_s8 + $0x76] ss:$0 sm:$0xff] }
 0x3ab   : >> { %v4266_v9 = vmul.f32 %v5574_v14, %v5552_v51  ;;  %v4311_v53 = vmul.f32 %v5556_v62, %v8369_v20  ;;  %v4303_v44 = vadd.f32 %v4301_v41, %v4294_v48  ;;  %v4319_v47 = vmul.f32 %v8407_v8, %v5557_v30 }
 0x3ac   : >> { %v4304_v25 = vadd.f32 %v4302_v22, %v4295_v21  ;;  %v4320_v45 = vmul.f32 %v5557_v30, %v8380_v11  ;;  %v4228_v43 = vadd.f32 %v4227_v4, %v4212_v13  ;;  %v4252_v27 = vadd.f32 %v4250_v10, %v4236_v39  ;;  %v5560_v11 = vld [vmem:[%s8815_s8 + $0x57] ss:$0 sm:$0xff] }
 0x3ad   : >> { %v4253_v50 = vadd.f32 %v4251_v0, %v4237_v23  ;;  %v4267_v60 = vmul.f32 %v5552_v51, %v4966_v31  ;;  %v4312_v15 = vadd.f32 %v4310_v36, %v4303_v44  ;;  %v4328_v33 = vmul.f32 %v8421_v46, %v5558_v63 }
 0x3ae   : >> { %v4313_v20 = vadd.f32 %v4311_v53, %v4304_v25  ;;  %v4329_v8 = vmul.f32 %v5558_v63, %v8402_v40  ;;  %v4085_v62 = vadd.f32 %v4083_v26, %v8333_v32  ;;  %v4091_v4 = vsel %vm4088_vm11, %v4089_v54, %v4090_v19  ;;  %v5561_v40 = vld [vmem:[%s8815_s8 + $0x62] ss:$0 sm:$0xff] }
 0x3af   : >> { %v4321_v24 = vadd.f32 %v4319_v47, %v4312_v15  ;;  %v4337_v37 = vmul.f32 %v8435_v5, %v5559_v52  ;;  %v4338_v17 = vmul.f32 %v5559_v52, %v8414_v59  ;;  %v4244_v46 = vadd.f32 %v4243_v55, %v4228_v43  ;;  %v5562_v5 = vld [vmem:[%s8815_s8 + $0x6d] ss:$0 sm:$0xff]  ;;  %v4401_v52 = vld [vmem:[%s8817_s10 + $0x50] sm:$0xff] (%p3199_p12)  ;;  %v4395_v15 = vld [vmem:[%s8817_s10 + $0x20] sm:$0xff] (%p3199_p12) }
 0x3b0   : >> { %v4322_v34 = vadd.f32 %v4320_v45, %v4313_v20  ;;  %v4259_v12 = vmul.f32 %v5574_v14, %v5551_v57  ;;  %v4268_v10 = vadd.f32 %v4266_v9, %v4252_v27  ;;  %v4269_v0 = vadd.f32 %v4267_v60, %v4253_v50  ;;  %v4404_v47 = vld [vmem:[%s8817_s10 + $0x68] sm:$0xff] (%p3199_p12)  ;;  %v4403_v45 = vld [vmem:[%s8817_s10 + $0x60] sm:$0xff] (%p3199_p12)  ;;  %v4398_v50 = vld [vmem:[%s8817_s10 + $0x38] sm:$0xff] (%p3199_p12) }
 0x3b1   : >> { %v4330_v51 = vadd.f32 %v4328_v33, %v4321_v24  ;;  %v4346_v56 = vmul.f32 %v8465_v35, %v5560_v11  ;;  %v4347_v54 = vmul.f32 %v5560_v11, %v8429_v1  ;;  %v4355_v49 = vmul.f32 %v8475_v7, %v5561_v40  ;;  %v4400_v43 = vld [vmem:[%s8817_s10 + $0x48] sm:$0xff] (%p3199_p12)  ;;  %v4399_v27 = vld [vmem:[%s8817_s10 + $0x40] sm:$0xff] (%p3199_p12)  ;;  %v4397_v57 = vld [vmem:[%s8817_s10 + $0x30] sm:$0xff] (%p3199_p12) }
 0x3b2   : >> { %v4331_v32 = vadd.f32 %v4329_v8, %v4322_v34  ;;  %v4356_v6 = vmul.f32 %v5561_v40, %v8453_v16  ;;  %v4093_v42 = vadd.f32 %v4091_v4, %v4085_v62  ;;  %v4260_v29 = vadd.f32 %v4259_v12, %v4244_v46  ;;  %v4396_v60 = vld [vmem:[%s8817_s10 + $0x28] sm:$0xff] (%p3199_p12)  ;;  %v4425_v20 = vld [vmem:[%s5889_s29] sm:$0xff] (%p3199_p12)  ;;  %v4394_v33 = vld [vmem:[%s8817_s10 + $0x18] sm:$0xff] (%p3199_p12) }
 0x3b3   : >> { %v4339_v19 = vadd.f32 %v4337_v37, %v4330_v51  ;;  %v4273_v28 = vrot.slane %v4268_v10, 1  ;;  %v4274_v35 = vrot.slane %v4269_v0, 1  ;;  %v4364_v13 = vmul.f32 %v8490_v3, %v5562_v5  ;;  %v4393_v8 = vld [vmem:[%s8817_s10 + $0x10] sm:$0xff] (%p3199_p12)  ;;  %v4392_v62 = vld [vmem:[%s8817_s10 + $0x8] sm:$0xff] (%p3199_p12)  ;;  %v4391_v4 = vld [vmem:[%s8817_s10] sm:$0xff] (%p3199_p12) }
 0x3b4   : >> { %v4340_v59 = vadd.f32 %v4338_v17, %v4331_v32  ;;  %v4365_v41 = vmul.f32 %v5562_v5, %v8462_v18  ;;  %v4373_v7 = vmul.f32 %v5574_v14, %v5563_v38  ;;  %v4374_v16 = vmul.f32 %v5563_v38, %v4966_v31  ;;  %v4406_v31 = vld [vmem:[%s8817_s10 + $0x78] sm:$0xff] (%p3199_p12)  ;;  %v4405_v14 = vld [vmem:[%s8817_s10 + $0x70] sm:$0xff] (%p3199_p12)  ;;  %v4427_v40 = vld [vmem:[%s5889_s29 + $0x10] sm:$0xff] (%p3199_p12) }
 0x3b5   : >> { %v4348_v30 = vadd.f32 %v4346_v56, %v4339_v19  ;;  %v4270_v39 = vadd.f32 %v4260_v29, %v4093_v42  ;;  %v4275_v23 = vsel %vm3446_vm5, %v4273_v28, %v4274_v35  ;;  %v4385_v3 = vperm.slane %v7767_v61, 0  ;;  %4476 = vmatpush.msrb.mxu2 (%p3199_p12), %v4406_v31  ;;  %v4402_v61 = vld [vmem:[%s8817_s10 + $0x58] sm:$0xff] (%p3199_p12)  ;;  %v4428_v10 = vld [vmem:[%s5889_s29 + $0x18] sm:$0xff] (%p3199_p12)  ;;  %v4429_v32 = vld [vmem:[%s5889_s29 + $0x20] sm:$0xff] (%p3199_p12) }
 0x3b6   : >> { %v4349_v1 = vadd.f32 %v4347_v54, %v4340_v59  ;;  %v4441_v11 = vmul.f32 (%p3199_p12), %v4425_v20, %v6027_v58  ;;  %v4426_v34 = vld [vmem:[%s5889_s29 + $0x8] sm:$0xff] (%p3199_p12)  ;;  %v4443_v46 = vmul.f32 (%p3199_p12), %v4427_v40, %v6027_v58  ;;  %v4444_v0 = vmul.f32 (%p3199_p12), %v4428_v10, %v6027_v58  ;;  %v4432_v42 = vld [vmem:[%s5889_s29 + $0x38] sm:$0xff] (%p3199_p12)  ;;  %v4433_v35 = vld [vmem:[%s5889_s29 + $0x40] sm:$0xff] (%p3199_p12) }
 0x3b7   : >> { %v4357_v22 = vadd.f32 %v4355_v49, %v4348_v30  ;;  %v4277_v55 = vadd.f32 %v4275_v23, %v4270_v39  ;;  %4477 = vmatpush.msrb.mxu2 (%p3199_p12), %v4405_v14  ;;  %v4442_v37 = vmul.f32 (%p3199_p12), %v4426_v34, %v6027_v58  ;;  %v4445_v56 = vmul.f32 (%p3199_p12), %v4429_v32, %v6027_v58  ;;  %v4430_v5 = vld [vmem:[%s5889_s29 + $0x28] sm:$0xff] (%p3199_p12)  ;;  %v4431_v49 = vld [vmem:[%s5889_s29 + $0x30] sm:$0xff] (%p3199_p12)  ;;  %v4422_v39 = vld [vmem:[%s8819_s12 + $0x70] sm:$0xff] (%p3199_p12) }
 0x3b8   : >> { %v4358_v36 = vadd.f32 %v4356_v6, %v4349_v1  ;;  %v4457_v24 = vadd.f32 (%p3199_p12), %v4441_v11, %v6042_v2  ;;  %v4459_v12 = vadd.f32 (%p3199_p12), %v4443_v46, %v6042_v2  ;;  %v4460_v51 = vadd.f32 (%p3199_p12), %v4444_v0, %v6042_v2  ;;  %v4421_v23 = vld [vmem:[%s8819_s12 + $0x68] sm:$0xff] (%p3199_p12)  ;;  %v4415_v31 = vld [vmem:[%s8819_s12 + $0x38] sm:$0xff] (%p3199_p12)  ;;  %v4414_v14 = vld [vmem:[%s8819_s12 + $0x30] sm:$0xff] (%p3199_p12) }
 0x3b9   : >> { %v4366_v48 = vadd.f32 %v4364_v13, %v4357_v22  ;;  %4478 = vmatpush.msrb.mxu2 (%p3199_p12), %v4404_v47  ;;  %v4458_v17 = vadd.f32 (%p3199_p12), %v4442_v37, %v6042_v2  ;;  %v4461_v54 = vadd.f32 (%p3199_p12), %v4445_v56, %v6042_v2  ;;  %v4446_v19 = vmul.f32 (%p3199_p12), %v4430_v5, %v6027_v58  ;;  %v4434_v13 = vld [vmem:[%s5889_s29 + $0x48] sm:$0xff] (%p3199_p12)  ;;  %v4413_v47 = vld [vmem:[%s8819_s12 + $0x28] sm:$0xff] (%p3199_p12)  ;;  %v4439_v20 = vld [vmem:[%s5889_s29 + $0x70] sm:$0xff] (%p3199_p12) }
 0x3ba   : >> { %v4367_v21 = vadd.f32 %v4365_v41, %v4358_v36  ;;  %v4447_v6 = vmul.f32 (%p3199_p12), %v4431_v49, %v6027_v58  ;;  %v4448_v29 = vmul.f32 (%p3199_p12), %v4432_v42, %v6027_v58  ;;  %v4449_v30 = vmul.f32 (%p3199_p12), %v4433_v35, %v6027_v58  ;;  %v4435_v36 = vld [vmem:[%s5889_s29 + $0x50] sm:$0xff] (%p3199_p12)  ;;  %v4440_v11 = vld [vmem:[%s5889_s29 + $0x78] sm:$0xff] (%p3199_p12) }
 0x3bb   : >> { %v4375_v63 = vadd.f32 %v4373_v7, %v4366_v48  ;;  %4479 = vmatpush.msrb.mxu2 (%p3199_p12), %v4403_v45  ;;  %v4462_v59 = vadd.f32 (%p3199_p12), %v4446_v19, %v6042_v2  ;;  %v4450_v41 = vmul.f32 (%p3199_p12), %v4434_v13, %v6027_v58  ;;  %v4451_v7 = vmul.f32 (%p3199_p12), %v4435_v36, %v6027_v58 }
 0x3bc   : >> { %v4376_v26 = vadd.f32 %v4374_v16, %v4367_v21  ;;  %v4463_v38 = vadd.f32 (%p3199_p12), %v4447_v6, %v6042_v2  ;;  %v4464_v28 = vadd.f32 (%p3199_p12), %v4448_v29, %v6042_v2  ;;  %v4465_v1 = vadd.f32 (%p3199_p12), %v4449_v30, %v6042_v2  ;;  %v4423_v16 = vld [vmem:[%s8819_s12 + $0x78] sm:$0xff] (%p3199_p12)  ;;  %v4420_v21 = vld [vmem:[%s8819_s12 + $0x60] sm:$0xff] (%p3199_p12) }
 0x3bd   : >> { %v4379_v9 = vrot.slane %v4375_v63, 2  ;;  %4480 = vmatpush.msrb.mxu2 (%p3199_p12), %v4402_v61  ;;  %v4466_v22 = vadd.f32 (%p3199_p12), %v4450_v41, %v6042_v2  ;;  %4576 = vmatpush.msrb.mxu1 (%p3199_p12), %v4423_v16  ;;  %v4467_v48 = vadd.f32 (%p3199_p12), %v4451_v7, %v6042_v2  ;;  %v4436_v63 = vld [vmem:[%s5889_s29 + $0x58] sm:$0xff] (%p3199_p12)  ;;  %v4412_v61 = vld [vmem:[%s8819_s12 + $0x20] sm:$0xff] (%p3199_p12) }
 0x3be   : >> { %v4380_v53 = vrot.slane %v4376_v26, 2  ;;  %5106 = vmatpush.msrb.mxu3 (%p3199_p12), %v4423_v16  ;;  %v4452_v26 = vmul.f32 (%p3199_p12), %v4436_v63, %v6027_v58 }
 0x3bf   : > { %4481 = vmatpush.msrb.mxu2 (%p3199_p12), %v4401_v52  ;;  %4577 = vmatpush.msrb.mxu1 (%p3199_p12), %v4422_v39  ;;  %v4438_v52 = vld [vmem:[%s5889_s29 + $0x68] sm:$0xff] (%p3199_p12) }
 0x3c0   : >> { %v4381_v18 = vsel %vm3652_vm6, %v4379_v9, %v4380_v53  ;;  %5107 = vmatpush.msrb.mxu3 (%p3199_p12), %v4422_v39  ;;  %v4418_v9 = vld [vmem:[%s8819_s12 + $0x50] sm:$0xff] (%p3199_p12)  ;;  %v4417_v53 = vld [vmem:[%s8819_s12 + $0x48] sm:$0xff] (%p3199_p12) }
 0x3c1   : >> { %v4383_v44 = vadd.f32 %v4381_v18, %v4277_v55  ;;  %3201 = sbr.rel (!%p3199_p12) target bundleno = 831 (0x33f), region = 388  ;;  %4482 = vmatpush.msrb.mxu2 (%p3199_p12), %v4400_v43  ;;  %4578 = vmatpush.msrb.mxu1 (%p3199_p12), %v4421_v23  ;;  %v4419_v55 = vld [vmem:[%s8819_s12 + $0x58] sm:$0xff] (%p3199_p12)  ;;  %v4416_v18 = vld [vmem:[%s8819_s12 + $0x40] sm:$0xff] (%p3199_p12) }
 0x3c2   : > { %5108 = vmatpush.msrb.mxu3 (%p3199_p12), %v4421_v23  ;;  %v4411_v43 = vld [vmem:[%s8819_s12 + $0x18] sm:$0xff] (%p3199_p12) }
 0x3c3   : >> { %v4387_v25 = vadd.f32 %v4385_v3, %v4383_v44  ;;  %4483 = vmatpush.msrb.mxu2 (%p3199_p12), %v4399_v27  ;;  %4579 = vmatpush.msrb.mxu1 (%p3199_p12), %v4420_v21  ;;  %v4468_v3 = vadd.f32 (%p3199_p12), %v4452_v26, %v6042_v2  ;;  %v4437_v44 = vld [vmem:[%s5889_s29 + $0x60] sm:$0xff] (%p3199_p12)  ;;  %v4454_v27 = vmul.f32 (%p3199_p12), %v4438_v52, %v6027_v58 }
 0x3c4   : > { %5109 = vmatpush.msrb.mxu3 (%p3199_p12), %v4420_v21 }
 0x3c5   : >> { %4390 = vst [vmem:[%s4389_s23] sm:$0xff] %v4387_v25  ;;  %4484 = vmatpush.msrb.mxu2 (%p3199_p12), %v4398_v50  ;;  %4580 = vmatpush.msrb.mxu1 (%p3199_p12), %v4419_v55  ;;  %v4453_v25 = vmul.f32 (%p3199_p12), %v4437_v44, %v6027_v58  ;;  %v4410_v50 = vld [vmem:[%s8819_s12 + $0x10] sm:$0xff] (%p3199_p12) }
 0x3c6   : > { %5110 = vmatpush.msrb.mxu3 %v4419_v55  ;;  %s8763_s24 = scalar_lea.vmem (%p5797_p5), %s8821_s14, %s5830_s19 }
 0x3c7   : > { %4485 = vmatpush.msrb.mxu2 %v4397_v57  ;;  %4581 = vmatpush.msrb.mxu1 %v4418_v9  ;;  %v4469_v45 = vadd.f32 %v4453_v25, %v6042_v2  ;;  %v4470_v57 = vadd.f32 %v4454_v27, %v6042_v2 }
 0x3c8   : > { %5111 = vmatpush.msrb.mxu3 %v4418_v9 }
 0x3c9   : > { %4486 = vmatpush.msrb.mxu2 %v4396_v60  ;;  %4582 = vmatpush.msrb.mxu1 %v4417_v53  ;;  %v4409_v60 = vld [vmem:[%s8819_s12 + $0x8] sm:$0xff] }
 0x3ca   : > { %5112 = vmatpush.msrb.mxu3 %v4417_v53 }
 0x3cb   : > { %4487 = vmatpush.msrb.mxu2 %v4395_v15  ;;  %4583 = vmatpush.msrb.mxu1 %v4416_v18  ;;  %v4408_v15 = vld [vmem:[%s8819_s12] sm:$0xff] }
 0x3cc   : > { %5113 = vmatpush.msrb.mxu3 %v4416_v18  ;;  %v4541_v37 = vld [vmem:[%s5892_s15] sm:$0xff]  ;;  %v4543_v0 = vld [vmem:[%s5892_s15 + $0x10] sm:$0xff]  ;;  %v4546_v29 = vld [vmem:[%s5892_s15 + $0x28] sm:$0xff] }
 0x3cd   : > { %4488 = vmatpush.msrb.mxu2 %v4394_v33  ;;  %4584 = vmatpush.msrb.mxu1 %v4415_v31  ;;  %v4455_v33 = vmul.f32 %v4439_v20, %v6027_v58  ;;  %v4545_v49 = vld [vmem:[%s5892_s15 + $0x20] sm:$0xff]  ;;  %v4548_v36 = vld [vmem:[%s5892_s15 + $0x38] sm:$0xff]  ;;  %v4550_v26 = vld [vmem:[%s5892_s15 + $0x48] sm:$0xff] }
 0x3ce   : > { %5114 = vmatpush.msrb.mxu3 %v4415_v31  ;;  %v4549_v23 = vld [vmem:[%s5892_s15 + $0x40] sm:$0xff]  ;;  %v4552_v31 = vld [vmem:[%s5892_s15 + $0x58] sm:$0xff]  ;;  %v4555_v20 = vld [vmem:[%s5892_s15 + $0x70] sm:$0xff] }
 0x3cf   : > { %4489 = vmatpush.msrb.mxu2 %v4393_v8  ;;  %4585 = vmatpush.msrb.mxu1 %v4414_v14  ;;  %v4471_v8 = vadd.f32 %v4455_v33, %v6042_v2 }
 0x3d0   : > { %5115 = vmatpush.msrb.mxu3 %v4414_v14 }
 0x3d1   : > { %4490 = vmatpush.msrb.mxu2 %v4392_v62  ;;  %4586 = vmatpush.msrb.mxu1 %v4413_v47  ;;  %v4456_v62 = vmul.f32 %v4440_v11, %v6027_v58 }
 0x3d2   : > { %5116 = vmatpush.msrb.mxu3 %v4413_v47 }
 0x3d3   : > { %4491 = vmatpush.msrb.mxu2 %v4391_v4  ;;  %4587 = vmatpush.msrb.mxu1 %v4412_v61  ;;  %v4472_v4 = vadd.f32 %v4456_v62, %v6042_v2  ;;  %v4556_v62 = vld [vmem:[%s5892_s15 + $0x78] sm:$0xff] }
 0x3d4   : > { %4492 = vmatmul.f32.vlgmr.msrb.gmra.mxu2 %v4457_v24  ;;  %5117 = vmatpush.msrb.mxu3 %v4412_v61  ;;  %v8704_v24 = vld [vmem:[%s8818_s11] ss:$0 sm:$0xff]  ;;  %v4553_v61 = vld [vmem:[%s5892_s15 + $0x60] sm:$0xff] }
 0x3d5   : > { %4588 = vmatpush.msrb.mxu1 %v4411_v43 }
 0x3d6   : > { %5118 = vmatpush.msrb.mxu3 %v4411_v43 }
 0x3d7   : > { %4589 = vmatpush.msrb.mxu1 %v4410_v50 }
 0x3d8   : > { %5119 = vmatpush.msrb.mxu3 %v4410_v50  ;;  %v4554_v50 = vld [vmem:[%s5892_s15 + $0x68] sm:$0xff] }
 0x3d9   : > { %4590 = vmatpush.msrb.mxu1 %v4409_v60 }
 0x3da   : > { %5120 = vmatpush.msrb.mxu3 %v4409_v60 }
 0x3db   : > { %4591 = vmatpush.msrb.mxu1 %v4408_v15 }
 0x3dc   : > { %4495 = vmatmul.f32.gmra.mxu2 %v4458_v17  ;;  %5121 = vmatpush.msrb.mxu3 %v4408_v15 }
 0x3e4   : > { %4498 = vmatmul.f32.gmra.mxu2 %v4459_v12  ;;  %v4542_v12 = vld [vmem:[%s5892_s15 + $0x8] sm:$0xff] }
 0x3ec   : > { %4501 = vmatmul.f32.gmra.mxu2 %v4460_v51 }
 0x3f4   : > { %4504 = vmatmul.f32.gmra.mxu2 %v4461_v54  ;;  %v4544_v54 = vld [vmem:[%s5892_s15 + $0x18] sm:$0xff] }
 0x3fc   : > { %4507 = vmatmul.f32.gmra.mxu2 %v4462_v59 }
 0x404   : > { %4510 = vmatmul.f32.gmra.mxu2 %v4463_v38 }
 0x40c   : > { %4513 = vmatmul.f32.gmra.mxu2 %v4464_v28 }
 0x414   : > { %4516 = vmatmul.f32.gmra.mxu2 %v4465_v1  ;;  %v4547_v1 = vld [vmem:[%s5892_s15 + $0x30] sm:$0xff] }
 0x41c   : > { %4519 = vmatmul.f32.gmra.mxu2 %v4466_v22 }
 0x424   : > { %4522 = vmatmul.f32.gmra.mxu2 %v4467_v48 }
 0x42c   : > { %4525 = vmatmul.f32.gmra.mxu2 %v4468_v3  ;;  %v4551_v3 = vld [vmem:[%s5892_s15 + $0x50] sm:$0xff] }
 0x434   : > { %4528 = vmatmul.f32.gmra.mxu2 %v4469_v45 }
 0x43c   : > { %4531 = vmatmul.f32.gmra.mxu2 %v4470_v57 }
 0x444   : > { %4534 = vmatmul.f32.gmra.mxu2 %v4471_v8 }
 0x44c   : > { %4537 = vmatmul.f32.gmra.mxu2 %v4472_v4 }
 0x457   : > { %v4493_v34 = vpop.f32.mrf.mxu2 }
 0x458   : > { %v4494_v17 = vadd.f32 %v8704_v24, %v4493_v34 }
 0x45a   : > { %v4557_v40 = vmul.f32 %v4541_v37, %v4494_v17  ;;  %v5576_v37 = vld [vmem:[%s8820_s13] ss:$0 sm:$0xff] }
 0x45c   : > { %4592 = vmatmul.f32.vlgmr.msrb.gmra.mxu1 %v4557_v40 }
 0x45f   : > { %v4496_v46 = vpop.f32.mrf.mxu2 }
 0x460   : > { %v4497_v58 = vadd.f32 %v8704_v24, %v4496_v46 }
 0x462   : > { %v4558_v10 = vmul.f32 %v4542_v12, %v4497_v58 }
 0x464   : > { %4595 = vmatmul.f32.gmra.mxu1 %v4558_v10 }
 0x467   : > { %v4499_v2 = vpop.f32.mrf.mxu2 }
 0x468   : > { %v4500_v51 = vadd.f32 %v8704_v24, %v4499_v2 }
 0x46a   : > { %v4559_v32 = vmul.f32 %v4543_v0, %v4500_v51 }
 0x46c   : > { %4598 = vmatmul.f32.vlgmr.msrb.gmra.mxu3 %v4559_v32 }
 0x46f   : > { %v4502_v56 = vpop.f32.mrf.mxu2 }
 0x470   : > { %v4503_v5 = vadd.f32 %v8704_v24, %v4502_v56 }
 0x472   : > { %v4560_v19 = vmul.f32 %v4544_v54, %v4503_v5 }
 0x474   : > { %4601 = vmatmul.f32.gmra.mxu3 %v4560_v19 }
 0x477   : > { %v4505_v59 = vpop.f32.mrf.mxu2 }
 0x478   : > { %v4506_v6 = vadd.f32 %v8704_v24, %v4505_v59 }
 0x47a   : > { %v4561_v38 = vmul.f32 %v4545_v49, %v4506_v6 }
 0x47c   : > { %4604 = vmatmul.f32.gmra.mxu3 %v4561_v38 }
 0x47f   : > { %v4508_v42 = vpop.f32.mrf.mxu2 }
 0x480   : > { %v4509_v28 = vadd.f32 %v8704_v24, %v4508_v42 }
 0x482   : > { %v4562_v35 = vmul.f32 %v4546_v29, %v4509_v28 }
 0x484   : > { %4607 = vmatmul.f32.gmra.mxu3 %v4562_v35 }
 0x487   : > { %v4511_v30 = vpop.f32.mrf.mxu2 }
 0x488   : > { %v4512_v13 = vadd.f32 %v8704_v24, %v4511_v30 }
 0x48a   : > { %v4563_v41 = vmul.f32 %v4547_v1, %v4512_v13 }
 0x48c   : > { %4610 = vmatmul.f32.gmra.mxu3 %v4563_v41 }
 0x48f   : > { %v4514_v22 = vpop.f32.mrf.mxu2 }
 0x490   : > { %v4515_v7 = vadd.f32 %v8704_v24, %v4514_v22 }
 0x492   : > { %v4564_v16 = vmul.f32 %v4548_v36, %v4515_v7 }
 0x494   : > { %4613 = vmatmul.f32.gmra.mxu3 %v4564_v16 }
 0x497   : > { %v4517_v39 = vpop.f32.mrf.mxu2 }
 0x498   : > { %v4518_v48 = vadd.f32 %v8704_v24, %v4517_v39 }
 0x49a   : > { %v4565_v21 = vmul.f32 %v4549_v23, %v4518_v48 }
 0x49c   : > { %4616 = vmatmul.f32.gmra.mxu3 %v4565_v21 }
 0x49f   : > { %v4520_v63 = vpop.f32.mrf.mxu2 }
 0x4a0   : > { %v4521_v55 = vadd.f32 %v8704_v24, %v4520_v63 }
 0x4a2   : > { %v4566_v9 = vmul.f32 %v4550_v26, %v4521_v55 }
 0x4a4   : > { %4619 = vmatmul.f32.gmra.mxu3 %v4566_v9 }
 0x4a7   : > { %v4523_v53 = vpop.f32.mrf.mxu2 }
 0x4a8   : > { %v4524_v18 = vadd.f32 %v8704_v24, %v4523_v53 }
 0x4aa   : > { %v4567_v44 = vmul.f32 %v4551_v3, %v4524_v18 }
 0x4ac   : > { %4622 = vmatmul.f32.gmra.mxu3 %v4567_v44 }
 0x4af   : > { %v4526_v25 = vpop.f32.mrf.mxu2 }
 0x4b0   : > { %v4527_v14 = vadd.f32 %v8704_v24, %v4526_v25 }
 0x4b2   : > { %v4568_v47 = vmul.f32 %v4552_v31, %v4527_v14 }
 0x4b4   : > { %4625 = vmatmul.f32.gmra.mxu3 %v4568_v47 }
 0x4b7   : > { %v4529_v45 = vpop.f32.mrf.mxu2 }
 0x4b8   : > { %v4530_v52 = vadd.f32 %v8704_v24, %v4529_v45 }
 0x4ba   : > { %v4569_v43 = vmul.f32 %v4553_v61, %v4530_v52 }
 0x4bc   : > { %4628 = vmatmul.f32.gmra.mxu3 %v4569_v43 }
 0x4bf   : > { %v4532_v27 = vpop.f32.mrf.mxu2 }
 0x4c0   : > { %v4533_v57 = vadd.f32 %v8704_v24, %v4532_v27 }
 0x4c2   : > { %v4570_v60 = vmul.f32 %v4554_v50, %v4533_v57 }
 0x4c4   : > { %4631 = vmatmul.f32.gmra.mxu3 %v4570_v60 }
 0x4c7   : > { %v4535_v15 = vpop.f32.mrf.mxu2 }
 0x4c8   : > { %v4536_v33 = vadd.f32 %v8704_v24, %v4535_v15 }
 0x4ca   : > { %v4571_v8 = vmul.f32 %v4555_v20, %v4536_v33 }
 0x4cc   : > { %4634 = vmatmul.f32.gmra.mxu3 %v4571_v8 }
 0x4cf   : > { %v4538_v11 = vpop.f32.mrf.mxu2 }
 0x4d0   : > { %v4539_v4 = vadd.f32 %v8704_v24, %v4538_v11 }
 0x4d2   : > { %v4572_v34 = vmul.f32 %v4556_v62, %v4539_v4 }
 0x4d4   : > { %4637 = vmatmul.f32.gmra.mxu3 %v4572_v34 }
 0x4d9   : > { %v4593_v17 = vpop.f32.mrf.mxu1 }
 0x4da   : > { %v4594_v40 = vadd.f32 %v5576_v37, %v4593_v17 }
 0x4dc   : > { %4641 = vst [vmem:[%s5892_s15] sm:$0xff] %v4594_v40 }
 0x4e1   : > { %v4596_v46 = vpop.f32.mrf.mxu1 }
 0x4e2   : > { %v4597_v12 = vadd.f32 %v5576_v37, %v4596_v46 }
 0x4e3   : > { %v4724_v23 = vld [vmem:[%s5892_s15] sm:$0xff] (%p5797_p5) }
 0x4e4   : > { %4642 = vst [vmem:[%s5892_s15 + $0x8] sm:$0xff] %v4597_v12 }
 0x4e5   : > { %4725 = vst [vmem:[%s8763_s24] sm:$0xff] (%p5797_p5), %v4724_v23 }
 0x4eb   : > { %v4726_v48 = vld [vmem:[%s5892_s15 + $0x8] sm:$0xff] (%p5797_p5) }
 0x4ec   : > { %4727 = vst [vmem:[%s8763_s24 + $0x10] sm:$0xff] (%p5797_p5), %v4726_v48 }
 0x4ef   : > { %v4599_v58 = vpop.f32.mrf.mxu3 }
 0x4f0   : > { %v4600_v10 = vadd.f32 %v5576_v37, %v4599_v58 }
 0x4f2   : > { %4643 = vst [vmem:[%s5892_s15 + $0x10] sm:$0xff] %v4600_v10 }
 0x4f7   : > { %v4602_v24 = vpop.f32.mrf.mxu3 }
 0x4f8   : > { %v4603_v2 = vadd.f32 %v5576_v37, %v4602_v24 }
 0x4f9   : > { %v4728_v21 = vld [vmem:[%s5892_s15 + $0x10] sm:$0xff] (%p5797_p5) }
 0x4fa   : > { %4644 = vst [vmem:[%s5892_s15 + $0x18] sm:$0xff] %v4603_v2 }
 0x4fb   : > { %4729 = vst [vmem:[%s8763_s24 + $0x20] sm:$0xff] (%p5797_p5), %v4728_v21 }
 0x4ff   : > { %v4605_v0 = vpop.f32.mrf.mxu3 }
 0x500   : > { %v4606_v51 = vadd.f32 %v5576_v37, %v4605_v0 }
 0x501   : > { %v4730_v63 = vld [vmem:[%s5892_s15 + $0x18] sm:$0xff] (%p5797_p5) }
 0x502   : > { %4645 = vst [vmem:[%s5892_s15 + $0x20] sm:$0xff] %v4606_v51 }
 0x503   : > { %4731 = vst [vmem:[%s8763_s24 + $0x30] sm:$0xff] (%p5797_p5), %v4730_v63 }
 0x507   : > { %v4608_v32 = vpop.f32.mrf.mxu3 }
 0x508   : > { %v4609_v56 = vadd.f32 %v5576_v37, %v4608_v32 }
 0x509   : > { %v4732_v26 = vld [vmem:[%s5892_s15 + $0x20] sm:$0xff] (%p5797_p5) }
 0x50a   : > { %4646 = vst [vmem:[%s5892_s15 + $0x28] sm:$0xff] %v4609_v56 }
 0x50b   : > { %4733 = vst [vmem:[%s8763_s24 + $0x40] sm:$0xff] (%p5797_p5), %v4732_v26 }
 0x50f   : > { %v4611_v54 = vpop.f32.mrf.mxu3 }
 0x510   : > { %v4612_v5 = vadd.f32 %v5576_v37, %v4611_v54 }
 0x511   : > { %v4734_v55 = vld [vmem:[%s5892_s15 + $0x28] sm:$0xff] (%p5797_p5) }
 0x512   : > { %4647 = vst [vmem:[%s5892_s15 + $0x30] sm:$0xff] %v4612_v5 }
 0x513   : > { %4735 = vst [vmem:[%s8763_s24 + $0x50] sm:$0xff] (%p5797_p5), %v4734_v55 }
 0x517   : > { %v4614_v19 = vpop.f32.mrf.mxu3 }
 0x518   : > { %v4615_v59 = vadd.f32 %v5576_v37, %v4614_v19 }
 0x519   : > { %v4736_v9 = vld [vmem:[%s5892_s15 + $0x30] sm:$0xff] (%p5797_p5) }
 0x51a   : > { %4648 = vst [vmem:[%s5892_s15 + $0x38] sm:$0xff] %v4615_v59 }
 0x51b   : > { %4737 = vst [vmem:[%s8763_s24 + $0x60] sm:$0xff] (%p5797_p5), %v4736_v9 }
 0x51f   : > { %v4617_v49 = vpop.f32.mrf.mxu3 }
 0x520   : > { %v4618_v6 = vadd.f32 %v5576_v37, %v4617_v49 }
 0x521   : > { %v4738_v53 = vld [vmem:[%s5892_s15 + $0x38] sm:$0xff] (%p5797_p5) }
 0x522   : > { %4649 = vst [vmem:[%s5892_s15 + $0x40] sm:$0xff] %v4618_v6 }
 0x523   : > { %4739 = vst [vmem:[%s8763_s24 + $0x70] sm:$0xff] (%p5797_p5), %v4738_v53 }
 0x527   : > { %v4620_v38 = vpop.f32.mrf.mxu3 }
 0x528   : > { %v4621_v42 = vadd.f32 %v5576_v37, %v4620_v38 }
 0x529   : > { %v4740_v3 = vld [vmem:[%s5892_s15 + $0x40] sm:$0xff] (%p5797_p5) }
 0x52a   : > { %4650 = vst [vmem:[%s5892_s15 + $0x48] sm:$0xff] %v4621_v42 }
 0x52b   : > { %4741 = vst [vmem:[%s8763_s24 + $0x80] sm:$0xff] (%p5797_p5), %v4740_v3 }
 0x52f   : > { %v4623_v29 = vpop.f32.mrf.mxu3 }
 0x530   : > { %v4624_v28 = vadd.f32 %v5576_v37, %v4623_v29 }
 0x531   : > { %v4742_v18 = vld [vmem:[%s5892_s15 + $0x48] sm:$0xff] (%p5797_p5) }
 0x532   : > { %4651 = vst [vmem:[%s5892_s15 + $0x50] sm:$0xff] %v4624_v28 }
 0x533   : > { %4743 = vst [vmem:[%s8763_s24 + $0x90] sm:$0xff] (%p5797_p5), %v4742_v18 }
 0x537   : > { %v4626_v35 = vpop.f32.mrf.mxu3 }
 0x538   : > { %v4627_v30 = vadd.f32 %v5576_v37, %v4626_v35 }
 0x539   : > { %v4744_v44 = vld [vmem:[%s5892_s15 + $0x50] sm:$0xff] (%p5797_p5) }
 0x53a   : > { %4652 = vst [vmem:[%s5892_s15 + $0x58] sm:$0xff] %v4627_v30 }
 0x53b   : > { %4745 = vst [vmem:[%s8763_s24 + $0xa0] sm:$0xff] (%p5797_p5), %v4744_v44 }
 0x53f   : > { %v4629_v1 = vpop.f32.mrf.mxu3 }
 0x540   : > { %v4630_v13 = vadd.f32 %v5576_v37, %v4629_v1 }
 0x541   : > { %v4746_v25 = vld [vmem:[%s5892_s15 + $0x58] sm:$0xff] (%p5797_p5) }
 0x542   : > { %4653 = vst [vmem:[%s5892_s15 + $0x60] sm:$0xff] %v4630_v13 }
 0x543   : > { %4747 = vst [vmem:[%s8763_s24 + $0xb0] sm:$0xff] (%p5797_p5), %v4746_v25 }
 0x547   : > { %v4632_v41 = vpop.f32.mrf.mxu3 }
 0x548   : > { %v4633_v22 = vadd.f32 %v5576_v37, %v4632_v41 }
 0x549   : > { %v4748_v31 = vld [vmem:[%s5892_s15 + $0x60] sm:$0xff] (%p5797_p5) }
 0x54a   : > { %4654 = vst [vmem:[%s5892_s15 + $0x68] sm:$0xff] %v4633_v22 }
 0x54b   : > { %4749 = vst [vmem:[%s8763_s24 + $0xc0] sm:$0xff] (%p5797_p5), %v4748_v31 }
 0x54f   : > { %v4635_v36 = vpop.f32.mrf.mxu3 }
 0x550   : > { %v4636_v7 = vadd.f32 %v5576_v37, %v4635_v36 }
 0x551   : > { %v4750_v14 = vld [vmem:[%s5892_s15 + $0x68] sm:$0xff] (%p5797_p5) }
 0x552   : > { %4655 = vst [vmem:[%s5892_s15 + $0x70] sm:$0xff] %v4636_v7 }
 0x553   : > { %4751 = vst [vmem:[%s8763_s24 + $0xd0] sm:$0xff] (%p5797_p5), %v4750_v14 }
 0x556   : > { %4663 = sbr.rel (!%p5797_p5) target bundleno = 1379 (0x563), region = 154 }
 0x557   : > { %v4638_v16 = vpop.f32.mrf.mxu3 }
 0x558   : > { %v4639_v39 = vadd.f32 %v5576_v37, %v4638_v16 }
 0x559   : > { %v4752_v47 = vld [vmem:[%s5892_s15 + $0x70] sm:$0xff] (%p5797_p5) }
 0x55a   : > { %4656 = vst [vmem:[%s5892_s15 + $0x78] sm:$0xff] %v4639_v39 }
 0x55b   : > { %4753 = vst [vmem:[%s8763_s24 + $0xe0] sm:$0xff] %v4752_v47 }
 0x561   : > { %v4754_v45 = vld [vmem:[%s5892_s15 + $0x78] sm:$0xff] }
 0x562   : > { %4755 = vst [vmem:[%s8763_s24 + $0xf0] sm:$0xff] %v4754_v45 }
 0x563 PF: > { %p21_p13 = scmp.ge.s32.totalorder %s5784_s17, 4   ;;  %s8937_s29 = smov %s5641_s30 }
 0x564   : > { %s8938_s30 = smov %s5795_s20  ;;  %s8939_s15 = smov %s5784_s17 }
 0x565   :  { %23 = sbr.rel (!%p21_p13) target bundleno = 7 (0x7), region = 399 }
 0x56a   :  { %4771 = vsyncmov [#allocation4] }
 0x56d   :  { %s4772_s21 = vpop.sfrf %4771 }
 0x56e   :  { %p5073_p0 = scmp.ne.s32.totalorder %s4772_s21, 0 }
 0x570   :  { %4776 = shalt.err (%p5073_p0)  }

</bundles_post_ra>
